<compile_context>
chip_gen: v5e
topology: v5e:2x2
jax: 0.10.0
libtpu: 0.0.40
codegen_flags: <defaults>
</compile_context>

<pallas_src>
import numpy as np
import jax
import jax.numpy as jnp
from jax.experimental import pallas as pl
from jax.experimental.pallas import tpu as pltpu

C1, C2, DENSE = 32, 64, 256            # conv1/conv2/dense1 widths (fixed by RedQ)
W3_CHUNKS = 4                          # w3 streamed HBM->VMEM in this many chunks
DENSE1_ACCS = 8                        # independent accumulator chains in dense1


def redq_forward(x, kernel_params, num_actions):
    """x: (B, H, W, C) float32 NHWC.  Returns (B, num_actions) Q-values."""
    w1, b1, w2, b2, w3, b3, w4p, b4p = kernel_params
    B, H, W, C = x.shape
    HW = H * W
    N = B * HW                          # conv matmul rows, hw-major (b fastest)
    A_pad = w4p.shape[1]                # output head already padded to 128 lanes
    taps = [(kh - 1, kw - 1) for kh in range(3) for kw in range(3)]
    assert HW % W3_CHUNKS == 0 and HW % DENSE1_ACCS == 0
    chunk = HW // W3_CHUNKS

    # ---- conv1 im2col (tiny, wrapper-side layout plumbing) ------------------
    xt = jnp.transpose(x, (1, 2, 0, 3))                        # (H, W, B, C)
    xp = jnp.pad(xt, ((1, 1), (1, 1), (0, 0), (0, 0)))
    patches1 = jnp.concatenate(
        [xp[kh:kh + H, kw:kw + W].reshape(N, C)
         for kh in range(3) for kw in range(3)],
        axis=-1).astype(jnp.bfloat16)                          # (N, 9*C)

    # ---- per-tap border masks, pre-broadcast to (9, N, C1) ------------------
    # (trace-time numpy constants; zero exactly the rolled-tap rows that would
    #  cross the image border / wrap around the row-major grid)
    hw = np.arange(HW)
    hh, ww = hw // W, hw % W
    mask_np = np.zeros((9, N, C1), np.float32)
    for t, (dh, dw) in enumerate(taps):
        valid = ((hh + dh >= 0) & (hh + dh < H) &
                 (ww + dw >= 0) & (ww + dw < W)).astype(np.float32)
        mask_np[t] = np.repeat(valid, B)[:, None]              # hw-major, b fastest
    masks = jnp.asarray(mask_np).astype(jnp.bfloat16)

    def kernel(p1_ref, m_ref, w1_ref, b1_ref, w2_ref, b2_ref, w3_hbm_ref,
               b3_ref, w4_ref, b4_ref, o_ref, w3_vmem, w3_sem):
        f32, bf16 = jnp.float32, jnp.bfloat16

        # Kick off the w3 HBM->VMEM stream first so it overlaps conv1/conv2
        # (and the earlier dense1 chunks).
        w3_copies = []
        for c in range(W3_CHUNKS):
            cp = pltpu.make_async_copy(
                w3_hbm_ref.at[c * chunk:(c + 1) * chunk],
                w3_vmem.at[c * chunk:(c + 1) * chunk],
                w3_sem.at[c])
            cp.start()
            w3_copies.append(cp)

        # conv1 + ReLU: one (N, 9C) x (9C, C1) MXU matmul.
        h1 = jnp.dot(p1_ref[...], w1_ref[...], preferred_element_type=f32)
        h1 = jnp.maximum(h1 + b1_ref[...], 0.0)                # (N, C1) f32

        # conv2 + ReLU: each of the 9 taps is a static sublane roll of h1
        # (XLU slot, idle otherwise), masked at the border with a
        # pre-broadcast mask, fed to its own (N,C1)x(C1,C2) matmul and summed
        # on two independent accumulator chains.  No scratch, no masked
        # partial-lane stores, no misaligned window reads.
        acc_a = jnp.zeros((N, C2), f32)
        acc_b = jnp.zeros((N, C2), f32)
        for t, (dh, dw) in enumerate(taps):
            s = (dh * W + dw) * B                              # row shift of this tap
            src = h1 if s == 0 else pltpu.roll(h1, shift=(-s) % N, axis=0)
            piece = src.astype(bf16)
            if not (dh == 0 and dw == 0):                      # center tap: all valid
                piece = piece * m_ref[t]
            contrib = jnp.dot(piece, w2_ref[t], preferred_element_type=f32)
            if t % 2 == 0:
                acc_a = acc_a + contrib
            else:
                acc_b = acc_b + contrib
        h2 = jnp.maximum(acc_a + acc_b + b2_ref[...], 0.0)     # (N, C2) f32

        # dense1 + ReLU.  Logically (B, HW*C2) @ (HW*C2, 256); computed as HW
        # (B, C2) x (C2, 256) MXU dots (each hw block is a contiguous row
        # slice of h2) on DENSE1_ACCS independent accumulator chains, so the
        # MXU pipelines instead of waiting on each result.  w3 chunks are
        # waited on just-in-time as the loop crosses chunk boundaries.
        accs = [jnp.zeros((B, DENSE), f32) for _ in range(DENSE1_ACCS)]
        for i in range(HW):
            if i % chunk == 0:
                w3_copies[i // chunk].wait()
            blk = h2[i * B:(i + 1) * B, :].astype(bf16)        # (B, C2)
            accs[i % DENSE1_ACCS] = accs[i % DENSE1_ACCS] + jnp.dot(
                blk, w3_vmem[i], preferred_element_type=f32)
        while len(accs) > 1:                                   # tree-sum the chains
            accs = [accs[j] + accs[j + 1] for j in range(0, len(accs), 2)]
        h3 = jnp.maximum(accs[0] + b3_ref[...], 0.0)           # (B, 256)

        # dense2 (output columns padded to 128 lanes -> lane-dense store).
        o_ref[...] = jnp.dot(h3.astype(bf16), w4_ref[...],
                             preferred_element_type=f32) + b4_ref[...]

    vmem = pltpu.MemorySpace.VMEM
    out = pl.pallas_call(
        kernel,
        out_shape=jax.ShapeDtypeStruct((B, A_pad), jnp.float32),
        in_specs=[pl.BlockSpec(memory_space=vmem)] * 6          # patches1..b2
                 + [pl.BlockSpec(memory_space=pl.ANY)]          # w3 stays in HBM
                 + [pl.BlockSpec(memory_space=vmem)] * 3,       # b3, w4, b4
        out_specs=pl.BlockSpec(memory_space=vmem),
        scratch_shapes=[
            pltpu.VMEM((HW, C2, DENSE), jnp.bfloat16),          # staged w3
            pltpu.SemaphoreType.DMA((W3_CHUNKS,)),
        ],
    )(patches1, masks, w1, b1, w2, b2, w3, b3, w4p, b4p)
    # NOTE: no grid -> single TensorCore; at B=2 / 8x8 spatial the problem is
    # far too small for a second v7x core or grid pipelining to pay off.
    return out[:, :num_actions]


# ---------------------------------------------------------------------------
# Deterministic synthetic parameters (PyTorch shapes) + one-time conversion to
# the layouts the kernel expects (bf16 weights, f32 biases, padded head).
# ---------------------------------------------------------------------------
def init_params(key, H, W, C, A):
    ks = jax.random.split(key, 8)
    s = 0.1
    w1_pt = jax.random.normal(ks[0], (C1, C, 3, 3), jnp.float32) * s       # OIHW
    b1_pt = jax.random.normal(ks[1], (C1,), jnp.float32) * s
    w2_pt = jax.random.normal(ks[2], (C2, C1, 3, 3), jnp.float32) * s
    b2_pt = jax.random.normal(ks[3], (C2,), jnp.float32) * s
    w3_pt = jax.random.normal(ks[4], (DENSE, C2 * H * W), jnp.float32) * (s / 8)
    b3_pt = jax.random.normal(ks[5], (DENSE,), jnp.float32) * s
    w4_pt = jax.random.normal(ks[6], (A, DENSE), jnp.float32) * s
    b4_pt = jax.random.normal(ks[7], (A,), jnp.float32) * s
    pt = (w1_pt, b1_pt, w2_pt, b2_pt, w3_pt, b3_pt, w4_pt, b4_pt)

    bf16 = jnp.bfloat16
    A_pad = ((A + 127) // 128) * 128
    # Conv weights: OIHW -> tap-major im2col layout.
    w1 = jnp.transpose(w1_pt, (2, 3, 1, 0)).reshape(9 * C, C1).astype(bf16)
    w2 = jnp.transpose(w2_pt, (2, 3, 1, 0)).reshape(9, C1, C2).astype(bf16)
    # PyTorch flatten index = c2*H*W + hw; kernel uses w3[hw, c2, :].
    w3 = jnp.transpose(w3_pt.reshape(DENSE, C2, H * W), (2, 1, 0)).astype(bf16)
    # Output head padded to 128 lanes ONCE here (static across RL steps).
    w4p = jnp.pad(jnp.transpose(w4_pt), ((0, 0), (0, A_pad - A))).astype(bf16)
    b4p = jnp.pad(b4_pt.reshape(1, A), ((0, 0), (0, A_pad - A)))
    kern = (w1, b1_pt.reshape(1, C1), w2, b2_pt.reshape(1, C2),
            w3, b3_pt.reshape(1, DENSE), w4p, b4p)
    return pt, kern


def redq_reference(x, pt_params):
    """Pure-JAX f32 mirror of the PyTorch forward (for correctness check)."""
    w1, b1, w2, b2, w3, b3, w4, b4 = pt_params

    def conv(h, w_oihw, b):
        w_hwio = jnp.transpose(w_oihw, (2, 3, 1, 0))
        y = jax.lax.conv_general_dilated(
            h, w_hwio, window_strides=(1, 1), padding="SAME",
            dimension_numbers=("NHWC", "HWIO", "NHWC"))
        return jax.nn.relu(y + b)

    h = conv(x, w1, b1)
    h = conv(h, w2, b2)
    h = jnp.transpose(h, (0, 3, 1, 2)).reshape(x.shape[0], -1)  # NCHW flatten
    h = jax.nn.relu(h @ w3.T + b3)
    return h @ w4.T + b4


if __name__ == "__main__":
    # forma_entrada = [8, 8, 4], num_acciones = 4, batch = 2
    B, H, W, C, A = 2, 8, 8, 4, 4
    key = jax.random.PRNGKey(0)
    k_x, k_p = jax.random.split(key)
    x = jax.random.normal(k_x, (B, H, W, C), jnp.float32)
    pt_params, kern_params = init_params(k_p, H, W, C, A)

    fwd = jax.jit(redq_forward, static_argnames=("num_actions",))
    out = jax.block_until_ready(fwd(x, kern_params, A))

    ref = redq_reference(x, pt_params)
    assert out.shape == (B, A)
    # bf16 matmul operands (f32 accumulation) -> slightly looser tolerance than
    # the pure-f32 reference would need.
    assert jnp.allclose(out, ref, atol=3e-2, rtol=3e-2), (out, ref)
    print("KERNEL_OK")
</pallas_src>

<mosaic_0001>
module attributes {stable_mosaic.version = 11 : i64} {
  func.func @kernel(%arg0: memref<128x36xbf16, #tpu.memory_space<vmem>>, %arg1: memref<9x128x32xbf16, #tpu.memory_space<vmem>>, %arg2: memref<36x32xbf16, #tpu.memory_space<vmem>>, %arg3: memref<1x32xf32, #tpu.memory_space<vmem>>, %arg4: memref<9x32x64xbf16, #tpu.memory_space<vmem>>, %arg5: memref<1x64xf32, #tpu.memory_space<vmem>>, %arg6: memref<64x64x256xbf16, #tpu.memory_space<any>>, %arg7: memref<1x256xf32, #tpu.memory_space<vmem>>, %arg8: memref<256x128xbf16, #tpu.memory_space<vmem>>, %arg9: memref<1x128xf32, #tpu.memory_space<vmem>>, %arg10: memref<2x128xf32, #tpu.memory_space<vmem>>, %arg11: memref<64x64x256xbf16, #tpu.memory_space<vmem>>, %arg12: memref<4x!tpu.dma_semaphore, #tpu.memory_space<semaphore_mem>>) attributes {dimension_semantics = [], scalar_prefetch = 0 : i64, scratch_operands = 2 : i64, tpu.core_type = #tpu.core_type<tc>} {
    %c0_i32 = arith.constant 0 : i32
    %c0_i32_0 = arith.constant 0 : i32
    %c0_i32_1 = arith.constant 0 : i32
    %c0_i32_2 = arith.constant 0 : i32
    %0 = tpu.memref_slice %arg6[%c0_i32_0, %c0_i32_1, %c0_i32_2] : memref<64x64x256xbf16, #tpu.memory_space<any>> -> memref<16x64x256xbf16, #tpu.memory_space<any>>
    %c0_i32_3 = arith.constant 0 : i32
    %c0_i32_4 = arith.constant 0 : i32
    %c0_i32_5 = arith.constant 0 : i32
    %1 = tpu.memref_slice %arg11[%c0_i32_3, %c0_i32_4, %c0_i32_5] : memref<64x64x256xbf16, #tpu.memory_space<vmem>> -> memref<16x64x256xbf16, #tpu.memory_space<vmem>>
    %2 = tpu.memref_slice %arg12[%c0_i32] : memref<4x!tpu.dma_semaphore, #tpu.memory_space<semaphore_mem>> -> memref<1x!tpu.dma_semaphore, #tpu.memory_space<semaphore_mem>>
    %3 = tpu.memref_squeeze %2 : memref<1x!tpu.dma_semaphore, #tpu.memory_space<semaphore_mem>> -> memref<!tpu.dma_semaphore, #tpu.memory_space<semaphore_mem>>
    tpu.enqueue_dma source(%0 : memref<16x64x256xbf16, #tpu.memory_space<any>>) target(%1 : memref<16x64x256xbf16, #tpu.memory_space<vmem>>) target_semaphore(%3 : memref<!tpu.dma_semaphore, #tpu.memory_space<semaphore_mem>>)
    %c1_i32 = arith.constant 1 : i32
    %c16_i32 = arith.constant 16 : i32
    %c0_i32_6 = arith.constant 0 : i32
    %c0_i32_7 = arith.constant 0 : i32
    %4 = tpu.memref_slice %arg6[%c16_i32, %c0_i32_6, %c0_i32_7] : memref<64x64x256xbf16, #tpu.memory_space<any>> -> memref<16x64x256xbf16, #tpu.memory_space<any>>
    %c16_i32_8 = arith.constant 16 : i32
    %c0_i32_9 = arith.constant 0 : i32
    %c0_i32_10 = arith.constant 0 : i32
    %5 = tpu.memref_slice %arg11[%c16_i32_8, %c0_i32_9, %c0_i32_10] : memref<64x64x256xbf16, #tpu.memory_space<vmem>> -> memref<16x64x256xbf16, #tpu.memory_space<vmem>>
    %6 = tpu.memref_slice %arg12[%c1_i32] : memref<4x!tpu.dma_semaphore, #tpu.memory_space<semaphore_mem>> -> memref<1x!tpu.dma_semaphore, #tpu.memory_space<semaphore_mem>>
    %7 = tpu.memref_squeeze %6 : memref<1x!tpu.dma_semaphore, #tpu.memory_space<semaphore_mem>> -> memref<!tpu.dma_semaphore, #tpu.memory_space<semaphore_mem>>
    tpu.enqueue_dma source(%4 : memref<16x64x256xbf16, #tpu.memory_space<any>>) target(%5 : memref<16x64x256xbf16, #tpu.memory_space<vmem>>) target_semaphore(%7 : memref<!tpu.dma_semaphore, #tpu.memory_space<semaphore_mem>>)
    %c2_i32 = arith.constant 2 : i32
    %c32_i32 = arith.constant 32 : i32
    %c0_i32_11 = arith.constant 0 : i32
    %c0_i32_12 = arith.constant 0 : i32
    %8 = tpu.memref_slice %arg6[%c32_i32, %c0_i32_11, %c0_i32_12] : memref<64x64x256xbf16, #tpu.memory_space<any>> -> memref<16x64x256xbf16, #tpu.memory_space<any>>
    %c32_i32_13 = arith.constant 32 : i32
    %c0_i32_14 = arith.constant 0 : i32
    %c0_i32_15 = arith.constant 0 : i32
    %9 = tpu.memref_slice %arg11[%c32_i32_13, %c0_i32_14, %c0_i32_15] : memref<64x64x256xbf16, #tpu.memory_space<vmem>> -> memref<16x64x256xbf16, #tpu.memory_space<vmem>>
    %10 = tpu.memref_slice %arg12[%c2_i32] : memref<4x!tpu.dma_semaphore, #tpu.memory_space<semaphore_mem>> -> memref<1x!tpu.dma_semaphore, #tpu.memory_space<semaphore_mem>>
    %11 = tpu.memref_squeeze %10 : memref<1x!tpu.dma_semaphore, #tpu.memory_space<semaphore_mem>> -> memref<!tpu.dma_semaphore, #tpu.memory_space<semaphore_mem>>
    tpu.enqueue_dma source(%8 : memref<16x64x256xbf16, #tpu.memory_space<any>>) target(%9 : memref<16x64x256xbf16, #tpu.memory_space<vmem>>) target_semaphore(%11 : memref<!tpu.dma_semaphore, #tpu.memory_space<semaphore_mem>>)
    %c3_i32 = arith.constant 3 : i32
    %c48_i32 = arith.constant 48 : i32
    %c0_i32_16 = arith.constant 0 : i32
    %c0_i32_17 = arith.constant 0 : i32
    %12 = tpu.memref_slice %arg6[%c48_i32, %c0_i32_16, %c0_i32_17] : memref<64x64x256xbf16, #tpu.memory_space<any>> -> memref<16x64x256xbf16, #tpu.memory_space<any>>
    %c48_i32_18 = arith.constant 48 : i32
    %c0_i32_19 = arith.constant 0 : i32
    %c0_i32_20 = arith.constant 0 : i32
    %13 = tpu.memref_slice %arg11[%c48_i32_18, %c0_i32_19, %c0_i32_20] : memref<64x64x256xbf16, #tpu.memory_space<vmem>> -> memref<16x64x256xbf16, #tpu.memory_space<vmem>>
    %14 = tpu.memref_slice %arg12[%c3_i32] : memref<4x!tpu.dma_semaphore, #tpu.memory_space<semaphore_mem>> -> memref<1x!tpu.dma_semaphore, #tpu.memory_space<semaphore_mem>>
    %15 = tpu.memref_squeeze %14 : memref<1x!tpu.dma_semaphore, #tpu.memory_space<semaphore_mem>> -> memref<!tpu.dma_semaphore, #tpu.memory_space<semaphore_mem>>
    tpu.enqueue_dma source(%12 : memref<16x64x256xbf16, #tpu.memory_space<any>>) target(%13 : memref<16x64x256xbf16, #tpu.memory_space<vmem>>) target_semaphore(%15 : memref<!tpu.dma_semaphore, #tpu.memory_space<semaphore_mem>>)
    %c0 = arith.constant 0 : index
    %c0_21 = arith.constant 0 : index
    %16 = vector.load %arg0[%c0, %c0_21] : memref<128x36xbf16, #tpu.memory_space<vmem>>, vector<128x36xbf16>
    %c0_22 = arith.constant 0 : index
    %c0_23 = arith.constant 0 : index
    %17 = vector.load %arg2[%c0_22, %c0_23] : memref<36x32xbf16, #tpu.memory_space<vmem>>, vector<36x32xbf16>
    %cst = arith.constant dense<0.000000e+00> : vector<128x32xf32>
    %18 = tpu.matmul %16, %17, %cst {dimension_numbers = #tpu.dot_dimension_numbers<[1], [0], [0], [1], [0, 0, 1, 1], [], []>} : vector<128x36xbf16>, vector<36x32xbf16>, vector<128x32xf32> -> vector<128x32xf32>
    %c0_24 = arith.constant 0 : index
    %c0_25 = arith.constant 0 : index
    %19 = vector.load %arg3[%c0_24, %c0_25] : memref<1x32xf32, #tpu.memory_space<vmem>>, vector<1x32xf32>
    %20 = vector.broadcast %19 : vector<1x32xf32> to vector<128x32xf32>
    %21 = arith.addf %18, %20 : vector<128x32xf32>
    %cst_26 = arith.constant 0.000000e+00 : f32
    %22 = vector.broadcast %cst_26 : f32 to vector<128x32xf32>
    %23 = arith.maximumf %21, %22 : vector<128x32xf32>
    %cst_27 = arith.constant 0.000000e+00 : f32
    %24 = vector.broadcast %cst_27 : f32 to vector<128x64xf32>
    %cst_28 = arith.constant 0.000000e+00 : f32
    %25 = vector.broadcast %cst_28 : f32 to vector<128x64xf32>
    %c18_i32 = arith.constant 18 : i32
    %26 = tpu.dynamic_rotate %23 by %c18_i32 dim 0 : vector<128x32xf32>, i32 -> vector<128x32xf32>
    %27 = arith.truncf %26 : vector<128x32xf32> to vector<128x32xbf16>
    %c0_29 = arith.constant 0 : index
    %c0_30 = arith.constant 0 : index
    %c0_31 = arith.constant 0 : index
    %28 = vector.load %arg1[%c0_29, %c0_30, %c0_31] : memref<9x128x32xbf16, #tpu.memory_space<vmem>>, vector<1x128x32xbf16>
    %29 = vector.shape_cast %28 : vector<1x128x32xbf16> to vector<128x32xbf16>
    %30 = arith.mulf %27, %29 : vector<128x32xbf16>
    %c0_32 = arith.constant 0 : index
    %c0_33 = arith.constant 0 : index
    %c0_34 = arith.constant 0 : index
    %31 = vector.load %arg4[%c0_32, %c0_33, %c0_34] : memref<9x32x64xbf16, #tpu.memory_space<vmem>>, vector<1x32x64xbf16>
    %32 = vector.shape_cast %31 : vector<1x32x64xbf16> to vector<32x64xbf16>
    %cst_35 = arith.constant dense<0.000000e+00> : vector<128x64xf32>
    %33 = tpu.matmul %30, %32, %cst_35 {dimension_numbers = #tpu.dot_dimension_numbers<[1], [0], [0], [1], [0, 0, 1, 1], [], []>} : vector<128x32xbf16>, vector<32x64xbf16>, vector<128x64xf32> -> vector<128x64xf32>
    %34 = arith.addf %24, %33 : vector<128x64xf32>
    %c16_i32_36 = arith.constant 16 : i32
    %35 = tpu.dynamic_rotate %23 by %c16_i32_36 dim 0 : vector<128x32xf32>, i32 -> vector<128x32xf32>
    %36 = arith.truncf %35 : vector<128x32xf32> to vector<128x32xbf16>
    %c1 = arith.constant 1 : index
    %c0_37 = arith.constant 0 : index
    %c0_38 = arith.constant 0 : index
    %37 = vector.load %arg1[%c1, %c0_37, %c0_38] : memref<9x128x32xbf16, #tpu.memory_space<vmem>>, vector<1x128x32xbf16>
    %38 = vector.shape_cast %37 : vector<1x128x32xbf16> to vector<128x32xbf16>
    %39 = arith.mulf %36, %38 : vector<128x32xbf16>
    %c1_39 = arith.constant 1 : index
    %c0_40 = arith.constant 0 : index
    %c0_41 = arith.constant 0 : index
    %40 = vector.load %arg4[%c1_39, %c0_40, %c0_41] : memref<9x32x64xbf16, #tpu.memory_space<vmem>>, vector<1x32x64xbf16>
    %41 = vector.shape_cast %40 : vector<1x32x64xbf16> to vector<32x64xbf16>
    %cst_42 = arith.constant dense<0.000000e+00> : vector<128x64xf32>
    %42 = tpu.matmul %39, %41, %cst_42 {dimension_numbers = #tpu.dot_dimension_numbers<[1], [0], [0], [1], [0, 0, 1, 1], [], []>} : vector<128x32xbf16>, vector<32x64xbf16>, vector<128x64xf32> -> vector<128x64xf32>
    %43 = arith.addf %25, %42 : vector<128x64xf32>
    %c14_i32 = arith.constant 14 : i32
    %44 = tpu.dynamic_rotate %23 by %c14_i32 dim 0 : vector<128x32xf32>, i32 -> vector<128x32xf32>
    %45 = arith.truncf %44 : vector<128x32xf32> to vector<128x32xbf16>
    %c2 = arith.constant 2 : index
    %c0_43 = arith.constant 0 : index
    %c0_44 = arith.constant 0 : index
    %46 = vector.load %arg1[%c2, %c0_43, %c0_44] : memref<9x128x32xbf16, #tpu.memory_space<vmem>>, vector<1x128x32xbf16>
    %47 = vector.shape_cast %46 : vector<1x128x32xbf16> to vector<128x32xbf16>
    %48 = arith.mulf %45, %47 : vector<128x32xbf16>
    %c2_45 = arith.constant 2 : index
    %c0_46 = arith.constant 0 : index
    %c0_47 = arith.constant 0 : index
    %49 = vector.load %arg4[%c2_45, %c0_46, %c0_47] : memref<9x32x64xbf16, #tpu.memory_space<vmem>>, vector<1x32x64xbf16>
    %50 = vector.shape_cast %49 : vector<1x32x64xbf16> to vector<32x64xbf16>
    %cst_48 = arith.constant dense<0.000000e+00> : vector<128x64xf32>
    %51 = tpu.matmul %48, %50, %cst_48 {dimension_numbers = #tpu.dot_dimension_numbers<[1], [0], [0], [1], [0, 0, 1, 1], [], []>} : vector<128x32xbf16>, vector<32x64xbf16>, vector<128x64xf32> -> vector<128x64xf32>
    %52 = arith.addf %34, %51 : vector<128x64xf32>
    %c2_i32_49 = arith.constant 2 : i32
    %53 = tpu.dynamic_rotate %23 by %c2_i32_49 dim 0 : vector<128x32xf32>, i32 -> vector<128x32xf32>
    %54 = arith.truncf %53 : vector<128x32xf32> to vector<128x32xbf16>
    %c3 = arith.constant 3 : index
    %c0_50 = arith.constant 0 : index
    %c0_51 = arith.constant 0 : index
    %55 = vector.load %arg1[%c3, %c0_50, %c0_51] : memref<9x128x32xbf16, #tpu.memory_space<vmem>>, vector<1x128x32xbf16>
    %56 = vector.shape_cast %55 : vector<1x128x32xbf16> to vector<128x32xbf16>
    %57 = arith.mulf %54, %56 : vector<128x32xbf16>
    %c3_52 = arith.constant 3 : index
    %c0_53 = arith.constant 0 : index
    %c0_54 = arith.constant 0 : index
    %58 = vector.load %arg4[%c3_52, %c0_53, %c0_54] : memref<9x32x64xbf16, #tpu.memory_space<vmem>>, vector<1x32x64xbf16>
    %59 = vector.shape_cast %58 : vector<1x32x64xbf16> to vector<32x64xbf16>
    %cst_55 = arith.constant dense<0.000000e+00> : vector<128x64xf32>
    %60 = tpu.matmul %57, %59, %cst_55 {dimension_numbers = #tpu.dot_dimension_numbers<[1], [0], [0], [1], [0, 0, 1, 1], [], []>} : vector<128x32xbf16>, vector<32x64xbf16>, vector<128x64xf32> -> vector<128x64xf32>
    %61 = arith.addf %43, %60 : vector<128x64xf32>
    %62 = arith.truncf %23 : vector<128x32xf32> to vector<128x32xbf16>
    %c4 = arith.constant 4 : index
    %c0_56 = arith.constant 0 : index
    %c0_57 = arith.constant 0 : index
    %63 = vector.load %arg4[%c4, %c0_56, %c0_57] : memref<9x32x64xbf16, #tpu.memory_space<vmem>>, vector<1x32x64xbf16>
    %64 = vector.shape_cast %63 : vector<1x32x64xbf16> to vector<32x64xbf16>
    %cst_58 = arith.constant dense<0.000000e+00> : vector<128x64xf32>
    %65 = tpu.matmul %62, %64, %cst_58 {dimension_numbers = #tpu.dot_dimension_numbers<[1], [0], [0], [1], [0, 0, 1, 1], [], []>} : vector<128x32xbf16>, vector<32x64xbf16>, vector<128x64xf32> -> vector<128x64xf32>
    %66 = arith.addf %52, %65 : vector<128x64xf32>
    %c126_i32 = arith.constant 126 : i32
    %67 = tpu.dynamic_rotate %23 by %c126_i32 dim 0 : vector<128x32xf32>, i32 -> vector<128x32xf32>
    %68 = arith.truncf %67 : vector<128x32xf32> to vector<128x32xbf16>
    %c5 = arith.constant 5 : index
    %c0_59 = arith.constant 0 : index
    %c0_60 = arith.constant 0 : index
    %69 = vector.load %arg1[%c5, %c0_59, %c0_60] : memref<9x128x32xbf16, #tpu.memory_space<vmem>>, vector<1x128x32xbf16>
    %70 = vector.shape_cast %69 : vector<1x128x32xbf16> to vector<128x32xbf16>
    %71 = arith.mulf %68, %70 : vector<128x32xbf16>
    %c5_61 = arith.constant 5 : index
    %c0_62 = arith.constant 0 : index
    %c0_63 = arith.constant 0 : index
    %72 = vector.load %arg4[%c5_61, %c0_62, %c0_63] : memref<9x32x64xbf16, #tpu.memory_space<vmem>>, vector<1x32x64xbf16>
    %73 = vector.shape_cast %72 : vector<1x32x64xbf16> to vector<32x64xbf16>
    %cst_64 = arith.constant dense<0.000000e+00> : vector<128x64xf32>
    %74 = tpu.matmul %71, %73, %cst_64 {dimension_numbers = #tpu.dot_dimension_numbers<[1], [0], [0], [1], [0, 0, 1, 1], [], []>} : vector<128x32xbf16>, vector<32x64xbf16>, vector<128x64xf32> -> vector<128x64xf32>
    %75 = arith.addf %61, %74 : vector<128x64xf32>
    %c114_i32 = arith.constant 114 : i32
    %76 = tpu.dynamic_rotate %23 by %c114_i32 dim 0 : vector<128x32xf32>, i32 -> vector<128x32xf32>
    %77 = arith.truncf %76 : vector<128x32xf32> to vector<128x32xbf16>
    %c6 = arith.constant 6 : index
    %c0_65 = arith.constant 0 : index
    %c0_66 = arith.constant 0 : index
    %78 = vector.load %arg1[%c6, %c0_65, %c0_66] : memref<9x128x32xbf16, #tpu.memory_space<vmem>>, vector<1x128x32xbf16>
    %79 = vector.shape_cast %78 : vector<1x128x32xbf16> to vector<128x32xbf16>
    %80 = arith.mulf %77, %79 : vector<128x32xbf16>
    %c6_67 = arith.constant 6 : index
    %c0_68 = arith.constant 0 : index
    %c0_69 = arith.constant 0 : index
    %81 = vector.load %arg4[%c6_67, %c0_68, %c0_69] : memref<9x32x64xbf16, #tpu.memory_space<vmem>>, vector<1x32x64xbf16>
    %82 = vector.shape_cast %81 : vector<1x32x64xbf16> to vector<32x64xbf16>
    %cst_70 = arith.constant dense<0.000000e+00> : vector<128x64xf32>
    %83 = tpu.matmul %80, %82, %cst_70 {dimension_numbers = #tpu.dot_dimension_numbers<[1], [0], [0], [1], [0, 0, 1, 1], [], []>} : vector<128x32xbf16>, vector<32x64xbf16>, vector<128x64xf32> -> vector<128x64xf32>
    %84 = arith.addf %66, %83 : vector<128x64xf32>
    %c112_i32 = arith.constant 112 : i32
    %85 = tpu.dynamic_rotate %23 by %c112_i32 dim 0 : vector<128x32xf32>, i32 -> vector<128x32xf32>
    %86 = arith.truncf %85 : vector<128x32xf32> to vector<128x32xbf16>
    %c7 = arith.constant 7 : index
    %c0_71 = arith.constant 0 : index
    %c0_72 = arith.constant 0 : index
    %87 = vector.load %arg1[%c7, %c0_71, %c0_72] : memref<9x128x32xbf16, #tpu.memory_space<vmem>>, vector<1x128x32xbf16>
    %88 = vector.shape_cast %87 : vector<1x128x32xbf16> to vector<128x32xbf16>
    %89 = arith.mulf %86, %88 : vector<128x32xbf16>
    %c7_73 = arith.constant 7 : index
    %c0_74 = arith.constant 0 : index
    %c0_75 = arith.constant 0 : index
    %90 = vector.load %arg4[%c7_73, %c0_74, %c0_75] : memref<9x32x64xbf16, #tpu.memory_space<vmem>>, vector<1x32x64xbf16>
    %91 = vector.shape_cast %90 : vector<1x32x64xbf16> to vector<32x64xbf16>
    %cst_76 = arith.constant dense<0.000000e+00> : vector<128x64xf32>
    %92 = tpu.matmul %89, %91, %cst_76 {dimension_numbers = #tpu.dot_dimension_numbers<[1], [0], [0], [1], [0, 0, 1, 1], [], []>} : vector<128x32xbf16>, vector<32x64xbf16>, vector<128x64xf32> -> vector<128x64xf32>
    %93 = arith.addf %75, %92 : vector<128x64xf32>
    %c110_i32 = arith.constant 110 : i32
    %94 = tpu.dynamic_rotate %23 by %c110_i32 dim 0 : vector<128x32xf32>, i32 -> vector<128x32xf32>
    %95 = arith.truncf %94 : vector<128x32xf32> to vector<128x32xbf16>
    %c8 = arith.constant 8 : index
    %c0_77 = arith.constant 0 : index
    %c0_78 = arith.constant 0 : index
    %96 = vector.load %arg1[%c8, %c0_77, %c0_78] : memref<9x128x32xbf16, #tpu.memory_space<vmem>>, vector<1x128x32xbf16>
    %97 = vector.shape_cast %96 : vector<1x128x32xbf16> to vector<128x32xbf16>
    %98 = arith.mulf %95, %97 : vector<128x32xbf16>
    %c8_79 = arith.constant 8 : index
    %c0_80 = arith.constant 0 : index
    %c0_81 = arith.constant 0 : index
    %99 = vector.load %arg4[%c8_79, %c0_80, %c0_81] : memref<9x32x64xbf16, #tpu.memory_space<vmem>>, vector<1x32x64xbf16>
    %100 = vector.shape_cast %99 : vector<1x32x64xbf16> to vector<32x64xbf16>
    %cst_82 = arith.constant dense<0.000000e+00> : vector<128x64xf32>
    %101 = tpu.matmul %98, %100, %cst_82 {dimension_numbers = #tpu.dot_dimension_numbers<[1], [0], [0], [1], [0, 0, 1, 1], [], []>} : vector<128x32xbf16>, vector<32x64xbf16>, vector<128x64xf32> -> vector<128x64xf32>
    %102 = arith.addf %84, %101 : vector<128x64xf32>
    %103 = arith.addf %102, %93 : vector<128x64xf32>
    %c0_83 = arith.constant 0 : index
    %c0_84 = arith.constant 0 : index
    %104 = vector.load %arg5[%c0_83, %c0_84] : memref<1x64xf32, #tpu.memory_space<vmem>>, vector<1x64xf32>
    %105 = vector.broadcast %104 : vector<1x64xf32> to vector<128x64xf32>
    %106 = arith.addf %103, %105 : vector<128x64xf32>
    %cst_85 = arith.constant 0.000000e+00 : f32
    %107 = vector.broadcast %cst_85 : f32 to vector<128x64xf32>
    %108 = arith.maximumf %106, %107 : vector<128x64xf32>
    %cst_86 = arith.constant 0.000000e+00 : f32
    %109 = vector.broadcast %cst_86 : f32 to vector<2x256xf32>
    %cst_87 = arith.constant 0.000000e+00 : f32
    %110 = vector.broadcast %cst_87 : f32 to vector<2x256xf32>
    %cst_88 = arith.constant 0.000000e+00 : f32
    %111 = vector.broadcast %cst_88 : f32 to vector<2x256xf32>
    %cst_89 = arith.constant 0.000000e+00 : f32
    %112 = vector.broadcast %cst_89 : f32 to vector<2x256xf32>
    %cst_90 = arith.constant 0.000000e+00 : f32
    %113 = vector.broadcast %cst_90 : f32 to vector<2x256xf32>
    %cst_91 = arith.constant 0.000000e+00 : f32
    %114 = vector.broadcast %cst_91 : f32 to vector<2x256xf32>
    %cst_92 = arith.constant 0.000000e+00 : f32
    %115 = vector.broadcast %cst_92 : f32 to vector<2x256xf32>
    %cst_93 = arith.constant 0.000000e+00 : f32
    %116 = vector.broadcast %cst_93 : f32 to vector<2x256xf32>
    %c0_i32_94 = arith.constant 0 : i32
    %c0_i32_95 = arith.constant 0 : i32
    %c0_i32_96 = arith.constant 0 : i32
    %c0_i32_97 = arith.constant 0 : i32
    %117 = tpu.memref_slice %arg6[%c0_i32_95, %c0_i32_96, %c0_i32_97] : memref<64x64x256xbf16, #tpu.memory_space<any>> -> memref<16x64x256xbf16, #tpu.memory_space<any>>
    %c0_i32_98 = arith.constant 0 : i32
    %c0_i32_99 = arith.constant 0 : i32
    %c0_i32_100 = arith.constant 0 : i32
    %118 = tpu.memref_slice %arg11[%c0_i32_98, %c0_i32_99, %c0_i32_100] : memref<64x64x256xbf16, #tpu.memory_space<vmem>> -> memref<16x64x256xbf16, #tpu.memory_space<vmem>>
    %119 = tpu.memref_slice %arg12[%c0_i32_94] : memref<4x!tpu.dma_semaphore, #tpu.memory_space<semaphore_mem>> -> memref<1x!tpu.dma_semaphore, #tpu.memory_space<semaphore_mem>>
    %120 = tpu.memref_squeeze %119 : memref<1x!tpu.dma_semaphore, #tpu.memory_space<semaphore_mem>> -> memref<!tpu.dma_semaphore, #tpu.memory_space<semaphore_mem>>
    tpu.wait_dma2 semaphore(%120 : memref<!tpu.dma_semaphore, #tpu.memory_space<semaphore_mem>>) src(%117 : memref<16x64x256xbf16, #tpu.memory_space<any>>) dst(%118 : memref<16x64x256xbf16, #tpu.memory_space<vmem>>)
    %121 = vector.extract_strided_slice %108 {offsets = [0, 0], sizes = [2, 64], strides = [1, 1]} : vector<128x64xf32> to vector<2x64xf32>
    %122 = arith.truncf %121 : vector<2x64xf32> to vector<2x64xbf16>
    %c0_101 = arith.constant 0 : index
    %c0_102 = arith.constant 0 : index
    %c0_103 = arith.constant 0 : index
    %123 = vector.load %arg11[%c0_101, %c0_102, %c0_103] : memref<64x64x256xbf16, #tpu.memory_space<vmem>>, vector<1x64x256xbf16>
    %124 = vector.shape_cast %123 : vector<1x64x256xbf16> to vector<64x256xbf16>
    %cst_104 = arith.constant dense<0.000000e+00> : vector<2x256xf32>
    %125 = tpu.matmul %122, %124, %cst_104 {dimension_numbers = #tpu.dot_dimension_numbers<[1], [0], [0], [1], [0, 0, 1, 1], [], []>} : vector<2x64xbf16>, vector<64x256xbf16>, vector<2x256xf32> -> vector<2x256xf32>
    %126 = arith.addf %109, %125 : vector<2x256xf32>
    %127 = vector.extract_strided_slice %108 {offsets = [2, 0], sizes = [2, 64], strides = [1, 1]} : vector<128x64xf32> to vector<2x64xf32>
    %128 = arith.truncf %127 : vector<2x64xf32> to vector<2x64xbf16>
    %c1_105 = arith.constant 1 : index
    %c0_106 = arith.constant 0 : index
    %c0_107 = arith.constant 0 : index
    %129 = vector.load %arg11[%c1_105, %c0_106, %c0_107] : memref<64x64x256xbf16, #tpu.memory_space<vmem>>, vector<1x64x256xbf16>
    %130 = vector.shape_cast %129 : vector<1x64x256xbf16> to vector<64x256xbf16>
    %cst_108 = arith.constant dense<0.000000e+00> : vector<2x256xf32>
    %131 = tpu.matmul %128, %130, %cst_108 {dimension_numbers = #tpu.dot_dimension_numbers<[1], [0], [0], [1], [0, 0, 1, 1], [], []>} : vector<2x64xbf16>, vector<64x256xbf16>, vector<2x256xf32> -> vector<2x256xf32>
    %132 = arith.addf %110, %131 : vector<2x256xf32>
    %133 = vector.extract_strided_slice %108 {offsets = [4, 0], sizes = [2, 64], strides = [1, 1]} : vector<128x64xf32> to vector<2x64xf32>
    %134 = arith.truncf %133 : vector<2x64xf32> to vector<2x64xbf16>
    %c2_109 = arith.constant 2 : index
    %c0_110 = arith.constant 0 : index
    %c0_111 = arith.constant 0 : index
    %135 = vector.load %arg11[%c2_109, %c0_110, %c0_111] : memref<64x64x256xbf16, #tpu.memory_space<vmem>>, vector<1x64x256xbf16>
    %136 = vector.shape_cast %135 : vector<1x64x256xbf16> to vector<64x256xbf16>
    %cst_112 = arith.constant dense<0.000000e+00> : vector<2x256xf32>
    %137 = tpu.matmul %134, %136, %cst_112 {dimension_numbers = #tpu.dot_dimension_numbers<[1], [0], [0], [1], [0, 0, 1, 1], [], []>} : vector<2x64xbf16>, vector<64x256xbf16>, vector<2x256xf32> -> vector<2x256xf32>
    %138 = arith.addf %111, %137 : vector<2x256xf32>
    %139 = vector.extract_strided_slice %108 {offsets = [6, 0], sizes = [2, 64], strides = [1, 1]} : vector<128x64xf32> to vector<2x64xf32>
    %140 = arith.truncf %139 : vector<2x64xf32> to vector<2x64xbf16>
    %c3_113 = arith.constant 3 : index
    %c0_114 = arith.constant 0 : index
    %c0_115 = arith.constant 0 : index
    %141 = vector.load %arg11[%c3_113, %c0_114, %c0_115] : memref<64x64x256xbf16, #tpu.memory_space<vmem>>, vector<1x64x256xbf16>
    %142 = vector.shape_cast %141 : vector<1x64x256xbf16> to vector<64x256xbf16>
    %cst_116 = arith.constant dense<0.000000e+00> : vector<2x256xf32>
    %143 = tpu.matmul %140, %142, %cst_116 {dimension_numbers = #tpu.dot_dimension_numbers<[1], [0], [0], [1], [0, 0, 1, 1], [], []>} : vector<2x64xbf16>, vector<64x256xbf16>, vector<2x256xf32> -> vector<2x256xf32>
    %144 = arith.addf %112, %143 : vector<2x256xf32>
    %145 = vector.extract_strided_slice %108 {offsets = [8, 0], sizes = [2, 64], strides = [1, 1]} : vector<128x64xf32> to vector<2x64xf32>
    %146 = arith.truncf %145 : vector<2x64xf32> to vector<2x64xbf16>
    %c4_117 = arith.constant 4 : index
    %c0_118 = arith.constant 0 : index
    %c0_119 = arith.constant 0 : index
    %147 = vector.load %arg11[%c4_117, %c0_118, %c0_119] : memref<64x64x256xbf16, #tpu.memory_space<vmem>>, vector<1x64x256xbf16>
    %148 = vector.shape_cast %147 : vector<1x64x256xbf16> to vector<64x256xbf16>
    %cst_120 = arith.constant dense<0.000000e+00> : vector<2x256xf32>
    %149 = tpu.matmul %146, %148, %cst_120 {dimension_numbers = #tpu.dot_dimension_numbers<[1], [0], [0], [1], [0, 0, 1, 1], [], []>} : vector<2x64xbf16>, vector<64x256xbf16>, vector<2x256xf32> -> vector<2x256xf32>
    %150 = arith.addf %113, %149 : vector<2x256xf32>
    %151 = vector.extract_strided_slice %108 {offsets = [10, 0], sizes = [2, 64], strides = [1, 1]} : vector<128x64xf32> to vector<2x64xf32>
    %152 = arith.truncf %151 : vector<2x64xf32> to vector<2x64xbf16>
    %c5_121 = arith.constant 5 : index
    %c0_122 = arith.constant 0 : index
    %c0_123 = arith.constant 0 : index
    %153 = vector.load %arg11[%c5_121, %c0_122, %c0_123] : memref<64x64x256xbf16, #tpu.memory_space<vmem>>, vector<1x64x256xbf16>
    %154 = vector.shape_cast %153 : vector<1x64x256xbf16> to vector<64x256xbf16>
    %cst_124 = arith.constant dense<0.000000e+00> : vector<2x256xf32>
    %155 = tpu.matmul %152, %154, %cst_124 {dimension_numbers = #tpu.dot_dimension_numbers<[1], [0], [0], [1], [0, 0, 1, 1], [], []>} : vector<2x64xbf16>, vector<64x256xbf16>, vector<2x256xf32> -> vector<2x256xf32>
    %156 = arith.addf %114, %155 : vector<2x256xf32>
    %157 = vector.extract_strided_slice %108 {offsets = [12, 0], sizes = [2, 64], strides = [1, 1]} : vector<128x64xf32> to vector<2x64xf32>
    %158 = arith.truncf %157 : vector<2x64xf32> to vector<2x64xbf16>
    %c6_125 = arith.constant 6 : index
    %c0_126 = arith.constant 0 : index
    %c0_127 = arith.constant 0 : index
    %159 = vector.load %arg11[%c6_125, %c0_126, %c0_127] : memref<64x64x256xbf16, #tpu.memory_space<vmem>>, vector<1x64x256xbf16>
    %160 = vector.shape_cast %159 : vector<1x64x256xbf16> to vector<64x256xbf16>
    %cst_128 = arith.constant dense<0.000000e+00> : vector<2x256xf32>
    %161 = tpu.matmul %158, %160, %cst_128 {dimension_numbers = #tpu.dot_dimension_numbers<[1], [0], [0], [1], [0, 0, 1, 1], [], []>} : vector<2x64xbf16>, vector<64x256xbf16>, vector<2x256xf32> -> vector<2x256xf32>
    %162 = arith.addf %115, %161 : vector<2x256xf32>
    %163 = vector.extract_strided_slice %108 {offsets = [14, 0], sizes = [2, 64], strides = [1, 1]} : vector<128x64xf32> to vector<2x64xf32>
    %164 = arith.truncf %163 : vector<2x64xf32> to vector<2x64xbf16>
    %c7_129 = arith.constant 7 : index
    %c0_130 = arith.constant 0 : index
    %c0_131 = arith.constant 0 : index
    %165 = vector.load %arg11[%c7_129, %c0_130, %c0_131] : memref<64x64x256xbf16, #tpu.memory_space<vmem>>, vector<1x64x256xbf16>
    %166 = vector.shape_cast %165 : vector<1x64x256xbf16> to vector<64x256xbf16>
    %cst_132 = arith.constant dense<0.000000e+00> : vector<2x256xf32>
    %167 = tpu.matmul %164, %166, %cst_132 {dimension_numbers = #tpu.dot_dimension_numbers<[1], [0], [0], [1], [0, 0, 1, 1], [], []>} : vector<2x64xbf16>, vector<64x256xbf16>, vector<2x256xf32> -> vector<2x256xf32>
    %168 = arith.addf %116, %167 : vector<2x256xf32>
    %169 = vector.extract_strided_slice %108 {offsets = [16, 0], sizes = [2, 64], strides = [1, 1]} : vector<128x64xf32> to vector<2x64xf32>
    %170 = arith.truncf %169 : vector<2x64xf32> to vector<2x64xbf16>
    %c8_133 = arith.constant 8 : index
    %c0_134 = arith.constant 0 : index
    %c0_135 = arith.constant 0 : index
    %171 = vector.load %arg11[%c8_133, %c0_134, %c0_135] : memref<64x64x256xbf16, #tpu.memory_space<vmem>>, vector<1x64x256xbf16>
    %172 = vector.shape_cast %171 : vector<1x64x256xbf16> to vector<64x256xbf16>
    %cst_136 = arith.constant dense<0.000000e+00> : vector<2x256xf32>
    %173 = tpu.matmul %170, %172, %cst_136 {dimension_numbers = #tpu.dot_dimension_numbers<[1], [0], [0], [1], [0, 0, 1, 1], [], []>} : vector<2x64xbf16>, vector<64x256xbf16>, vector<2x256xf32> -> vector<2x256xf32>
    %174 = arith.addf %126, %173 : vector<2x256xf32>
    %175 = vector.extract_strided_slice %108 {offsets = [18, 0], sizes = [2, 64], strides = [1, 1]} : vector<128x64xf32> to vector<2x64xf32>
    %176 = arith.truncf %175 : vector<2x64xf32> to vector<2x64xbf16>
    %c9 = arith.constant 9 : index
    %c0_137 = arith.constant 0 : index
    %c0_138 = arith.constant 0 : index
    %177 = vector.load %arg11[%c9, %c0_137, %c0_138] : memref<64x64x256xbf16, #tpu.memory_space<vmem>>, vector<1x64x256xbf16>
    %178 = vector.shape_cast %177 : vector<1x64x256xbf16> to vector<64x256xbf16>
    %cst_139 = arith.constant dense<0.000000e+00> : vector<2x256xf32>
    %179 = tpu.matmul %176, %178, %cst_139 {dimension_numbers = #tpu.dot_dimension_numbers<[1], [0], [0], [1], [0, 0, 1, 1], [], []>} : vector<2x64xbf16>, vector<64x256xbf16>, vector<2x256xf32> -> vector<2x256xf32>
    %180 = arith.addf %132, %179 : vector<2x256xf32>
    %181 = vector.extract_strided_slice %108 {offsets = [20, 0], sizes = [2, 64], strides = [1, 1]} : vector<128x64xf32> to vector<2x64xf32>
    %182 = arith.truncf %181 : vector<2x64xf32> to vector<2x64xbf16>
    %c10 = arith.constant 10 : index
    %c0_140 = arith.constant 0 : index
    %c0_141 = arith.constant 0 : index
    %183 = vector.load %arg11[%c10, %c0_140, %c0_141] : memref<64x64x256xbf16, #tpu.memory_space<vmem>>, vector<1x64x256xbf16>
    %184 = vector.shape_cast %183 : vector<1x64x256xbf16> to vector<64x256xbf16>
    %cst_142 = arith.constant dense<0.000000e+00> : vector<2x256xf32>
    %185 = tpu.matmul %182, %184, %cst_142 {dimension_numbers = #tpu.dot_dimension_numbers<[1], [0], [0], [1], [0, 0, 1, 1], [], []>} : vector<2x64xbf16>, vector<64x256xbf16>, vector<2x256xf32> -> vector<2x256xf32>
    %186 = arith.addf %138, %185 : vector<2x256xf32>
    %187 = vector.extract_strided_slice %108 {offsets = [22, 0], sizes = [2, 64], strides = [1, 1]} : vector<128x64xf32> to vector<2x64xf32>
    %188 = arith.truncf %187 : vector<2x64xf32> to vector<2x64xbf16>
    %c11 = arith.constant 11 : index
    %c0_143 = arith.constant 0 : index
    %c0_144 = arith.constant 0 : index
    %189 = vector.load %arg11[%c11, %c0_143, %c0_144] : memref<64x64x256xbf16, #tpu.memory_space<vmem>>, vector<1x64x256xbf16>
    %190 = vector.shape_cast %189 : vector<1x64x256xbf16> to vector<64x256xbf16>
    %cst_145 = arith.constant dense<0.000000e+00> : vector<2x256xf32>
    %191 = tpu.matmul %188, %190, %cst_145 {dimension_numbers = #tpu.dot_dimension_numbers<[1], [0], [0], [1], [0, 0, 1, 1], [], []>} : vector<2x64xbf16>, vector<64x256xbf16>, vector<2x256xf32> -> vector<2x256xf32>
    %192 = arith.addf %144, %191 : vector<2x256xf32>
    %193 = vector.extract_strided_slice %108 {offsets = [24, 0], sizes = [2, 64], strides = [1, 1]} : vector<128x64xf32> to vector<2x64xf32>
    %194 = arith.truncf %193 : vector<2x64xf32> to vector<2x64xbf16>
    %c12 = arith.constant 12 : index
    %c0_146 = arith.constant 0 : index
    %c0_147 = arith.constant 0 : index
    %195 = vector.load %arg11[%c12, %c0_146, %c0_147] : memref<64x64x256xbf16, #tpu.memory_space<vmem>>, vector<1x64x256xbf16>
    %196 = vector.shape_cast %195 : vector<1x64x256xbf16> to vector<64x256xbf16>
    %cst_148 = arith.constant dense<0.000000e+00> : vector<2x256xf32>
    %197 = tpu.matmul %194, %196, %cst_148 {dimension_numbers = #tpu.dot_dimension_numbers<[1], [0], [0], [1], [0, 0, 1, 1], [], []>} : vector<2x64xbf16>, vector<64x256xbf16>, vector<2x256xf32> -> vector<2x256xf32>
    %198 = arith.addf %150, %197 : vector<2x256xf32>
    %199 = vector.extract_strided_slice %108 {offsets = [26, 0], sizes = [2, 64], strides = [1, 1]} : vector<128x64xf32> to vector<2x64xf32>
    %200 = arith.truncf %199 : vector<2x64xf32> to vector<2x64xbf16>
    %c13 = arith.constant 13 : index
    %c0_149 = arith.constant 0 : index
    %c0_150 = arith.constant 0 : index
    %201 = vector.load %arg11[%c13, %c0_149, %c0_150] : memref<64x64x256xbf16, #tpu.memory_space<vmem>>, vector<1x64x256xbf16>
    %202 = vector.shape_cast %201 : vector<1x64x256xbf16> to vector<64x256xbf16>
    %cst_151 = arith.constant dense<0.000000e+00> : vector<2x256xf32>
    %203 = tpu.matmul %200, %202, %cst_151 {dimension_numbers = #tpu.dot_dimension_numbers<[1], [0], [0], [1], [0, 0, 1, 1], [], []>} : vector<2x64xbf16>, vector<64x256xbf16>, vector<2x256xf32> -> vector<2x256xf32>
    %204 = arith.addf %156, %203 : vector<2x256xf32>
    %205 = vector.extract_strided_slice %108 {offsets = [28, 0], sizes = [2, 64], strides = [1, 1]} : vector<128x64xf32> to vector<2x64xf32>
    %206 = arith.truncf %205 : vector<2x64xf32> to vector<2x64xbf16>
    %c14 = arith.constant 14 : index
    %c0_152 = arith.constant 0 : index
    %c0_153 = arith.constant 0 : index
    %207 = vector.load %arg11[%c14, %c0_152, %c0_153] : memref<64x64x256xbf16, #tpu.memory_space<vmem>>, vector<1x64x256xbf16>
    %208 = vector.shape_cast %207 : vector<1x64x256xbf16> to vector<64x256xbf16>
    %cst_154 = arith.constant dense<0.000000e+00> : vector<2x256xf32>
    %209 = tpu.matmul %206, %208, %cst_154 {dimension_numbers = #tpu.dot_dimension_numbers<[1], [0], [0], [1], [0, 0, 1, 1], [], []>} : vector<2x64xbf16>, vector<64x256xbf16>, vector<2x256xf32> -> vector<2x256xf32>
    %210 = arith.addf %162, %209 : vector<2x256xf32>
    %211 = vector.extract_strided_slice %108 {offsets = [30, 0], sizes = [2, 64], strides = [1, 1]} : vector<128x64xf32> to vector<2x64xf32>
    %212 = arith.truncf %211 : vector<2x64xf32> to vector<2x64xbf16>
    %c15 = arith.constant 15 : index
    %c0_155 = arith.constant 0 : index
    %c0_156 = arith.constant 0 : index
    %213 = vector.load %arg11[%c15, %c0_155, %c0_156] : memref<64x64x256xbf16, #tpu.memory_space<vmem>>, vector<1x64x256xbf16>
    %214 = vector.shape_cast %213 : vector<1x64x256xbf16> to vector<64x256xbf16>
    %cst_157 = arith.constant dense<0.000000e+00> : vector<2x256xf32>
    %215 = tpu.matmul %212, %214, %cst_157 {dimension_numbers = #tpu.dot_dimension_numbers<[1], [0], [0], [1], [0, 0, 1, 1], [], []>} : vector<2x64xbf16>, vector<64x256xbf16>, vector<2x256xf32> -> vector<2x256xf32>
    %216 = arith.addf %168, %215 : vector<2x256xf32>
    %c1_i32_158 = arith.constant 1 : i32
    %c16_i32_159 = arith.constant 16 : i32
    %c0_i32_160 = arith.constant 0 : i32
    %c0_i32_161 = arith.constant 0 : i32
    %217 = tpu.memref_slice %arg6[%c16_i32_159, %c0_i32_160, %c0_i32_161] : memref<64x64x256xbf16, #tpu.memory_space<any>> -> memref<16x64x256xbf16, #tpu.memory_space<any>>
    %c16_i32_162 = arith.constant 16 : i32
    %c0_i32_163 = arith.constant 0 : i32
    %c0_i32_164 = arith.constant 0 : i32
    %218 = tpu.memref_slice %arg11[%c16_i32_162, %c0_i32_163, %c0_i32_164] : memref<64x64x256xbf16, #tpu.memory_space<vmem>> -> memref<16x64x256xbf16, #tpu.memory_space<vmem>>
    %219 = tpu.memref_slice %arg12[%c1_i32_158] : memref<4x!tpu.dma_semaphore, #tpu.memory_space<semaphore_mem>> -> memref<1x!tpu.dma_semaphore, #tpu.memory_space<semaphore_mem>>
    %220 = tpu.memref_squeeze %219 : memref<1x!tpu.dma_semaphore, #tpu.memory_space<semaphore_mem>> -> memref<!tpu.dma_semaphore, #tpu.memory_space<semaphore_mem>>
    tpu.wait_dma2 semaphore(%220 : memref<!tpu.dma_semaphore, #tpu.memory_space<semaphore_mem>>) src(%217 : memref<16x64x256xbf16, #tpu.memory_space<any>>) dst(%218 : memref<16x64x256xbf16, #tpu.memory_space<vmem>>)
    %221 = vector.extract_strided_slice %108 {offsets = [32, 0], sizes = [2, 64], strides = [1, 1]} : vector<128x64xf32> to vector<2x64xf32>
    %222 = arith.truncf %221 : vector<2x64xf32> to vector<2x64xbf16>
    %c16 = arith.constant 16 : index
    %c0_165 = arith.constant 0 : index
    %c0_166 = arith.constant 0 : index
    %223 = vector.load %arg11[%c16, %c0_165, %c0_166] : memref<64x64x256xbf16, #tpu.memory_space<vmem>>, vector<1x64x256xbf16>
    %224 = vector.shape_cast %223 : vector<1x64x256xbf16> to vector<64x256xbf16>
    %cst_167 = arith.constant dense<0.000000e+00> : vector<2x256xf32>
    %225 = tpu.matmul %222, %224, %cst_167 {dimension_numbers = #tpu.dot_dimension_numbers<[1], [0], [0], [1], [0, 0, 1, 1], [], []>} : vector<2x64xbf16>, vector<64x256xbf16>, vector<2x256xf32> -> vector<2x256xf32>
    %226 = arith.addf %174, %225 : vector<2x256xf32>
    %227 = vector.extract_strided_slice %108 {offsets = [34, 0], sizes = [2, 64], strides = [1, 1]} : vector<128x64xf32> to vector<2x64xf32>
    %228 = arith.truncf %227 : vector<2x64xf32> to vector<2x64xbf16>
    %c17 = arith.constant 17 : index
    %c0_168 = arith.constant 0 : index
    %c0_169 = arith.constant 0 : index
    %229 = vector.load %arg11[%c17, %c0_168, %c0_169] : memref<64x64x256xbf16, #tpu.memory_space<vmem>>, vector<1x64x256xbf16>
    %230 = vector.shape_cast %229 : vector<1x64x256xbf16> to vector<64x256xbf16>
    %cst_170 = arith.constant dense<0.000000e+00> : vector<2x256xf32>
    %231 = tpu.matmul %228, %230, %cst_170 {dimension_numbers = #tpu.dot_dimension_numbers<[1], [0], [0], [1], [0, 0, 1, 1], [], []>} : vector<2x64xbf16>, vector<64x256xbf16>, vector<2x256xf32> -> vector<2x256xf32>
    %232 = arith.addf %180, %231 : vector<2x256xf32>
    %233 = vector.extract_strided_slice %108 {offsets = [36, 0], sizes = [2, 64], strides = [1, 1]} : vector<128x64xf32> to vector<2x64xf32>
    %234 = arith.truncf %233 : vector<2x64xf32> to vector<2x64xbf16>
    %c18 = arith.constant 18 : index
    %c0_171 = arith.constant 0 : index
    %c0_172 = arith.constant 0 : index
    %235 = vector.load %arg11[%c18, %c0_171, %c0_172] : memref<64x64x256xbf16, #tpu.memory_space<vmem>>, vector<1x64x256xbf16>
    %236 = vector.shape_cast %235 : vector<1x64x256xbf16> to vector<64x256xbf16>
    %cst_173 = arith.constant dense<0.000000e+00> : vector<2x256xf32>
    %237 = tpu.matmul %234, %236, %cst_173 {dimension_numbers = #tpu.dot_dimension_numbers<[1], [0], [0], [1], [0, 0, 1, 1], [], []>} : vector<2x64xbf16>, vector<64x256xbf16>, vector<2x256xf32> -> vector<2x256xf32>
    %238 = arith.addf %186, %237 : vector<2x256xf32>
    %239 = vector.extract_strided_slice %108 {offsets = [38, 0], sizes = [2, 64], strides = [1, 1]} : vector<128x64xf32> to vector<2x64xf32>
    %240 = arith.truncf %239 : vector<2x64xf32> to vector<2x64xbf16>
    %c19 = arith.constant 19 : index
    %c0_174 = arith.constant 0 : index
    %c0_175 = arith.constant 0 : index
    %241 = vector.load %arg11[%c19, %c0_174, %c0_175] : memref<64x64x256xbf16, #tpu.memory_space<vmem>>, vector<1x64x256xbf16>
    %242 = vector.shape_cast %241 : vector<1x64x256xbf16> to vector<64x256xbf16>
    %cst_176 = arith.constant dense<0.000000e+00> : vector<2x256xf32>
    %243 = tpu.matmul %240, %242, %cst_176 {dimension_numbers = #tpu.dot_dimension_numbers<[1], [0], [0], [1], [0, 0, 1, 1], [], []>} : vector<2x64xbf16>, vector<64x256xbf16>, vector<2x256xf32> -> vector<2x256xf32>
    %244 = arith.addf %192, %243 : vector<2x256xf32>
    %245 = vector.extract_strided_slice %108 {offsets = [40, 0], sizes = [2, 64], strides = [1, 1]} : vector<128x64xf32> to vector<2x64xf32>
    %246 = arith.truncf %245 : vector<2x64xf32> to vector<2x64xbf16>
    %c20 = arith.constant 20 : index
    %c0_177 = arith.constant 0 : index
    %c0_178 = arith.constant 0 : index
    %247 = vector.load %arg11[%c20, %c0_177, %c0_178] : memref<64x64x256xbf16, #tpu.memory_space<vmem>>, vector<1x64x256xbf16>
    %248 = vector.shape_cast %247 : vector<1x64x256xbf16> to vector<64x256xbf16>
    %cst_179 = arith.constant dense<0.000000e+00> : vector<2x256xf32>
    %249 = tpu.matmul %246, %248, %cst_179 {dimension_numbers = #tpu.dot_dimension_numbers<[1], [0], [0], [1], [0, 0, 1, 1], [], []>} : vector<2x64xbf16>, vector<64x256xbf16>, vector<2x256xf32> -> vector<2x256xf32>
    %250 = arith.addf %198, %249 : vector<2x256xf32>
    %251 = vector.extract_strided_slice %108 {offsets = [42, 0], sizes = [2, 64], strides = [1, 1]} : vector<128x64xf32> to vector<2x64xf32>
    %252 = arith.truncf %251 : vector<2x64xf32> to vector<2x64xbf16>
    %c21 = arith.constant 21 : index
    %c0_180 = arith.constant 0 : index
    %c0_181 = arith.constant 0 : index
    %253 = vector.load %arg11[%c21, %c0_180, %c0_181] : memref<64x64x256xbf16, #tpu.memory_space<vmem>>, vector<1x64x256xbf16>
    %254 = vector.shape_cast %253 : vector<1x64x256xbf16> to vector<64x256xbf16>
    %cst_182 = arith.constant dense<0.000000e+00> : vector<2x256xf32>
    %255 = tpu.matmul %252, %254, %cst_182 {dimension_numbers = #tpu.dot_dimension_numbers<[1], [0], [0], [1], [0, 0, 1, 1], [], []>} : vector<2x64xbf16>, vector<64x256xbf16>, vector<2x256xf32> -> vector<2x256xf32>
    %256 = arith.addf %204, %255 : vector<2x256xf32>
    %257 = vector.extract_strided_slice %108 {offsets = [44, 0], sizes = [2, 64], strides = [1, 1]} : vector<128x64xf32> to vector<2x64xf32>
    %258 = arith.truncf %257 : vector<2x64xf32> to vector<2x64xbf16>
    %c22 = arith.constant 22 : index
    %c0_183 = arith.constant 0 : index
    %c0_184 = arith.constant 0 : index
    %259 = vector.load %arg11[%c22, %c0_183, %c0_184] : memref<64x64x256xbf16, #tpu.memory_space<vmem>>, vector<1x64x256xbf16>
    %260 = vector.shape_cast %259 : vector<1x64x256xbf16> to vector<64x256xbf16>
    %cst_185 = arith.constant dense<0.000000e+00> : vector<2x256xf32>
    %261 = tpu.matmul %258, %260, %cst_185 {dimension_numbers = #tpu.dot_dimension_numbers<[1], [0], [0], [1], [0, 0, 1, 1], [], []>} : vector<2x64xbf16>, vector<64x256xbf16>, vector<2x256xf32> -> vector<2x256xf32>
    %262 = arith.addf %210, %261 : vector<2x256xf32>
    %263 = vector.extract_strided_slice %108 {offsets = [46, 0], sizes = [2, 64], strides = [1, 1]} : vector<128x64xf32> to vector<2x64xf32>
    %264 = arith.truncf %263 : vector<2x64xf32> to vector<2x64xbf16>
    %c23 = arith.constant 23 : index
    %c0_186 = arith.constant 0 : index
    %c0_187 = arith.constant 0 : index
    %265 = vector.load %arg11[%c23, %c0_186, %c0_187] : memref<64x64x256xbf16, #tpu.memory_space<vmem>>, vector<1x64x256xbf16>
    %266 = vector.shape_cast %265 : vector<1x64x256xbf16> to vector<64x256xbf16>
    %cst_188 = arith.constant dense<0.000000e+00> : vector<2x256xf32>
    %267 = tpu.matmul %264, %266, %cst_188 {dimension_numbers = #tpu.dot_dimension_numbers<[1], [0], [0], [1], [0, 0, 1, 1], [], []>} : vector<2x64xbf16>, vector<64x256xbf16>, vector<2x256xf32> -> vector<2x256xf32>
    %268 = arith.addf %216, %267 : vector<2x256xf32>
    %269 = vector.extract_strided_slice %108 {offsets = [48, 0], sizes = [2, 64], strides = [1, 1]} : vector<128x64xf32> to vector<2x64xf32>
    %270 = arith.truncf %269 : vector<2x64xf32> to vector<2x64xbf16>
    %c24 = arith.constant 24 : index
    %c0_189 = arith.constant 0 : index
    %c0_190 = arith.constant 0 : index
    %271 = vector.load %arg11[%c24, %c0_189, %c0_190] : memref<64x64x256xbf16, #tpu.memory_space<vmem>>, vector<1x64x256xbf16>
    %272 = vector.shape_cast %271 : vector<1x64x256xbf16> to vector<64x256xbf16>
    %cst_191 = arith.constant dense<0.000000e+00> : vector<2x256xf32>
    %273 = tpu.matmul %270, %272, %cst_191 {dimension_numbers = #tpu.dot_dimension_numbers<[1], [0], [0], [1], [0, 0, 1, 1], [], []>} : vector<2x64xbf16>, vector<64x256xbf16>, vector<2x256xf32> -> vector<2x256xf32>
    %274 = arith.addf %226, %273 : vector<2x256xf32>
    %275 = vector.extract_strided_slice %108 {offsets = [50, 0], sizes = [2, 64], strides = [1, 1]} : vector<128x64xf32> to vector<2x64xf32>
    %276 = arith.truncf %275 : vector<2x64xf32> to vector<2x64xbf16>
    %c25 = arith.constant 25 : index
    %c0_192 = arith.constant 0 : index
    %c0_193 = arith.constant 0 : index
    %277 = vector.load %arg11[%c25, %c0_192, %c0_193] : memref<64x64x256xbf16, #tpu.memory_space<vmem>>, vector<1x64x256xbf16>
    %278 = vector.shape_cast %277 : vector<1x64x256xbf16> to vector<64x256xbf16>
    %cst_194 = arith.constant dense<0.000000e+00> : vector<2x256xf32>
    %279 = tpu.matmul %276, %278, %cst_194 {dimension_numbers = #tpu.dot_dimension_numbers<[1], [0], [0], [1], [0, 0, 1, 1], [], []>} : vector<2x64xbf16>, vector<64x256xbf16>, vector<2x256xf32> -> vector<2x256xf32>
    %280 = arith.addf %232, %279 : vector<2x256xf32>
    %281 = vector.extract_strided_slice %108 {offsets = [52, 0], sizes = [2, 64], strides = [1, 1]} : vector<128x64xf32> to vector<2x64xf32>
    %282 = arith.truncf %281 : vector<2x64xf32> to vector<2x64xbf16>
    %c26 = arith.constant 26 : index
    %c0_195 = arith.constant 0 : index
    %c0_196 = arith.constant 0 : index
    %283 = vector.load %arg11[%c26, %c0_195, %c0_196] : memref<64x64x256xbf16, #tpu.memory_space<vmem>>, vector<1x64x256xbf16>
    %284 = vector.shape_cast %283 : vector<1x64x256xbf16> to vector<64x256xbf16>
    %cst_197 = arith.constant dense<0.000000e+00> : vector<2x256xf32>
    %285 = tpu.matmul %282, %284, %cst_197 {dimension_numbers = #tpu.dot_dimension_numbers<[1], [0], [0], [1], [0, 0, 1, 1], [], []>} : vector<2x64xbf16>, vector<64x256xbf16>, vector<2x256xf32> -> vector<2x256xf32>
    %286 = arith.addf %238, %285 : vector<2x256xf32>
    %287 = vector.extract_strided_slice %108 {offsets = [54, 0], sizes = [2, 64], strides = [1, 1]} : vector<128x64xf32> to vector<2x64xf32>
    %288 = arith.truncf %287 : vector<2x64xf32> to vector<2x64xbf16>
    %c27 = arith.constant 27 : index
    %c0_198 = arith.constant 0 : index
    %c0_199 = arith.constant 0 : index
    %289 = vector.load %arg11[%c27, %c0_198, %c0_199] : memref<64x64x256xbf16, #tpu.memory_space<vmem>>, vector<1x64x256xbf16>
    %290 = vector.shape_cast %289 : vector<1x64x256xbf16> to vector<64x256xbf16>
    %cst_200 = arith.constant dense<0.000000e+00> : vector<2x256xf32>
    %291 = tpu.matmul %288, %290, %cst_200 {dimension_numbers = #tpu.dot_dimension_numbers<[1], [0], [0], [1], [0, 0, 1, 1], [], []>} : vector<2x64xbf16>, vector<64x256xbf16>, vector<2x256xf32> -> vector<2x256xf32>
    %292 = arith.addf %244, %291 : vector<2x256xf32>
    %293 = vector.extract_strided_slice %108 {offsets = [56, 0], sizes = [2, 64], strides = [1, 1]} : vector<128x64xf32> to vector<2x64xf32>
    %294 = arith.truncf %293 : vector<2x64xf32> to vector<2x64xbf16>
    %c28 = arith.constant 28 : index
    %c0_201 = arith.constant 0 : index
    %c0_202 = arith.constant 0 : index
    %295 = vector.load %arg11[%c28, %c0_201, %c0_202] : memref<64x64x256xbf16, #tpu.memory_space<vmem>>, vector<1x64x256xbf16>
    %296 = vector.shape_cast %295 : vector<1x64x256xbf16> to vector<64x256xbf16>
    %cst_203 = arith.constant dense<0.000000e+00> : vector<2x256xf32>
    %297 = tpu.matmul %294, %296, %cst_203 {dimension_numbers = #tpu.dot_dimension_numbers<[1], [0], [0], [1], [0, 0, 1, 1], [], []>} : vector<2x64xbf16>, vector<64x256xbf16>, vector<2x256xf32> -> vector<2x256xf32>
    %298 = arith.addf %250, %297 : vector<2x256xf32>
    %299 = vector.extract_strided_slice %108 {offsets = [58, 0], sizes = [2, 64], strides = [1, 1]} : vector<128x64xf32> to vector<2x64xf32>
    %300 = arith.truncf %299 : vector<2x64xf32> to vector<2x64xbf16>
    %c29 = arith.constant 29 : index
    %c0_204 = arith.constant 0 : index
    %c0_205 = arith.constant 0 : index
    %301 = vector.load %arg11[%c29, %c0_204, %c0_205] : memref<64x64x256xbf16, #tpu.memory_space<vmem>>, vector<1x64x256xbf16>
    %302 = vector.shape_cast %301 : vector<1x64x256xbf16> to vector<64x256xbf16>
    %cst_206 = arith.constant dense<0.000000e+00> : vector<2x256xf32>
    %303 = tpu.matmul %300, %302, %cst_206 {dimension_numbers = #tpu.dot_dimension_numbers<[1], [0], [0], [1], [0, 0, 1, 1], [], []>} : vector<2x64xbf16>, vector<64x256xbf16>, vector<2x256xf32> -> vector<2x256xf32>
    %304 = arith.addf %256, %303 : vector<2x256xf32>
    %305 = vector.extract_strided_slice %108 {offsets = [60, 0], sizes = [2, 64], strides = [1, 1]} : vector<128x64xf32> to vector<2x64xf32>
    %306 = arith.truncf %305 : vector<2x64xf32> to vector<2x64xbf16>
    %c30 = arith.constant 30 : index
    %c0_207 = arith.constant 0 : index
    %c0_208 = arith.constant 0 : index
    %307 = vector.load %arg11[%c30, %c0_207, %c0_208] : memref<64x64x256xbf16, #tpu.memory_space<vmem>>, vector<1x64x256xbf16>
    %308 = vector.shape_cast %307 : vector<1x64x256xbf16> to vector<64x256xbf16>
    %cst_209 = arith.constant dense<0.000000e+00> : vector<2x256xf32>
    %309 = tpu.matmul %306, %308, %cst_209 {dimension_numbers = #tpu.dot_dimension_numbers<[1], [0], [0], [1], [0, 0, 1, 1], [], []>} : vector<2x64xbf16>, vector<64x256xbf16>, vector<2x256xf32> -> vector<2x256xf32>
    %310 = arith.addf %262, %309 : vector<2x256xf32>
    %311 = vector.extract_strided_slice %108 {offsets = [62, 0], sizes = [2, 64], strides = [1, 1]} : vector<128x64xf32> to vector<2x64xf32>
    %312 = arith.truncf %311 : vector<2x64xf32> to vector<2x64xbf16>
    %c31 = arith.constant 31 : index
    %c0_210 = arith.constant 0 : index
    %c0_211 = arith.constant 0 : index
    %313 = vector.load %arg11[%c31, %c0_210, %c0_211] : memref<64x64x256xbf16, #tpu.memory_space<vmem>>, vector<1x64x256xbf16>
    %314 = vector.shape_cast %313 : vector<1x64x256xbf16> to vector<64x256xbf16>
    %cst_212 = arith.constant dense<0.000000e+00> : vector<2x256xf32>
    %315 = tpu.matmul %312, %314, %cst_212 {dimension_numbers = #tpu.dot_dimension_numbers<[1], [0], [0], [1], [0, 0, 1, 1], [], []>} : vector<2x64xbf16>, vector<64x256xbf16>, vector<2x256xf32> -> vector<2x256xf32>
    %316 = arith.addf %268, %315 : vector<2x256xf32>
    %c2_i32_213 = arith.constant 2 : i32
    %c32_i32_214 = arith.constant 32 : i32
    %c0_i32_215 = arith.constant 0 : i32
    %c0_i32_216 = arith.constant 0 : i32
    %317 = tpu.memref_slice %arg6[%c32_i32_214, %c0_i32_215, %c0_i32_216] : memref<64x64x256xbf16, #tpu.memory_space<any>> -> memref<16x64x256xbf16, #tpu.memory_space<any>>
    %c32_i32_217 = arith.constant 32 : i32
    %c0_i32_218 = arith.constant 0 : i32
    %c0_i32_219 = arith.constant 0 : i32
    %318 = tpu.memref_slice %arg11[%c32_i32_217, %c0_i32_218, %c0_i32_219] : memref<64x64x256xbf16, #tpu.memory_space<vmem>> -> memref<16x64x256xbf16, #tpu.memory_space<vmem>>
    %319 = tpu.memref_slice %arg12[%c2_i32_213] : memref<4x!tpu.dma_semaphore, #tpu.memory_space<semaphore_mem>> -> memref<1x!tpu.dma_semaphore, #tpu.memory_space<semaphore_mem>>
    %320 = tpu.memref_squeeze %319 : memref<1x!tpu.dma_semaphore, #tpu.memory_space<semaphore_mem>> -> memref<!tpu.dma_semaphore, #tpu.memory_space<semaphore_mem>>
    tpu.wait_dma2 semaphore(%320 : memref<!tpu.dma_semaphore, #tpu.memory_space<semaphore_mem>>) src(%317 : memref<16x64x256xbf16, #tpu.memory_space<any>>) dst(%318 : memref<16x64x256xbf16, #tpu.memory_space<vmem>>)
    %321 = vector.extract_strided_slice %108 {offsets = [64, 0], sizes = [2, 64], strides = [1, 1]} : vector<128x64xf32> to vector<2x64xf32>
    %322 = arith.truncf %321 : vector<2x64xf32> to vector<2x64xbf16>
    %c32 = arith.constant 32 : index
    %c0_220 = arith.constant 0 : index
    %c0_221 = arith.constant 0 : index
    %323 = vector.load %arg11[%c32, %c0_220, %c0_221] : memref<64x64x256xbf16, #tpu.memory_space<vmem>>, vector<1x64x256xbf16>
    %324 = vector.shape_cast %323 : vector<1x64x256xbf16> to vector<64x256xbf16>
    %cst_222 = arith.constant dense<0.000000e+00> : vector<2x256xf32>
    %325 = tpu.matmul %322, %324, %cst_222 {dimension_numbers = #tpu.dot_dimension_numbers<[1], [0], [0], [1], [0, 0, 1, 1], [], []>} : vector<2x64xbf16>, vector<64x256xbf16>, vector<2x256xf32> -> vector<2x256xf32>
    %326 = arith.addf %274, %325 : vector<2x256xf32>
    %327 = vector.extract_strided_slice %108 {offsets = [66, 0], sizes = [2, 64], strides = [1, 1]} : vector<128x64xf32> to vector<2x64xf32>
    %328 = arith.truncf %327 : vector<2x64xf32> to vector<2x64xbf16>
    %c33 = arith.constant 33 : index
    %c0_223 = arith.constant 0 : index
    %c0_224 = arith.constant 0 : index
    %329 = vector.load %arg11[%c33, %c0_223, %c0_224] : memref<64x64x256xbf16, #tpu.memory_space<vmem>>, vector<1x64x256xbf16>
    %330 = vector.shape_cast %329 : vector<1x64x256xbf16> to vector<64x256xbf16>
    %cst_225 = arith.constant dense<0.000000e+00> : vector<2x256xf32>
    %331 = tpu.matmul %328, %330, %cst_225 {dimension_numbers = #tpu.dot_dimension_numbers<[1], [0], [0], [1], [0, 0, 1, 1], [], []>} : vector<2x64xbf16>, vector<64x256xbf16>, vector<2x256xf32> -> vector<2x256xf32>
    %332 = arith.addf %280, %331 : vector<2x256xf32>
    %333 = vector.extract_strided_slice %108 {offsets = [68, 0], sizes = [2, 64], strides = [1, 1]} : vector<128x64xf32> to vector<2x64xf32>
    %334 = arith.truncf %333 : vector<2x64xf32> to vector<2x64xbf16>
    %c34 = arith.constant 34 : index
    %c0_226 = arith.constant 0 : index
    %c0_227 = arith.constant 0 : index
    %335 = vector.load %arg11[%c34, %c0_226, %c0_227] : memref<64x64x256xbf16, #tpu.memory_space<vmem>>, vector<1x64x256xbf16>
    %336 = vector.shape_cast %335 : vector<1x64x256xbf16> to vector<64x256xbf16>
    %cst_228 = arith.constant dense<0.000000e+00> : vector<2x256xf32>
    %337 = tpu.matmul %334, %336, %cst_228 {dimension_numbers = #tpu.dot_dimension_numbers<[1], [0], [0], [1], [0, 0, 1, 1], [], []>} : vector<2x64xbf16>, vector<64x256xbf16>, vector<2x256xf32> -> vector<2x256xf32>
    %338 = arith.addf %286, %337 : vector<2x256xf32>
    %339 = vector.extract_strided_slice %108 {offsets = [70, 0], sizes = [2, 64], strides = [1, 1]} : vector<128x64xf32> to vector<2x64xf32>
    %340 = arith.truncf %339 : vector<2x64xf32> to vector<2x64xbf16>
    %c35 = arith.constant 35 : index
    %c0_229 = arith.constant 0 : index
    %c0_230 = arith.constant 0 : index
    %341 = vector.load %arg11[%c35, %c0_229, %c0_230] : memref<64x64x256xbf16, #tpu.memory_space<vmem>>, vector<1x64x256xbf16>
    %342 = vector.shape_cast %341 : vector<1x64x256xbf16> to vector<64x256xbf16>
    %cst_231 = arith.constant dense<0.000000e+00> : vector<2x256xf32>
    %343 = tpu.matmul %340, %342, %cst_231 {dimension_numbers = #tpu.dot_dimension_numbers<[1], [0], [0], [1], [0, 0, 1, 1], [], []>} : vector<2x64xbf16>, vector<64x256xbf16>, vector<2x256xf32> -> vector<2x256xf32>
    %344 = arith.addf %292, %343 : vector<2x256xf32>
    %345 = vector.extract_strided_slice %108 {offsets = [72, 0], sizes = [2, 64], strides = [1, 1]} : vector<128x64xf32> to vector<2x64xf32>
    %346 = arith.truncf %345 : vector<2x64xf32> to vector<2x64xbf16>
    %c36 = arith.constant 36 : index
    %c0_232 = arith.constant 0 : index
    %c0_233 = arith.constant 0 : index
    %347 = vector.load %arg11[%c36, %c0_232, %c0_233] : memref<64x64x256xbf16, #tpu.memory_space<vmem>>, vector<1x64x256xbf16>
    %348 = vector.shape_cast %347 : vector<1x64x256xbf16> to vector<64x256xbf16>
    %cst_234 = arith.constant dense<0.000000e+00> : vector<2x256xf32>
    %349 = tpu.matmul %346, %348, %cst_234 {dimension_numbers = #tpu.dot_dimension_numbers<[1], [0], [0], [1], [0, 0, 1, 1], [], []>} : vector<2x64xbf16>, vector<64x256xbf16>, vector<2x256xf32> -> vector<2x256xf32>
    %350 = arith.addf %298, %349 : vector<2x256xf32>
    %351 = vector.extract_strided_slice %108 {offsets = [74, 0], sizes = [2, 64], strides = [1, 1]} : vector<128x64xf32> to vector<2x64xf32>
    %352 = arith.truncf %351 : vector<2x64xf32> to vector<2x64xbf16>
    %c37 = arith.constant 37 : index
    %c0_235 = arith.constant 0 : index
    %c0_236 = arith.constant 0 : index
    %353 = vector.load %arg11[%c37, %c0_235, %c0_236] : memref<64x64x256xbf16, #tpu.memory_space<vmem>>, vector<1x64x256xbf16>
    %354 = vector.shape_cast %353 : vector<1x64x256xbf16> to vector<64x256xbf16>
    %cst_237 = arith.constant dense<0.000000e+00> : vector<2x256xf32>
    %355 = tpu.matmul %352, %354, %cst_237 {dimension_numbers = #tpu.dot_dimension_numbers<[1], [0], [0], [1], [0, 0, 1, 1], [], []>} : vector<2x64xbf16>, vector<64x256xbf16>, vector<2x256xf32> -> vector<2x256xf32>
    %356 = arith.addf %304, %355 : vector<2x256xf32>
    %357 = vector.extract_strided_slice %108 {offsets = [76, 0], sizes = [2, 64], strides = [1, 1]} : vector<128x64xf32> to vector<2x64xf32>
    %358 = arith.truncf %357 : vector<2x64xf32> to vector<2x64xbf16>
    %c38 = arith.constant 38 : index
    %c0_238 = arith.constant 0 : index
    %c0_239 = arith.constant 0 : index
    %359 = vector.load %arg11[%c38, %c0_238, %c0_239] : memref<64x64x256xbf16, #tpu.memory_space<vmem>>, vector<1x64x256xbf16>
    %360 = vector.shape_cast %359 : vector<1x64x256xbf16> to vector<64x256xbf16>
    %cst_240 = arith.constant dense<0.000000e+00> : vector<2x256xf32>
    %361 = tpu.matmul %358, %360, %cst_240 {dimension_numbers = #tpu.dot_dimension_numbers<[1], [0], [0], [1], [0, 0, 1, 1], [], []>} : vector<2x64xbf16>, vector<64x256xbf16>, vector<2x256xf32> -> vector<2x256xf32>
    %362 = arith.addf %310, %361 : vector<2x256xf32>
    %363 = vector.extract_strided_slice %108 {offsets = [78, 0], sizes = [2, 64], strides = [1, 1]} : vector<128x64xf32> to vector<2x64xf32>
    %364 = arith.truncf %363 : vector<2x64xf32> to vector<2x64xbf16>
    %c39 = arith.constant 39 : index
    %c0_241 = arith.constant 0 : index
    %c0_242 = arith.constant 0 : index
    %365 = vector.load %arg11[%c39, %c0_241, %c0_242] : memref<64x64x256xbf16, #tpu.memory_space<vmem>>, vector<1x64x256xbf16>
    %366 = vector.shape_cast %365 : vector<1x64x256xbf16> to vector<64x256xbf16>
    %cst_243 = arith.constant dense<0.000000e+00> : vector<2x256xf32>
    %367 = tpu.matmul %364, %366, %cst_243 {dimension_numbers = #tpu.dot_dimension_numbers<[1], [0], [0], [1], [0, 0, 1, 1], [], []>} : vector<2x64xbf16>, vector<64x256xbf16>, vector<2x256xf32> -> vector<2x256xf32>
    %368 = arith.addf %316, %367 : vector<2x256xf32>
    %369 = vector.extract_strided_slice %108 {offsets = [80, 0], sizes = [2, 64], strides = [1, 1]} : vector<128x64xf32> to vector<2x64xf32>
    %370 = arith.truncf %369 : vector<2x64xf32> to vector<2x64xbf16>
    %c40 = arith.constant 40 : index
    %c0_244 = arith.constant 0 : index
    %c0_245 = arith.constant 0 : index
    %371 = vector.load %arg11[%c40, %c0_244, %c0_245] : memref<64x64x256xbf16, #tpu.memory_space<vmem>>, vector<1x64x256xbf16>
    %372 = vector.shape_cast %371 : vector<1x64x256xbf16> to vector<64x256xbf16>
    %cst_246 = arith.constant dense<0.000000e+00> : vector<2x256xf32>
    %373 = tpu.matmul %370, %372, %cst_246 {dimension_numbers = #tpu.dot_dimension_numbers<[1], [0], [0], [1], [0, 0, 1, 1], [], []>} : vector<2x64xbf16>, vector<64x256xbf16>, vector<2x256xf32> -> vector<2x256xf32>
    %374 = arith.addf %326, %373 : vector<2x256xf32>
    %375 = vector.extract_strided_slice %108 {offsets = [82, 0], sizes = [2, 64], strides = [1, 1]} : vector<128x64xf32> to vector<2x64xf32>
    %376 = arith.truncf %375 : vector<2x64xf32> to vector<2x64xbf16>
    %c41 = arith.constant 41 : index
    %c0_247 = arith.constant 0 : index
    %c0_248 = arith.constant 0 : index
    %377 = vector.load %arg11[%c41, %c0_247, %c0_248] : memref<64x64x256xbf16, #tpu.memory_space<vmem>>, vector<1x64x256xbf16>
    %378 = vector.shape_cast %377 : vector<1x64x256xbf16> to vector<64x256xbf16>
    %cst_249 = arith.constant dense<0.000000e+00> : vector<2x256xf32>
    %379 = tpu.matmul %376, %378, %cst_249 {dimension_numbers = #tpu.dot_dimension_numbers<[1], [0], [0], [1], [0, 0, 1, 1], [], []>} : vector<2x64xbf16>, vector<64x256xbf16>, vector<2x256xf32> -> vector<2x256xf32>
    %380 = arith.addf %332, %379 : vector<2x256xf32>
    %381 = vector.extract_strided_slice %108 {offsets = [84, 0], sizes = [2, 64], strides = [1, 1]} : vector<128x64xf32> to vector<2x64xf32>
    %382 = arith.truncf %381 : vector<2x64xf32> to vector<2x64xbf16>
    %c42 = arith.constant 42 : index
    %c0_250 = arith.constant 0 : index
    %c0_251 = arith.constant 0 : index
    %383 = vector.load %arg11[%c42, %c0_250, %c0_251] : memref<64x64x256xbf16, #tpu.memory_space<vmem>>, vector<1x64x256xbf16>
    %384 = vector.shape_cast %383 : vector<1x64x256xbf16> to vector<64x256xbf16>
    %cst_252 = arith.constant dense<0.000000e+00> : vector<2x256xf32>
    %385 = tpu.matmul %382, %384, %cst_252 {dimension_numbers = #tpu.dot_dimension_numbers<[1], [0], [0], [1], [0, 0, 1, 1], [], []>} : vector<2x64xbf16>, vector<64x256xbf16>, vector<2x256xf32> -> vector<2x256xf32>
    %386 = arith.addf %338, %385 : vector<2x256xf32>
    %387 = vector.extract_strided_slice %108 {offsets = [86, 0], sizes = [2, 64], strides = [1, 1]} : vector<128x64xf32> to vector<2x64xf32>
    %388 = arith.truncf %387 : vector<2x64xf32> to vector<2x64xbf16>
    %c43 = arith.constant 43 : index
    %c0_253 = arith.constant 0 : index
    %c0_254 = arith.constant 0 : index
    %389 = vector.load %arg11[%c43, %c0_253, %c0_254] : memref<64x64x256xbf16, #tpu.memory_space<vmem>>, vector<1x64x256xbf16>
    %390 = vector.shape_cast %389 : vector<1x64x256xbf16> to vector<64x256xbf16>
    %cst_255 = arith.constant dense<0.000000e+00> : vector<2x256xf32>
    %391 = tpu.matmul %388, %390, %cst_255 {dimension_numbers = #tpu.dot_dimension_numbers<[1], [0], [0], [1], [0, 0, 1, 1], [], []>} : vector<2x64xbf16>, vector<64x256xbf16>, vector<2x256xf32> -> vector<2x256xf32>
    %392 = arith.addf %344, %391 : vector<2x256xf32>
    %393 = vector.extract_strided_slice %108 {offsets = [88, 0], sizes = [2, 64], strides = [1, 1]} : vector<128x64xf32> to vector<2x64xf32>
    %394 = arith.truncf %393 : vector<2x64xf32> to vector<2x64xbf16>
    %c44 = arith.constant 44 : index
    %c0_256 = arith.constant 0 : index
    %c0_257 = arith.constant 0 : index
    %395 = vector.load %arg11[%c44, %c0_256, %c0_257] : memref<64x64x256xbf16, #tpu.memory_space<vmem>>, vector<1x64x256xbf16>
    %396 = vector.shape_cast %395 : vector<1x64x256xbf16> to vector<64x256xbf16>
    %cst_258 = arith.constant dense<0.000000e+00> : vector<2x256xf32>
    %397 = tpu.matmul %394, %396, %cst_258 {dimension_numbers = #tpu.dot_dimension_numbers<[1], [0], [0], [1], [0, 0, 1, 1], [], []>} : vector<2x64xbf16>, vector<64x256xbf16>, vector<2x256xf32> -> vector<2x256xf32>
    %398 = arith.addf %350, %397 : vector<2x256xf32>
    %399 = vector.extract_strided_slice %108 {offsets = [90, 0], sizes = [2, 64], strides = [1, 1]} : vector<128x64xf32> to vector<2x64xf32>
    %400 = arith.truncf %399 : vector<2x64xf32> to vector<2x64xbf16>
    %c45 = arith.constant 45 : index
    %c0_259 = arith.constant 0 : index
    %c0_260 = arith.constant 0 : index
    %401 = vector.load %arg11[%c45, %c0_259, %c0_260] : memref<64x64x256xbf16, #tpu.memory_space<vmem>>, vector<1x64x256xbf16>
    %402 = vector.shape_cast %401 : vector<1x64x256xbf16> to vector<64x256xbf16>
    %cst_261 = arith.constant dense<0.000000e+00> : vector<2x256xf32>
    %403 = tpu.matmul %400, %402, %cst_261 {dimension_numbers = #tpu.dot_dimension_numbers<[1], [0], [0], [1], [0, 0, 1, 1], [], []>} : vector<2x64xbf16>, vector<64x256xbf16>, vector<2x256xf32> -> vector<2x256xf32>
    %404 = arith.addf %356, %403 : vector<2x256xf32>
    %405 = vector.extract_strided_slice %108 {offsets = [92, 0], sizes = [2, 64], strides = [1, 1]} : vector<128x64xf32> to vector<2x64xf32>
    %406 = arith.truncf %405 : vector<2x64xf32> to vector<2x64xbf16>
    %c46 = arith.constant 46 : index
    %c0_262 = arith.constant 0 : index
    %c0_263 = arith.constant 0 : index
    %407 = vector.load %arg11[%c46, %c0_262, %c0_263] : memref<64x64x256xbf16, #tpu.memory_space<vmem>>, vector<1x64x256xbf16>
    %408 = vector.shape_cast %407 : vector<1x64x256xbf16> to vector<64x256xbf16>
    %cst_264 = arith.constant dense<0.000000e+00> : vector<2x256xf32>
    %409 = tpu.matmul %406, %408, %cst_264 {dimension_numbers = #tpu.dot_dimension_numbers<[1], [0], [0], [1], [0, 0, 1, 1], [], []>} : vector<2x64xbf16>, vector<64x256xbf16>, vector<2x256xf32> -> vector<2x256xf32>
    %410 = arith.addf %362, %409 : vector<2x256xf32>
    %411 = vector.extract_strided_slice %108 {offsets = [94, 0], sizes = [2, 64], strides = [1, 1]} : vector<128x64xf32> to vector<2x64xf32>
    %412 = arith.truncf %411 : vector<2x64xf32> to vector<2x64xbf16>
    %c47 = arith.constant 47 : index
    %c0_265 = arith.constant 0 : index
    %c0_266 = arith.constant 0 : index
    %413 = vector.load %arg11[%c47, %c0_265, %c0_266] : memref<64x64x256xbf16, #tpu.memory_space<vmem>>, vector<1x64x256xbf16>
    %414 = vector.shape_cast %413 : vector<1x64x256xbf16> to vector<64x256xbf16>
    %cst_267 = arith.constant dense<0.000000e+00> : vector<2x256xf32>
    %415 = tpu.matmul %412, %414, %cst_267 {dimension_numbers = #tpu.dot_dimension_numbers<[1], [0], [0], [1], [0, 0, 1, 1], [], []>} : vector<2x64xbf16>, vector<64x256xbf16>, vector<2x256xf32> -> vector<2x256xf32>
    %416 = arith.addf %368, %415 : vector<2x256xf32>
    %c3_i32_268 = arith.constant 3 : i32
    %c48_i32_269 = arith.constant 48 : i32
    %c0_i32_270 = arith.constant 0 : i32
    %c0_i32_271 = arith.constant 0 : i32
    %417 = tpu.memref_slice %arg6[%c48_i32_269, %c0_i32_270, %c0_i32_271] : memref<64x64x256xbf16, #tpu.memory_space<any>> -> memref<16x64x256xbf16, #tpu.memory_space<any>>
    %c48_i32_272 = arith.constant 48 : i32
    %c0_i32_273 = arith.constant 0 : i32
    %c0_i32_274 = arith.constant 0 : i32
    %418 = tpu.memref_slice %arg11[%c48_i32_272, %c0_i32_273, %c0_i32_274] : memref<64x64x256xbf16, #tpu.memory_space<vmem>> -> memref<16x64x256xbf16, #tpu.memory_space<vmem>>
    %419 = tpu.memref_slice %arg12[%c3_i32_268] : memref<4x!tpu.dma_semaphore, #tpu.memory_space<semaphore_mem>> -> memref<1x!tpu.dma_semaphore, #tpu.memory_space<semaphore_mem>>
    %420 = tpu.memref_squeeze %419 : memref<1x!tpu.dma_semaphore, #tpu.memory_space<semaphore_mem>> -> memref<!tpu.dma_semaphore, #tpu.memory_space<semaphore_mem>>
    tpu.wait_dma2 semaphore(%420 : memref<!tpu.dma_semaphore, #tpu.memory_space<semaphore_mem>>) src(%417 : memref<16x64x256xbf16, #tpu.memory_space<any>>) dst(%418 : memref<16x64x256xbf16, #tpu.memory_space<vmem>>)
    %421 = vector.extract_strided_slice %108 {offsets = [96, 0], sizes = [2, 64], strides = [1, 1]} : vector<128x64xf32> to vector<2x64xf32>
    %422 = arith.truncf %421 : vector<2x64xf32> to vector<2x64xbf16>
    %c48 = arith.constant 48 : index
    %c0_275 = arith.constant 0 : index
    %c0_276 = arith.constant 0 : index
    %423 = vector.load %arg11[%c48, %c0_275, %c0_276] : memref<64x64x256xbf16, #tpu.memory_space<vmem>>, vector<1x64x256xbf16>
    %424 = vector.shape_cast %423 : vector<1x64x256xbf16> to vector<64x256xbf16>
    %cst_277 = arith.constant dense<0.000000e+00> : vector<2x256xf32>
    %425 = tpu.matmul %422, %424, %cst_277 {dimension_numbers = #tpu.dot_dimension_numbers<[1], [0], [0], [1], [0, 0, 1, 1], [], []>} : vector<2x64xbf16>, vector<64x256xbf16>, vector<2x256xf32> -> vector<2x256xf32>
    %426 = arith.addf %374, %425 : vector<2x256xf32>
    %427 = vector.extract_strided_slice %108 {offsets = [98, 0], sizes = [2, 64], strides = [1, 1]} : vector<128x64xf32> to vector<2x64xf32>
    %428 = arith.truncf %427 : vector<2x64xf32> to vector<2x64xbf16>
    %c49 = arith.constant 49 : index
    %c0_278 = arith.constant 0 : index
    %c0_279 = arith.constant 0 : index
    %429 = vector.load %arg11[%c49, %c0_278, %c0_279] : memref<64x64x256xbf16, #tpu.memory_space<vmem>>, vector<1x64x256xbf16>
    %430 = vector.shape_cast %429 : vector<1x64x256xbf16> to vector<64x256xbf16>
    %cst_280 = arith.constant dense<0.000000e+00> : vector<2x256xf32>
    %431 = tpu.matmul %428, %430, %cst_280 {dimension_numbers = #tpu.dot_dimension_numbers<[1], [0], [0], [1], [0, 0, 1, 1], [], []>} : vector<2x64xbf16>, vector<64x256xbf16>, vector<2x256xf32> -> vector<2x256xf32>
    %432 = arith.addf %380, %431 : vector<2x256xf32>
    %433 = vector.extract_strided_slice %108 {offsets = [100, 0], sizes = [2, 64], strides = [1, 1]} : vector<128x64xf32> to vector<2x64xf32>
    %434 = arith.truncf %433 : vector<2x64xf32> to vector<2x64xbf16>
    %c50 = arith.constant 50 : index
    %c0_281 = arith.constant 0 : index
    %c0_282 = arith.constant 0 : index
    %435 = vector.load %arg11[%c50, %c0_281, %c0_282] : memref<64x64x256xbf16, #tpu.memory_space<vmem>>, vector<1x64x256xbf16>
    %436 = vector.shape_cast %435 : vector<1x64x256xbf16> to vector<64x256xbf16>
    %cst_283 = arith.constant dense<0.000000e+00> : vector<2x256xf32>
    %437 = tpu.matmul %434, %436, %cst_283 {dimension_numbers = #tpu.dot_dimension_numbers<[1], [0], [0], [1], [0, 0, 1, 1], [], []>} : vector<2x64xbf16>, vector<64x256xbf16>, vector<2x256xf32> -> vector<2x256xf32>
    %438 = arith.addf %386, %437 : vector<2x256xf32>
    %439 = vector.extract_strided_slice %108 {offsets = [102, 0], sizes = [2, 64], strides = [1, 1]} : vector<128x64xf32> to vector<2x64xf32>
    %440 = arith.truncf %439 : vector<2x64xf32> to vector<2x64xbf16>
    %c51 = arith.constant 51 : index
    %c0_284 = arith.constant 0 : index
    %c0_285 = arith.constant 0 : index
    %441 = vector.load %arg11[%c51, %c0_284, %c0_285] : memref<64x64x256xbf16, #tpu.memory_space<vmem>>, vector<1x64x256xbf16>
    %442 = vector.shape_cast %441 : vector<1x64x256xbf16> to vector<64x256xbf16>
    %cst_286 = arith.constant dense<0.000000e+00> : vector<2x256xf32>
    %443 = tpu.matmul %440, %442, %cst_286 {dimension_numbers = #tpu.dot_dimension_numbers<[1], [0], [0], [1], [0, 0, 1, 1], [], []>} : vector<2x64xbf16>, vector<64x256xbf16>, vector<2x256xf32> -> vector<2x256xf32>
    %444 = arith.addf %392, %443 : vector<2x256xf32>
    %445 = vector.extract_strided_slice %108 {offsets = [104, 0], sizes = [2, 64], strides = [1, 1]} : vector<128x64xf32> to vector<2x64xf32>
    %446 = arith.truncf %445 : vector<2x64xf32> to vector<2x64xbf16>
    %c52 = arith.constant 52 : index
    %c0_287 = arith.constant 0 : index
    %c0_288 = arith.constant 0 : index
    %447 = vector.load %arg11[%c52, %c0_287, %c0_288] : memref<64x64x256xbf16, #tpu.memory_space<vmem>>, vector<1x64x256xbf16>
    %448 = vector.shape_cast %447 : vector<1x64x256xbf16> to vector<64x256xbf16>
    %cst_289 = arith.constant dense<0.000000e+00> : vector<2x256xf32>
    %449 = tpu.matmul %446, %448, %cst_289 {dimension_numbers = #tpu.dot_dimension_numbers<[1], [0], [0], [1], [0, 0, 1, 1], [], []>} : vector<2x64xbf16>, vector<64x256xbf16>, vector<2x256xf32> -> vector<2x256xf32>
    %450 = arith.addf %398, %449 : vector<2x256xf32>
    %451 = vector.extract_strided_slice %108 {offsets = [106, 0], sizes = [2, 64], strides = [1, 1]} : vector<128x64xf32> to vector<2x64xf32>
    %452 = arith.truncf %451 : vector<2x64xf32> to vector<2x64xbf16>
    %c53 = arith.constant 53 : index
    %c0_290 = arith.constant 0 : index
    %c0_291 = arith.constant 0 : index
    %453 = vector.load %arg11[%c53, %c0_290, %c0_291] : memref<64x64x256xbf16, #tpu.memory_space<vmem>>, vector<1x64x256xbf16>
    %454 = vector.shape_cast %453 : vector<1x64x256xbf16> to vector<64x256xbf16>
    %cst_292 = arith.constant dense<0.000000e+00> : vector<2x256xf32>
    %455 = tpu.matmul %452, %454, %cst_292 {dimension_numbers = #tpu.dot_dimension_numbers<[1], [0], [0], [1], [0, 0, 1, 1], [], []>} : vector<2x64xbf16>, vector<64x256xbf16>, vector<2x256xf32> -> vector<2x256xf32>
    %456 = arith.addf %404, %455 : vector<2x256xf32>
    %457 = vector.extract_strided_slice %108 {offsets = [108, 0], sizes = [2, 64], strides = [1, 1]} : vector<128x64xf32> to vector<2x64xf32>
    %458 = arith.truncf %457 : vector<2x64xf32> to vector<2x64xbf16>
    %c54 = arith.constant 54 : index
    %c0_293 = arith.constant 0 : index
    %c0_294 = arith.constant 0 : index
    %459 = vector.load %arg11[%c54, %c0_293, %c0_294] : memref<64x64x256xbf16, #tpu.memory_space<vmem>>, vector<1x64x256xbf16>
    %460 = vector.shape_cast %459 : vector<1x64x256xbf16> to vector<64x256xbf16>
    %cst_295 = arith.constant dense<0.000000e+00> : vector<2x256xf32>
    %461 = tpu.matmul %458, %460, %cst_295 {dimension_numbers = #tpu.dot_dimension_numbers<[1], [0], [0], [1], [0, 0, 1, 1], [], []>} : vector<2x64xbf16>, vector<64x256xbf16>, vector<2x256xf32> -> vector<2x256xf32>
    %462 = arith.addf %410, %461 : vector<2x256xf32>
    %463 = vector.extract_strided_slice %108 {offsets = [110, 0], sizes = [2, 64], strides = [1, 1]} : vector<128x64xf32> to vector<2x64xf32>
    %464 = arith.truncf %463 : vector<2x64xf32> to vector<2x64xbf16>
    %c55 = arith.constant 55 : index
    %c0_296 = arith.constant 0 : index
    %c0_297 = arith.constant 0 : index
    %465 = vector.load %arg11[%c55, %c0_296, %c0_297] : memref<64x64x256xbf16, #tpu.memory_space<vmem>>, vector<1x64x256xbf16>
    %466 = vector.shape_cast %465 : vector<1x64x256xbf16> to vector<64x256xbf16>
    %cst_298 = arith.constant dense<0.000000e+00> : vector<2x256xf32>
    %467 = tpu.matmul %464, %466, %cst_298 {dimension_numbers = #tpu.dot_dimension_numbers<[1], [0], [0], [1], [0, 0, 1, 1], [], []>} : vector<2x64xbf16>, vector<64x256xbf16>, vector<2x256xf32> -> vector<2x256xf32>
    %468 = arith.addf %416, %467 : vector<2x256xf32>
    %469 = vector.extract_strided_slice %108 {offsets = [112, 0], sizes = [2, 64], strides = [1, 1]} : vector<128x64xf32> to vector<2x64xf32>
    %470 = arith.truncf %469 : vector<2x64xf32> to vector<2x64xbf16>
    %c56 = arith.constant 56 : index
    %c0_299 = arith.constant 0 : index
    %c0_300 = arith.constant 0 : index
    %471 = vector.load %arg11[%c56, %c0_299, %c0_300] : memref<64x64x256xbf16, #tpu.memory_space<vmem>>, vector<1x64x256xbf16>
    %472 = vector.shape_cast %471 : vector<1x64x256xbf16> to vector<64x256xbf16>
    %cst_301 = arith.constant dense<0.000000e+00> : vector<2x256xf32>
    %473 = tpu.matmul %470, %472, %cst_301 {dimension_numbers = #tpu.dot_dimension_numbers<[1], [0], [0], [1], [0, 0, 1, 1], [], []>} : vector<2x64xbf16>, vector<64x256xbf16>, vector<2x256xf32> -> vector<2x256xf32>
    %474 = arith.addf %426, %473 : vector<2x256xf32>
    %475 = vector.extract_strided_slice %108 {offsets = [114, 0], sizes = [2, 64], strides = [1, 1]} : vector<128x64xf32> to vector<2x64xf32>
    %476 = arith.truncf %475 : vector<2x64xf32> to vector<2x64xbf16>
    %c57 = arith.constant 57 : index
    %c0_302 = arith.constant 0 : index
    %c0_303 = arith.constant 0 : index
    %477 = vector.load %arg11[%c57, %c0_302, %c0_303] : memref<64x64x256xbf16, #tpu.memory_space<vmem>>, vector<1x64x256xbf16>
    %478 = vector.shape_cast %477 : vector<1x64x256xbf16> to vector<64x256xbf16>
    %cst_304 = arith.constant dense<0.000000e+00> : vector<2x256xf32>
    %479 = tpu.matmul %476, %478, %cst_304 {dimension_numbers = #tpu.dot_dimension_numbers<[1], [0], [0], [1], [0, 0, 1, 1], [], []>} : vector<2x64xbf16>, vector<64x256xbf16>, vector<2x256xf32> -> vector<2x256xf32>
    %480 = arith.addf %432, %479 : vector<2x256xf32>
    %481 = vector.extract_strided_slice %108 {offsets = [116, 0], sizes = [2, 64], strides = [1, 1]} : vector<128x64xf32> to vector<2x64xf32>
    %482 = arith.truncf %481 : vector<2x64xf32> to vector<2x64xbf16>
    %c58 = arith.constant 58 : index
    %c0_305 = arith.constant 0 : index
    %c0_306 = arith.constant 0 : index
    %483 = vector.load %arg11[%c58, %c0_305, %c0_306] : memref<64x64x256xbf16, #tpu.memory_space<vmem>>, vector<1x64x256xbf16>
    %484 = vector.shape_cast %483 : vector<1x64x256xbf16> to vector<64x256xbf16>
    %cst_307 = arith.constant dense<0.000000e+00> : vector<2x256xf32>
    %485 = tpu.matmul %482, %484, %cst_307 {dimension_numbers = #tpu.dot_dimension_numbers<[1], [0], [0], [1], [0, 0, 1, 1], [], []>} : vector<2x64xbf16>, vector<64x256xbf16>, vector<2x256xf32> -> vector<2x256xf32>
    %486 = arith.addf %438, %485 : vector<2x256xf32>
    %487 = vector.extract_strided_slice %108 {offsets = [118, 0], sizes = [2, 64], strides = [1, 1]} : vector<128x64xf32> to vector<2x64xf32>
    %488 = arith.truncf %487 : vector<2x64xf32> to vector<2x64xbf16>
    %c59 = arith.constant 59 : index
    %c0_308 = arith.constant 0 : index
    %c0_309 = arith.constant 0 : index
    %489 = vector.load %arg11[%c59, %c0_308, %c0_309] : memref<64x64x256xbf16, #tpu.memory_space<vmem>>, vector<1x64x256xbf16>
    %490 = vector.shape_cast %489 : vector<1x64x256xbf16> to vector<64x256xbf16>
    %cst_310 = arith.constant dense<0.000000e+00> : vector<2x256xf32>
    %491 = tpu.matmul %488, %490, %cst_310 {dimension_numbers = #tpu.dot_dimension_numbers<[1], [0], [0], [1], [0, 0, 1, 1], [], []>} : vector<2x64xbf16>, vector<64x256xbf16>, vector<2x256xf32> -> vector<2x256xf32>
    %492 = arith.addf %444, %491 : vector<2x256xf32>
    %493 = vector.extract_strided_slice %108 {offsets = [120, 0], sizes = [2, 64], strides = [1, 1]} : vector<128x64xf32> to vector<2x64xf32>
    %494 = arith.truncf %493 : vector<2x64xf32> to vector<2x64xbf16>
    %c60 = arith.constant 60 : index
    %c0_311 = arith.constant 0 : index
    %c0_312 = arith.constant 0 : index
    %495 = vector.load %arg11[%c60, %c0_311, %c0_312] : memref<64x64x256xbf16, #tpu.memory_space<vmem>>, vector<1x64x256xbf16>
    %496 = vector.shape_cast %495 : vector<1x64x256xbf16> to vector<64x256xbf16>
    %cst_313 = arith.constant dense<0.000000e+00> : vector<2x256xf32>
    %497 = tpu.matmul %494, %496, %cst_313 {dimension_numbers = #tpu.dot_dimension_numbers<[1], [0], [0], [1], [0, 0, 1, 1], [], []>} : vector<2x64xbf16>, vector<64x256xbf16>, vector<2x256xf32> -> vector<2x256xf32>
    %498 = arith.addf %450, %497 : vector<2x256xf32>
    %499 = vector.extract_strided_slice %108 {offsets = [122, 0], sizes = [2, 64], strides = [1, 1]} : vector<128x64xf32> to vector<2x64xf32>
    %500 = arith.truncf %499 : vector<2x64xf32> to vector<2x64xbf16>
    %c61 = arith.constant 61 : index
    %c0_314 = arith.constant 0 : index
    %c0_315 = arith.constant 0 : index
    %501 = vector.load %arg11[%c61, %c0_314, %c0_315] : memref<64x64x256xbf16, #tpu.memory_space<vmem>>, vector<1x64x256xbf16>
    %502 = vector.shape_cast %501 : vector<1x64x256xbf16> to vector<64x256xbf16>
    %cst_316 = arith.constant dense<0.000000e+00> : vector<2x256xf32>
    %503 = tpu.matmul %500, %502, %cst_316 {dimension_numbers = #tpu.dot_dimension_numbers<[1], [0], [0], [1], [0, 0, 1, 1], [], []>} : vector<2x64xbf16>, vector<64x256xbf16>, vector<2x256xf32> -> vector<2x256xf32>
    %504 = arith.addf %456, %503 : vector<2x256xf32>
    %505 = vector.extract_strided_slice %108 {offsets = [124, 0], sizes = [2, 64], strides = [1, 1]} : vector<128x64xf32> to vector<2x64xf32>
    %506 = arith.truncf %505 : vector<2x64xf32> to vector<2x64xbf16>
    %c62 = arith.constant 62 : index
    %c0_317 = arith.constant 0 : index
    %c0_318 = arith.constant 0 : index
    %507 = vector.load %arg11[%c62, %c0_317, %c0_318] : memref<64x64x256xbf16, #tpu.memory_space<vmem>>, vector<1x64x256xbf16>
    %508 = vector.shape_cast %507 : vector<1x64x256xbf16> to vector<64x256xbf16>
    %cst_319 = arith.constant dense<0.000000e+00> : vector<2x256xf32>
    %509 = tpu.matmul %506, %508, %cst_319 {dimension_numbers = #tpu.dot_dimension_numbers<[1], [0], [0], [1], [0, 0, 1, 1], [], []>} : vector<2x64xbf16>, vector<64x256xbf16>, vector<2x256xf32> -> vector<2x256xf32>
    %510 = arith.addf %462, %509 : vector<2x256xf32>
    %511 = vector.extract_strided_slice %108 {offsets = [126, 0], sizes = [2, 64], strides = [1, 1]} : vector<128x64xf32> to vector<2x64xf32>
    %512 = arith.truncf %511 : vector<2x64xf32> to vector<2x64xbf16>
    %c63 = arith.constant 63 : index
    %c0_320 = arith.constant 0 : index
    %c0_321 = arith.constant 0 : index
    %513 = vector.load %arg11[%c63, %c0_320, %c0_321] : memref<64x64x256xbf16, #tpu.memory_space<vmem>>, vector<1x64x256xbf16>
    %514 = vector.shape_cast %513 : vector<1x64x256xbf16> to vector<64x256xbf16>
    %cst_322 = arith.constant dense<0.000000e+00> : vector<2x256xf32>
    %515 = tpu.matmul %512, %514, %cst_322 {dimension_numbers = #tpu.dot_dimension_numbers<[1], [0], [0], [1], [0, 0, 1, 1], [], []>} : vector<2x64xbf16>, vector<64x256xbf16>, vector<2x256xf32> -> vector<2x256xf32>
    %516 = arith.addf %468, %515 : vector<2x256xf32>
    %517 = arith.addf %474, %480 : vector<2x256xf32>
    %518 = arith.addf %486, %492 : vector<2x256xf32>
    %519 = arith.addf %498, %504 : vector<2x256xf32>
    %520 = arith.addf %510, %516 : vector<2x256xf32>
    %521 = arith.addf %517, %518 : vector<2x256xf32>
    %522 = arith.addf %519, %520 : vector<2x256xf32>
    %523 = arith.addf %521, %522 : vector<2x256xf32>
    %c0_323 = arith.constant 0 : index
    %c0_324 = arith.constant 0 : index
    %524 = vector.load %arg7[%c0_323, %c0_324] : memref<1x256xf32, #tpu.memory_space<vmem>>, vector<1x256xf32>
    %525 = vector.broadcast %524 : vector<1x256xf32> to vector<2x256xf32>
    %526 = arith.addf %523, %525 : vector<2x256xf32>
    %cst_325 = arith.constant 0.000000e+00 : f32
    %527 = vector.broadcast %cst_325 : f32 to vector<2x256xf32>
    %528 = arith.maximumf %526, %527 : vector<2x256xf32>
    %529 = arith.truncf %528 : vector<2x256xf32> to vector<2x256xbf16>
    %c0_326 = arith.constant 0 : index
    %c0_327 = arith.constant 0 : index
    %530 = vector.load %arg8[%c0_326, %c0_327] : memref<256x128xbf16, #tpu.memory_space<vmem>>, vector<256x128xbf16>
    %cst_328 = arith.constant dense<0.000000e+00> : vector<2x128xf32>
    %531 = tpu.matmul %529, %530, %cst_328 {dimension_numbers = #tpu.dot_dimension_numbers<[1], [0], [0], [1], [0, 0, 1, 1], [], []>} : vector<2x256xbf16>, vector<256x128xbf16>, vector<2x128xf32> -> vector<2x128xf32>
    %c0_329 = arith.constant 0 : index
    %c0_330 = arith.constant 0 : index
    %532 = vector.load %arg9[%c0_329, %c0_330] : memref<1x128xf32, #tpu.memory_space<vmem>>, vector<1x128xf32>
    %533 = vector.broadcast %532 : vector<1x128xf32> to vector<2x128xf32>
    %534 = arith.addf %531, %533 : vector<2x128xf32>
    %c0_331 = arith.constant 0 : index
    %c0_332 = arith.constant 0 : index
    %535 = vector.load %arg10[%c0_331, %c0_332] : memref<2x128xf32, #tpu.memory_space<vmem>>, vector<2x128xf32>
    tpu.vector_store %arg10[%c0_331, %c0_332], %534 {strides = array<i32>} : memref<2x128xf32, #tpu.memory_space<vmem>>, vector<2x128xf32>,
    return
  }
}

</mosaic_0001>

<bundles_post_ra>
// kernel: redq_forward.1
= control target key start
LH: loop header
LB: loop body
LE: loop exit
PB: predicated region body
PF: predicated region fallthrough
CT: control target
= control target key end

     0   :  { %15 = vsyncpa [#allocation5], 0  ;;  %s13064_s0 = inlined_call_operand.vmem [shape: bf16[128,36], index: 0, kind: input, shape index: {}]   ;;  %s13065_s1 = inlined_call_operand.hbm [shape: bf16[9,128,32], index: 1, kind: input, shape index: {}]   ;;  %s13066_s2 = inlined_call_operand.vmem [shape: bf16[36,32], index: 2, kind: input, shape index: {}]   ;;  %s13067_s3 = inlined_call_operand.hbm [shape: f32[1,32], index: 3, kind: input, shape index: {}]   ;;  %s13068_s4 = inlined_call_operand.hbm [shape: bf16[9,32,64], index: 4, kind: input, shape index: {}]   ;;  %s13069_s5 = inlined_call_operand.hbm [shape: f32[1,64], index: 5, kind: input, shape index: {}]   ;;  %s13070_s6 = inlined_call_operand.hbm [shape: bf16[64,64,256], index: 6, kind: input, shape index: {}]   ;;  %s13071_s7 = inlined_call_operand.hbm [shape: f32[1,256], index: 7, kind: input, shape index: {}]   ;;  %s13072_s8 = inlined_call_operand.hbm [shape: bf16[256,128], index: 8, kind: input, shape index: {}]   ;;  %s13073_s9 = inlined_call_operand.hbm [shape: f32[1,128], index: 9, kind: input, shape index: {}]   ;;  %s13074_s10 = inlined_call_operand.hbm [shape: f32[2,128], index: 10, kind: output, shape index: {}]  }
   0x1   :  { %16 = vsyncpa [#allocation8], 0 }
   0x2   :  { %17 = vsyncpa [#allocation11], 0 }
   0x3   :  { %18 = vsyncpa [#allocation14], 0  ;;  %s42_s15 = sshll.u32 %s13067_s3, 4  ;;  %s43_s15 = int_to_ptr.hbm [resolvable:$true] %s42_s15 }
   0x4   :  { %19 = vsyncpa [#allocation6], 0  ;;  %s10976_s16 = smov [#allocation7]   ;;  %s66_s20 = sshll.u32 %s13069_s5, 4  ;;  %s67_s20 = int_to_ptr.hbm [resolvable:$true] %s66_s20 }
   0x5   :  { %s44_s17 = sshll.u32 %s10976_s16, 4  ;;  %s10977_s21 = smov [#allocation10]   ;;  %s45_s17 = int_to_ptr.vmem [resolvable:$true] %s44_s17 }
   0x6   :  { %47 = dma.hbm_to_vmem [thread:$0]  %s43_s15, 16, %s45_s17, [#allocation8]  }
   0x7   :  { %s68_s22 = sshll.u32 %s10977_s21, 4  ;;  %s87_s25 = sshll.u32 %s13072_s8, 4  ;;  %s69_s22 = int_to_ptr.vmem [resolvable:$true] %s68_s22  ;;  %s88_s25 = int_to_ptr.hbm [resolvable:$true] %s87_s25 }
   0x8   :  { %71 = dma.hbm_to_vmem [thread:$0]  %s67_s20, 16, %s69_s22, [#allocation11]  }
   0x9   :  { %s10978_s3 = smov [#allocation13]   ;;  %s26_s29 = sshll.u32 %s13065_s1, 4  ;;  %s27_s29 = int_to_ptr.hbm [resolvable:$true] %s26_s29 }
   0xa   :  { %s89_s26 = sshll.u32 %s10978_s3, 4  ;;  %s10979_s30 = smov 64   ;;  %s90_s26 = int_to_ptr.vmem [resolvable:$true] %s89_s26 }
   0xb   :  { %s10980_s5 = smov 4   ;;  %s10981_s11 = smov [#allocation4]  }
   0xc   :  { %95 = dma.hbm_to_vmem [thread:$0]  %s88_s25, 2048, %s90_s26, [#allocation14], %s10979_s30, %s10979_s30, %s10980_s5  }
   0xd   :  { %s28_s12 = sshll.u32 %s10981_s11, 4  ;;  %s52_s15 = sshll.u32 %s13068_s4, 4  ;;  %s29_s12 = int_to_ptr.vmem [resolvable:$true] %s28_s12  ;;  %s53_s15 = int_to_ptr.hbm [resolvable:$true] %s52_s15 }
   0xe   :  { %34 = dma.hbm_to_vmem [thread:$0]  %s27_s29, 9216, %s29_s12, [#allocation5], %s10979_s30, %s10979_s30, %s10980_s5  }
   0xf   :  { %s77_s17 = sshll.u32 %s13071_s7, 4  ;;  %s10982_s18 = smov [#allocation9]   ;;  %s78_s17 = int_to_ptr.hbm [resolvable:$true] %s77_s17 }
  0x10   :  { %s54_s19 = sshll.u32 %s10982_s18, 4  ;;  %s10983_s1 = smov [#allocation12]   ;;  %s55_s19 = int_to_ptr.vmem [resolvable:$true] %s54_s19 }
  0x11   :  { %60 = dma.hbm_to_vmem [thread:$0]  %s53_s15, 2304, %s55_s19, [#allocation8], %s10979_s30, %s10979_s30, %s10980_s5  }
  0x12   :  { %s79_s20 = sshll.u32 %s10983_s1, 4  ;;  %s101_s23 = sshll.u32 %s13073_s9, 4  ;;  %s80_s20 = int_to_ptr.vmem [resolvable:$true] %s79_s20  ;;  %s102_s23 = int_to_ptr.hbm [resolvable:$true] %s101_s23 }
  0x13   :  { %82 = dma.hbm_to_vmem [thread:$0]  %s78_s17, 32, %s80_s20, [#allocation11]  }
  0x14   :  { %s10984_s4 = smov [#allocation15]  }
  0x15   :  { %s103_s24 = sshll.u32 %s10984_s4, 4  ;;  %s104_s24 = int_to_ptr.vmem [resolvable:$true] %s103_s24 }
  0x16   :  { %106 = dma.hbm_to_vmem [thread:$0]  %s102_s23, 16, %s104_s24, [#allocation14]  }
  0x17   :  { %10958 = dma.done.wait [#allocation5], 9216  }
  0x18   :  { %10959 = vsyncadd [#allocation5], 4294958080 }
  0x19   :  { %10960 = dma.done.wait [#allocation8], 2320  }
  0x1a   :  { %10961 = vsyncadd [#allocation8], 4294964976 }
  0x1b   :  { %10962 = dma.done.wait [#allocation11], 48  }
  0x1c   :  { %10963 = vsyncadd [#allocation11], 4294967248 }
  0x1d   :  { %10964 = dma.done.wait [#allocation14], 2064  }
  0x1e   :  { %10965 = vsyncadd [#allocation14], 4294965232  ;;  %v217_v0 = vld [vmem:[%s13066_s2 + $0x10] sm:$0x3]  ;;  %vm302_vm0 = vcmask 1041408   ;;  %v9793_v4 = vld [vmem:[%s13066_s2 + $0x8] sm:$0xff]  ;;  %v387_v15 = vlaneseq }
  0x1f   :  { %v271_v1 = vunpack.c.l.b16 %v217_v0  ;;  %v9792_v5 = vld [vmem:[%s13066_s2] sm:$0xff]  ;;  %vm277_vm1 = vcmask 293888   ;;  %v9785_v7 = vld [vmem:[%s13064_s0 + $0x8] sm:$0xff]  ;;  %v9786_v8 = vld [vmem:[%s13064_s0 + $0x10] sm:$0xff]  ;;  %vm731_vm4 = vcmask 261120   ;;  %s143_s21 = sshll.u32 %s13070_s6, 4  ;;  %s144_s21 = int_to_ptr.hbm [resolvable:$true] %s143_s21 }
  0x20   :  { %v9784_v6 = vld [vmem:[%s13064_s0] sm:$0xff]  ;;  %v9787_v9 = vld [vmem:[%s13064_s0 + $0x18] sm:$0xff]  ;;  %v9789_v11 = vld [vmem:[%s13064_s0 + $0x28] sm:$0xff]  ;;  %v11102_v19 = vshrl.u32 %v387_v15, 7  ;;  %s10985_s22 = smov [#allocation2]   ;;  %s149_s7 = scalar_lea.hbm %s13070_s6, 1024 }
  0x21   :  { %v274_v2 = vpack.c.b16 %v271_v1, %v271_v1  ;;  %v9788_v10 = vld [vmem:[%s13064_s0 + $0x20] sm:$0xff]  ;;  %v9790_v12 = vld [vmem:[%s13064_s0 + $0x30] sm:$0xff]  ;;  %v9791_v13 = vld [vmem:[%s13064_s0 + $0x38] sm:$0xff]  ;;  %s145_s23 = sshll.u32 %s10985_s22, 4  ;;  %s159_s25 = sshll.u32 %s149_s7, 4  ;;  %s146_s23 = int_to_ptr.vmem [resolvable:$true] %s145_s23  ;;  %s160_s25 = int_to_ptr.hbm [resolvable:$true] %s159_s25 }
  0x22   :  { %v11099_v14 = vld [vmem:[#allocation7] ss:$0 sm:$0xff]  ;;  %v9807_v16 = vld [vmem:[#allocation9 + $0x68] sm:$0xff]  ;;  %v9806_v20 = vld [vmem:[#allocation9 + $0x60] sm:$0xff]  ;;  %vm389_vm2 = vcmp.lt.s32.totalorder %v11102_v19, 2  ;;  %vm608_vm3 = vcmp.lt.s32.totalorder %v11102_v19, 6 }
  0x23   :  { %v304_v3 = vsel %vm302_vm0, %v274_v2, 0  ;;  %v11104_v21 = vld [vmem:[#allocation4 + $0x48] sm:$0xff]   ;;  %v11106_v22 = vld [vmem:[#allocation4 + $0xc0] sm:$0xff]   ;;  %v11110_v24 = vld [vmem:[#allocation4 + $0x1f8] sm:$0xff]   ;;  %148 = dma.hbm_to_vmem [thread:$0]  %s144_s21, 16384, %s146_s23, [#allocation3] }
  0x24   :  { %311 = vmatpush.bf16.msra.mxu0 %v304_v3  ;;  %v11108_v23 = vld [vmem:[#allocation4 + $0x88] sm:$0xff]   ;;  %v11114_v26 = vld [vmem:[#allocation4 + $0x1b8] sm:$0xff]   ;;  %v11116_v27 = vld [vmem:[#allocation4 + $0x140] sm:$0xff]   ;;  %v10378_v30 = vunpack.c.l.bf16 %v11104_v21  ;;  %v10439_v34 = vunpack.c.h.bf16 %v11106_v22  ;;  %v10379_v35 = vunpack.c.h.bf16 %v11104_v21  ;;  %v10562_v36 = vunpack.c.l.bf16 %v11110_v24  ;;  %s10986_s9 = smov [#allocation2 + $0x400]   ;;  %s165_s28 = scalar_lea.hbm %s13070_s6, 2048 }
  0x25   :  { %v11112_v25 = vld [vmem:[#allocation4 + $0x8] sm:$0xff]   ;;  %v11121_v29 = vld [vmem:[#allocation4 + $0x180] sm:$0xff]   ;;  %v11124_v31 = vld [vmem:[#allocation4 + $0x50] sm:$0xff]   ;;  %v10410_v38 = vunpack.c.l.bf16 %v11108_v23  ;;  %v10531_v41 = vunpack.c.h.bf16 %v11114_v26  ;;  %v10470_v44 = vunpack.c.l.bf16 %v11116_v27  ;;  %v10411_v48 = vunpack.c.h.bf16 %v11108_v23  ;;  %s161_s3 = sshll.u32 %s10986_s9, 4  ;;  %s175_s29 = sshll.u32 %s165_s28, 4  ;;  %s162_s3 = int_to_ptr.vmem [resolvable:$true] %s161_s3  ;;  %s176_s29 = int_to_ptr.hbm [resolvable:$true] %s175_s29 }
  0x26   :  { %v11126_v32 = vld [vmem:[#allocation4 + $0x1c0] sm:$0xff]   ;;  %v10347_v39 = vunpack.c.h.bf16 %v11112_v25  ;;  %v11135_v40 = vld [vmem:[#allocation4 + $0xc8] sm:$0xff]   ;;  %v11138_v42 = vld [vmem:[#allocation4 + $0x10] sm:$0xff]   ;;  %v10502_v43 = vunpack.c.l.bf16 %v11121_v29  ;;  %v10382_v45 = vunpack.c.l.bf16 %v11124_v31  ;;  %v10563_v50 = vunpack.c.h.bf16 %v11110_v24  ;;  %164 = dma.hbm_to_vmem [thread:$0]  %s160_s25, 16384, %s162_s3, [#allocation3 + $0x1] }
  0x27   :  { %v11150_v51 = vld [vmem:[#allocation4 + $0x238] sm:$0xff]   ;;  %v10442_v54 = vunpack.c.l.bf16 %v11135_v40  ;;  %v10350_v55 = vunpack.c.l.bf16 %v11138_v42  ;;  %v11158_v58 = vld [vmem:[#allocation4 + $0x90] sm:$0xff]   ;;  %v11160_v59 = vld [vmem:[#allocation4 + $0x200] sm:$0xff]   ;;  %v10471_v63 = vunpack.c.h.bf16 %v11116_v27  ;;  %s10987_s30 = smov [#allocation2 + $0x800]   ;;  %s181_s13 = scalar_lea.hbm %s13070_s6, 3072 }
  0x28   :  { %312 = vmatpush.bf16.msra.mxu0 %v9793_v4  ;;  %v10594_v1 = vunpack.c.l.bf16 %v11150_v51  ;;  %v11305_v62 = vld [vmem:[#allocation4 + $0x60] sm:$0xff]   ;;  %v11311_v0 = vld [vmem:[#allocation4 + $0x208] sm:$0xff]   ;;  %s177_s5 = sshll.u32 %s10987_s30, 4  ;;  %s191_s14 = sshll.u32 %s181_s13, 4  ;;  %s178_s5 = int_to_ptr.vmem [resolvable:$true] %s177_s5  ;;  %s192_s14 = int_to_ptr.hbm [resolvable:$true] %s191_s14 }
  0x29   :  { %180 = dma.hbm_to_vmem [thread:$0]  %s176_s29, 16384, %s178_s5, [#allocation3 + $0x2] }
  0x2a   :  { %s10988_s2 = smov [#allocation2 + $0xc00]  }
  0x2b   :  { %s193_s15 = sshll.u32 %s10988_s2, 4  ;;  %s194_s15 = int_to_ptr.vmem [resolvable:$true] %s193_s15 }
  0x2c   :  { %313 = vmatpush.bf16.msra.mxu0 %v9792_v5  ;;  %196 = dma.hbm_to_vmem [thread:$0]  %s192_s14, 16384, %s194_s15, [#allocation3 + $0x3] }
  0x2f   :  { %7388 = vmatmul.msk.bf16.vlgmr.msra.gmra.mxu0 %vm277_vm1, %v9784_v6  ;;  %v11178_v6 = vld [vmem:[#allocation4 + $0x148] sm:$0xff]  }
  0x30   :  { %1503 = vmatpush.bf16.msrb.mxu0 %v9807_v16 }
  0x34   :  { %1504 = vmatpush.bf16.msrb.mxu0 %v9806_v20 }
  0x3f   :  { %7389 = vmatmul.msk.bf16.gmra.mxu0 %vm277_vm1, %v9785_v7 }
  0x4f   :  { %7390 = vmatmul.msk.bf16.gmra.mxu0 %vm277_vm1, %v9786_v8  ;;  %v11180_v8 = vld [vmem:[#allocation4 + $0x188] sm:$0xff]  }
  0x5f   :  { %7391 = vmatmul.msk.bf16.gmra.mxu0 %vm277_vm1, %v9787_v9 }
  0x6f   :  { %7392 = vmatmul.msk.bf16.gmra.mxu0 %vm277_vm1, %v9788_v10 }
  0x7f   :  { %7393 = vmatmul.msk.bf16.gmra.mxu0 %vm277_vm1, %v9789_v11 }
  0x8f   :  { %7394 = vmatmul.msk.bf16.gmra.mxu0 %vm277_vm1, %v9790_v12  ;;  %v11239_v12 = vld [vmem:[#allocation4 + $0x150] sm:$0xff]  }
  0x9f   :  { %7395 = vmatmul.msk.bf16.gmra.mxu0 %vm277_vm1, %v9791_v13 }
  0xac   :  { %v315_v17 = vpop.f32.mrf.mxu0 }
  0xad   :  { %v316_v18 = vadd.f32 %v11099_v14, %v315_v17  ;;  %v11188_v17 = vld [vmem:[#allocation4 + $0xd0] sm:$0xff]  }
  0xaf   :  { %v11118_v28 = vmax.f32 %v316_v18, 0.0  ;;  %v11190_v18 = vld [vmem:[#allocation4 + $0x18] sm:$0xff]  }
  0xb1   :  { %v500_v49 = vpack.c.bf16 %v11118_v28, %v11118_v28  ;;  %v13075_v52 = vrot.slane %v11118_v28, 6  ;;  %v13076_v53 = vrot.slane %v11118_v28, 2 }
  0xb3   :  { %v533_v4 = vunpack.c.l.bf16 %v500_v49 }
  0xb4   :  { %v317_v33 = vpop.f32.mrf.mxu0 }
  0xb5   :  { %v318_v37 = vadd.f32 %v11099_v14, %v317_v33  ;;  %v11205_v60 = vmul.f32 %v10562_v36, %v533_v4 }
  0xb7   :  { %v11144_v47 = vmax.f32 %v318_v37, 0.0  ;;  %13169 = vst [vmem:[#allocation41_spill] sm:$0xff] %v11205_v60 }
  0xb9   :  { %13164 = vst [vmem:[#allocation36_spill] sm:$0xff] %v11144_v47  ;;  %v372_v56 = vrot.slane %v11144_v47, 6  ;;  %v593_v57 = vrot.slane %v11144_v47, 2  ;;  %v501_v61 = vpack.c.bf16 %v11144_v47, %v11144_v47 }
  0xbb   :  { %v404_v2 = vsel %vm389_vm2, %v13075_v52, %v372_v56  ;;  %v623_v3 = vsel %vm608_vm3, %v13076_v53, %v593_v57  ;;  %v534_v5 = vunpack.c.l.bf16 %v501_v61 }
  0xbc   :  { %v320_v7 = vpop.f32.mrf.mxu0  ;;  %v409_v15 = vpack.c.bf16 %v404_v2, %v404_v2  ;;  %v627_v21 = vpack.c.bf16 %v623_v3, %v623_v3  ;;  %v11201_v2 = vmul.f32 %v10378_v30, %v533_v4  ;;  %v11217_v4 = vld [vmem:[#allocation4 + $0x98] sm:$0xff]  }
  0xbd   :  { %v321_v13 = vadd.f32 %v11099_v14, %v320_v7  ;;  %v11192_v20 = vmul.f32 %v10379_v35, %v534_v5  ;;  %v11195_v33 = vmul.f32 %v10563_v50, %v534_v5  ;;  %v11203_v7 = vld [vmem:[#allocation4 + $0x58] sm:$0xff]   ;;  %v11211_v5 = vld [vmem:[#allocation4 + $0x1c8] sm:$0xff]  }
  0xbe   :  { %13168 = vst [vmem:[#allocation40_spill] sm:$0xff] %v11201_v2  ;;  %v441_v30 = vunpack.c.l.bf16 %v409_v15  ;;  %v660_v36 = vunpack.c.l.bf16 %v627_v21 }
  0xbf   :  { %13165 = vst [vmem:[#allocation37_spill] sm:$0xff] %v11192_v20  ;;  %v11198_v49 = vmax.f32 %v321_v13, 0.0 }
  0xc0   :  { %13166 = vst [vmem:[#allocation38_spill] sm:$0xff] %v11195_v33 }
  0xc1   :  { %13167 = vst [vmem:[#allocation39_spill] sm:$0xff] %v11198_v49  ;;  %v373_v13 = vrot.slane %v11198_v49, 6  ;;  %v594_v53 = vrot.slane %v11198_v49, 2  ;;  %v502_v15 = vpack.c.bf16 %v11198_v49, %v11198_v49 }
  0xc3   :  { %v403_v52 = vsel %vm389_vm2, %v372_v56, %v373_v13  ;;  %v622_v24 = vsel %vm608_vm3, %v593_v57, %v594_v53  ;;  %v11235_v56 = vmul.f32 %v10439_v34, %v441_v30  ;;  %v11253_v34 = vmul.f32 %v10531_v41, %v441_v30  ;;  %v11257_v57 = vld [vmem:[#allocation4 + $0x190] sm:$0xff]   ;;  %v11285_v41 = vld [vmem:[#allocation4 + $0x20] sm:$0xff]  }
  0xc4   :  { %v410_v61 = vpack.c.bf16 %v403_v52, %v403_v52  ;;  %v322_v11 = vpop.f32.mrf.mxu0  ;;  %v628_v10 = vpack.c.bf16 %v622_v24, %v622_v24  ;;  %v11245_v52 = vmul.f32 %v10410_v38, %v660_v36  ;;  %v11249_v24 = vmul.f32 %v10347_v39, %v441_v30 }
  0xc5   :  { %v323_v50 = vadd.f32 %v11099_v14, %v322_v11  ;;  %v535_v37 = vunpack.c.l.bf16 %v502_v15  ;;  %v11291_v38 = vmul.f32 %v10594_v1, %v660_v36 }
  0xc6   :  { %v11241_v21 = vunpack.c.l.bf16 %v628_v10  ;;  %v11261_v10 = vmul.f32 %v10470_v44, %v660_v36  ;;  %v442_v3 = vunpack.c.l.bf16 %v410_v61  ;;  %v11273_v44 = vld [vmem:[#allocation4 + $0xd8] sm:$0xff]  }
  0xc7   :  { %v11255_v11 = vmax.f32 %v323_v50, 0.0  ;;  %13173 = vst [vmem:[#allocation45_spill] sm:$0xff] %v11291_v38  ;;  %v11301_v15 = vmul.f32 %v10382_v45, %v535_v37  ;;  %v11313_v45 = vld [vmem:[#allocation4 + $0x1d0] sm:$0xff]  }
  0xc8   :  { %13171 = vst [vmem:[#allocation43_spill] sm:$0xff] %v11261_v10  ;;  %v11267_v39 = vmul.f32 %v10411_v48, %v11241_v21  ;;  %v11278_v61 = vmul.f32 %v10471_v63, %v11241_v21  ;;  %v11317_v9 = vmul.f32 %v10442_v54, %v442_v3  ;;  %v13180_v54 = vunpack.c.h.bf16 %v11121_v29 }
  0xc9   :  { %13170 = vst [vmem:[#allocation42_spill] sm:$0xff] %v11255_v11  ;;  %v374_v30 = vrot.slane %v11255_v11, 6  ;;  %v595_v35 = vrot.slane %v11255_v11, 2  ;;  %v503_v50 = vpack.c.bf16 %v11255_v11, %v11255_v11  ;;  %v13198_v11 = vunpack.c.l.bf16 %v11180_v8 }
  0xca   :  { %13172 = vst [vmem:[#allocation44_spill] sm:$0xff] %v11278_v61 }
  0xcb   :  { %v402_v27 = vsel %vm389_vm2, %v373_v13, %v374_v30  ;;  %v621_v63 = vsel %vm608_vm3, %v594_v53, %v595_v35  ;;  %13174 = vst [vmem:[#allocation46_spill] sm:$0xff] %v11301_v15  ;;  %v536_v36 = vunpack.c.l.bf16 %v503_v50  ;;  %v1432_v53 = vmul.f32 %v10502_v43, %v442_v3 }
  0xcc   :  { %v325_v48 = vpop.f32.mrf.mxu0  ;;  %v411_v16 = vpack.c.bf16 %v402_v27, %v402_v27  ;;  %v629_v46 = vpack.c.bf16 %v621_v63, %v621_v63  ;;  %v11321_v50 = vmul.f32 %v10350_v55, %v442_v3  ;;  %v13178_v63 = vunpack.c.l.bf16 %v11126_v32 }
  0xcd   :  { %v326_v13 = vadd.f32 %v11099_v14, %v325_v48  ;;  %v13175_v48 = vunpack.c.h.bf16 %v11124_v31  ;;  %v13181_v55 = vunpack.c.h.bf16 %v11135_v40  ;;  %v11351_v40 = vld [vmem:[#allocation4 + $0xa0] sm:$0xff]  }
  0xce   :  { %v443_v27 = vunpack.c.l.bf16 %v411_v16  ;;  %v11331_v23 = vmul.f32 %v13178_v63, %v535_v37  ;;  %v662_v63 = vunpack.c.l.bf16 %v629_v46  ;;  %v13182_v16 = vunpack.c.h.bf16 %v11138_v42 }
  0xcf   :  { %v11325_v1 = vmul.f32 %v13175_v48, %v536_v36  ;;  %v11327_v43 = vmax.f32 %v326_v13, 0.0 }
  0xd0   :  { %13179 = vst [vmem:[#allocation49_spill] sm:$0xff] %v11331_v23  ;;  %v1433_v33 = vmul.f32 %v13180_v54, %v443_v27  ;;  %v11339_v3 = vmul.f32 %v13181_v55, %v443_v27  ;;  %v11347_v49 = vmul.f32 %v13182_v16, %v443_v27  ;;  %v13183_v55 = vunpack.c.h.bf16 %v11126_v32 }
  0xd1   :  { %13176 = vst [vmem:[#allocation47_spill] sm:$0xff] %v11325_v1  ;;  %v375_v48 = vrot.slane %v11327_v43, 6  ;;  %v596_v37 = vrot.slane %v11327_v43, 2  ;;  %v11439_v1 = vld [vmem:[#allocation4 + $0x68] sm:$0xff]  }
  0xd2   :  { %13177 = vst [vmem:[#allocation48_spill] sm:$0xff] %v11327_v43  ;;  %v1448_v60 = vpack.c.bf16 %v1433_v33, %v1432_v53  ;;  %v11357_v13 = vmul.f32 %v13183_v55, %v536_v36  ;;  %v504_v53 = vpack.c.bf16 %v11327_v43, %v11327_v43  ;;  %v11371_v55 = vld [vmem:[#allocation4 + $0x158] sm:$0xff]   ;;  %v13188_v36 = vunpack.c.l.bf16 %v11160_v59 }
  0xd3   :  { %v401_v46 = vsel %vm389_vm2, %v374_v30, %v375_v48  ;;  %v620_v42 = vsel %vm608_vm3, %v595_v35, %v596_v37  ;;  %v13185_v35 = vunpack.c.h.bf16 %v11150_v51 }
  0xd4   :  { %13184 = vst [vmem:[#allocation50_spill] sm:$0xff] %v11357_v13  ;;  %v327_v27 = vpop.f32.mrf.mxu0  ;;  %7500 = vmatmul.msk.bf16.vlgmr.msrb.gmra.mxu0 %vm731_vm4, %v1448_v60  ;;  %v630_v32 = vpack.c.bf16 %v620_v42, %v620_v42  ;;  %v412_v33 = vpack.c.bf16 %v401_v46, %v401_v46  ;;  %v13187_v42 = vunpack.c.l.bf16 %v11158_v58  ;;  %v11387_v23 = vmul.f32 %v13188_v36, %v662_v63 }
  0xd5   :  { %v11376_v30 = vmul.f32 %v13185_v35, %v11241_v21  ;;  %v328_v54 = vadd.f32 %v11099_v14, %v327_v27  ;;  %v13191_v27 = vunpack.c.l.bf16 %v11178_v6  ;;  %v537_v35 = vunpack.c.l.bf16 %v504_v53 }
  0xd6   :  { %v663_v31 = vunpack.c.l.bf16 %v630_v32  ;;  %v11383_v16 = vmul.f32 %v13187_v42, %v662_v63  ;;  %13189 = vst [vmem:[#allocation52_spill] sm:$0xff] %v11387_v23  ;;  %v11397_v32 = vld [vmem:[#allocation4 + $0x198] sm:$0xff]   ;;  %v13193_v42 = vunpack.c.h.bf16 %v11158_v58  ;;  %v13194_v36 = vunpack.c.h.bf16 %v11160_v59 }
  0xd7   :  { %13186 = vst [vmem:[#allocation51_spill] sm:$0xff] %v11376_v30  ;;  %v11390_v21 = vmax.f32 %v328_v54, 0.0  ;;  %v11394_v46 = vmul.f32 %v13191_v27, %v662_v63  ;;  %v444_v27 = vunpack.c.l.bf16 %v412_v33  ;;  %v13196_v60 = vunpack.c.h.bf16 %v11178_v6 }
  0xd8   :  { %v11401_v29 = vmul.f32 %v13193_v42, %v663_v31  ;;  %v11405_v13 = vmul.f32 %v13194_v36, %v663_v31  ;;  %v11419_v42 = vld [vmem:[#allocation4 + $0xe0] sm:$0xff]   ;;  %v11421_v36 = vld [vmem:[#allocation4 + $0x28] sm:$0xff]   ;;  %v13208_v54 = vunpack.c.h.bf16 %v11180_v8 }
  0xd9   :  { %13190 = vst [vmem:[#allocation53_spill] sm:$0xff] %v11390_v21  ;;  %v376_v63 = vrot.slane %v11390_v21, 6  ;;  %v597_v53 = vrot.slane %v11390_v21, 2  ;;  %v11413_v15 = vmul.f32 %v13196_v60, %v663_v31  ;;  %v505_v33 = vpack.c.bf16 %v11390_v21, %v11390_v21 }
  0xda   :  { %13192 = vst [vmem:[#allocation54_spill] sm:$0xff] %v11394_v46  ;;  %v1434_v59 = vmul.f32 %v13198_v11, %v444_v27  ;;  %v13206_v31 = vunpack.c.l.bf16 %v11203_v7 }
  0xdb   :  { %13195 = vst [vmem:[#allocation55_spill] sm:$0xff] %v11405_v13  ;;  %v400_v6 = vsel %vm389_vm2, %v375_v48, %v376_v63  ;;  %v619_v60 = vsel %vm608_vm3, %v596_v37, %v597_v53  ;;  %v538_v13 = vunpack.c.l.bf16 %v505_v33  ;;  %v13201_v33 = vunpack.c.h.bf16 %v11203_v7 }
  0xdc   :  { %13197 = vst [vmem:[#allocation56_spill] sm:$0xff] %v11413_v15  ;;  %v330_v58 = vpop.f32.mrf.mxu0  ;;  %v413_v51 = vpack.c.bf16 %v400_v6, %v400_v6  ;;  %v631_v21 = vpack.c.bf16 %v619_v60, %v619_v60  ;;  %v13199_v6 = vunpack.c.l.bf16 %v11188_v17  ;;  %v13204_v60 = vunpack.c.l.bf16 %v11190_v18 }
  0xdd   :  { %v331_v43 = vadd.f32 %v11099_v14, %v330_v58  ;;  %v11449_v23 = vmul.f32 %v13201_v33, %v538_v13  ;;  %v13209_v15 = vunpack.c.h.bf16 %v11188_v17 }
  0xde   :  { %v445_v37 = vunpack.c.l.bf16 %v413_v51  ;;  %v11445_v46 = vmul.f32 %v13199_v6, %v444_v27  ;;  %v11455_v48 = vmul.f32 %v13204_v60, %v444_v27  ;;  %v11459_v51 = vmul.f32 %v13206_v31, %v537_v35  ;;  %v11473_v60 = vld [vmem:[#allocation4 + $0x210] sm:$0xff]  }
  0xdf   :  { %13202 = vst [vmem:[#allocation58_spill] sm:$0xff] %v11449_v23  ;;  %v11451_v58 = vmax.f32 %v331_v43, 0.0  ;;  %v13211_v43 = vunpack.c.h.bf16 %v11190_v18 }
  0xe0   :  { %13200 = vst [vmem:[#allocation57_spill] sm:$0xff] %v11445_v46  ;;  %v1435_v6 = vmul.f32 %v13208_v54, %v445_v37  ;;  %v11466_v2 = vmul.f32 %v13209_v15, %v445_v37  ;;  %v664_v54 = vunpack.c.l.bf16 %v631_v21  ;;  %v11483_v15 = vld [vmem:[#allocation4 + $0xa8] sm:$0xff]   ;;  %v13213_v21 = vunpack.c.l.bf16 %v11211_v5 }
  0xe1   :  { %13203 = vst [vmem:[#allocation59_spill] sm:$0xff] %v11451_v58  ;;  %v11470_v33 = vmul.f32 %v13211_v43, %v445_v37  ;;  %v377_v7 = vrot.slane %v11451_v58, 6  ;;  %v506_v31 = vpack.c.bf16 %v11451_v58, %v11451_v58  ;;  %v598_v8 = vrot.slane %v11451_v58, 2  ;;  %v11498_v37 = vld [vmem:[#allocation4 + $0x160] sm:$0xff]   ;;  %v9795_v46 = vld [vmem:[#allocation9 + $0x8] sm:$0xff] }
  0xe2   :  { %13205 = vst [vmem:[#allocation60_spill] sm:$0xff] %v11455_v48  ;;  %v1449_v11 = vpack.c.bf16 %v1435_v6, %v1434_v59  ;;  %v11493_v59 = vmul.f32 %v13213_v21, %v537_v35  ;;  %v13217_v6 = vunpack.c.l.bf16 %v11217_v4  ;;  %v13232_v48 = vunpack.c.h.bf16 %v11311_v0  ;;  %847 = vmatpush.bf16.msra.mxu2 %v9795_v46 }
  0xe3   :  { %13207 = vst [vmem:[#allocation61_spill] sm:$0xff] %v11459_v51  ;;  %v399_v43 = vsel %vm389_vm2, %v376_v63, %v377_v7  ;;  %v618_v27 = vsel %vm608_vm3, %v597_v53, %v598_v8  ;;  %v539_v17 = vunpack.c.l.bf16 %v506_v31  ;;  %v13215_v63 = vunpack.c.h.bf16 %v11211_v5 }
  0xe4   :  { %13210 = vst [vmem:[#allocation62_spill] sm:$0xff] %v11466_v2  ;;  %v332_v20 = vpop.f32.mrf.mxu0  ;;  %7501 = vmatmul.msk.bf16.gmra.mxu0 %vm731_vm4, %v1449_v11  ;;  %v632_v10 = vpack.c.bf16 %v618_v27, %v618_v27  ;;  %v414_v23 = vpack.c.bf16 %v399_v43, %v399_v43  ;;  %v11509_v11 = vmul.f32 %v13217_v6, %v664_v54  ;;  %v13222_v6 = vunpack.c.h.bf16 %v11217_v4 }
  0xe5   :  { %13212 = vst [vmem:[#allocation63_spill] sm:$0xff] %v11470_v33  ;;  %v11502_v51 = vmul.f32 %v13215_v63, %v538_v13  ;;  %v333_v53 = vadd.f32 %v11099_v14, %v332_v20  ;;  %v11516_v13 = vld [vmem:[#allocation4 + $0x1a0] sm:$0xff]   ;;  %v13220_v20 = vunpack.c.l.bf16 %v11239_v12  ;;  %v13224_v27 = vunpack.c.l.bf16 %v11305_v62 }
  0xe6   :  { %13214 = vst [vmem:[#allocation64_spill] sm:$0xff] %v11493_v59  ;;  %v665_v31 = vunpack.c.l.bf16 %v632_v10  ;;  %v13228_v59 = vunpack.c.l.bf16 %v11313_v45  ;;  %v13295_v2 = vunpack.c.l.bf16 %v11516_v13 }
  0xe7   :  { %13216 = vst [vmem:[#allocation65_spill] sm:$0xff] %v11502_v51  ;;  %v11514_v5 = vmax.f32 %v333_v53, 0.0  ;;  %v11520_v43 = vmul.f32 %v13220_v20, %v664_v54  ;;  %v11530_v35 = vmul.f32 %v13224_v27, %v539_v17  ;;  %v13226_v53 = vunpack.c.l.bf16 %v11311_v0  ;;  %v11544_v51 = vld [vmem:[#allocation4 + $0xe8] sm:$0xff]  }
  0xe8   :  { %13218 = vst [vmem:[#allocation66_spill] sm:$0xff] %v11509_v11  ;;  %v11526_v21 = vmul.f32 %v13222_v6, %v665_v31  ;;  %v11538_v20 = vmul.f32 %v13228_v59, %v539_v17  ;;  %v446_v6 = vunpack.c.l.bf16 %v414_v23  ;;  %v11561_v27 = vmul.f32 %v13232_v48, %v665_v31  ;;  %v11565_v11 = vld [vmem:[#allocation4 + $0x30] sm:$0xff]  }
  0xe9   :  { %13219 = vst [vmem:[#allocation67_spill] sm:$0xff] %v11514_v5  ;;  %v11534_v18 = vmul.f32 %v13226_v53, %v664_v54  ;;  %v378_v63 = vrot.slane %v11514_v5, 6  ;;  %v507_v10 = vpack.c.bf16 %v11514_v5, %v11514_v5  ;;  %v599_v4 = vrot.slane %v11514_v5, 2  ;;  %v11583_v5 = vld [vmem:[#allocation4 + $0x70] sm:$0xff]  }
  0xea   :  { %13221 = vst [vmem:[#allocation68_spill] sm:$0xff] %v11520_v43  ;;  %v13230_v53 = vunpack.c.h.bf16 %v11239_v12  ;;  %v13234_v17 = vunpack.c.h.bf16 %v11305_v62  ;;  %v13237_v12 = vunpack.c.l.bf16 %v11273_v44  ;;  %v13240_v62 = vunpack.c.l.bf16 %v11285_v41 }
  0xeb   :  { %13223 = vst [vmem:[#allocation69_spill] sm:$0xff] %v11526_v21  ;;  %v540_v59 = vunpack.c.l.bf16 %v507_v10  ;;  %v398_v47 = vsel %vm389_vm2, %v377_v7, %v378_v63  ;;  %v617_v23 = vsel %vm608_vm3, %v598_v8, %v599_v4 }
  0xec   :  { %13225 = vst [vmem:[#allocation70_spill] sm:$0xff] %v11530_v35  ;;  %v11551_v61 = vmul.f32 %v13230_v53, %v665_v31  ;;  %v335_v33 = vpop.f32.mrf.mxu0  ;;  %v415_v54 = vpack.c.bf16 %v398_v47, %v398_v47  ;;  %v13236_v31 = vunpack.c.l.bf16 %v11257_v57  ;;  %v11581_v58 = vmul.f32 %v13237_v12, %v446_v6 }
  0xed   :  { %13227 = vst [vmem:[#allocation71_spill] sm:$0xff] %v11534_v18  ;;  %v336_v7 = vadd.f32 %v11099_v14, %v335_v33  ;;  %v11572_v8 = vmul.f32 %v13234_v17, %v540_v59  ;;  %v633_v10 = vpack.c.bf16 %v617_v23, %v617_v23  ;;  %v11589_v17 = vmul.f32 %v13240_v62, %v446_v6 }
  0xee   :  { %13229 = vst [vmem:[#allocation72_spill] sm:$0xff] %v11538_v20  ;;  %v447_v48 = vunpack.c.l.bf16 %v415_v54  ;;  %v1436_v53 = vmul.f32 %v13236_v31, %v446_v6  ;;  %v13242_v31 = vunpack.c.h.bf16 %v11257_v57  ;;  %v13243_v12 = vunpack.c.h.bf16 %v11273_v44 }
  0xef   :  { %13231 = vst [vmem:[#allocation73_spill] sm:$0xff] %v11551_v61  ;;  %v11585_v33 = vmax.f32 %v336_v7, 0.0  ;;  %v13245_v23 = vunpack.c.h.bf16 %v11285_v41  ;;  %v666_v41 = vunpack.c.l.bf16 %v633_v10  ;;  %v13251_v10 = vunpack.c.l.bf16 %v11371_v55 }
  0xf0   :  { %13233 = vst [vmem:[#allocation74_spill] sm:$0xff] %v11561_v27  ;;  %v1437_v47 = vmul.f32 %v13242_v31, %v447_v48  ;;  %v11598_v18 = vmul.f32 %v13243_v12, %v447_v48  ;;  %v13247_v27 = vunpack.c.h.bf16 %v11313_v45  ;;  %v11617_v45 = vld [vmem:[#allocation4 + $0xb0] sm:$0xff]   ;;  %v11633_v31 = vld [vmem:[#allocation4 + $0x1a8] sm:$0xff]  }
  0xf1   :  { %13235 = vst [vmem:[#allocation75_spill] sm:$0xff] %v11572_v8  ;;  %v11602_v7 = vmul.f32 %v13245_v23, %v447_v48  ;;  %v379_v62 = vrot.slane %v11585_v33, 6  ;;  %v508_v54 = vpack.c.bf16 %v11585_v33, %v11585_v33  ;;  %v600_v57 = vrot.slane %v11585_v33, 2  ;;  %v11626_v48 = vld [vmem:[#allocation4 + $0x168] sm:$0xff]  }
  0xf2   :  { %13238 = vst [vmem:[#allocation76_spill] sm:$0xff] %v11581_v58  ;;  %v11606_v6 = vmul.f32 %v13247_v27, %v540_v59  ;;  %v1450_v44 = vpack.c.bf16 %v1437_v47, %v1436_v53  ;;  %v10640_v27 = vld [vmem:[#allocation4 + $0x1d8] sm:$0xff]   ;;  %v11642_v61 = vmul.f32 %v13251_v10, %v666_v41 }
  0xf3   :  { %13239 = vst [vmem:[#allocation77_spill] sm:$0xff] %v11585_v33  ;;  %v541_v59 = vunpack.c.l.bf16 %v508_v54  ;;  %v397_v23 = vsel %vm389_vm2, %v378_v63, %v379_v62  ;;  %v616_v0 = vsel %vm608_vm3, %v599_v4, %v600_v57  ;;  %v10546_v8 = vunpack.c.l.bf16 %v10640_v27 }
  0xf4   :  { %13241 = vst [vmem:[#allocation78_spill] sm:$0xff] %v11589_v17  ;;  %v337_v53 = vpop.f32.mrf.mxu0  ;;  %7502 = vmatmul.msk.bf16.gmra.mxu0 %vm731_vm4, %v1450_v44  ;;  %v416_v47 = vpack.c.bf16 %v397_v23, %v397_v23  ;;  %v634_v12 = vpack.c.bf16 %v616_v0, %v616_v0  ;;  %v13249_v44 = vunpack.c.l.bf16 %v11351_v40  ;;  %v13258_v0 = vunpack.c.l.bf16 %v11473_v60 }
  0xf5   :  { %13244 = vst [vmem:[#allocation79_spill] sm:$0xff] %v11598_v18  ;;  %v338_v35 = vadd.f32 %v11099_v14, %v337_v53  ;;  %v13254_v53 = vunpack.c.l.bf16 %v11439_v1  ;;  %v10547_v10 = vunpack.c.h.bf16 %v10640_v27  ;;  %v11675_v27 = vmul.f32 %v10546_v8, %v541_v59 }
  0xf6   :  { %13246 = vst [vmem:[#allocation80_spill] sm:$0xff] %v11602_v7  ;;  %v667_v43 = vunpack.c.l.bf16 %v634_v12  ;;  %v11637_v23 = vmul.f32 %v13249_v44, %v666_v41  ;;  %v448_v20 = vunpack.c.l.bf16 %v416_v47  ;;  %v13256_v44 = vunpack.c.h.bf16 %v11351_v40  ;;  %v11665_v12 = vld [vmem:[#allocation4 + $0x218] sm:$0xff]  }
  0xf7   :  { %13248 = vst [vmem:[#allocation81_spill] sm:$0xff] %v11606_v6  ;;  %v11644_v54 = vmax.f32 %v338_v35, 0.0  ;;  %v11648_v63 = vmul.f32 %v13254_v53, %v541_v59  ;;  %v11658_v17 = vmul.f32 %v13258_v0, %v666_v41  ;;  %v13260_v47 = vunpack.c.h.bf16 %v11371_v55 }
  0xf8   :  { %13250 = vst [vmem:[#allocation82_spill] sm:$0xff] %v11637_v23  ;;  %v11654_v6 = vmul.f32 %v13256_v44, %v667_v43  ;;  %v13263_v59 = vunpack.c.h.bf16 %v11439_v1  ;;  %v13269_v55 = vunpack.c.l.bf16 %v11419_v42  ;;  %v11705_v1 = vld [vmem:[#allocation4 + $0xf0] sm:$0xff]  }
  0xf9   :  { %13252 = vst [vmem:[#allocation83_spill] sm:$0xff] %v11642_v61  ;;  %v380_v35 = vrot.slane %v11644_v54, 6  ;;  %v509_v53 = vpack.c.bf16 %v11644_v54, %v11644_v54  ;;  %v601_v7 = vrot.slane %v11644_v54, 2  ;;  %v11671_v44 = vmul.f32 %v13260_v47, %v667_v43 }
  0xfa   :  { %13253 = vst [vmem:[#allocation84_spill] sm:$0xff] %v11644_v54  ;;  %v11700_v33 = vmul.f32 %v13269_v55, %v448_v20  ;;  %v13273_v55 = vunpack.c.h.bf16 %v11419_v42 }
  0xfb   :  { %13255 = vst [vmem:[#allocation85_spill] sm:$0xff] %v11648_v63  ;;  %v542_v0 = vunpack.c.l.bf16 %v509_v53  ;;  %v396_v58 = vsel %vm389_vm2, %v379_v62, %v380_v35  ;;  %v615_v4 = vsel %vm608_vm3, %v600_v57, %v601_v7  ;;  %v13265_v62 = vunpack.c.h.bf16 %v11473_v60 }
  0xfc   :  { %13257 = vst [vmem:[#allocation86_spill] sm:$0xff] %v11654_v6  ;;  %v340_v21 = vpop.f32.mrf.mxu0  ;;  %v417_v40 = vpack.c.bf16 %v396_v58, %v396_v58  ;;  %v635_v23 = vpack.c.bf16 %v615_v4, %v615_v4  ;;  %v13268_v58 = vunpack.c.l.bf16 %v11397_v32  ;;  %v13282_v63 = vunpack.c.l.bf16 %v11498_v37  ;;  %v9799_v6 = vld [vmem:[#allocation9 + $0x28] sm:$0xff] }
  0xfd   :  { %13259 = vst [vmem:[#allocation87_spill] sm:$0xff] %v11658_v17  ;;  %v341_v8 = vadd.f32 %v11099_v14, %v340_v21  ;;  %v11688_v53 = vmul.f32 %v13263_v59, %v542_v0  ;;  %v11692_v41 = vmul.f32 %v13265_v62, %v667_v43  ;;  %v11694_v57 = vmul.f32 %v10547_v10, %v542_v0  ;;  %v11727_v21 = vld [vmem:[#allocation4 + $0x38] sm:$0xff]  }
  0xfe   :  { %13261 = vst [vmem:[#allocation88_spill] sm:$0xff] %v11671_v44  ;;  %v449_v18 = vunpack.c.l.bf16 %v417_v40  ;;  %v1438_v4 = vmul.f32 %v13268_v58, %v448_v20  ;;  %v13272_v40 = vunpack.c.h.bf16 %v11397_v32  ;;  %v13277_v58 = vunpack.c.h.bf16 %v11421_v36  ;;  %v11729_v43 = vld [vmem:[#allocation4 + $0x78] sm:$0xff]   ;;  %762 = vmatpush.bf16.msra.mxu1 %v9799_v6 }
  0xff   :  { %13262 = vst [vmem:[#allocation89_spill] sm:$0xff] %v11675_v27  ;;  %v11703_v47 = vmax.f32 %v341_v8, 0.0  ;;  %v13275_v8 = vunpack.c.l.bf16 %v11421_v36 }
 0x100   :  { %13264 = vst [vmem:[#allocation90_spill] sm:$0xff] %v11688_v53  ;;  %v1439_v0 = vmul.f32 %v13272_v40, %v449_v18  ;;  %v11717_v59 = vmul.f32 %v13273_v55, %v449_v18  ;;  %v11725_v60 = vmul.f32 %v13277_v58, %v449_v18  ;;  %v668_v40 = vunpack.c.l.bf16 %v635_v23  ;;  %v11751_v18 = vld [vmem:[#allocation4 + $0x40] sm:$0xff]  }
 0x101   :  { %13266 = vst [vmem:[#allocation91_spill] sm:$0xff] %v11692_v41  ;;  %v11721_v62 = vmul.f32 %v13275_v8, %v448_v20  ;;  %v381_v10 = vrot.slane %v11703_v47, 6  ;;  %v510_v32 = vpack.c.bf16 %v11703_v47, %v11703_v47  ;;  %v602_v42 = vrot.slane %v11703_v47, 2  ;;  %v11740_v8 = vld [vmem:[#allocation4 + $0x1e0] sm:$0xff]  }
 0x102   :  { %13267 = vst [vmem:[#allocation92_spill] sm:$0xff] %v11694_v57  ;;  %v1451_v55 = vpack.c.bf16 %v1439_v0, %v1438_v4  ;;  %v11746_v57 = vld [vmem:[#allocation4 + $0xb8] sm:$0xff]   ;;  %v13279_v23 = vunpack.c.l.bf16 %v11483_v15  ;;  %v11773_v61 = vmul.f32 %v13282_v63, %v668_v40  ;;  %v13286_v4 = vunpack.c.l.bf16 %v11583_v5 }
 0x103   :  { %13270 = vst [vmem:[#allocation93_spill] sm:$0xff] %v11700_v33  ;;  %v395_v58 = vsel %vm389_vm2, %v380_v35, %v381_v10  ;;  %v614_v27 = vsel %vm608_vm3, %v601_v7, %v602_v42  ;;  %v543_v20 = vunpack.c.l.bf16 %v510_v32  ;;  %v11754_v35 = vld [vmem:[#allocation4 + $0x170] sm:$0xff]   ;;  %v10550_v32 = vunpack.c.l.bf16 %v11740_v8 }
 0x104   :  { %13271 = vst [vmem:[#allocation94_spill] sm:$0xff] %v11703_v47  ;;  %v418_v0 = vpack.c.bf16 %v395_v58, %v395_v58  ;;  %v342_v17 = vpop.f32.mrf.mxu0  ;;  %7503 = vmatmul.msk.bf16.gmra.mxu0 %vm731_vm4, %v1451_v55  ;;  %v636_v36 = vpack.c.bf16 %v614_v27, %v614_v27  ;;  %v11760_v53 = vmul.f32 %v13279_v23, %v668_v40  ;;  %v11763_v58 = vld [vmem:[#allocation4] sm:$0xff]  }
 0x105   :  { %13274 = vst [vmem:[#allocation95_spill] sm:$0xff] %v11717_v59  ;;  %v343_v7 = vadd.f32 %v11099_v14, %v342_v17  ;;  %v11784_v41 = vmul.f32 %v13286_v4, %v543_v20 }
 0x106   :  { %13276 = vst [vmem:[#allocation96_spill] sm:$0xff] %v11721_v62  ;;  %v669_v55 = vunpack.c.l.bf16 %v636_v36  ;;  %v450_v44 = vunpack.c.l.bf16 %v418_v0  ;;  %v11776_v62 = vld [vmem:[#allocation4 + $0x1b0] sm:$0xff]   ;;  %v13284_v36 = vunpack.c.h.bf16 %v11483_v15  ;;  %v9801_v0 = vld [vmem:[#allocation9 + $0x38] sm:$0xff] }
 0x107   :  { %13278 = vst [vmem:[#allocation97_spill] sm:$0xff] %v11725_v60  ;;  %v11768_v54 = vmax.f32 %v343_v7, 0.0  ;;  %v13290_v7 = vunpack.c.l.bf16 %v11665_v12  ;;  %994 = vmatpush.bf16.msra.mxu3 %v9801_v0 }
 0x108   :  { %13280 = vst [vmem:[#allocation98_spill] sm:$0xff] %v11760_v53  ;;  %v11780_v27 = vmul.f32 %v13284_v36, %v669_v55  ;;  %v13288_v36 = vunpack.c.h.bf16 %v11498_v37 }
 0x109   :  { %13281 = vst [vmem:[#allocation99_spill] sm:$0xff] %v11768_v54  ;;  %v382_v17 = vrot.slane %v11768_v54, 6  ;;  %v511_v63 = vpack.c.bf16 %v11768_v54, %v11768_v54  ;;  %v603_v23 = vrot.slane %v11768_v54, 2  ;;  %v11802_v33 = vmul.f32 %v13290_v7, %v668_v40  ;;  %v11813_v40 = vld [vmem:[#allocation4 + $0xf8] sm:$0xff]  }
 0x10a   :  { %13283 = vst [vmem:[#allocation100_spill] sm:$0xff] %v11773_v61  ;;  %v11796_v60 = vmul.f32 %v13288_v36, %v669_v55  ;;  %v13292_v36 = vunpack.c.h.bf16 %v11665_v12  ;;  %v11817_v7 = vmul.f32 %v10550_v32, %v543_v20  ;;  %v9798_v12 = vld [vmem:[#allocation9 + $0x20] sm:$0xff]  ;;  %v13296_v20 = vunpack.c.l.bf16 %v11544_v51 }
 0x10b   :  { %13285 = vst [vmem:[#allocation101_spill] sm:$0xff] %v11780_v27  ;;  %v394_v59 = vsel %vm389_vm2, %v381_v10, %v382_v17  ;;  %v613_v37 = vsel %vm608_vm3, %v602_v42, %v603_v23  ;;  %v544_v47 = vunpack.c.l.bf16 %v511_v63  ;;  %v1440_v27 = vmul.f32 %v13295_v2, %v450_v44  ;;  %v9794_v42 = vld [vmem:[#allocation9] sm:$0xff]  ;;  %763 = vmatpush.bf16.msra.mxu1 %v9798_v12 }
 0x10c   :  { %13287 = vst [vmem:[#allocation102_spill] sm:$0xff] %v11784_v41  ;;  %v11811_v15 = vmul.f32 %v13292_v36, %v669_v55  ;;  %v419_v4 = vpack.c.bf16 %v394_v59, %v394_v59  ;;  %v345_v54 = vpop.f32.mrf.mxu0  ;;  %v10551_v55 = vunpack.c.h.bf16 %v11740_v8  ;;  %v9800_v36 = vld [vmem:[#allocation9 + $0x30] sm:$0xff]  ;;  %v11825_v10 = vld [vmem:[#allocation4 + $0x80] sm:$0xff]   ;;  %v637_v32 = vpack.c.bf16 %v613_v37, %v613_v37  ;;  %848 = vmatpush.bf16.msra.mxu2 %v9794_v42 }
 0x10d   :  { %13289 = vst [vmem:[#allocation103_spill] sm:$0xff] %v11796_v60  ;;  %v346_v53 = vadd.f32 %v11099_v14, %v345_v54  ;;  %v11829_v54 = vmul.f32 %v13296_v20, %v450_v44  ;;  %v13297_v2 = vunpack.c.l.bf16 %v11565_v11  ;;  %995 = vmatpush.bf16.msra.mxu3 %v9800_v36  ;;  %v13309_v8 = vunpack.c.h.bf16 %v11617_v45 }
 0x10e   :  { %13291 = vst [vmem:[#allocation104_spill] sm:$0xff] %v11802_v33  ;;  %v451_v63 = vunpack.c.l.bf16 %v419_v4  ;;  %v13299_v4 = vunpack.c.h.bf16 %v11516_v13  ;;  %v13303_v13 = vunpack.c.h.bf16 %v11565_v11  ;;  %v11882_v61 = vmul.f32 %v10551_v55, %v544_v47 }
 0x10f   :  { %13293 = vst [vmem:[#allocation105_spill] sm:$0xff] %v11811_v15  ;;  %v11833_v46 = vmul.f32 %v13297_v2, %v450_v44  ;;  %v11835_v6 = vmax.f32 %v346_v53, 0.0  ;;  %v13300_v15 = vunpack.c.h.bf16 %v11544_v51  ;;  %v13301_v44 = vunpack.c.h.bf16 %v11583_v5  ;;  %v9803_v5 = vld [vmem:[#allocation9 + $0x48] sm:$0xff] }
 0x110   :  { %13294 = vst [vmem:[#allocation106_spill] sm:$0xff] %v11817_v7  ;;  %v1441_v33 = vmul.f32 %v13299_v4, %v451_v63  ;;  %v11856_v4 = vmul.f32 %v13303_v13, %v451_v63  ;;  %1177 = vmatpush.bf16.msrb.mxu2 %v9803_v5  ;;  %v13340_v19 = vunpack.c.l.bf16 %v11813_v40 }
 0x111   :  { %13298 = vst [vmem:[#allocation107_spill] sm:$0xff] %v11835_v6  ;;  %v11844_v20 = vmul.f32 %v13300_v15, %v451_v63  ;;  %v11849_v2 = vmul.f32 %v13301_v44, %v544_v47  ;;  %v383_v53 = vrot.slane %v11835_v6, 6  ;;  %v604_v59 = vrot.slane %v11835_v6, 2  ;;  %v9797_v15 = vld [vmem:[#allocation9 + $0x18] sm:$0xff] }
 0x112   :  { %v1452_v51 = vpack.c.bf16 %v1441_v33, %v1440_v27  ;;  %v670_v44 = vunpack.c.l.bf16 %v637_v32  ;;  %v512_v12 = vpack.c.bf16 %v11835_v6, %v11835_v6  ;;  %v10648_v32 = vld [vmem:[#allocation4 + $0x220] sm:$0xff]   ;;  %v13304_v63 = vunpack.c.l.bf16 %v11617_v45  ;;  %13305 = vst [vmem:[#allocation109_spill] sm:$0xff] %v11882_v61  ;;  %1079 = vmatpush.bf16.msrb.mxu1 %v9797_v15 }
 0x113   :  { %13302 = vst [vmem:[#allocation108_spill] sm:$0xff] %v11849_v2  ;;  %v393_v37 = vsel %vm389_vm2, %v382_v17, %v383_v53  ;;  %v612_v42 = vsel %vm608_vm3, %v603_v23, %v604_v59  ;;  %v10582_v11 = vunpack.c.l.bf16 %v10648_v32  ;;  %v13310_v15 = vunpack.c.h.bf16 %v11626_v48 }
 0x114   :  { %v347_v33 = vpop.f32.mrf.mxu0  ;;  %7504 = vmatmul.msk.bf16.gmra.mxu0 %vm731_vm4, %v1452_v51  ;;  %v638_v36 = vpack.c.bf16 %v612_v42, %v612_v42  ;;  %v10642_v51 = vld [vmem:[#allocation4 + $0x1e8] sm:$0xff]   ;;  %v420_v0 = vpack.c.bf16 %v393_v37, %v393_v37  ;;  %v11880_v42 = vmul.f32 %v13304_v63, %v670_v44  ;;  %v545_v17 = vunpack.c.l.bf16 %v512_v12 }
 0x115   :  { %v348_v13 = vadd.f32 %v11099_v14, %v347_v33  ;;  %v13307_v14 = vunpack.c.l.bf16 %v11626_v48  ;;  %v10554_v23 = vunpack.c.l.bf16 %v10642_v51  ;;  %v10555_v63 = vunpack.c.h.bf16 %v10642_v51 }
 0x116   :  { %v671_v27 = vunpack.c.l.bf16 %v638_v36  ;;  %v10583_v36 = vunpack.c.h.bf16 %v10648_v32  ;;  %v13312_v45 = vunpack.c.l.bf16 %v11729_v43  ;;  %v10668_v32 = vld [vmem:[#allocation7] ss:$0 sm:$0xff]  ;;  %v13320_v48 = vunpack.c.l.bf16 %v11633_v31 }
 0x117   :  { %v11884_v41 = vmax.f32 %v348_v13, 0.0  ;;  %v11888_v33 = vmul.f32 %v13307_v14, %v670_v44  ;;  %v452_v13 = vunpack.c.l.bf16 %v420_v0 }
 0x118   :  { %v11892_v37 = vmul.f32 %v13309_v8, %v671_v27  ;;  %v11900_v12 = vmul.f32 %v13310_v15, %v671_v27  ;;  %v11916_v60 = vmul.f32 %v13312_v45, %v545_v17  ;;  %v11918_v8 = vmul.f32 %v10582_v11, %v670_v44 }
 0x119   :  { %13306 = vst [vmem:[#allocation110_spill] sm:$0xff] %v11884_v41  ;;  %v384_v47 = vrot.slane %v11884_v41, 6  ;;  %v513_v55 = vpack.c.bf16 %v11884_v41, %v11884_v41  ;;  %v605_v5 = vrot.slane %v11884_v41, 2  ;;  %v11920_v6 = vmul.f32 %v10583_v36, %v671_v27 }
 0x11a   :  { %13308 = vst [vmem:[#allocation111_spill] sm:$0xff] %v11888_v33  ;;  %v1442_v41 = vmul.f32 %v13320_v48, %v452_v13  ;;  %v13322_v27 = vunpack.c.l.bf16 %v11705_v1  ;;  %v13336_v33 = vrot.slane %v11118_v28, 2 }
 0x11b   :  { %13311 = vst [vmem:[#allocation112_spill] sm:$0xff] %v11900_v12  ;;  %v392_v51 = vsel %vm389_vm2, %v383_v53, %v384_v47  ;;  %v546_v14 = vunpack.c.l.bf16 %v513_v55  ;;  %v611_v2 = vsel %vm608_vm3, %v604_v59, %v605_v5  ;;  %v13316_v53 = vunpack.c.h.bf16 %v11729_v43 }
 0x11c   :  { %v421_v0 = vpack.c.bf16 %v392_v51, %v392_v51  ;;  %v350_v15 = vpop.f32.mrf.mxu0  ;;  %13313 = vst [vmem:[#allocation113_spill] sm:$0xff] %v11916_v60  ;;  %v11926_v59 = vmul.f32 %v10554_v23, %v545_v17  ;;  %v639_v45 = vpack.c.bf16 %v611_v2, %v611_v2  ;;  %v11938_v36 = vmul.f32 %v13322_v27, %v452_v13  ;;  %v10649_v27 = vld [vmem:[#allocation4 + $0x228] sm:$0xff]  }
 0x11d   :  { %13314 = vst [vmem:[#allocation114_spill] sm:$0xff] %v11918_v8  ;;  %v351_v7 = vadd.f32 %v10668_v32, %v350_v15  ;;  %v11924_v55 = vmul.f32 %v13316_v53, %v546_v14  ;;  %v11928_v61 = vmul.f32 %v10555_v63, %v546_v14  ;;  %v13323_v23 = vunpack.c.h.bf16 %v11633_v31  ;;  %v11958_v53 = vld [vmem:[#allocation4 + $0x178] sm:$0xff]  }
 0x11e   :  { %13315 = vst [vmem:[#allocation115_spill] sm:$0xff] %v11920_v6  ;;  %v453_v51 = vunpack.c.l.bf16 %v421_v0  ;;  %v13324_v2 = vunpack.c.h.bf16 %v11705_v1  ;;  %v13327_v0 = vunpack.c.h.bf16 %v11727_v21  ;;  %v10587_v6 = vunpack.c.h.bf16 %v10649_v27 }
 0x11f   :  { %13317 = vst [vmem:[#allocation116_spill] sm:$0xff] %v11924_v55  ;;  %v11934_v11 = vmax.f32 %v351_v7, 0.0  ;;  %v13325_v7 = vunpack.c.l.bf16 %v11727_v21  ;;  %v672_v21 = vunpack.c.l.bf16 %v639_v45  ;;  %v11975_v45 = vld [vmem:[#allocation4 + $0x230] sm:$0xff]   ;;  %v13328_v43 = vunpack.c.l.bf16 %v11746_v57 }
 0x120   :  { %13318 = vst [vmem:[#allocation117_spill] sm:$0xff] %v11926_v59  ;;  %v1443_v63 = vmul.f32 %v13323_v23, %v453_v51  ;;  %v11948_v14 = vmul.f32 %v13324_v2, %v453_v51  ;;  %v11956_v15 = vmul.f32 %v13327_v0, %v453_v51  ;;  %v10643_v2 = vld [vmem:[#allocation4 + $0x1f0] sm:$0xff]   ;;  %v10586_v59 = vunpack.c.l.bf16 %v10649_v27 }
 0x121   :  { %13319 = vst [vmem:[#allocation118_spill] sm:$0xff] %v11928_v61  ;;  %v11952_v48 = vmul.f32 %v13325_v7, %v452_v13  ;;  %v385_v17 = vrot.slane %v11934_v11, 6  ;;  %v498_v31 = vpack.c.bf16 %v11934_v11, %v11934_v11  ;;  %v606_v1 = vrot.slane %v11934_v11, 2 }
 0x122   :  { %13321 = vst [vmem:[#allocation119_spill] sm:$0xff] %v11934_v11  ;;  %v1453_v44 = vpack.c.bf16 %v1443_v63, %v1442_v41  ;;  %v10558_v13 = vunpack.c.l.bf16 %v10643_v2  ;;  %v10499_v51 = vunpack.c.h.bf16 %v11958_v53  ;;  %v11990_v55 = vmul.f32 %v10586_v59, %v672_v21 }
 0x123   :  { %13326 = vst [vmem:[#allocation120_spill] sm:$0xff] %v11952_v48  ;;  %v391_v7 = vsel %vm389_vm2, %v384_v47, %v385_v17  ;;  %v610_v0 = vsel %vm608_vm3, %v605_v5, %v606_v1  ;;  %v531_v61 = vunpack.c.l.bf16 %v498_v31  ;;  %v11982_v31 = vmul.f32 %v13328_v43, %v672_v21 }
 0x124   :  { %v352_v23 = vpop.f32.mrf.mxu0  ;;  %7505 = vmatmul.msk.bf16.gmra.mxu0 %vm731_vm4, %v1453_v44  ;;  %v406_v41 = vpack.c.bf16 %v391_v7, %v391_v7  ;;  %v640_v63 = vpack.c.bf16 %v610_v0, %v610_v0  ;;  %v13329_v44 = vunpack.c.l.bf16 %v11754_v35  ;;  %13330 = vst [vmem:[#allocation121_spill] sm:$0xff] %v11990_v55  ;;  %v10590_v27 = vunpack.c.l.bf16 %v11975_v45 }
 0x125   :  { %v353_v8 = vadd.f32 %v10668_v32, %v352_v23  ;;  %v10559_v32 = vunpack.c.h.bf16 %v10643_v2  ;;  %v13331_v23 = vunpack.c.h.bf16 %v11746_v57  ;;  %v12001_v43 = vmul.f32 %v10558_v13, %v531_v61 }
 0x126   :  { %v438_v5 = vunpack.c.l.bf16 %v406_v41  ;;  %v673_v60 = vunpack.c.l.bf16 %v640_v63  ;;  %v11986_v7 = vmul.f32 %v13329_v44, %v672_v21  ;;  %v13332_v41 = vunpack.c.l.bf16 %v11751_v18 }
 0x127   :  { %v11988_v0 = vmax.f32 %v353_v8, 0.0  ;;  %v10591_v44 = vunpack.c.h.bf16 %v11975_v45  ;;  %v13333_v21 = vunpack.c.h.bf16 %v11754_v35  ;;  %v13337_v48 = vrot.slane %v11118_v28, 6 }
 0x128   :  { %v11995_v47 = vmul.f32 %v13331_v23, %v673_v60  ;;  %v11999_v63 = vmul.f32 %v13332_v41, %v531_v61  ;;  %v13334_v23 = vunpack.c.l.bf16 %v11763_v58  ;;  %v12018_v45 = vmul.f32 %v10587_v6, %v673_v60 }
 0x129   :  { %v386_v8 = vrot.slane %v11988_v0, 6  ;;  %v499_v59 = vpack.c.bf16 %v11988_v0, %v11988_v0  ;;  %v607_v2 = vrot.slane %v11988_v0, 2  ;;  %v12010_v57 = vmul.f32 %v13333_v21, %v673_v60 }
 0x12a   :  { %v470_v38 = vmul.f32 %v13334_v23, %v438_v5  ;;  %13335 = vst [vmem:[#allocation122_spill] sm:$0xff] %v12018_v45  ;;  %v13346_v13 = vunpack.c.l.bf16 %v11112_v25 }
 0x12b   :  { %v532_v41 = vunpack.c.l.bf16 %v499_v59  ;;  %v609_v30 = vsel %vm608_vm3, %v606_v1, %v607_v2  ;;  %v624_v35 = vsel %vm608_vm3, %v607_v2, %v13336_v33  ;;  %v390_v21 = vsel %vm389_vm2, %v385_v17, %v386_v8 }
 0x12c   :  { %v625_v23 = vpack.c.bf16 %v609_v30, %v609_v30  ;;  %v626_v12 = vpack.c.bf16 %v624_v35, %v624_v35  ;;  %v407_v61 = vpack.c.bf16 %v390_v21, %v390_v21  ;;  %v405_v60 = vsel %vm389_vm2, %v386_v8, %v13337_v48 }
 0x12d   :  { %v408_v6 = vpack.c.bf16 %v405_v60, %v405_v60  ;;  %v13338_v59 = vunpack.c.h.bf16 %v11751_v18  ;;  %v13339_v35 = vunpack.c.l.bf16 %v11776_v62  ;;  %v12044_v48 = vmul.f32 %v13340_v19, %v438_v5 }
 0x12e   :  { %v658_v17 = vunpack.c.l.bf16 %v625_v23  ;;  %v659_v30 = vunpack.c.l.bf16 %v626_v12  ;;  %v439_v2 = vunpack.c.l.bf16 %v407_v61  ;;  %v12048_v8 = vmul.f32 %v10559_v32, %v532_v41 }
 0x12f   :  { %v12034_v1 = vmul.f32 %v13338_v59, %v532_v41  ;;  %v1444_v21 = vmul.f32 %v13339_v35, %v438_v5  ;;  %v440_v11 = vunpack.c.l.bf16 %v408_v6  ;;  %v13341_v60 = vunpack.c.l.bf16 %v11825_v10 }
 0x130   :  { %v13342_v23 = vunpack.c.h.bf16 %v11825_v10  ;;  %v13343_v61 = vunpack.c.h.bf16 %v11763_v58  ;;  %v13344_v6 = vunpack.c.h.bf16 %v11776_v62  ;;  %v13345_v5 = vunpack.c.l.bf16 %v11106_v22 }
 0x131   :  { %v690_v59 = vmul.f32 %v13341_v60, %v658_v17  ;;  %v472_v18 = vmul.f32 %v13346_v13, %v440_v11  ;;  %v13347_v32 = vunpack.c.l.bf16 %v11114_v26  ;;  %v13348_v60 = vunpack.c.h.bf16 %v11813_v40 }
 0x132   :  { %v691_v12 = vmul.f32 %v13342_v23, %v659_v30  ;;  %v471_v33 = vmul.f32 %v13343_v61, %v439_v2  ;;  %v1445_v35 = vmul.f32 %v13344_v6, %v439_v2  ;;  %v923_v19 = vmul.f32 %v13345_v5, %v440_v11  ;;  %v13372_v6 = vld [vmem:[#allocation95_spill] sm:$0xff] }
 0x133   :  { %v1446_v41 = vmul.f32 %v13347_v32, %v440_v11  ;;  %v938_v55 = vmul.f32 %v13348_v60, %v439_v2  ;;  %v13349_v58 = vunpack.c.l.bf16 %v11958_v53  ;;  %v487_v22 = vpack.c.bf16 %v11249_v24, %v472_v18  ;;  %v13366_v2 = vld [vmem:[#allocation86_spill] sm:$0xff]  ;;  %v13369_v18 = vld [vmem:[#allocation80_spill] sm:$0xff]  ;;  %v13378_v60 = vld [vmem:[#allocation97_spill] sm:$0xff] }
 0x134   :  { %v706_v10 = vpack.c.bf16 %v691_v12, %v690_v59  ;;  %v486_v23 = vpack.c.bf16 %v471_v33, %v470_v38  ;;  %v1454_v45 = vpack.c.bf16 %v1445_v35, %v1444_v21  ;;  %v939_v62 = vpack.c.bf16 %v11235_v56, %v923_v19  ;;  %v13367_v21 = vld [vmem:[#allocation82_spill] sm:$0xff]  ;;  %v13373_v35 = vld [vmem:[#allocation93_spill] sm:$0xff] }
 0x135   :  { %v12068_v61 = vmul.f32 %v13349_v58, %v658_v17  ;;  %v1455_v25 = vpack.c.bf16 %v11253_v34, %v1446_v41  ;;  %v946_v13 = vpack.c.bf16 %v938_v55, %v12044_v48  ;;  %v12076_v26 = vmul.f32 %v10499_v51, %v659_v30  ;;  %v13370_v59 = vld [vmem:[#allocation78_spill] sm:$0xff]  ;;  %v13375_v19 = vld [vmem:[#allocation101_spill] sm:$0xff] }
 0x136   :  { %7404 = vmatmul.msk.bf16.vlgmr.msra.gmra.mxu1 %vm731_vm4, %v706_v10  ;;  %7420 = vmatmul.msk.bf16.vlgmr.msra.gmra.mxu2 %vm731_vm4, %v486_v23  ;;  %v1617_v38 = vpack.c.bf16 %v12048_v8, %v12001_v43  ;;  %v12080_v40 = vmul.f32 %v10590_v27, %v658_v17  ;;  %v12084_v56 = vmul.f32 %v10591_v44, %v659_v30  ;;  %v13357_v44 = vld [vmem:[#allocation69_spill] sm:$0xff]  ;;  %v13376_v32 = vld [vmem:[#allocation98_spill] sm:$0xff]  ;;  %v13379_v10 = vld [vmem:[#allocation96_spill] sm:$0xff] }
 0x137   :  { %7436 = vmatmul.msk.bf16.vlgmr.msra.gmra.mxu3 %vm731_vm4, %v939_v62  ;;  %7506 = vmatmul.msk.bf16.gmra.mxu0 %vm731_vm4, %v1454_v45  ;;  %v1292_v24 = vpack.c.bf16 %v12076_v26, %v12068_v61  ;;  %v13350_v55 = vpack.c.bf16 %v11267_v39, %v11245_v52  ;;  %v13351_v11 = vpack.c.bf16 %v11339_v3, %v11317_v9  ;;  %v13354_v52 = vld [vmem:[#allocation62_spill] sm:$0xff]  ;;  %v13355_v39 = vld [vmem:[#allocation57_spill] sm:$0xff]  ;;  %v9796_v3 = vld [vmem:[#allocation9 + $0x10] sm:$0xff] }
 0x138   :  { %v1780_v34 = vpack.c.bf16 %v12084_v56, %v12080_v40  ;;  %v13352_v53 = vpack.c.bf16 %v11401_v29, %v11383_v16  ;;  %v13353_v51 = vpack.c.bf16 %v11347_v49, %v11321_v50  ;;  %v13356_v27 = vpack.c.bf16 %v13354_v52, %v13355_v39  ;;  %v9802_v9 = vld [vmem:[#allocation9 + $0x40] sm:$0xff]  ;;  %1080 = vmatpush.bf16.msrb.mxu1 %v9796_v3  ;;  %v13358_v45 = vld [vmem:[#allocation66_spill] sm:$0xff]  ;;  %v13360_v29 = vld [vmem:[#allocation63_spill] sm:$0xff] }
 0x139   :  { %1178 = vmatpush.bf16.msrb.mxu2 %v9802_v9  ;;  %v13359_v33 = vpack.c.bf16 %v13357_v44, %v13358_v45  ;;  %v13361_v16 = vld [vmem:[#allocation60_spill] sm:$0xff]  ;;  %v13363_v49 = vld [vmem:[#allocation79_spill] sm:$0xff]  ;;  %v13368_v48 = vpack.c.bf16 %v13366_v2, %v13367_v21  ;;  %v13371_v12 = vpack.c.bf16 %v13369_v18, %v13370_v59  ;;  %v13374_v5 = vpack.c.bf16 %v13372_v6, %v13373_v35  ;;  %v13397_v45 = vld [vmem:[#allocation42_spill] sm:$0xff] }
 0x13a   :  { %v13362_v17 = vpack.c.bf16 %v13360_v29, %v13361_v16  ;;  %v13364_v50 = vld [vmem:[#allocation76_spill] sm:$0xff]  ;;  %v13377_v41 = vpack.c.bf16 %v13375_v19, %v13376_v32  ;;  %v13380_v23 = vpack.c.bf16 %v13378_v60, %v13379_v10  ;;  %v13381_v58 = vpack.c.bf16 %v11844_v20, %v11829_v54  ;;  %v9811_v54 = vld [vmem:[#allocation9 + $0x88] sm:$0xff]  ;;  %v13403_v6 = vld [vmem:[#allocation47_spill] sm:$0xff] }
 0x13b   :  { %v13365_v30 = vpack.c.bf16 %v13363_v49, %v13364_v50  ;;  %v9805_v62 = vld [vmem:[#allocation9 + $0x58] sm:$0xff]  ;;  %v13404_v35 = vld [vmem:[#allocation46_spill] sm:$0xff]  ;;  %v13406_v19 = vld [vmem:[#allocation53_spill] sm:$0xff] }
 0x13c   :  { %1340 = vmatpush.bf16.msrb.mxu3 %v9805_v62  ;;  %v9809_v20 = vld [vmem:[#allocation9 + $0x78] sm:$0xff]  ;;  %v13409_v60 = vld [vmem:[#allocation73_spill] sm:$0xff]  ;;  %v13454_v61 = vld [vmem:[#allocation55_spill] sm:$0xff] }
 0x13d   :  { %1829 = vmatpush.bf16.msra.mxu2 %v9811_v54  ;;  %1666 = vmatpush.bf16.msra.mxu1 %v9809_v20  ;;  %v13395_v3 = vld [vmem:[#allocation40_spill] sm:$0xff]  ;;  %v13488_v40 = vld [vmem:[#allocation41_spill] sm:$0xff] }
 0x13e   :  { %v13400_v16 = vld [vmem:[#allocation56_spill] sm:$0xff] }
 0x13f   :  { %v13407_v32 = vld [vmem:[#allocation48_spill] sm:$0xff] }
 0x140   :  { %v13410_v10 = vld [vmem:[#allocation68_spill] sm:$0xff] }
 0x141   :  { %v13455_v26 = vld [vmem:[#allocation52_spill] sm:$0xff] }
 0x146   :  { %7405 = vmatmul.msk.bf16.gmra.mxu1 %vm731_vm4, %v13350_v55  ;;  %7421 = vmatmul.msk.bf16.gmra.mxu2 %vm731_vm4, %v487_v22  ;;  %v9804_v22 = vld [vmem:[#allocation9 + $0x50] sm:$0xff]  ;;  %v13383_v55 = vpack.c.bf16 %v11856_v4, %v11833_v46  ;;  %v13388_v4 = vpack.c.bf16 %v12034_v1, %v11999_v63 }
 0x147   :  { %7437 = vmatmul.msk.bf16.gmra.mxu3 %vm731_vm4, %v13351_v11  ;;  %7507 = vmatmul.msk.bf16.gmra.mxu0 %vm731_vm4, %v1455_v25  ;;  %v13382_v25 = vpack.c.bf16 %v11892_v37, %v11880_v42  ;;  %v13384_v11 = vpack.c.bf16 %v11948_v14, %v11938_v36  ;;  %v13386_v42 = vld [vmem:[#allocation120_spill] sm:$0xff] }
 0x148   :  { %1341 = vmatpush.bf16.msrb.mxu3 %v9804_v22  ;;  %v13387_v37 = vpack.c.bf16 %v11956_v15, %v13386_v42  ;;  %v13389_v36 = vld [vmem:[#allocation36_spill] sm:$0xff] }
 0x149   :  { %v13390_v14 = vpack.c.bf16 %v13389_v36, %v11118_v28  ;;  %v13394_v28 = vld [vmem:[#allocation37_spill] sm:$0xff]  ;;  %v13415_v36 = vld [vmem:[#allocation67_spill] sm:$0xff] }
 0x14a   :  { %v13396_v44 = vpack.c.bf16 %v13394_v28, %v13395_v3 }
 0x156   :  { %7406 = vmatmul.msk.bf16.gmra.mxu1 %vm731_vm4, %v13352_v53  ;;  %7422 = vmatmul.msk.bf16.gmra.mxu2 %vm731_vm4, %v13353_v51  ;;  %v13385_v53 = vpack.c.bf16 %v11995_v47, %v11982_v31  ;;  %v13391_v47 = vld [vmem:[#allocation44_spill] sm:$0xff]  ;;  %v13392_v31 = vld [vmem:[#allocation43_spill] sm:$0xff] }
 0x157   :  { %7438 = vmatmul.msk.bf16.gmra.mxu3 %vm731_vm4, %v13356_v27  ;;  %v13393_v51 = vpack.c.bf16 %v13391_v47, %v13392_v31  ;;  %v13418_v31 = vld [vmem:[#allocation88_spill] sm:$0xff] }
 0x166   :  { %7407 = vmatmul.msk.bf16.gmra.mxu1 %vm731_vm4, %v13359_v33  ;;  %7423 = vmatmul.msk.bf16.gmra.mxu2 %vm731_vm4, %v13362_v17  ;;  %v13398_v33 = vld [vmem:[#allocation39_spill] sm:$0xff]  ;;  %v13401_v17 = vld [vmem:[#allocation54_spill] sm:$0xff] }
 0x167   :  { %7439 = vmatmul.msk.bf16.gmra.mxu3 %vm731_vm4, %v13365_v30  ;;  %v13399_v29 = vpack.c.bf16 %v13397_v45, %v13398_v33  ;;  %v13402_v49 = vpack.c.bf16 %v13400_v16, %v13401_v17  ;;  %v13422_v16 = vld [vmem:[#allocation70_spill] sm:$0xff] }
 0x176   :  { %7408 = vmatmul.msk.bf16.gmra.mxu1 %vm731_vm4, %v13368_v48  ;;  %7424 = vmatmul.msk.bf16.gmra.mxu2 %vm731_vm4, %v13371_v12 }
 0x177   :  { %7440 = vmatmul.msk.bf16.gmra.mxu3 %vm731_vm4, %v13374_v5  ;;  %v13405_v5 = vpack.c.bf16 %v13403_v6, %v13404_v35 }
 0x186   :  { %7409 = vmatmul.msk.bf16.gmra.mxu1 %vm731_vm4, %v13377_v41  ;;  %7425 = vmatmul.msk.bf16.gmra.mxu2 %vm731_vm4, %v13380_v23  ;;  %v13408_v41 = vpack.c.bf16 %v13406_v19, %v13407_v32  ;;  %v13411_v23 = vpack.c.bf16 %v13409_v60, %v13410_v10 }
 0x187   :  { %7441 = vmatmul.msk.bf16.gmra.mxu3 %vm731_vm4, %v13381_v58  ;;  %v9810_v58 = vld [vmem:[#allocation9 + $0x80] sm:$0xff] }
 0x188   :  { %1830 = vmatpush.bf16.msra.mxu2 %v9810_v58  ;;  %v13430_v58 = vld [vmem:[#allocation90_spill] sm:$0xff] }
 0x196   :  { %7410 = vmatmul.msk.bf16.gmra.mxu1 %vm731_vm4, %v13382_v25  ;;  %7426 = vmatmul.msk.bf16.gmra.mxu2 %vm731_vm4, %v13383_v55 }
 0x197   :  { %7442 = vmatmul.msk.bf16.gmra.mxu3 %vm731_vm4, %v13384_v11  ;;  %v9808_v11 = vld [vmem:[#allocation9 + $0x70] sm:$0xff] }
 0x198   :  { %1667 = vmatpush.bf16.msra.mxu1 %v9808_v11  ;;  %v13433_v11 = vld [vmem:[#allocation99_spill] sm:$0xff] }
 0x1a6   :  { %7411 = vmatmul.msk.bf16.gmra.mxu1 %vm731_vm4, %v13385_v53  ;;  %7427 = vmatmul.msk.bf16.gmra.mxu2 %vm731_vm4, %v13387_v37  ;;  %v13412_v37 = vld [vmem:[#allocation58_spill] sm:$0xff] }
 0x1a7   :  { %7443 = vmatmul.msk.bf16.gmra.mxu3 %vm731_vm4, %v946_v13 }
 0x1b3   :  { %v765_v46 = vpop.f32.mrf.mxu1 }
 0x1b6   :  { %7452 = vmatmul.msk.bf16.vlgmr.msrb.gmra.mxu1 %vm731_vm4, %v13388_v4  ;;  %7468 = vmatmul.msk.bf16.vlgmr.msrb.gmra.mxu2 %vm731_vm4, %v13390_v14  ;;  %v13416_v14 = vld [vmem:[#allocation59_spill] sm:$0xff] }
 0x1b7   :  { %7484 = vmatmul.msk.bf16.vlgmr.msrb.gmra.mxu3 %vm731_vm4, %v13393_v51  ;;  %v13417_v47 = vpack.c.bf16 %v13415_v36, %v13416_v14  ;;  %v13419_v51 = vld [vmem:[#allocation83_spill] sm:$0xff] }
 0x1b9   :  { %v850_v15 = vpop.f32.mrf.mxu2 }
 0x1ba   :  { %v12181_v52 = vadd.f32 %v850_v15, %v765_v46  ;;  %v12183_v13 = vpop.f32.mrf.mxu3  ;;  %v13413_v46 = vld [vmem:[#allocation61_spill] sm:$0xff]  ;;  %v13420_v15 = vpack.c.bf16 %v13418_v31, %v13419_v51 }
 0x1bb   :  { %v767_v39 = vpop.f32.mrf.mxu1  ;;  %v13414_v4 = vpack.c.bf16 %v13412_v37, %v13413_v46  ;;  %v13436_v37 = vld [vmem:[#allocation112_spill] sm:$0xff]  ;;  %v13437_v46 = vld [vmem:[#allocation111_spill] sm:$0xff] }
 0x1c1   :  { %v852_v27 = vpop.f32.mrf.mxu2 }
 0x1c2   :  { %v12185_v63 = vadd.f32 %v852_v27, %v767_v39  ;;  %v12187_v1 = vpop.f32.mrf.mxu3 }
 0x1c3   :  { %v770_v9 = vpop.f32.mrf.mxu1 }
 0x1c6   :  { %7453 = vmatmul.msk.bf16.gmra.mxu1 %vm731_vm4, %v13396_v44  ;;  %7469 = vmatmul.msk.bf16.gmra.mxu2 %vm731_vm4, %v13399_v29  ;;  %v13421_v29 = vld [vmem:[#allocation75_spill] sm:$0xff] }
 0x1c7   :  { %7485 = vmatmul.msk.bf16.gmra.mxu3 %vm731_vm4, %v13402_v49  ;;  %v13423_v17 = vpack.c.bf16 %v13421_v29, %v13422_v16  ;;  %v13424_v49 = vld [vmem:[#allocation84_spill] sm:$0xff]  ;;  %v13442_v16 = vld [vmem:[#allocation110_spill] sm:$0xff] }
 0x1c9   :  { %v855_v50 = vpop.f32.mrf.mxu2 }
 0x1ca   :  { %v12201_v30 = vadd.f32 %v855_v50, %v770_v9  ;;  %v12203_v2 = vpop.f32.mrf.mxu3  ;;  %v13425_v50 = vld [vmem:[#allocation77_spill] sm:$0xff] }
 0x1cb   :  { %v772_v21 = vpop.f32.mrf.mxu1 }
 0x1d1   :  { %v857_v48 = vpop.f32.mrf.mxu2 }
 0x1d2   :  { %v12205_v18 = vadd.f32 %v857_v48, %v772_v21  ;;  %v12207_v59 = vpop.f32.mrf.mxu3  ;;  %v13426_v21 = vpack.c.bf16 %v13424_v49, %v13425_v50  ;;  %v13427_v48 = vld [vmem:[#allocation103_spill] sm:$0xff]  ;;  %v13445_v50 = vpack.c.bf16 %v12010_v57, %v11986_v7 }
 0x1d3   :  { %v775_v12 = vpop.f32.mrf.mxu1  ;;  %v13449_v7 = vld [vmem:[#allocation119_spill] sm:$0xff] }
 0x1d4   :  { %v13450_v57 = vpack.c.bf16 %v11988_v0, %v13449_v7  ;;  %v13451_v0 = vld [vmem:[#allocation50_spill] sm:$0xff]  ;;  %v13461_v7 = vld [vmem:[#allocation71_spill] sm:$0xff] }
 0x1d6   :  { %7454 = vmatmul.msk.bf16.gmra.mxu1 %vm731_vm4, %v13405_v5  ;;  %7470 = vmatmul.msk.bf16.gmra.mxu2 %vm731_vm4, %v13408_v41 }
 0x1d7   :  { %7486 = vmatmul.msk.bf16.gmra.mxu3 %vm731_vm4, %v13411_v23 }
 0x1d9   :  { %v860_v62 = vpop.f32.mrf.mxu2 }
 0x1da   :  { %v12221_v22 = vadd.f32 %v860_v62, %v775_v12  ;;  %v12223_v25 = vpop.f32.mrf.mxu3  ;;  %v13428_v12 = vld [vmem:[#allocation100_spill] sm:$0xff]  ;;  %v13431_v62 = vld [vmem:[#allocation85_spill] sm:$0xff] }
 0x1db   :  { %v777_v55 = vpop.f32.mrf.mxu1  ;;  %v13429_v6 = vpack.c.bf16 %v13427_v48, %v13428_v12 }
 0x1e1   :  { %v862_v54 = vpop.f32.mrf.mxu2 }
 0x1e2   :  { %v12225_v20 = vadd.f32 %v862_v54, %v777_v55  ;;  %v12227_v53 = vpop.f32.mrf.mxu3  ;;  %v13432_v55 = vpack.c.bf16 %v13430_v58, %v13431_v62  ;;  %v13434_v54 = vld [vmem:[#allocation94_spill] sm:$0xff]  ;;  %v13446_v58 = vld [vmem:[#allocation116_spill] sm:$0xff]  ;;  %v13447_v62 = vld [vmem:[#allocation113_spill] sm:$0xff] }
 0x1e3   :  { %v780_v42 = vpop.f32.mrf.mxu1 }
 0x1e6   :  { %7455 = vmatmul.msk.bf16.gmra.mxu1 %vm731_vm4, %v13414_v4  ;;  %7471 = vmatmul.msk.bf16.gmra.mxu2 %vm731_vm4, %v13417_v47  ;;  %v13438_v4 = vpack.c.bf16 %v13436_v37, %v13437_v46 }
 0x1e7   :  { %7487 = vmatmul.msk.bf16.gmra.mxu3 %vm731_vm4, %v13420_v15 }
 0x1e9   :  { %v865_v39 = vpop.f32.mrf.mxu2 }
 0x1ea   :  { %v12241_v27 = vadd.f32 %v865_v39, %v780_v42  ;;  %v12243_v9 = vpop.f32.mrf.mxu3  ;;  %v13435_v42 = vpack.c.bf16 %v13433_v11, %v13434_v54 }
 0x1eb   :  { %v782_v28 = vpop.f32.mrf.mxu1 }
 0x1f1   :  { %v867_v3 = vpop.f32.mrf.mxu2 }
 0x1f2   :  { %v12245_v44 = vadd.f32 %v867_v3, %v782_v28  ;;  %v12247_v45 = vpop.f32.mrf.mxu3  ;;  %v13439_v3 = vld [vmem:[#allocation108_spill] sm:$0xff] }
 0x1f3   :  { %v785_v33 = vpop.f32.mrf.mxu1 }
 0x1f6   :  { %7456 = vmatmul.msk.bf16.gmra.mxu1 %vm731_vm4, %v13423_v17  ;;  %7472 = vmatmul.msk.bf16.gmra.mxu2 %vm731_vm4, %v13426_v21  ;;  %v13443_v17 = vld [vmem:[#allocation107_spill] sm:$0xff] }
 0x1f7   :  { %7488 = vmatmul.msk.bf16.gmra.mxu3 %vm731_vm4, %v13429_v6  ;;  %v13444_v49 = vpack.c.bf16 %v13442_v16, %v13443_v17 }
 0x1f9   :  { %v870_v35 = vpop.f32.mrf.mxu2 }
 0x1fa   :  { %v12261_v5 = vadd.f32 %v870_v35, %v785_v33  ;;  %v12263_v19 = vpop.f32.mrf.mxu3  ;;  %v13440_v33 = vld [vmem:[#allocation102_spill] sm:$0xff] }
 0x1fb   :  { %v787_v32 = vpop.f32.mrf.mxu1  ;;  %v13441_v29 = vpack.c.bf16 %v13439_v3, %v13440_v33 }
 0x201   :  { %v872_v41 = vpop.f32.mrf.mxu2 }
 0x202   :  { %v12265_v60 = vadd.f32 %v872_v41, %v787_v32  ;;  %v12267_v10 = vpop.f32.mrf.mxu3 }
 0x203   :  { %v790_v23 = vpop.f32.mrf.mxu1 }
 0x206   :  { %7457 = vmatmul.msk.bf16.gmra.mxu1 %vm731_vm4, %v13432_v55  ;;  %7473 = vmatmul.msk.bf16.gmra.mxu2 %vm731_vm4, %v13435_v42  ;;  %v13448_v55 = vpack.c.bf16 %v13446_v58, %v13447_v62  ;;  %v13457_v62 = vld [vmem:[#allocation65_spill] sm:$0xff] }
 0x207   :  { %7489 = vmatmul.msk.bf16.gmra.mxu3 %vm731_vm4, %v13438_v4 }
 0x209   :  { %v875_v36 = vpop.f32.mrf.mxu2 }
 0x20a   :  { %v12281_v14 = vadd.f32 %v875_v36, %v790_v23  ;;  %v12283_v47 = vpop.f32.mrf.mxu3 }
 0x20b   :  { %v792_v31 = vpop.f32.mrf.mxu1 }
 0x211   :  { %v877_v51 = vpop.f32.mrf.mxu2 }
 0x212   :  { %v12285_v15 = vadd.f32 %v877_v51, %v792_v31  ;;  %v12287_v39 = vpop.f32.mrf.mxu3  ;;  %v13452_v51 = vld [vmem:[#allocation49_spill] sm:$0xff] }
 0x213   :  { %v795_v28 = vpop.f32.mrf.mxu1 }
 0x216   :  { %7458 = vmatmul.msk.bf16.gmra.mxu1 %vm731_vm4, %v13441_v29  ;;  %7474 = vmatmul.msk.bf16.gmra.mxu2 %vm731_vm4, %v13444_v49 }
 0x217   :  { %7490 = vmatmul.msk.bf16.gmra.mxu3 %vm731_vm4, %v13445_v50 }
 0x219   :  { %v880_v21 = vpop.f32.mrf.mxu2 }
 0x21a   :  { %v12301_v48 = vadd.f32 %v880_v21, %v795_v28  ;;  %v12303_v12 = vpop.f32.mrf.mxu3  ;;  %v13453_v28 = vpack.c.bf16 %v13451_v0, %v13452_v51 }
 0x21b   :  { %v797_v6 = vpop.f32.mrf.mxu1 }
 0x221   :  { %v882_v35 = vpop.f32.mrf.mxu2 }
 0x222   :  { %v12305_v32 = vadd.f32 %v882_v35, %v797_v6  ;;  %v12307_v41 = vpop.f32.mrf.mxu3 }
 0x223   :  { %v800_v23 = vpop.f32.mrf.mxu1 }
 0x226   :  { %7459 = vmatmul.msk.bf16.gmra.mxu1 %vm731_vm4, %v13448_v55  ;;  %7475 = vmatmul.msk.bf16.gmra.mxu2 %vm731_vm4, %v13450_v57 }
 0x227   :  { %7491 = vmatmul.msk.bf16.gmra.mxu3 %vm731_vm4, %v1292_v24  ;;  %v13456_v24 = vpack.c.bf16 %v13454_v61, %v13455_v26 }
 0x229   :  { %v885_v11 = vpop.f32.mrf.mxu2 }
 0x22a   :  { %v12321_v54 = vadd.f32 %v885_v11, %v800_v23  ;;  %v12323_v42 = vpop.f32.mrf.mxu3 }
 0x22b   :  { %v802_v37 = vpop.f32.mrf.mxu1 }
 0x231   :  { %v887_v46 = vpop.f32.mrf.mxu2 }
 0x232   :  { %v12325_v4 = vadd.f32 %v887_v46, %v802_v37  ;;  %v12327_v36 = vpop.f32.mrf.mxu3 }
 0x233   :  { %v1082_v31 = vpop.f32.mrf.mxu1 }
 0x234   :  { %v1083_v3 = vadd.f32 %v1082_v31, %v12183_v13  ;;  %v13458_v13 = vld [vmem:[#allocation64_spill] sm:$0xff] }
 0x235   :  { %v13459_v55 = vpack.c.bf16 %v13457_v62, %v13458_v13 }
 0x236   :  { %7516 = vmatmul.msk.bf16.vlgmr.msra.gmra.mxu1 %vm731_vm4, %v13453_v28  ;;  %7532 = vmatmul.msk.bf16.vlgmr.msra.gmra.mxu2 %vm731_vm4, %v13456_v24 }
 0x239   :  { %v1180_v33 = vpop.f32.mrf.mxu2 }
 0x23a   :  { %v12339_v29 = vadd.f32 %v1180_v33, %v12181_v52  ;;  %v1343_v16 = vpop.f32.mrf.mxu3  ;;  %v13460_v52 = vld [vmem:[#allocation74_spill] sm:$0xff] }
 0x23b   :  { %v12341_v17 = vadd.f32 %v1343_v16, %v1083_v3  ;;  %v1084_v49 = vpop.f32.mrf.mxu1  ;;  %v13462_v57 = vpack.c.bf16 %v13460_v52, %v13461_v7  ;;  %v13463_v3 = vld [vmem:[#allocation81_spill] sm:$0xff]  ;;  %v13467_v16 = vld [vmem:[#allocation87_spill] sm:$0xff] }
 0x23c   :  { %v1085_v50 = vadd.f32 %v1084_v49, %v12187_v1 }
 0x241   :  { %v1182_v21 = vpop.f32.mrf.mxu2 }
 0x242   :  { %v12345_v6 = vadd.f32 %v1182_v21, %v12185_v63  ;;  %v1345_v35 = vpop.f32.mrf.mxu3 }
 0x243   :  { %v12347_v23 = vadd.f32 %v1345_v35, %v1085_v50  ;;  %v1087_v58 = vpop.f32.mrf.mxu1 }
 0x244   :  { %v1088_v1 = vadd.f32 %v1087_v58, %v12203_v2  ;;  %v13464_v2 = vld [vmem:[#allocation72_spill] sm:$0xff] }
 0x245   :  { %v13465_v33 = vpack.c.bf16 %v13463_v3, %v13464_v2 }
 0x246   :  { %7517 = vmatmul.msk.bf16.gmra.mxu1 %vm731_vm4, %v13459_v55  ;;  %7533 = vmatmul.msk.bf16.gmra.mxu2 %vm731_vm4, %v13462_v57 }
 0x249   :  { %v1185_v11 = vpop.f32.mrf.mxu2 }
 0x24a   :  { %v12359_v63 = vadd.f32 %v1185_v11, %v12201_v30  ;;  %v1348_v37 = vpop.f32.mrf.mxu3  ;;  %v13466_v30 = vld [vmem:[#allocation91_spill] sm:$0xff] }
 0x24b   :  { %v12361_v46 = vadd.f32 %v1348_v37, %v1088_v1  ;;  %v1089_v31 = vpop.f32.mrf.mxu1  ;;  %v13468_v49 = vpack.c.bf16 %v13466_v30, %v13467_v16  ;;  %v13469_v1 = vld [vmem:[#allocation92_spill] sm:$0xff] }
 0x24c   :  { %v1090_v0 = vadd.f32 %v1089_v31, %v12207_v59  ;;  %v13473_v37 = vld [vmem:[#allocation104_spill] sm:$0xff] }
 0x251   :  { %v1187_v51 = vpop.f32.mrf.mxu2 }
 0x252   :  { %v12365_v28 = vadd.f32 %v1187_v51, %v12205_v18  ;;  %v1350_v61 = vpop.f32.mrf.mxu3 }
 0x253   :  { %v12367_v26 = vadd.f32 %v1350_v61, %v1090_v0  ;;  %v1092_v24 = vpop.f32.mrf.mxu1  ;;  %v1506_v0 = vpop.f32.mrf.mxu0 }
 0x254   :  { %v1093_v59 = vadd.f32 %v1092_v24, %v12223_v25  ;;  %v13470_v25 = vld [vmem:[#allocation89_spill] sm:$0xff] }
 0x255   :  { %v13471_v11 = vpack.c.bf16 %v13469_v1, %v13470_v25 }
 0x256   :  { %7518 = vmatmul.msk.bf16.gmra.mxu1 %vm731_vm4, %v13465_v33  ;;  %7534 = vmatmul.msk.bf16.gmra.mxu2 %vm731_vm4, %v13468_v49 }
 0x259   :  { %v1190_v50 = vpop.f32.mrf.mxu2 }
 0x25a   :  { %v12379_v18 = vadd.f32 %v1190_v50, %v12221_v22  ;;  %v1353_v21 = vpop.f32.mrf.mxu3  ;;  %v13472_v22 = vld [vmem:[#allocation105_spill] sm:$0xff] }
 0x25b   :  { %v12381_v35 = vadd.f32 %v1353_v21, %v1093_v59  ;;  %v1094_v58 = vpop.f32.mrf.mxu1  ;;  %v13474_v31 = vpack.c.bf16 %v13472_v22, %v13473_v37  ;;  %v12404_v30 = vpop.f32.mrf.mxu0  ;;  %v13476_v21 = vld [vmem:[#allocation106_spill] sm:$0xff] }
 0x25c   :  { %v1095_v62 = vadd.f32 %v1094_v58, %v12227_v53  ;;  %v13478_v58 = vld [vmem:[#allocation115_spill] sm:$0xff]  ;;  %v13481_v37 = vld [vmem:[#allocation118_spill] sm:$0xff] }
 0x261   :  { %v1192_v13 = vpop.f32.mrf.mxu2 }
 0x262   :  { %v12385_v55 = vadd.f32 %v1192_v13, %v12225_v20  ;;  %v1355_v52 = vpop.f32.mrf.mxu3 }
 0x263   :  { %v12387_v7 = vadd.f32 %v1355_v52, %v1095_v62  ;;  %v1097_v57 = vpop.f32.mrf.mxu1  ;;  %v13479_v62 = vld [vmem:[#allocation114_spill] sm:$0xff] }
 0x264   :  { %v1098_v53 = vadd.f32 %v1097_v57, %v12243_v9  ;;  %v13475_v9 = vld [vmem:[#allocation109_spill] sm:$0xff]  ;;  %v13480_v13 = vpack.c.bf16 %v13478_v58, %v13479_v62  ;;  %v12424_v57 = vpop.f32.mrf.mxu0 }
 0x266   :  { %7519 = vmatmul.msk.bf16.gmra.mxu1 %vm731_vm4, %v13471_v11  ;;  %7535 = vmatmul.msk.bf16.gmra.mxu2 %vm731_vm4, %v13474_v31  ;;  %v13482_v31 = vld [vmem:[#allocation117_spill] sm:$0xff] }
 0x269   :  { %v1195_v51 = vpop.f32.mrf.mxu2 }
 0x26a   :  { %v12399_v20 = vadd.f32 %v1195_v51, %v12241_v27  ;;  %v1358_v61 = vpop.f32.mrf.mxu3  ;;  %v13477_v27 = vpack.c.bf16 %v13475_v9, %v13476_v21  ;;  %v13484_v51 = vld [vmem:[#allocation122_spill] sm:$0xff] }
 0x26b   :  { %v12401_v24 = vadd.f32 %v1358_v61, %v1098_v53  ;;  %v1099_v3 = vpop.f32.mrf.mxu1  ;;  %v13483_v53 = vpack.c.bf16 %v13481_v37, %v13482_v31 }
 0x26c   :  { %v1100_v2 = vadd.f32 %v1099_v3, %v12247_v45  ;;  %v12431_v22 = vpop.f32.mrf.mxu0 }
 0x271   :  { %v1197_v33 = vpop.f32.mrf.mxu2 }
 0x272   :  { %v1227_v16 = vadd.f32 %v1197_v33, %v12245_v44  ;;  %v1360_v49 = vpop.f32.mrf.mxu3 }
 0x273   :  { %v12407_v59 = vadd.f32 %v1360_v49, %v1100_v2  ;;  %v12409_v50 = vpop.f32.mrf.mxu1 }
 0x274   :  { %v12446_v33 = vpop.f32.mrf.mxu0 }
 0x276   :  { %7520 = vmatmul.msk.bf16.gmra.mxu1 %vm731_vm4, %v13477_v27  ;;  %7536 = vmatmul.msk.bf16.gmra.mxu2 %vm731_vm4, %v13480_v13 }
 0x279   :  { %v1200_v45 = vpop.f32.mrf.mxu2 }
 0x27a   :  { %v12420_v52 = vadd.f32 %v1200_v45, %v12261_v5  ;;  %v13485_v5 = vld [vmem:[#allocation121_spill] sm:$0xff] }
 0x27b   :  { %v12422_v44 = vpop.f32.mrf.mxu1  ;;  %v13486_v61 = vpack.c.bf16 %v13484_v51, %v13485_v5  ;;  %v13491_v45 = vld [vmem:[#allocation45_spill] sm:$0xff] }
 0x27c   :  { %v12461_v27 = vpop.f32.mrf.mxu0 }
 0x281   :  { %v1202_v1 = vpop.f32.mrf.mxu2 }
 0x282   :  { %v12427_v25 = vadd.f32 %v1202_v1, %v12265_v60 }
 0x283   :  { %v12429_v11 = vpop.f32.mrf.mxu1 }
 0x284   :  { %v12473_v8 = vpop.f32.mrf.mxu0 }
 0x286   :  { %7521 = vmatmul.msk.bf16.gmra.mxu1 %vm731_vm4, %v13483_v53  ;;  %7537 = vmatmul.msk.bf16.gmra.mxu2 %vm731_vm4, %v13486_v61 }
 0x289   :  { %v1205_v3 = vpop.f32.mrf.mxu2 }
 0x28a   :  { %v12442_v2 = vadd.f32 %v1205_v3, %v12281_v14 }
 0x28b   :  { %v12444_v60 = vpop.f32.mrf.mxu1 }
 0x28c   :  { %v1523_v31 = vpop.f32.mrf.mxu0 }
 0x28d   :  { %v12488_v53 = vadd.f32 %v1523_v31, %v1227_v16  ;;  %v12498_v16 = vld [vmem:[#allocation10] ss:$0 sm:$0xff] }
 0x291   :  { %v1207_v49 = vpop.f32.mrf.mxu2 }
 0x292   :  { %v12449_v9 = vadd.f32 %v1207_v49, %v12285_v15  ;;  %v1546_v49 = vadd.f32 %v1506_v0, %v12339_v29 }
 0x293   :  { %v12451_v21 = vpop.f32.mrf.mxu1 }
 0x296   :  { %7522 = vmatmul.msk.bf16.gmra.mxu1 %vm731_vm4, %v1617_v38  ;;  %7538 = vmatmul.msk.bf16.gmra.mxu2 %vm731_vm4, %v1780_v34  ;;  %v13487_v38 = vld [vmem:[#allocation38_spill] sm:$0xff]  ;;  %v13490_v34 = vld [vmem:[#allocation51_spill] sm:$0xff] }
 0x297   :  { %v13489_v56 = vpack.c.bf16 %v13487_v38, %v13488_v40  ;;  %v13492_v1 = vpack.c.bf16 %v13490_v34, %v13491_v45  ;;  %v1547_v38 = vadd.f32 %v12404_v30, %v12345_v6 }
 0x299   :  { %v1210_v14 = vpop.f32.mrf.mxu2 }
 0x29a   :  { %v12464_v58 = vadd.f32 %v1210_v14, %v12301_v48 }
 0x29b   :  { %v12466_v15 = vpop.f32.mrf.mxu1 }
 0x2a1   :  { %v1212_v62 = vpop.f32.mrf.mxu2 }
 0x2a2   :  { %v12469_v13 = vadd.f32 %v1212_v62, %v12305_v32 }
 0x2a3   :  { %v12471_v43 = vpop.f32.mrf.mxu1 }
 0x2a6   :  { %7523 = vmatmul.msk.bf16.gmra.mxu1 %vm731_vm4, %v13489_v56  ;;  %7539 = vmatmul.msk.bf16.gmra.mxu2 %vm731_vm4, %v13492_v1  ;;  %v1548_v1 = vadd.f32 %v12424_v57, %v12359_v63 }
 0x2a9   :  { %v1215_v48 = vpop.f32.mrf.mxu2 }
 0x2aa   :  { %v12484_v37 = vadd.f32 %v1215_v48, %v12321_v54 }
 0x2ab   :  { %v12486_v32 = vpop.f32.mrf.mxu1 }
 0x2b1   :  { %v1217_v51 = vpop.f32.mrf.mxu2 }
 0x2b2   :  { %v12491_v5 = vadd.f32 %v1217_v51, %v12325_v4 }
 0x2b3   :  { %v1669_v61 = vpop.f32.mrf.mxu1 }
 0x2b4   :  { %v1709_v3 = vadd.f32 %v1669_v61, %v12341_v17 }
 0x2b9   :  { %v1832_v54 = vpop.f32.mrf.mxu2 }
 0x2ba   :  { %v1872_v14 = vadd.f32 %v1832_v54, %v1546_v49  ;;  %v1549_v54 = vadd.f32 %v12431_v22, %v12365_v28 }
 0x2bb   :  { %v1671_v4 = vpop.f32.mrf.mxu1 }
 0x2bc   :  { %v1888_v17 = vadd.f32 %v1872_v14, %v1709_v3  ;;  %v1710_v29 = vadd.f32 %v1671_v4, %v12347_v23 }
 0x2be   :  { %v12505_v0 = vadd.f32 %v12498_v16, %v1888_v17 }
 0x2c0   :  { %v1924_v62 = vmax.f32 %v12505_v0, 0.0 }
 0x2c1   :  { %v1834_v23 = vpop.f32.mrf.mxu2 }
 0x2c2   :  { %v1873_v40 = vadd.f32 %v1834_v23, %v1547_v38 }
 0x2c3   :  { %v1674_v56 = vpop.f32.mrf.mxu1 }
 0x2c4   :  { %v1889_v34 = vadd.f32 %v1873_v40, %v1710_v29  ;;  %v1711_v45 = vadd.f32 %v1674_v56, %v12361_v46 }
 0x2c6   :  { %v12518_v6 = vadd.f32 %v12498_v16, %v1889_v34 }
 0x2c8   :  { %v1925_v30 = vmax.f32 %v12518_v6, 0.0 }
 0x2c9   :  { %v1837_v48 = vpop.f32.mrf.mxu2 }
 0x2ca   :  { %v1874_v31 = vadd.f32 %v1837_v48, %v1548_v1 }
 0x2cb   :  { %v1676_v51 = vpop.f32.mrf.mxu1 }
 0x2cc   :  { %v1890_v61 = vadd.f32 %v1874_v31, %v1711_v45  ;;  %v1712_v46 = vadd.f32 %v1676_v51, %v12367_v26  ;;  %v1550_v26 = vadd.f32 %v12446_v33, %v12379_v18 }
 0x2ce   :  { %v12525_v3 = vadd.f32 %v12498_v16, %v1890_v61  ;;  %v1363_v61 = vpop.f32.mrf.mxu3 }
 0x2d0   :  { %v1926_v49 = vmax.f32 %v12525_v3, 0.0 }
 0x2d1   :  { %v1839_v14 = vpop.f32.mrf.mxu2 }
 0x2d2   :  { %v1875_v4 = vadd.f32 %v1839_v14, %v1549_v54  ;;  %v1526_v54 = vpop.f32.mrf.mxu0 }
 0x2d3   :  { %v1679_v17 = vpop.f32.mrf.mxu1 }
 0x2d4   :  { %v1891_v29 = vadd.f32 %v1875_v4, %v1712_v46  ;;  %v1713_v63 = vadd.f32 %v1679_v17, %v12381_v35  ;;  %v1551_v35 = vadd.f32 %v12461_v27, %v12385_v55  ;;  %v1552_v46 = vadd.f32 %v12473_v8, %v12399_v20 }
 0x2d5   :  { %v1103_v20 = vadd.f32 %v12409_v50, %v12263_v19 }
 0x2d6   :  { %v12532_v57 = vadd.f32 %v12498_v16, %v1891_v29 }
 0x2d8   :  { %v1927_v38 = vmax.f32 %v12532_v57, 0.0 }
 0x2d9   :  { %v1842_v23 = vpop.f32.mrf.mxu2 }
 0x2da   :  { %v1876_v40 = vadd.f32 %v1842_v23, %v1550_v26 }
 0x2db   :  { %v1681_v56 = vpop.f32.mrf.mxu1 }
 0x2dc   :  { %v1892_v34 = vadd.f32 %v1876_v40, %v1713_v63  ;;  %v1714_v28 = vadd.f32 %v1681_v56, %v12387_v7  ;;  %v1365_v63 = vpop.f32.mrf.mxu3  ;;  %v1528_v40 = vpop.f32.mrf.mxu0 }
 0x2de   :  { %v12539_v22 = vadd.f32 %v12498_v16, %v1892_v34 }
 0x2e0   :  { %v1928_v45 = vmax.f32 %v12539_v22, 0.0 }
 0x2e1   :  { %v1844_v1 = vpop.f32.mrf.mxu2 }
 0x2e2   :  { %v1877_v48 = vadd.f32 %v1844_v1, %v1551_v35  ;;  %v1554_v35 = vadd.f32 %v1526_v54, %v12420_v52 }
 0x2e3   :  { %v1684_v31 = vpop.f32.mrf.mxu1 }
 0x2e4   :  { %v1893_v51 = vadd.f32 %v1877_v48, %v1714_v28  ;;  %v1715_v18 = vadd.f32 %v1684_v31, %v12401_v24  ;;  %v1391_v28 = vadd.f32 %v1363_v61, %v1103_v20 }
 0x2e6   :  { %v12546_v33 = vadd.f32 %v12498_v16, %v1893_v51  ;;  %v1368_v51 = vpop.f32.mrf.mxu3 }
 0x2e8   :  { %v1929_v7 = vmax.f32 %v12546_v33, 0.0 }
 0x2e9   :  { %v1847_v14 = vpop.f32.mrf.mxu2 }
 0x2ea   :  { %v1878_v4 = vadd.f32 %v1847_v14, %v1552_v46  ;;  %v1531_v46 = vpop.f32.mrf.mxu0  ;;  %v1105_v14 = vadd.f32 %v12422_v44, %v12267_v10 }
 0x2eb   :  { %v1686_v17 = vpop.f32.mrf.mxu1 }
 0x2ec   :  { %v1894_v55 = vadd.f32 %v1878_v4, %v1715_v18  ;;  %v1716_v27 = vadd.f32 %v1686_v17, %v12407_v59  ;;  %v1392_v50 = vadd.f32 %v1365_v63, %v1105_v14  ;;  %v1555_v4 = vadd.f32 %v1528_v40, %v12427_v25 }
 0x2ee   :  { %v12553_v29 = vadd.f32 %v12498_v16, %v1894_v55 }
 0x2f0   :  { %v1930_v24 = vmax.f32 %v12553_v29, 0.0 }
 0x2f1   :  { %v1849_v26 = vpop.f32.mrf.mxu2 }
 0x2f2   :  { %v1879_v23 = vadd.f32 %v1849_v26, %v12488_v53  ;;  %v1370_v26 = vpop.f32.mrf.mxu3  ;;  %v1533_v10 = vpop.f32.mrf.mxu0 }
 0x2f3   :  { %v1689_v56 = vpop.f32.mrf.mxu1 }
 0x2f4   :  { %v1895_v34 = vadd.f32 %v1879_v23, %v1716_v27  ;;  %v1717_v48 = vadd.f32 %v1689_v56, %v1391_v28  ;;  %v1108_v23 = vadd.f32 %v12429_v11, %v12283_v47 }
 0x2f6   :  { %v12560_v8 = vadd.f32 %v12498_v16, %v1895_v34  ;;  %v1393_v44 = vadd.f32 %v1368_v51, %v1108_v23  ;;  %v1556_v34 = vadd.f32 %v1531_v46, %v12442_v2  ;;  %v1557_v51 = vadd.f32 %v1533_v10, %v12449_v9 }
 0x2f8   :  { %v1931_v59 = vmax.f32 %v12560_v8, 0.0 }
 0x2f9   :  { %v1852_v1 = vpop.f32.mrf.mxu2 }
 0x2fa   :  { %v1880_v31 = vadd.f32 %v1852_v1, %v1554_v35  ;;  %v1110_v1 = vadd.f32 %v12444_v60, %v12287_v39  ;;  %v1373_v47 = vpop.f32.mrf.mxu3 }
 0x2fb   :  { %v1691_v18 = vpop.f32.mrf.mxu1 }
 0x2fc   :  { %v1896_v53 = vadd.f32 %v1880_v31, %v1717_v48  ;;  %v1718_v52 = vadd.f32 %v1691_v18, %v1392_v50  ;;  %v1394_v11 = vadd.f32 %v1370_v26, %v1110_v1  ;;  %v1536_v18 = vpop.f32.mrf.mxu0 }
 0x2fe   :  { %v12567_v19 = vadd.f32 %v12498_v16, %v1896_v53 }
 0x300   :  { %v1932_v61 = vmax.f32 %v12567_v19, 0.0 }
 0x301   :  { %v1854_v17 = vpop.f32.mrf.mxu2 }
 0x302   :  { %v1881_v54 = vadd.f32 %v1854_v17, %v1555_v4  ;;  %v1113_v4 = vadd.f32 %v12451_v21, %v12303_v12 }
 0x303   :  { %v1694_v55 = vpop.f32.mrf.mxu1 }
 0x304   :  { %v1897_v27 = vadd.f32 %v1881_v54, %v1718_v52  ;;  %v1719_v25 = vadd.f32 %v1694_v55, %v1393_v44  ;;  %v1395_v60 = vadd.f32 %v1373_v47, %v1113_v4  ;;  %v1558_v52 = vadd.f32 %v1536_v18, %v12464_v58  ;;  %v1375_v54 = vpop.f32.mrf.mxu3  ;;  %v1538_v26 = vpop.f32.mrf.mxu0 }
 0x305   :  { %v1115_v44 = vadd.f32 %v12466_v15, %v12307_v41 }
 0x306   :  { %v12574_v56 = vadd.f32 %v12498_v16, %v1897_v27 }
 0x307   :  { %v1396_v21 = vadd.f32 %v1375_v54, %v1115_v44 }
 0x308   :  { %v1933_v63 = vmax.f32 %v12574_v56, 0.0 }
 0x309   :  { %v1857_v20 = vpop.f32.mrf.mxu2 }
 0x30a   :  { %v1882_v40 = vadd.f32 %v1857_v20, %v1556_v34  ;;  %v1559_v20 = vadd.f32 %v1538_v26, %v12469_v13 }
 0x30b   :  { %v1696_v28 = vpop.f32.mrf.mxu1 }
 0x30c   :  { %v1898_v35 = vadd.f32 %v1882_v40, %v1719_v25  ;;  %v1720_v2 = vadd.f32 %v1696_v28, %v1394_v11  ;;  %v1378_v28 = vpop.f32.mrf.mxu3  ;;  %v1541_v1 = vpop.f32.mrf.mxu0  ;;  %v1118_v11 = vadd.f32 %v12471_v43, %v12323_v42 }
 0x30d   :  { %v1560_v18 = vadd.f32 %v1541_v1, %v12484_v37 }
 0x30e   :  { %v12581_v48 = vadd.f32 %v12498_v16, %v1898_v35  ;;  %v1397_v15 = vadd.f32 %v1378_v28, %v1118_v11 }
 0x310   :  { %v1934_v31 = vmax.f32 %v12581_v48, 0.0 }
 0x311   :  { %v1859_v53 = vpop.f32.mrf.mxu2 }
 0x312   :  { %v1883_v46 = vadd.f32 %v1859_v53, %v1557_v51 }
 0x313   :  { %v1699_v14 = vpop.f32.mrf.mxu1 }
 0x314   :  { %v1899_v50 = vadd.f32 %v1883_v46, %v1720_v2  ;;  %v1721_v9 = vadd.f32 %v1699_v14, %v1395_v60  ;;  %v1380_v14 = vpop.f32.mrf.mxu3  ;;  %v1543_v42 = vpop.f32.mrf.mxu0 }
 0x315   :  { %v1561_v54 = vadd.f32 %v1543_v42, %v12491_v5 }
 0x316   :  { %v12588_v39 = vadd.f32 %v12498_v16, %v1899_v50  ;;  %v1120_v50 = vadd.f32 %v12486_v32, %v12327_v36 }
 0x318   :  { %v1398_v60 = vadd.f32 %v1380_v14, %v1120_v50 }
 0x319   :  { %v1862_v55 = vpop.f32.mrf.mxu2 }
 0x31a   :  { %v1884_v27 = vadd.f32 %v1862_v55, %v1558_v52 }
 0x31b   :  { %v1701_v23 = vpop.f32.mrf.mxu1 }
 0x31c   :  { %v1900_v10 = vadd.f32 %v1884_v27, %v1721_v9  ;;  %v1722_v58 = vadd.f32 %v1701_v23, %v1396_v21 }
 0x31e   :  { %v12595_v12 = vadd.f32 %v12498_v16, %v1900_v10 }
 0x321   :  { %v1864_v25 = vpop.f32.mrf.mxu2 }
 0x322   :  { %v1885_v40 = vadd.f32 %v1864_v25, %v1559_v20 }
 0x323   :  { %v1704_v47 = vpop.f32.mrf.mxu1 }
 0x324   :  { %v1901_v35 = vadd.f32 %v1885_v40, %v1722_v58  ;;  %v1723_v13 = vadd.f32 %v1704_v47, %v1397_v15 }
 0x326   :  { %v12602_v41 = vadd.f32 %v12498_v16, %v1901_v35 }
 0x329   :  { %v1867_v53 = vpop.f32.mrf.mxu2 }
 0x32a   :  { %v1886_v2 = vadd.f32 %v1867_v53, %v1560_v18 }
 0x32b   :  { %v1706_v43 = vpop.f32.mrf.mxu1 }
 0x32c   :  { %v1902_v46 = vadd.f32 %v1886_v2, %v1723_v13  ;;  %v1724_v37 = vadd.f32 %v1706_v43, %v1398_v60 }
 0x32e   :  { %v12609_v4 = vadd.f32 %v12498_v16, %v1902_v46 }
 0x331   :  { %v1869_v55 = vpop.f32.mrf.mxu2 }
 0x332   :  { %v1887_v9 = vadd.f32 %v1869_v55, %v1561_v54 }
 0x334   :  { %v1903_v27 = vadd.f32 %v1887_v9, %v1724_v37 }
 0x336   :  { %v12614_v26 = vadd.f32 %v12498_v16, %v1903_v27 }
 0x337   :  { %10966 = dma.done.wait [#allocation3], 16384 }
 0x338   :  { %10967 = vsyncadd [#allocation3], 4294950912  ;;  %v7566_v36 = vld [vmem:[#allocation2 + $0x230] sm:$0xf]  ;;  %v9883_v32 = vld [vmem:[#allocation2 + $0x234] sm:$0xf0] }
 0x339   :  { %v9882_v10 = vld [vmem:[#allocation2 + $0x234] sm:$0xf]  ;;  %v7567_v44 = vor.u32 %v9883_v32, %v7566_v36  ;;  %v7568_v21 = vld [vmem:[#allocation2 + $0x238] sm:$0xf0]  ;;  %v7558_v20 = vld [vmem:[#allocation2 + $0x220] sm:$0xf]  ;;  %v12620_v36 = vpack.c.bf16 %v1926_v49, %v1926_v49 }
 0x33a   :  { %v9881_v25 = vld [vmem:[#allocation2 + $0x224] sm:$0xf0]  ;;  %v7571_v58 = vor.u32 %v9882_v10, %v7568_v21  ;;  %v9880_v5 = vld [vmem:[#allocation2 + $0x224] sm:$0xf]  ;;  %v7560_v40 = vld [vmem:[#allocation2 + $0x228] sm:$0xf0] }
 0x33b   :  { %2076 = vmatpush.bf16.msra.mxu3 %v7567_v44  ;;  %v7559_v28 = vor.u32 %v9881_v25, %v7558_v20  ;;  %v7563_v35 = vor.u32 %v9880_v5, %v7560_v40  ;;  %v7550_v16 = vld [vmem:[#allocation2 + $0x210] sm:$0xf]  ;;  %v9879_v1 = vld [vmem:[#allocation2 + $0x214] sm:$0xf0]  ;;  %v9878_v47 = vld [vmem:[#allocation2 + $0x214] sm:$0xf] }
 0x33c   :  { %2089 = vmatpush.bf16.msra.mxu0 %v7571_v58  ;;  %v7552_v11 = vld [vmem:[#allocation2 + $0x218] sm:$0xf0]  ;;  %v7551_v15 = vor.u32 %v9879_v1, %v7550_v16  ;;  %v7542_v53 = vld [vmem:[#allocation2 + $0x200] sm:$0xf]  ;;  %v9877_v13 = vld [vmem:[#allocation2 + $0x204] sm:$0xf0] }
 0x33d   :  { %v7555_v18 = vor.u32 %v9878_v47, %v7552_v11  ;;  %v9876_v2 = vld [vmem:[#allocation2 + $0x204] sm:$0xf]  ;;  %v7544_v46 = vld [vmem:[#allocation2 + $0x208] sm:$0xf0]  ;;  %v7600_v14 = vld [vmem:[#allocation2 + $0x30] sm:$0xf]  ;;  %v7543_v60 = vor.u32 %v9877_v13, %v7542_v53 }
 0x33e   :  { %v9819_v50 = vld [vmem:[#allocation2 + $0x34] sm:$0xf0]  ;;  %v9818_v42 = vld [vmem:[#allocation2 + $0x34] sm:$0xf]  ;;  %v7602_v43 = vld [vmem:[#allocation2 + $0x38] sm:$0xf0]  ;;  %v7547_v54 = vor.u32 %v9876_v2, %v7544_v46 }
 0x33f   :  { %2077 = vmatpush.bf16.msra.mxu3 %v7559_v28  ;;  %v7601_v55 = vor.u32 %v9819_v50, %v7600_v14  ;;  %v7605_v37 = vor.u32 %v9818_v42, %v7602_v43  ;;  %v7592_v9 = vld [vmem:[#allocation2 + $0x20] sm:$0xf]  ;;  %v9817_v27 = vld [vmem:[#allocation2 + $0x24] sm:$0xf0]  ;;  %v9816_v32 = vld [vmem:[#allocation2 + $0x24] sm:$0xf] }
 0x340   :  { %2090 = vmatpush.bf16.msra.mxu0 %v7563_v35  ;;  %v7594_v10 = vld [vmem:[#allocation2 + $0x28] sm:$0xf0]  ;;  %vm2068_vm5 = vcmask 523264   ;;  %v7593_v44 = vor.u32 %v9817_v27, %v7592_v9  ;;  %v7584_v20 = vld [vmem:[#allocation2 + $0x10] sm:$0xf] }
 0x341   :  { %v7597_v21 = vor.u32 %v9816_v32, %v7594_v10  ;;  %v9815_v25 = vld [vmem:[#allocation2 + $0x14] sm:$0xf0]  ;;  %v9814_v58 = vld [vmem:[#allocation2 + $0x14] sm:$0xf]  ;;  %v7586_v5 = vld [vmem:[#allocation2 + $0x18] sm:$0xf0] }
 0x342   :  { %v7585_v3 = vor.u32 %v9815_v25, %v7584_v20  ;;  %v7589_v49 = vor.u32 %v9814_v58, %v7586_v5  ;;  %v7576_v40 = vld [vmem:[#allocation2] sm:$0xf]  ;;  %v9813_v28 = vld [vmem:[#allocation2 + $0x4] sm:$0xf0]  ;;  %v9812_v35 = vld [vmem:[#allocation2 + $0x4] sm:$0xf] }
 0x343   :  { %2078 = vmatpush.bf16.msra.mxu3 %v7551_v15  ;;  %v7578_v16 = vld [vmem:[#allocation2 + $0x8] sm:$0xf0]  ;;  %v7634_v1 = vld [vmem:[#allocation2 + $0x270] sm:$0xf]  ;;  %v9891_v47 = vld [vmem:[#allocation2 + $0x274] sm:$0xf0] }
 0x344   :  { %2091 = vmatpush.bf16.msra.mxu0 %v7555_v18  ;;  %v9890_v11 = vld [vmem:[#allocation2 + $0x274] sm:$0xf]  ;;  %v7636_v15 = vld [vmem:[#allocation2 + $0x278] sm:$0xf0]  ;;  %v7577_v18 = vor.u32 %v9813_v28, %v7576_v40  ;;  %v7581_v53 = vor.u32 %v9812_v35, %v7578_v16  ;;  %v7635_v13 = vor.u32 %v9891_v47, %v7634_v1  ;;  %v7626_v46 = vld [vmem:[#allocation2 + $0x260] sm:$0xf] }
 0x345   :  { %v7639_v2 = vor.u32 %v9890_v11, %v7636_v15  ;;  %v9889_v14 = vld [vmem:[#allocation2 + $0x264] sm:$0xf0]  ;;  %v9888_v50 = vld [vmem:[#allocation2 + $0x264] sm:$0xf]  ;;  %v7628_v42 = vld [vmem:[#allocation2 + $0x268] sm:$0xf0] }
 0x346   :  { %v7627_v43 = vor.u32 %v9889_v14, %v7626_v46  ;;  %v9886_v9 = vld [vmem:[#allocation2 + $0x254] sm:$0xf]  ;;  %v7620_v27 = vld [vmem:[#allocation2 + $0x258] sm:$0xf0]  ;;  %v9884_v20 = vld [vmem:[#allocation2 + $0x244] sm:$0xf] }
 0x347   :  { %2079 = vmatpush.bf16.msra.mxu3 %v7543_v60  ;;  %v12629_v60 = vpack.c.bf16 %v1924_v62, %v1924_v62  ;;  %v7623_v10 = vor.u32 %v9886_v9, %v7620_v27  ;;  %v7612_v0 = vld [vmem:[#allocation2 + $0x248] sm:$0xf0]  ;;  %v7668_v62 = vld [vmem:[#allocation2 + $0x70] sm:$0xf]  ;;  %v9827_v25 = vld [vmem:[#allocation2 + $0x74] sm:$0xf0] }
 0x348   :  { %2092 = vmatpush.bf16.msra.mxu0 %v7547_v54  ;;  %v7631_v54 = vor.u32 %v9888_v50, %v7628_v42  ;;  %v9826_v58 = vld [vmem:[#allocation2 + $0x74] sm:$0xf]  ;;  %v7670_v5 = vld [vmem:[#allocation2 + $0x78] sm:$0xf0]  ;;  %v7669_v40 = vor.u32 %v9827_v25, %v7668_v62  ;;  %v7660_v35 = vld [vmem:[#allocation2 + $0x60] sm:$0xf] }
 0x349   :  { %v7673_v28 = vor.u32 %v9826_v58, %v7670_v5  ;;  %v9825_v16 = vld [vmem:[#allocation2 + $0x64] sm:$0xf0]  ;;  %v9824_v1 = vld [vmem:[#allocation2 + $0x64] sm:$0xf]  ;;  %v7662_v47 = vld [vmem:[#allocation2 + $0x68] sm:$0xf0] }
 0x34a   :  { %7572 = vmatmul.msk.bf16.vlgmr.msra.gmra.mxu3 %vm2068_vm5, %v12620_v36  ;;  %v7661_v11 = vor.u32 %v9825_v16, %v7660_v35  ;;  %v7665_v15 = vor.u32 %v9824_v1, %v7662_v47  ;;  %v2177_v46 = vrot.slane %v12620_v36, 1  ;;  %v7644_v42 = vld [vmem:[#allocation2 + $0x40] sm:$0xf]  ;;  %v9899_v9 = vld [vmem:[#allocation2 + $0x2b4] sm:$0xf0]  ;;  %v2248_v16 = vrot.slane %v12629_v60, 1 }
 0x34b   :  { %2145 = vmatpush.bf16.msrb.mxu3 %v7601_v55  ;;  %7573 = vmatmul.msk.bf16.vlgmr.msra.gmra.mxu0 %vm2068_vm5, %v12620_v36  ;;  %v7618_v55 = vld [vmem:[#allocation2 + $0x250] sm:$0xf]  ;;  %v9898_v27 = vld [vmem:[#allocation2 + $0x2b4] sm:$0xf]  ;;  %v9897_v62 = vld [vmem:[#allocation2 + $0x2a4] sm:$0xf0] }
 0x34c   :  { %2158 = vmatpush.bf16.msrb.mxu0 %v7605_v37  ;;  %v9887_v37 = vld [vmem:[#allocation2 + $0x254] sm:$0xf0]  ;;  %v9896_v25 = vld [vmem:[#allocation2 + $0x2a4] sm:$0xf]  ;;  %v7696_v58 = vld [vmem:[#allocation2 + $0x2a8] sm:$0xf0] }
 0x34d   :  { %v7619_v32 = vor.u32 %v9887_v37, %v7618_v55  ;;  %v7646_v55 = vld [vmem:[#allocation2 + $0x48] sm:$0xf0]  ;;  %v7702_v37 = vld [vmem:[#allocation2 + $0x2b0] sm:$0xf]  ;;  %v7688_v35 = vld [vmem:[#allocation2 + $0x298] sm:$0xf0] }
 0x34e   :  { %v9930_v57 = vld [vmem:[#allocation2 + $0x3b4] sm:$0xf]  ;;  %v9864_v6 = vld [vmem:[#allocation2 + $0x1a4] sm:$0xf] }
 0x34f   :  { %2146 = vmatpush.bf16.msrb.mxu3 %v7593_v44  ;;  %v7610_v44 = vld [vmem:[#allocation2 + $0x240] sm:$0xf] }
 0x350   :  { %2159 = vmatpush.bf16.msrb.mxu0 %v7597_v21  ;;  %v9885_v21 = vld [vmem:[#allocation2 + $0x244] sm:$0xf0] }
 0x353   :  { %2147 = vmatpush.bf16.msrb.mxu3 %v7585_v3  ;;  %v7611_v3 = vor.u32 %v9885_v21, %v7610_v44  ;;  %v7703_v21 = vor.u32 %v9899_v9, %v7702_v37  ;;  %v9833_v37 = vld [vmem:[#allocation2 + $0xa4] sm:$0xf0]  ;;  %v9832_v9 = vld [vmem:[#allocation2 + $0xa4] sm:$0xf] }
 0x354   :  { %2160 = vmatpush.bf16.msrb.mxu0 %v7589_v49  ;;  %v7615_v49 = vor.u32 %v9884_v20, %v7612_v0  ;;  %v7694_v0 = vld [vmem:[#allocation2 + $0x2a0] sm:$0xf] }
 0x355   :  { %v7695_v5 = vor.u32 %v9897_v62, %v7694_v0  ;;  %v7722_v0 = vld [vmem:[#allocation2 + $0x98] sm:$0xf0] }
 0x357   :  { %2148 = vmatpush.bf16.msrb.mxu3 %v7577_v18  ;;  %v7652_v18 = vld [vmem:[#allocation2 + $0x50] sm:$0xf] }
 0x358   :  { %2161 = vmatpush.bf16.msrb.mxu0 %v7581_v53  ;;  %v9823_v53 = vld [vmem:[#allocation2 + $0x54] sm:$0xf0] }
 0x359   :  { %v7653_v14 = vor.u32 %v9823_v53, %v7652_v18  ;;  %v9892_v18 = vld [vmem:[#allocation2 + $0x284] sm:$0xf]  ;;  %v7680_v53 = vld [vmem:[#allocation2 + $0x288] sm:$0xf0] }
 0x35a   :  { %7606 = vmatmul.msk.bf16.vlgmr.msrb.gmra.mxu3 %vm2068_vm5, %v12629_v60 }
 0x35b   :  { %2225 = vmatpush.bf16.msra.mxu3 %v7635_v13  ;;  %7607 = vmatmul.msk.bf16.vlgmr.msrb.gmra.mxu0 %vm2068_vm5, %v12629_v60  ;;  %v9822_v13 = vld [vmem:[#allocation2 + $0x54] sm:$0xf] }
 0x35c   :  { %2238 = vmatpush.bf16.msra.mxu0 %v7639_v2  ;;  %v7654_v2 = vld [vmem:[#allocation2 + $0x58] sm:$0xf0] }
 0x35d   :  { %v7657_v50 = vor.u32 %v9822_v13, %v7654_v2  ;;  %v7736_v13 = vld [vmem:[#allocation2 + $0xb0] sm:$0xf]  ;;  %v9835_v2 = vld [vmem:[#allocation2 + $0xb4] sm:$0xf0] }
 0x35f   :  { %2226 = vmatpush.bf16.msra.mxu3 %v7627_v43  ;;  %v9821_v43 = vld [vmem:[#allocation2 + $0x44] sm:$0xf0] }
 0x360   :  { %2239 = vmatpush.bf16.msra.mxu0 %v7631_v54  ;;  %v9820_v54 = vld [vmem:[#allocation2 + $0x44] sm:$0xf] }
 0x361   :  { %v7649_v44 = vor.u32 %v9820_v54, %v7646_v55  ;;  %v7728_v55 = vld [vmem:[#allocation2 + $0xa0] sm:$0xf] }
 0x363   :  { %2227 = vmatpush.bf16.msra.mxu3 %v7619_v32  ;;  %v7704_v32 = vld [vmem:[#allocation2 + $0x2b8] sm:$0xf0] }
 0x364   :  { %2240 = vmatpush.bf16.msra.mxu0 %v7623_v10  ;;  %v7645_v10 = vor.u32 %v9821_v43, %v7644_v42  ;;  %v7707_v20 = vor.u32 %v9898_v27, %v7704_v32  ;;  %v7683_v42 = vor.u32 %v9892_v18, %v7680_v53  ;;  %v7737_v43 = vor.u32 %v9835_v2, %v7736_v13  ;;  %v7730_v27 = vld [vmem:[#allocation2 + $0xa8] sm:$0xf0]  ;;  %v7762_v53 = vld [vmem:[#allocation2 + $0x2e0] sm:$0xf]  ;;  %v9905_v13 = vld [vmem:[#allocation2 + $0x2e4] sm:$0xf0] }
 0x365   :  { %v7729_v32 = vor.u32 %v9833_v37, %v7728_v55  ;;  %v9904_v2 = vld [vmem:[#allocation2 + $0x2e4] sm:$0xf]  ;;  %v7756_v55 = vld [vmem:[#allocation2 + $0x2d8] sm:$0xf0] }
 0x367   :  { %2228 = vmatpush.bf16.msra.mxu3 %v7611_v3  ;;  %v7699_v3 = vor.u32 %v9896_v25, %v7696_v58  ;;  %v7712_v58 = vld [vmem:[#allocation2 + $0x80] sm:$0xf] }
 0x368   :  { %2241 = vmatpush.bf16.msra.mxu0 %v7615_v49  ;;  %v7686_v49 = vld [vmem:[#allocation2 + $0x290] sm:$0xf] }
 0x36a   :  { %7640 = vmatmul.msk.bf16.vlgmr.msra.gmra.mxu3 %vm2068_vm5, %v2177_v46 }
 0x36b   :  { %2296 = vmatpush.bf16.msrb.mxu3 %v7669_v40  ;;  %7641 = vmatmul.msk.bf16.vlgmr.msra.gmra.mxu0 %vm2068_vm5, %v2177_v46  ;;  %v9895_v40 = vld [vmem:[#allocation2 + $0x294] sm:$0xf0]  ;;  %v9834_v46 = vld [vmem:[#allocation2 + $0xb4] sm:$0xf] }
 0x36c   :  { %2309 = vmatpush.bf16.msrb.mxu0 %v7673_v28  ;;  %v9894_v28 = vld [vmem:[#allocation2 + $0x294] sm:$0xf]  ;;  %v7687_v1 = vor.u32 %v9895_v40, %v7686_v49  ;;  %v7714_v49 = vld [vmem:[#allocation2 + $0x88] sm:$0xf0]  ;;  %v7770_v40 = vld [vmem:[#allocation2 + $0x2f0] sm:$0xf] }
 0x36d   :  { %v7691_v47 = vor.u32 %v9894_v28, %v7688_v35  ;;  %v9907_v28 = vld [vmem:[#allocation2 + $0x2f4] sm:$0xf0] }
 0x36f   :  { %2297 = vmatpush.bf16.msrb.mxu3 %v7661_v11  ;;  %v7678_v11 = vld [vmem:[#allocation2 + $0x280] sm:$0xf] }
 0x370   :  { %2310 = vmatpush.bf16.msrb.mxu0 %v7665_v15  ;;  %v9893_v15 = vld [vmem:[#allocation2 + $0x284] sm:$0xf0] }
 0x373   :  { %2298 = vmatpush.bf16.msrb.mxu3 %v7653_v14  ;;  %v7738_v14 = vld [vmem:[#allocation2 + $0xb8] sm:$0xf0] }
 0x374   :  { %2311 = vmatpush.bf16.msrb.mxu0 %v7657_v50  ;;  %v7679_v50 = vor.u32 %v9893_v15, %v7678_v11  ;;  %v7741_v54 = vor.u32 %v9834_v46, %v7738_v14  ;;  %v7771_v15 = vor.u32 %v9907_v28, %v7770_v40  ;;  %v7764_v46 = vld [vmem:[#allocation2 + $0x2e8] sm:$0xf0]  ;;  %v7763_v14 = vor.u32 %v9905_v13, %v7762_v53  ;;  %v7796_v40 = vld [vmem:[#allocation2 + $0xe0] sm:$0xf]  ;;  %v9841_v28 = vld [vmem:[#allocation2 + $0xe4] sm:$0xf0] }
 0x375   :  { %v7790_v53 = vld [vmem:[#allocation2 + $0xd8] sm:$0xf0] }
 0x377   :  { %2299 = vmatpush.bf16.msrb.mxu3 %v7645_v10  ;;  %v7733_v10 = vor.u32 %v9832_v9, %v7730_v27  ;;  %v7746_v27 = vld [vmem:[#allocation2 + $0x2c0] sm:$0xf] }
 0x378   :  { %2312 = vmatpush.bf16.msrb.mxu0 %v7649_v44  ;;  %v7720_v44 = vld [vmem:[#allocation2 + $0x90] sm:$0xf] }
 0x37a   :  { %7674 = vmatmul.msk.bf16.vlgmr.msrb.gmra.mxu3 %vm2068_vm5, %v2248_v16 }
 0x37b   :  { %2375 = vmatpush.bf16.msra.mxu3 %v7703_v21  ;;  %7675 = vmatmul.msk.bf16.vlgmr.msrb.gmra.mxu0 %vm2068_vm5, %v2248_v16  ;;  %v9831_v21 = vld [vmem:[#allocation2 + $0x94] sm:$0xf0]  ;;  %v9906_v16 = vld [vmem:[#allocation2 + $0x2f4] sm:$0xf] }
 0x37c   :  { %2388 = vmatpush.bf16.msra.mxu0 %v7707_v20  ;;  %v9830_v20 = vld [vmem:[#allocation2 + $0x94] sm:$0xf]  ;;  %v7721_v62 = vor.u32 %v9831_v21, %v7720_v44  ;;  %v7748_v44 = vld [vmem:[#allocation2 + $0x2c8] sm:$0xf0] }
 0x37d   :  { %v7725_v25 = vor.u32 %v9830_v20, %v7722_v0  ;;  %v7804_v0 = vld [vmem:[#allocation2 + $0xf0] sm:$0xf] }
 0x37f   :  { %2376 = vmatpush.bf16.msra.mxu3 %v7695_v5  ;;  %v9829_v5 = vld [vmem:[#allocation2 + $0x84] sm:$0xf0] }
 0x380   :  { %2389 = vmatpush.bf16.msra.mxu0 %v7699_v3  ;;  %v9828_v3 = vld [vmem:[#allocation2 + $0x84] sm:$0xf]  ;;  %v7713_v35 = vor.u32 %v9829_v5, %v7712_v58  ;;  %v7806_v58 = vld [vmem:[#allocation2 + $0xf8] sm:$0xf0]  ;;  %v2397_v5 = vrot.slane %v12629_v60, 2 }
 0x381   :  { %v7717_v11 = vor.u32 %v9828_v3, %v7714_v49 }
 0x383   :  { %2377 = vmatpush.bf16.msra.mxu3 %v7687_v1  ;;  %v7772_v1 = vld [vmem:[#allocation2 + $0x2f8] sm:$0xf0] }
 0x384   :  { %2390 = vmatpush.bf16.msra.mxu0 %v7691_v47  ;;  %v2327_v47 = vrot.slane %v12620_v36, 2  ;;  %v7775_v18 = vor.u32 %v9906_v16, %v7772_v1  ;;  %v7798_v16 = vld [vmem:[#allocation2 + $0xe8] sm:$0xf0]  ;;  %v7797_v1 = vor.u32 %v9841_v28, %v7796_v40 }
 0x387   :  { %2378 = vmatpush.bf16.msra.mxu3 %v7679_v50  ;;  %v7767_v50 = vor.u32 %v9904_v2, %v7764_v46  ;;  %v7780_v46 = vld [vmem:[#allocation2 + $0xc0] sm:$0xf] }
 0x388   :  { %2391 = vmatpush.bf16.msra.mxu0 %v7683_v42  ;;  %v7754_v42 = vld [vmem:[#allocation2 + $0x2d0] sm:$0xf] }
 0x38a   :  { %7708 = vmatmul.msk.bf16.vlgmr.msra.gmra.mxu3 %vm2068_vm5, %v2327_v47 }
 0x38b   :  { %2445 = vmatpush.bf16.msrb.mxu3 %v7737_v43  ;;  %7709 = vmatmul.msk.bf16.vlgmr.msra.gmra.mxu0 %vm2068_vm5, %v2327_v47  ;;  %v9903_v43 = vld [vmem:[#allocation2 + $0x2d4] sm:$0xf0] }
 0x38c   :  { %2458 = vmatpush.bf16.msrb.mxu0 %v7741_v54  ;;  %v9902_v54 = vld [vmem:[#allocation2 + $0x2d4] sm:$0xf]  ;;  %v7755_v37 = vor.u32 %v9903_v43, %v7754_v42  ;;  %v7782_v42 = vld [vmem:[#allocation2 + $0xc8] sm:$0xf0] }
 0x38d   :  { %v7759_v9 = vor.u32 %v9902_v54, %v7756_v55  ;;  %v7838_v55 = vld [vmem:[#allocation2 + $0x330] sm:$0xf] }
 0x38f   :  { %2446 = vmatpush.bf16.msrb.mxu3 %v7729_v32  ;;  %v9901_v32 = vld [vmem:[#allocation2 + $0x2c4] sm:$0xf0] }
 0x390   :  { %2459 = vmatpush.bf16.msrb.mxu0 %v7733_v10  ;;  %v9900_v10 = vld [vmem:[#allocation2 + $0x2c4] sm:$0xf]  ;;  %v7747_v21 = vor.u32 %v9901_v32, %v7746_v27  ;;  %v7840_v27 = vld [vmem:[#allocation2 + $0x338] sm:$0xf0]  ;;  %v2476_v32 = vrot.slane %v12620_v36, 3 }
 0x391   :  { %v7751_v20 = vor.u32 %v9900_v10, %v7748_v44  ;;  %v7824_v36 = vld [vmem:[#allocation2 + $0x318] sm:$0xf0] }
 0x393   :  { %2447 = vmatpush.bf16.msrb.mxu3 %v7721_v62  ;;  %v9843_v62 = vld [vmem:[#allocation2 + $0xf4] sm:$0xf0] }
 0x394   :  { %2460 = vmatpush.bf16.msrb.mxu0 %v7725_v25  ;;  %v9842_v25 = vld [vmem:[#allocation2 + $0xf4] sm:$0xf]  ;;  %v7805_v3 = vor.u32 %v9843_v62, %v7804_v0  ;;  %v9912_v0 = vld [vmem:[#allocation2 + $0x324] sm:$0xf]  ;;  %v7832_v62 = vld [vmem:[#allocation2 + $0x328] sm:$0xf0] }
 0x395   :  { %v7809_v49 = vor.u32 %v9842_v25, %v7806_v58  ;;  %v7835_v58 = vor.u32 %v9912_v0, %v7832_v62  ;;  %v7866_v0 = vld [vmem:[#allocation2 + $0x128] sm:$0xf0]  ;;  %v9918_v62 = vld [vmem:[#allocation2 + $0x354] sm:$0xf] }
 0x397   :  { %2448 = vmatpush.bf16.msrb.mxu3 %v7713_v35  ;;  %v9840_v35 = vld [vmem:[#allocation2 + $0xe4] sm:$0xf] }
 0x398   :  { %2461 = vmatpush.bf16.msrb.mxu0 %v7717_v11  ;;  %v7801_v47 = vor.u32 %v9840_v35, %v7798_v16  ;;  %v7788_v11 = vld [vmem:[#allocation2 + $0xd0] sm:$0xf]  ;;  %v7814_v35 = vld [vmem:[#allocation2 + $0x300] sm:$0xf]  ;;  %v9909_v16 = vld [vmem:[#allocation2 + $0x304] sm:$0xf0] }
 0x39a   :  { %7742 = vmatmul.msk.bf16.vlgmr.msrb.gmra.mxu3 %vm2068_vm5, %v2397_v5 }
 0x39b   :  { %2524 = vmatpush.bf16.msra.mxu3 %v7771_v15  ;;  %7743 = vmatmul.msk.bf16.vlgmr.msrb.gmra.mxu0 %vm2068_vm5, %v2397_v5  ;;  %v9839_v15 = vld [vmem:[#allocation2 + $0xd4] sm:$0xf0]  ;;  %v7822_v5 = vld [vmem:[#allocation2 + $0x310] sm:$0xf] }
 0x39c   :  { %2537 = vmatpush.bf16.msra.mxu0 %v7775_v18  ;;  %v9838_v18 = vld [vmem:[#allocation2 + $0xd4] sm:$0xf]  ;;  %v7789_v13 = vor.u32 %v9839_v15, %v7788_v11  ;;  %v7908_v15 = vld [vmem:[#allocation2 + $0x378] sm:$0xf0] }
 0x39d   :  { %v7793_v2 = vor.u32 %v9838_v18, %v7790_v53  ;;  %v9922_v11 = vld [vmem:[#allocation2 + $0x374] sm:$0xf]  ;;  %v7815_v53 = vor.u32 %v9909_v16, %v7814_v35  ;;  %v7858_v16 = vld [vmem:[#allocation2 + $0x118] sm:$0xf0] }
 0x39e   :  { %v7911_v18 = vor.u32 %v9922_v11, %v7908_v15  ;;  %v9846_v35 = vld [vmem:[#allocation2 + $0x114] sm:$0xf]  ;;  %v7884_v11 = vld [vmem:[#allocation2 + $0x348] sm:$0xf0] }
 0x39f   :  { %2525 = vmatpush.bf16.msra.mxu3 %v7763_v14  ;;  %v9837_v14 = vld [vmem:[#allocation2 + $0xc4] sm:$0xf0] }
 0x3a0   :  { %2538 = vmatpush.bf16.msra.mxu0 %v7767_v50  ;;  %v9836_v50 = vld [vmem:[#allocation2 + $0xc4] sm:$0xf]  ;;  %v7781_v43 = vor.u32 %v9837_v14, %v7780_v46  ;;  %v9851_v46 = vld [vmem:[#allocation2 + $0x134] sm:$0xf0]  ;;  %2835 = vmatpush.bf16.msrb.mxu2 %v7911_v18  ;;  %v9850_v14 = vld [vmem:[#allocation2 + $0x134] sm:$0xf] }
 0x3a1   :  { %v7785_v54 = vor.u32 %v9836_v50, %v7782_v42  ;;  %v7874_v50 = vld [vmem:[#allocation2 + $0x138] sm:$0xf0]  ;;  %v2546_v42 = vrot.slane %v12629_v60, 3 }
 0x3a2   :  { %v7892_v60 = vld [vmem:[#allocation2 + $0x358] sm:$0xf0] }
 0x3a3   :  { %2526 = vmatpush.bf16.msra.mxu3 %v7755_v37  ;;  %v9915_v37 = vld [vmem:[#allocation2 + $0x334] sm:$0xf0] }
 0x3a4   :  { %2539 = vmatpush.bf16.msra.mxu0 %v7759_v9  ;;  %v9914_v9 = vld [vmem:[#allocation2 + $0x334] sm:$0xf]  ;;  %v7839_v10 = vor.u32 %v9915_v37, %v7838_v55 }
 0x3a5   :  { %v7843_v44 = vor.u32 %v9914_v9, %v7840_v27  ;;  %v7906_v9 = vld [vmem:[#allocation2 + $0x370] sm:$0xf]  ;;  %v9923_v27 = vld [vmem:[#allocation2 + $0x374] sm:$0xf0] }
 0x3a7   :  { %2527 = vmatpush.bf16.msra.mxu3 %v7747_v21  ;;  %v7830_v21 = vld [vmem:[#allocation2 + $0x320] sm:$0xf] }
 0x3a8   :  { %2540 = vmatpush.bf16.msra.mxu0 %v7751_v20  ;;  %v9913_v20 = vld [vmem:[#allocation2 + $0x324] sm:$0xf0] }
 0x3a9   :  { %v7831_v25 = vor.u32 %v9913_v20, %v7830_v21  ;;  %v7907_v21 = vor.u32 %v9923_v27, %v7906_v9  ;;  %v9848_v20 = vld [vmem:[#allocation2 + $0x124] sm:$0xf]  ;;  %v7882_v9 = vld [vmem:[#allocation2 + $0x340] sm:$0xf]  ;;  %v9917_v27 = vld [vmem:[#allocation2 + $0x344] sm:$0xf0] }
 0x3aa   :  { %7776 = vmatmul.msk.bf16.vlgmr.msra.gmra.mxu3 %vm2068_vm5, %v2476_v32 }
 0x3ab   :  { %2594 = vmatpush.bf16.msrb.mxu3 %v7805_v3  ;;  %7777 = vmatmul.msk.bf16.vlgmr.msra.gmra.mxu0 %vm2068_vm5, %v2476_v32  ;;  %v9911_v3 = vld [vmem:[#allocation2 + $0x314] sm:$0xf0]  ;;  %v7877_v32 = vor.u32 %v9850_v14, %v7874_v50  ;;  %v9845_v14 = vld [vmem:[#allocation2 + $0x104] sm:$0xf0] }
 0x3ac   :  { %2607 = vmatpush.bf16.msrb.mxu0 %v7809_v49  ;;  %v9910_v49 = vld [vmem:[#allocation2 + $0x314] sm:$0xf]  ;;  %v7823_v40 = vor.u32 %v9911_v3, %v7822_v5  ;;  %2822 = vmatpush.bf16.msrb.mxu1 %v7907_v21  ;;  %v7898_v5 = vld [vmem:[#allocation2 + $0x360] sm:$0xf]  ;;  %v9921_v3 = vld [vmem:[#allocation2 + $0x364] sm:$0xf0]  ;;  %v7883_v21 = vor.u32 %v9917_v27, %v7882_v9 }
 0x3ad   :  { %v7827_v28 = vor.u32 %v9910_v49, %v7824_v36  ;;  %v7869_v49 = vor.u32 %v9848_v20, %v7866_v0  ;;  %v7856_v36 = vld [vmem:[#allocation2 + $0x110] sm:$0xf]  ;;  %v9858_v20 = vld [vmem:[#allocation2 + $0x174] sm:$0xf]  ;;  %v7942_v0 = vld [vmem:[#allocation2 + $0x178] sm:$0xf0] }
 0x3ae   :  { %v7958_v27 = vld [vmem:[#allocation2 + $0x390] sm:$0xf] }
 0x3af   :  { %2595 = vmatpush.bf16.msrb.mxu3 %v7797_v1  ;;  %v9908_v1 = vld [vmem:[#allocation2 + $0x304] sm:$0xf] }
 0x3b0   :  { %2608 = vmatpush.bf16.msrb.mxu0 %v7801_v47  ;;  %v7816_v47 = vld [vmem:[#allocation2 + $0x308] sm:$0xf0] }
 0x3b3   :  { %2596 = vmatpush.bf16.msrb.mxu3 %v7789_v13  ;;  %v7819_v13 = vor.u32 %v9908_v1, %v7816_v47  ;;  %v9916_v1 = vld [vmem:[#allocation2 + $0x344] sm:$0xf]  ;;  %v12656_v47 = vpack.c.bf16 %v1927_v38, %v1927_v38  ;;  %v7976_v38 = vld [vmem:[#allocation2 + $0x3b8] sm:$0xf0] }
 0x3b4   :  { %2609 = vmatpush.bf16.msrb.mxu0 %v7793_v2  ;;  %v7872_v2 = vld [vmem:[#allocation2 + $0x130] sm:$0xf]  ;;  %v7887_v18 = vor.u32 %v9916_v1, %v7884_v11  ;;  %v7934_v1 = vld [vmem:[#allocation2 + $0x168] sm:$0xf0]  ;;  %v9926_v11 = vld [vmem:[#allocation2 + $0x394] sm:$0xf] }
 0x3b5   :  { %v7873_v55 = vor.u32 %v9851_v46, %v7872_v2  ;;  %v7861_v2 = vor.u32 %v9846_v35, %v7858_v16  ;;  %v7848_v46 = vld [vmem:[#allocation2 + $0x100] sm:$0xf]  ;;  %v9856_v16 = vld [vmem:[#allocation2 + $0x164] sm:$0xf] }
 0x3b7   :  { %2597 = vmatpush.bf16.msrb.mxu3 %v7781_v43  ;;  %v9920_v43 = vld [vmem:[#allocation2 + $0x364] sm:$0xf] }
 0x3b8   :  { %2610 = vmatpush.bf16.msrb.mxu0 %v7785_v54  ;;  %v7900_v54 = vld [vmem:[#allocation2 + $0x368] sm:$0xf0] }
 0x3b9   :  { %v7903_v37 = vor.u32 %v9920_v43, %v7900_v54  ;;  %v9844_v43 = vld [vmem:[#allocation2 + $0x104] sm:$0xf]  ;;  %v7850_v54 = vld [vmem:[#allocation2 + $0x108] sm:$0xf0] }
 0x3ba   :  { %7810 = vmatmul.msk.bf16.vlgmr.msrb.gmra.mxu3 %vm2068_vm5, %v2546_v42 }
 0x3bb   :  { %2673 = vmatpush.bf16.msra.mxu3 %v7839_v10  ;;  %v7864_v10 = vld [vmem:[#allocation2 + $0x120] sm:$0xf]  ;;  %2836 = vmatpush.bf16.msrb.mxu2 %v7903_v37  ;;  %v7979_v37 = vor.u32 %v9930_v57, %v7976_v38  ;;  %v7926_v57 = vld [vmem:[#allocation2 + $0x158] sm:$0xf0]  ;;  %v9924_v38 = vld [vmem:[#allocation2 + $0x384] sm:$0xf] }
 0x3bc   :  { %2686 = vmatpush.bf16.msra.mxu0 %v7843_v44  ;;  %v9849_v44 = vld [vmem:[#allocation2 + $0x124] sm:$0xf0] }
 0x3bd   :  { %7811 = vmatmul.msk.bf16.vlgmr.msrb.gmra.mxu0 %vm2068_vm5, %v2546_v42  ;;  %v2774_v42 = vrot.slane %v12656_v47, 1 }
 0x3bf   :  { %2674 = vmatpush.bf16.msra.mxu3 %v7831_v25  ;;  %v7865_v25 = vor.u32 %v9849_v44, %v7864_v10  ;;  %v7940_v10 = vld [vmem:[#allocation2 + $0x170] sm:$0xf]  ;;  %v9859_v44 = vld [vmem:[#allocation2 + $0x174] sm:$0xf0] }
 0x3c0   :  { %2687 = vmatpush.bf16.msra.mxu0 %v7835_v58  ;;  %v7895_v58 = vor.u32 %v9918_v62, %v7892_v60  ;;  %v9928_v62 = vld [vmem:[#allocation2 + $0x3a4] sm:$0xf]  ;;  %v7968_v60 = vld [vmem:[#allocation2 + $0x3a8] sm:$0xf0] }
 0x3c2   :  { %2837 = vmatpush.bf16.msrb.mxu2 %v7895_v58  ;;  %v7971_v58 = vor.u32 %v9928_v62, %v7968_v60  ;;  %v2924_v62 = vrot.slane %v12656_v47, 2  ;;  %v9852_v60 = vld [vmem:[#allocation2 + $0x144] sm:$0xf] }
 0x3c3   :  { %2675 = vmatpush.bf16.msra.mxu3 %v7823_v40  ;;  %v9847_v40 = vld [vmem:[#allocation2 + $0x114] sm:$0xf0] }
 0x3c4   :  { %2688 = vmatpush.bf16.msra.mxu0 %v7827_v28  ;;  %v7899_v28 = vor.u32 %v9921_v3, %v7898_v5  ;;  %v7857_v15 = vor.u32 %v9847_v40, %v7856_v36  ;;  %v7974_v5 = vld [vmem:[#allocation2 + $0x3b0] sm:$0xf]  ;;  %v9931_v3 = vld [vmem:[#allocation2 + $0x3b4] sm:$0xf0]  ;;  %v7945_v36 = vor.u32 %v9858_v20, %v7942_v0  ;;  %v7932_v40 = vld [vmem:[#allocation2 + $0x160] sm:$0xf] }
 0x3c5   :  { %v7975_v35 = vor.u32 %v9931_v3, %v7974_v5  ;;  %v9853_v20 = vld [vmem:[#allocation2 + $0x144] sm:$0xf0]  ;;  %v8044_v5 = vld [vmem:[#allocation2 + $0x3f8] sm:$0xf0] }
 0x3c6   :  { %2823 = vmatpush.bf16.msrb.mxu1 %v7899_v28  ;;  %2838 = vmatpush.bf16.msrb.mxu2 %v7887_v18  ;;  %v9857_v28 = vld [vmem:[#allocation2 + $0x164] sm:$0xf0] }
 0x3c7   :  { %2676 = vmatpush.bf16.msra.mxu3 %v7815_v53  ;;  %v7890_v53 = vld [vmem:[#allocation2 + $0x350] sm:$0xf]  ;;  %v7933_v18 = vor.u32 %v9857_v28, %v7932_v40  ;;  %v7950_v40 = vld [vmem:[#allocation2 + $0x380] sm:$0xf]  ;;  %v9925_v28 = vld [vmem:[#allocation2 + $0x384] sm:$0xf0] }
 0x3c8   :  { %2689 = vmatpush.bf16.msra.mxu0 %v7819_v13  ;;  %v9919_v13 = vld [vmem:[#allocation2 + $0x354] sm:$0xf0] }
 0x3c9   :  { %v7891_v50 = vor.u32 %v9919_v13, %v7890_v53  ;;  %7913 = vmatmul.msk.bf16.vlgmr.msrb.gmra.mxu2 %vm2068_vm5, %v2774_v42  ;;  %v7966_v13 = vld [vmem:[#allocation2 + $0x3a0] sm:$0xf] }
 0x3ca   :  { %2985 = vmatpush.bf16.msra.mxu2 %v7979_v37  ;;  %7844 = vmatmul.msk.bf16.vlgmr.msra.gmra.mxu3 %vm2068_vm5, %v12656_v47 }
 0x3cb   :  { %2742 = vmatpush.bf16.msrb.mxu3 %v7873_v55  ;;  %2824 = vmatpush.bf16.msrb.mxu1 %v7891_v50  ;;  %v7849_v55 = vor.u32 %v9845_v14, %v7848_v46  ;;  %v7937_v46 = vor.u32 %v9856_v16, %v7934_v1  ;;  %v7924_v14 = vld [vmem:[#allocation2 + $0x150] sm:$0xf]  ;;  %v9855_v50 = vld [vmem:[#allocation2 + $0x154] sm:$0xf0] }
 0x3cc   :  { %2755 = vmatpush.bf16.msrb.mxu0 %v7877_v32  ;;  %v7853_v32 = vor.u32 %v9844_v43, %v7850_v54  ;;  %v9854_v54 = vld [vmem:[#allocation2 + $0x154] sm:$0xf]  ;;  %v7925_v37 = vor.u32 %v9855_v50, %v7924_v14  ;;  %v8008_v16 = vld [vmem:[#allocation2 + $0x1b0] sm:$0xf]  ;;  %v9867_v1 = vld [vmem:[#allocation2 + $0x1b4] sm:$0xf0] }
 0x3cd   :  { %7845 = vmatmul.msk.bf16.vlgmr.msra.gmra.mxu0 %vm2068_vm5, %v12656_v47  ;;  %v8009_v14 = vor.u32 %v9867_v1, %v8008_v16  ;;  %v8026_v1 = vld [vmem:[#allocation2 + $0x3d0] sm:$0xf] }
 0x3ce   :  { %2986 = vmatpush.bf16.msra.mxu2 %v7971_v58  ;;  %v9938_v58 = vld [vmem:[#allocation2 + $0x3f4] sm:$0xf] }
 0x3cf   :  { %2743 = vmatpush.bf16.msrb.mxu3 %v7865_v25  ;;  %2825 = vmatpush.bf16.msrb.mxu1 %v7883_v21  ;;  %v7941_v25 = vor.u32 %v9859_v44, %v7940_v10  ;;  %v7929_v44 = vor.u32 %v9854_v54, %v7926_v57  ;;  %v7916_v21 = vld [vmem:[#allocation2 + $0x140] sm:$0xf]  ;;  %v9939_v54 = vld [vmem:[#allocation2 + $0x3f4] sm:$0xf0] }
 0x3d0   :  { %2756 = vmatpush.bf16.msrb.mxu0 %v7869_v49  ;;  %v12660_v49 = vpop.f32.mrf.mxu0  ;;  %v7917_v3 = vor.u32 %v9853_v20, %v7916_v21  ;;  %v8034_v20 = vld [vmem:[#allocation2 + $0x3e0] sm:$0xf] }
 0x3d2   :  { %7912 = vmatmul.msk.bf16.vlgmr.msrb.gmra.mxu1 %vm2068_vm5, %v2774_v42  ;;  %v12667_v42 = vpop.f32.mrf.mxu3 }
 0x3d3   :  { %2744 = vmatpush.bf16.msrb.mxu3 %v7857_v15  ;;  %2972 = vmatpush.bf16.msra.mxu1 %v7975_v35  ;;  %v7960_v15 = vld [vmem:[#allocation2 + $0x398] sm:$0xf0] }
 0x3d4   :  { %2757 = vmatpush.bf16.msrb.mxu0 %v7861_v2  ;;  %v7963_v53 = vor.u32 %v9926_v11, %v7960_v15  ;;  %v9929_v2 = vld [vmem:[#allocation2 + $0x3a4] sm:$0xf0]  ;;  %v7951_v11 = vor.u32 %v9925_v28, %v7950_v40  ;;  %v8020_v28 = vld [vmem:[#allocation2 + $0x3c8] sm:$0xf0] }
 0x3d5   :  { %v7967_v43 = vor.u32 %v9929_v2, %v7966_v13  ;;  %v12674_v13 = vpack.c.bf16 %v1925_v30, %v1925_v30  ;;  %v9936_v2 = vld [vmem:[#allocation2 + $0x3e4] sm:$0xf]  ;;  %v8002_v30 = vld [vmem:[#allocation2 + $0x1a8] sm:$0xf0] }
 0x3d6   :  { %2987 = vmatpush.bf16.msra.mxu2 %v7963_v53  ;;  %v8010_v53 = vld [vmem:[#allocation2 + $0x1b8] sm:$0xf0] }
 0x3d7   :  { %2745 = vmatpush.bf16.msrb.mxu3 %v7849_v55  ;;  %2973 = vmatpush.bf16.msra.mxu1 %v7967_v43  ;;  %v7952_v55 = vld [vmem:[#allocation2 + $0x388] sm:$0xf0]  ;;  %v8042_v43 = vld [vmem:[#allocation2 + $0x3f0] sm:$0xf] }
 0x3d8   :  { %2758 = vmatpush.bf16.msrb.mxu0 %v7853_v32  ;;  %v7955_v9 = vor.u32 %v9924_v38, %v7952_v55  ;;  %v9927_v32 = vld [vmem:[#allocation2 + $0x394] sm:$0xf0]  ;;  %v2096_v10 = vpop.f32.mrf.mxu0  ;;  %v8000_v55 = vld [vmem:[#allocation2 + $0x1a0] sm:$0xf] }
 0x3d9   :  { %v7959_v0 = vor.u32 %v9927_v32, %v7958_v27  ;;  %v9934_v32 = vld [vmem:[#allocation2 + $0x3d4] sm:$0xf]  ;;  %v8028_v10 = vld [vmem:[#allocation2 + $0x3d8] sm:$0xf0] }
 0x3da   :  { %2988 = vmatpush.bf16.msra.mxu2 %v7955_v9  ;;  %v2083_v15 = vpop.f32.mrf.mxu3  ;;  %v8043_v9 = vor.u32 %v9939_v54, %v8042_v43  ;;  %7878 = vmatmul.msk.bf16.vlgmr.msrb.gmra.mxu3 %vm2068_vm5, %v12674_v13  ;;  %v8031_v21 = vor.u32 %v9934_v32, %v8028_v10  ;;  %v7986_v43 = vld [vmem:[#allocation2 + $0x188] sm:$0xf0]  ;;  %v8018_v54 = vld [vmem:[#allocation2 + $0x3c0] sm:$0xf]  ;;  %v8078_v32 = vld [vmem:[#allocation2 + $0x1f8] sm:$0xf0] }
 0x3db   :  { %2893 = vmatpush.bf16.msra.mxu3 %v7941_v25  ;;  %v7918_v25 = vld [vmem:[#allocation2 + $0x148] sm:$0xf0]  ;;  %2974 = vmatpush.bf16.msra.mxu1 %v7959_v0  ;;  %v8005_v0 = vor.u32 %v9864_v6, %v8002_v30  ;;  %v9874_v30 = vld [vmem:[#allocation2 + $0x1f4] sm:$0xf] }
 0x3dc   :  { %2906 = vmatpush.bf16.msra.mxu0 %v7945_v36  ;;  %v8047_v36 = vor.u32 %v9938_v58, %v8044_v5  ;;  %v7921_v35 = vor.u32 %v9852_v60, %v7918_v25  ;;  %v7992_v60 = vld [vmem:[#allocation2 + $0x190] sm:$0xf]  ;;  %v9863_v25 = vld [vmem:[#allocation2 + $0x194] sm:$0xf0]  ;;  %v9862_v5 = vld [vmem:[#allocation2 + $0x194] sm:$0xf] }
 0x3dd   :  { %7981 = vmatmul.msk.bf16.vlgmr.msra.gmra.mxu2 %vm2068_vm5, %v2924_v62  ;;  %7879 = vmatmul.msk.bf16.vlgmr.msrb.gmra.mxu0 %vm2068_vm5, %v12674_v13 }
 0x3de   :  { %3134 = vmatpush.bf16.msrb.mxu2 %v8047_v36  ;;  %v9932_v36 = vld [vmem:[#allocation2 + $0x3c4] sm:$0xf] }
 0x3df   :  { %2894 = vmatpush.bf16.msra.mxu3 %v7933_v18  ;;  %v9866_v18 = vld [vmem:[#allocation2 + $0x1b4] sm:$0xf]  ;;  %2975 = vmatpush.bf16.msra.mxu1 %v7951_v11  ;;  %v8023_v16 = vor.u32 %v9932_v36, %v8020_v28  ;;  %v9935_v11 = vld [vmem:[#allocation2 + $0x3d4] sm:$0xf0]  ;;  %v8062_v28 = vld [vmem:[#allocation2 + $0x1d8] sm:$0xf0] }
 0x3e0   :  { %2907 = vmatpush.bf16.msra.mxu0 %v7937_v46  ;;  %v8036_v46 = vld [vmem:[#allocation2 + $0x3e8] sm:$0xf0]  ;;  %v2163_v57 = vpop.f32.mrf.mxu0  ;;  %v8013_v38 = vor.u32 %v9866_v18, %v8010_v53  ;;  %v7984_v53 = vld [vmem:[#allocation2 + $0x180] sm:$0xf]  ;;  %v9870_v36 = vld [vmem:[#allocation2 + $0x1d4] sm:$0xf] }
 0x3e1   :  { %v8039_v50 = vor.u32 %v9936_v2, %v8036_v46  ;;  %v12677_v27 = vadd.f32 %v2163_v57, %v12660_v49  ;;  %v9937_v49 = vld [vmem:[#allocation2 + $0x3e4] sm:$0xf0]  ;;  %v8027_v46 = vor.u32 %v9935_v11, %v8026_v1  ;;  %v8065_v1 = vor.u32 %v9870_v36, %v8062_v28  ;;  %v8052_v11 = vld [vmem:[#allocation2 + $0x1c0] sm:$0xf] }
 0x3e2   :  { %7980 = vmatmul.msk.bf16.vlgmr.msra.gmra.mxu1 %vm2068_vm5, %v2924_v62  ;;  %v8035_v58 = vor.u32 %v9937_v49, %v8034_v20  ;;  %v2150_v62 = vpop.f32.mrf.mxu3  ;;  %v9861_v2 = vld [vmem:[#allocation2 + $0x184] sm:$0xf0]  ;;  %v8068_v20 = vld [vmem:[#allocation2 + $0x1e0] sm:$0xf] }
 0x3e3   :  { %2895 = vmatpush.bf16.msra.mxu3 %v7925_v37  ;;  %v9865_v37 = vld [vmem:[#allocation2 + $0x1a4] sm:$0xf0]  ;;  %3135 = vmatpush.bf16.msrb.mxu2 %v8039_v50  ;;  %v12685_v40 = vadd.f32 %v2150_v62, %v12667_v42  ;;  %v9860_v50 = vld [vmem:[#allocation2 + $0x184] sm:$0xf]  ;;  %v7985_v42 = vor.u32 %v9861_v2, %v7984_v53  ;;  %v8060_v62 = vld [vmem:[#allocation2 + $0x1d0] sm:$0xf] }
 0x3e4   :  { %2908 = vmatpush.bf16.msra.mxu0 %v7929_v44  ;;  %3121 = vmatpush.bf16.msrb.mxu1 %v8043_v9  ;;  %v8001_v44 = vor.u32 %v9865_v37, %v8000_v55  ;;  %v9933_v57 = vld [vmem:[#allocation2 + $0x3c4] sm:$0xf0]  ;;  %v8076_v55 = vld [vmem:[#allocation2 + $0x1f0] sm:$0xf]  ;;  %v9875_v37 = vld [vmem:[#allocation2 + $0x1f4] sm:$0xf0] }
 0x3e5   :  { %v8019_v9 = vor.u32 %v9933_v57, %v8018_v54  ;;  %v8077_v10 = vor.u32 %v9875_v37, %v8076_v55  ;;  %v9873_v49 = vld [vmem:[#allocation2 + $0x1e4] sm:$0xf0]  ;;  %v8054_v53 = vld [vmem:[#allocation2 + $0x1c8] sm:$0xf0]  ;;  %v3143_v37 = vrot.slane %v12674_v13, 3 }
 0x3e7   :  { %2896 = vmatpush.bf16.msra.mxu3 %v7917_v3  ;;  %v7994_v3 = vld [vmem:[#allocation2 + $0x198] sm:$0xf0]  ;;  %3136 = vmatpush.bf16.msrb.mxu2 %v8031_v21  ;;  %v8081_v21 = vor.u32 %v9874_v30, %v8078_v32 }
 0x3e8   :  { %2909 = vmatpush.bf16.msra.mxu0 %v7921_v35  ;;  %3122 = vmatpush.bf16.msrb.mxu1 %v8035_v58  ;;  %v7993_v35 = vor.u32 %v9863_v25, %v7992_v60  ;;  %v2165_v15 = vpop.f32.mrf.mxu0  ;;  %v7997_v18 = vor.u32 %v9862_v5, %v7994_v3  ;;  %v8070_v60 = vld [vmem:[#allocation2 + $0x1e8] sm:$0xf0]  ;;  %v8069_v25 = vor.u32 %v9873_v49, %v8068_v20  ;;  %v9871_v5 = vld [vmem:[#allocation2 + $0x1d4] sm:$0xf0] }
 0x3e9   :  { %v9869_v15 = vld [vmem:[#allocation2 + $0x1c4] sm:$0xf0] }
 0x3ea   :  { %v2152_v6 = vpop.f32.mrf.mxu3  ;;  %v8053_v2 = vor.u32 %v9869_v15, %v8052_v11 }
 0x3eb   :  { %3042 = vmatpush.bf16.msrb.mxu3 %v8009_v14  ;;  %v3073_v14 = vrot.slane %v12656_v47, 3  ;;  %3137 = vmatpush.bf16.msrb.mxu2 %v8023_v16  ;;  %v2845_v47 = vrot.slane %v12674_v13, 1 }
 0x3ec   :  { %3055 = vmatpush.bf16.msrb.mxu0 %v8013_v38  ;;  %3123 = vmatpush.bf16.msrb.mxu1 %v8027_v46  ;;  %v7989_v38 = vor.u32 %v9860_v50, %v7986_v43  ;;  %v2994_v50 = vrot.slane %v12674_v13, 2 }
 0x3ed   :  { %7946 = vmatmul.msk.bf16.vlgmr.msra.gmra.mxu3 %vm2068_vm5, %v2845_v47  ;;  %7947 = vmatmul.msk.bf16.vlgmr.msra.gmra.mxu0 %vm2068_vm5, %v2845_v47 }
 0x3ee   :  { %8049 = vmatmul.msk.bf16.vlgmr.msrb.gmra.mxu2 %vm2068_vm5, %v3073_v14 }
 0x3ef   :  { %3043 = vmatpush.bf16.msrb.mxu3 %v8001_v44 }
 0x3f0   :  { %3056 = vmatpush.bf16.msrb.mxu0 %v8005_v0  ;;  %3124 = vmatpush.bf16.msrb.mxu1 %v8019_v9  ;;  %v2243_v44 = vpop.f32.mrf.mxu0  ;;  %v9872_v0 = vld [vmem:[#allocation2 + $0x1e4] sm:$0xf] }
 0x3f1   :  { %v8073_v58 = vor.u32 %v9872_v0, %v8070_v60 }
 0x3f2   :  { %v2230_v3 = vpop.f32.mrf.mxu3 }
 0x3f3   :  { %3044 = vmatpush.bf16.msrb.mxu3 %v7993_v35  ;;  %8048 = vmatmul.msk.bf16.vlgmr.msrb.gmra.mxu1 %vm2068_vm5, %v3073_v14  ;;  %v8061_v35 = vor.u32 %v9871_v5, %v8060_v62 }
 0x3f4   :  { %3057 = vmatpush.bf16.msrb.mxu0 %v7997_v18  ;;  %v9868_v18 = vld [vmem:[#allocation2 + $0x1c4] sm:$0xf] }
 0x3f5   :  { %v8057_v46 = vor.u32 %v9868_v18, %v8054_v53 }
 0x3f7   :  { %3045 = vmatpush.bf16.msrb.mxu3 %v7985_v42 }
 0x3f8   :  { %3058 = vmatpush.bf16.msrb.mxu0 %v7989_v38  ;;  %v2245_v16 = vpop.f32.mrf.mxu0 }
 0x3fa   :  { %v2232_v14 = vpop.f32.mrf.mxu3 }
 0x3fb   :  { %3191 = vmatpush.bf16.msra.mxu3 %v8077_v10 }
 0x3fc   :  { %3204 = vmatpush.bf16.msra.mxu0 %v8081_v21 }
 0x3fd   :  { %8014 = vmatmul.msk.bf16.vlgmr.msrb.gmra.mxu3 %vm2068_vm5, %v2994_v50  ;;  %8015 = vmatmul.msk.bf16.vlgmr.msrb.gmra.mxu0 %vm2068_vm5, %v2994_v50 }
 0x3ff   :  { %3192 = vmatpush.bf16.msra.mxu3 %v8069_v25 }
 0x400   :  { %3205 = vmatpush.bf16.msra.mxu0 %v8073_v58  ;;  %v2314_v43 = vpop.f32.mrf.mxu0 }
 0x401   :  { %v12694_v42 = vadd.f32 %v2314_v43, %v2243_v44 }
 0x402   :  { %v2301_v54 = vpop.f32.mrf.mxu3 }
 0x403   :  { %3193 = vmatpush.bf16.msra.mxu3 %v8061_v35  ;;  %v12698_v57 = vadd.f32 %v2301_v54, %v2230_v3 }
 0x404   :  { %3206 = vmatpush.bf16.msra.mxu0 %v8065_v1 }
 0x407   :  { %3194 = vmatpush.bf16.msra.mxu3 %v8053_v2 }
 0x408   :  { %3207 = vmatpush.bf16.msra.mxu0 %v8057_v46  ;;  %v2316_v38 = vpop.f32.mrf.mxu0 }
 0x40a   :  { %v2303_v55 = vpop.f32.mrf.mxu3 }
 0x40d   :  { %8082 = vmatmul.msk.bf16.vlgmr.msra.gmra.mxu3 %vm2068_vm5, %v3143_v37  ;;  %8083 = vmatmul.msk.bf16.vlgmr.msra.gmra.mxu0 %vm2068_vm5, %v3143_v37 }
 0x410   :  { %v2393_v9 = vpop.f32.mrf.mxu0 }
 0x412   :  { %v2380_v6 = vpop.f32.mrf.mxu3 }
 0x418   :  { %v2395_v30 = vpop.f32.mrf.mxu0 }
 0x41a   :  { %v2382_v32 = vpop.f32.mrf.mxu3 }
 0x420   :  { %v2463_v47 = vpop.f32.mrf.mxu0 }
 0x421   :  { %v12703_v10 = vadd.f32 %v2463_v47, %v2393_v9 }
 0x422   :  { %v2450_v44 = vpop.f32.mrf.mxu3 }
 0x423   :  { %v12705_v21 = vadd.f32 %v2450_v44, %v2380_v6 }
 0x428   :  { %v2465_v20 = vpop.f32.mrf.mxu0 }
 0x42a   :  { %v2452_v49 = vpop.f32.mrf.mxu3 }
 0x430   :  { %v2542_v0 = vpop.f32.mrf.mxu0 }
 0x432   :  { %v2529_v60 = vpop.f32.mrf.mxu3 }
 0x438   :  { %v2544_v25 = vpop.f32.mrf.mxu0 }
 0x43a   :  { %v2531_v13 = vpop.f32.mrf.mxu3 }
 0x440   :  { %v2612_v58 = vpop.f32.mrf.mxu0 }
 0x441   :  { %v12707_v62 = vadd.f32 %v2612_v58, %v2542_v0 }
 0x442   :  { %v2599_v5 = vpop.f32.mrf.mxu3 }
 0x443   :  { %v12709_v3 = vadd.f32 %v2599_v5, %v2529_v60 }
 0x448   :  { %v2614_v36 = vpop.f32.mrf.mxu0 }
 0x44a   :  { %v2601_v28 = vpop.f32.mrf.mxu3 }
 0x44c   :  { %v2840_v16 = vpop.f32.mrf.mxu2 }
 0x44f   :  { %v2827_v35 = vpop.f32.mrf.mxu1 }
 0x450   :  { %v2691_v1 = vpop.f32.mrf.mxu0 }
 0x452   :  { %v2678_v11 = vpop.f32.mrf.mxu3 }
 0x454   :  { %v2842_v18 = vpop.f32.mrf.mxu2 }
 0x457   :  { %v2829_v15 = vpop.f32.mrf.mxu1 }
 0x458   :  { %v2693_v53 = vpop.f32.mrf.mxu0 }
 0x45a   :  { %v2680_v2 = vpop.f32.mrf.mxu3 }
 0x45f   :  { %v2977_v46 = vpop.f32.mrf.mxu1 }
 0x460   :  { %v2990_v14 = vpop.f32.mrf.mxu2  ;;  %v2760_v50 = vpop.f32.mrf.mxu0 }
 0x461   :  { %v12711_v43 = vadd.f32 %v2760_v50, %v2691_v1 }
 0x462   :  { %v2747_v54 = vpop.f32.mrf.mxu3 }
 0x463   :  { %v12713_v38 = vadd.f32 %v2747_v54, %v2678_v11 }
 0x467   :  { %v2979_v55 = vpop.f32.mrf.mxu1 }
 0x468   :  { %v2992_v37 = vpop.f32.mrf.mxu2  ;;  %v2762_v9 = vpop.f32.mrf.mxu0 }
 0x46a   :  { %v2749_v6 = vpop.f32.mrf.mxu3 }
 0x470   :  { %v3126_v30 = vpop.f32.mrf.mxu1  ;;  %v2911_v47 = vpop.f32.mrf.mxu0 }
 0x471   :  { %v3139_v32 = vpop.f32.mrf.mxu2  ;;  %v12715_v44 = vadd.f32 %v2911_v47, %v2840_v16 }
 0x472   :  { %v2898_v20 = vpop.f32.mrf.mxu3 }
 0x473   :  { %v12717_v49 = vadd.f32 %v2898_v20, %v2827_v35 }
 0x478   :  { %v3128_v0 = vpop.f32.mrf.mxu1  ;;  %v2913_v25 = vpop.f32.mrf.mxu0 }
 0x479   :  { %v3141_v60 = vpop.f32.mrf.mxu2 }
 0x47a   :  { %v2900_v13 = vpop.f32.mrf.mxu3 }
 0x480   :  { %v3060_v58 = vpop.f32.mrf.mxu0 }
 0x481   :  { %v12719_v5 = vadd.f32 %v3060_v58, %v2990_v14 }
 0x482   :  { %v3047_v36 = vpop.f32.mrf.mxu3 }
 0x483   :  { %v12721_v28 = vadd.f32 %v3047_v36, %v2977_v46 }
 0x488   :  { %v3062_v1 = vpop.f32.mrf.mxu0 }
 0x48a   :  { %v3049_v11 = vpop.f32.mrf.mxu3 }
 0x490   :  { %v3209_v15 = vpop.f32.mrf.mxu0 }
 0x491   :  { %v12723_v18 = vadd.f32 %v3209_v15, %v3139_v32 }
 0x492   :  { %v3196_v16 = vpop.f32.mrf.mxu3 }
 0x493   :  { %v12725_v53 = vadd.f32 %v3196_v16, %v3126_v30 }
 0x498   :  { %v3211_v35 = vpop.f32.mrf.mxu0 }
 0x49a   :  { %v3198_v2 = vpop.f32.mrf.mxu3 }
 0x49b   :  { %10968 = dma.done.wait [#allocation3 + $0x1], 16384 }
 0x49c   :  { %10969 = vsyncadd [#allocation3 + $0x1], 4294950912  ;;  %v8110_v50 = vld [vmem:[#allocation2 + $0x430] sm:$0xf]  ;;  %v9947_v54 = vld [vmem:[#allocation2 + $0x434] sm:$0xf0] }
 0x49d   :  { %v9946_v55 = vld [vmem:[#allocation2 + $0x434] sm:$0xf]  ;;  %v8111_v14 = vor.u32 %v9947_v54, %v8110_v50  ;;  %v8112_v37 = vld [vmem:[#allocation2 + $0x438] sm:$0xf0]  ;;  %v8144_v9 = vld [vmem:[#allocation2 + $0x470] sm:$0xf] }
 0x49e   :  { %v9955_v46 = vld [vmem:[#allocation2 + $0x474] sm:$0xf0]  ;;  %v8115_v6 = vor.u32 %v9946_v55, %v8112_v37  ;;  %v9954_v20 = vld [vmem:[#allocation2 + $0x474] sm:$0xf]  ;;  %v8146_v0 = vld [vmem:[#allocation2 + $0x478] sm:$0xf0] }
 0x49f   :  { %v8145_v47 = vor.u32 %v9955_v46, %v8144_v9  ;;  %v8102_v32 = vld [vmem:[#allocation2 + $0x420] sm:$0xf]  ;;  %3271 = vmatpush.bf16.msra.mxu1 %v8111_v14  ;;  %v8149_v60 = vor.u32 %v9954_v20, %v8146_v0  ;;  %v9945_v30 = vld [vmem:[#allocation2 + $0x424] sm:$0xf0]  ;;  %v9944_v25 = vld [vmem:[#allocation2 + $0x424] sm:$0xf] }
 0x4a0   :  { %v8104_v13 = vld [vmem:[#allocation2 + $0x428] sm:$0xf0]  ;;  %3284 = vmatpush.bf16.msra.mxu2 %v8115_v6  ;;  %v8103_v58 = vor.u32 %v9945_v30, %v8102_v32  ;;  %v8136_v1 = vld [vmem:[#allocation2 + $0x460] sm:$0xf]  ;;  %v9953_v11 = vld [vmem:[#allocation2 + $0x464] sm:$0xf0] }
 0x4a1   :  { %3353 = vmatpush.bf16.msrb.mxu3 %v8145_v47  ;;  %v8107_v36 = vor.u32 %v9944_v25, %v8104_v13  ;;  %v9952_v15 = vld [vmem:[#allocation2 + $0x464] sm:$0xf]  ;;  %3366 = vmatpush.bf16.msrb.mxu0 %v8149_v60  ;;  %v8137_v16 = vor.u32 %v9953_v11, %v8136_v1  ;;  %v8138_v35 = vld [vmem:[#allocation2 + $0x468] sm:$0xf0]  ;;  %v8094_v2 = vld [vmem:[#allocation2 + $0x410] sm:$0xf] }
 0x4a2   :  { %v9943_v50 = vld [vmem:[#allocation2 + $0x414] sm:$0xf0]  ;;  %v8141_v54 = vor.u32 %v9952_v15, %v8138_v35  ;;  %v9942_v55 = vld [vmem:[#allocation2 + $0x414] sm:$0xf]  ;;  %v8096_v37 = vld [vmem:[#allocation2 + $0x418] sm:$0xf0] }
 0x4a3   :  { %v8128_v14 = vld [vmem:[#allocation2 + $0x450] sm:$0xf]  ;;  %3272 = vmatpush.bf16.msra.mxu1 %v8103_v58  ;;  %v8095_v9 = vor.u32 %v9943_v50, %v8094_v2  ;;  %v9951_v46 = vld [vmem:[#allocation2 + $0x454] sm:$0xf0]  ;;  %v9950_v20 = vld [vmem:[#allocation2 + $0x454] sm:$0xf]  ;;  %v8099_v47 = vor.u32 %v9942_v55, %v8096_v37 }
 0x4a4   :  { %v8130_v6 = vld [vmem:[#allocation2 + $0x458] sm:$0xf0]  ;;  %3285 = vmatpush.bf16.msra.mxu2 %v8107_v36  ;;  %v8129_v0 = vor.u32 %v9951_v46, %v8128_v14  ;;  %v8086_v32 = vld [vmem:[#allocation2 + $0x400] sm:$0xf]  ;;  %v9941_v30 = vld [vmem:[#allocation2 + $0x404] sm:$0xf0]  ;;  %v12730_v36 = vpack.c.bf16 %v1928_v45, %v1928_v45 }
 0x4a5   :  { %3354 = vmatpush.bf16.msrb.mxu3 %v8137_v16  ;;  %v9940_v60 = vld [vmem:[#allocation2 + $0x404] sm:$0xf]  ;;  %3367 = vmatpush.bf16.msrb.mxu0 %v8141_v54  ;;  %v8133_v25 = vor.u32 %v9950_v20, %v8130_v6  ;;  %v8088_v13 = vld [vmem:[#allocation2 + $0x408] sm:$0xf0]  ;;  %v8120_v1 = vld [vmem:[#allocation2 + $0x440] sm:$0xf]  ;;  %v8087_v58 = vor.u32 %v9941_v30, %v8086_v32 }
 0x4a6   :  { %v9949_v11 = vld [vmem:[#allocation2 + $0x444] sm:$0xf0]  ;;  %v9948_v15 = vld [vmem:[#allocation2 + $0x444] sm:$0xf]  ;;  %v8122_v35 = vld [vmem:[#allocation2 + $0x448] sm:$0xf0]  ;;  %v8091_v54 = vor.u32 %v9940_v60, %v8088_v13 }
 0x4a7   :  { %v9962_v23 = vld [vmem:[#allocation2 + $0x4b4] sm:$0xf]  ;;  %3273 = vmatpush.bf16.msra.mxu1 %v8095_v9  ;;  %v8180_v16 = vld [vmem:[#allocation2 + $0x4b8] sm:$0xf0]  ;;  %v8212_v2 = vld [vmem:[#allocation2 + $0x4f0] sm:$0xf]  ;;  %v8121_v55 = vor.u32 %v9949_v11, %v8120_v1  ;;  %v8125_v37 = vor.u32 %v9948_v15, %v8122_v35 }
 0x4a8   :  { %v9971_v50 = vld [vmem:[#allocation2 + $0x4f4] sm:$0xf0]  ;;  %3286 = vmatpush.bf16.msra.mxu2 %v8099_v47  ;;  %v8183_v14 = vor.u32 %v9962_v23, %v8180_v16  ;;  %v8178_v46 = vld [vmem:[#allocation2 + $0x4b0] sm:$0xf]  ;;  %v9970_v6 = vld [vmem:[#allocation2 + $0x4f4] sm:$0xf] }
 0x4a9   :  { %3355 = vmatpush.bf16.msrb.mxu3 %v8129_v0  ;;  %3368 = vmatpush.bf16.msrb.mxu0 %v8133_v25  ;;  %v9963_v20 = vld [vmem:[#allocation2 + $0x4b4] sm:$0xf0]  ;;  %v8213_v9 = vor.u32 %v9971_v50, %v8212_v2  ;;  %v8214_v32 = vld [vmem:[#allocation2 + $0x4f8] sm:$0xf0]  ;;  %v9960_v30 = vld [vmem:[#allocation2 + $0x4a4] sm:$0xf] }
 0x4aa   :  { %v8172_v22 = vld [vmem:[#allocation2 + $0x4a8] sm:$0xf0]  ;;  %v3305_v45 = vrot.slane %v12730_v36, 1  ;;  %v8204_v52 = vld [vmem:[#allocation2 + $0x4e0] sm:$0xf]  ;;  %v8179_v47 = vor.u32 %v9963_v20, %v8178_v46  ;;  %v8217_v0 = vor.u32 %v9970_v6, %v8214_v32 }
 0x4ab   :  { %3274 = vmatpush.bf16.msra.mxu1 %v8087_v58  ;;  %v9969_v51 = vld [vmem:[#allocation2 + $0x4e4] sm:$0xf0]  ;;  %v8175_v60 = vor.u32 %v9960_v30, %v8172_v22  ;;  %v8170_v23 = vld [vmem:[#allocation2 + $0x4a0] sm:$0xf]  ;;  %v9968_v13 = vld [vmem:[#allocation2 + $0x4e4] sm:$0xf] }
 0x4ac   :  { %3287 = vmatpush.bf16.msra.mxu2 %v8091_v54  ;;  %v9961_v25 = vld [vmem:[#allocation2 + $0x4a4] sm:$0xf0]  ;;  %v8205_v1 = vor.u32 %v9969_v51, %v8204_v52  ;;  %v8206_v11 = vld [vmem:[#allocation2 + $0x4e8] sm:$0xf0]  ;;  %v9958_v15 = vld [vmem:[#allocation2 + $0x494] sm:$0xf] }
 0x4ad   :  { %3356 = vmatpush.bf16.msrb.mxu3 %v8121_v55  ;;  %3369 = vmatpush.bf16.msrb.mxu0 %v8125_v37  ;;  %v8164_v35 = vld [vmem:[#allocation2 + $0x498] sm:$0xf0]  ;;  %v8196_v58 = vld [vmem:[#allocation2 + $0x4d0] sm:$0xf]  ;;  %v9967_v16 = vld [vmem:[#allocation2 + $0x4d4] sm:$0xf0]  ;;  %v8171_v2 = vor.u32 %v9961_v25, %v8170_v23  ;;  %v8209_v54 = vor.u32 %v9968_v13, %v8206_v11 }
 0x4ae   :  { %8116 = vmatmul.msk.bf16.vlgmr.msra.gmra.mxu1 %vm2068_vm5, %v12730_v36  ;;  %v8162_v50 = vld [vmem:[#allocation2 + $0x490] sm:$0xf]  ;;  %v8167_v55 = vor.u32 %v9958_v15, %v8164_v35  ;;  %v9959_v51 = vld [vmem:[#allocation2 + $0x494] sm:$0xf0]  ;;  %v9966_v52 = vld [vmem:[#allocation2 + $0x4d4] sm:$0xf] }
 0x4af   :  { %8117 = vmatmul.msk.bf16.vlgmr.msra.gmra.mxu2 %vm2068_vm5, %v12730_v36  ;;  %3434 = vmatpush.bf16.msrb.mxu1 %v8179_v47  ;;  %v8198_v37 = vld [vmem:[#allocation2 + $0x4d8] sm:$0xf0]  ;;  %v9956_v46 = vld [vmem:[#allocation2 + $0x484] sm:$0xf]  ;;  %v8156_v20 = vld [vmem:[#allocation2 + $0x488] sm:$0xf0]  ;;  %v8163_v22 = vor.u32 %v9959_v51, %v8162_v50 }
 0x4b0   :  { %3447 = vmatpush.bf16.msrb.mxu2 %v8183_v14  ;;  %8150 = vmatmul.msk.bf16.vlgmr.msrb.gmra.mxu3 %vm2068_vm5, %v3305_v45  ;;  %v8197_v14 = vor.u32 %v9967_v16, %v8196_v58  ;;  %v8188_v6 = vld [vmem:[#allocation2 + $0x4c0] sm:$0xf]  ;;  %v9978_v32 = vld [vmem:[#allocation2 + $0x534] sm:$0xf]  ;;  %v8248_v30 = vld [vmem:[#allocation2 + $0x538] sm:$0xf0] }
 0x4b1   :  { %3515 = vmatpush.bf16.msra.mxu3 %v8213_v9  ;;  %8151 = vmatmul.msk.bf16.vlgmr.msrb.gmra.mxu0 %vm2068_vm5, %v3305_v45  ;;  %v9965_v9 = vld [vmem:[#allocation2 + $0x4c4] sm:$0xf0]  ;;  %v8154_v45 = vld [vmem:[#allocation2 + $0x480] sm:$0xf]  ;;  %v8280_v47 = vld [vmem:[#allocation2 + $0x570] sm:$0xf]  ;;  %v8251_v15 = vor.u32 %v9978_v32, %v8248_v30 }
 0x4b2   :  { %3528 = vmatpush.bf16.msra.mxu0 %v8217_v0  ;;  %v9987_v23 = vld [vmem:[#allocation2 + $0x574] sm:$0xf0]  ;;  %v8201_v0 = vor.u32 %v9966_v52, %v8198_v37  ;;  %v9957_v25 = vld [vmem:[#allocation2 + $0x484] sm:$0xf0]  ;;  %v9964_v13 = vld [vmem:[#allocation2 + $0x4c4] sm:$0xf] }
 0x4b3   :  { %3435 = vmatpush.bf16.msrb.mxu1 %v8171_v2  ;;  %v8190_v11 = vld [vmem:[#allocation2 + $0x4c8] sm:$0xf0]  ;;  %v8246_v35 = vld [vmem:[#allocation2 + $0x530] sm:$0xf]  ;;  %v9979_v58 = vld [vmem:[#allocation2 + $0x534] sm:$0xf0]  ;;  %v8281_v34 = vor.u32 %v9987_v23, %v8280_v47  ;;  %v8155_v51 = vor.u32 %v9957_v25, %v8154_v45 }
 0x4b4   :  { %3448 = vmatpush.bf16.msrb.mxu2 %v8175_v60  ;;  %v8159_v60 = vor.u32 %v9956_v46, %v8156_v20  ;;  %v9986_v16 = vld [vmem:[#allocation2 + $0x574] sm:$0xf]  ;;  %v8282_v17 = vld [vmem:[#allocation2 + $0x578] sm:$0xf0]  ;;  %v9976_v2 = vld [vmem:[#allocation2 + $0x524] sm:$0xf]  ;;  %v8247_v52 = vor.u32 %v9979_v58, %v8246_v35 }
 0x4b5   :  { %3516 = vmatpush.bf16.msra.mxu3 %v8205_v1  ;;  %v8189_v1 = vor.u32 %v9965_v9, %v8188_v6  ;;  %v8240_v50 = vld [vmem:[#allocation2 + $0x528] sm:$0xf0]  ;;  %v8272_v37 = vld [vmem:[#allocation2 + $0x560] sm:$0xf]  ;;  %v9985_v46 = vld [vmem:[#allocation2 + $0x564] sm:$0xf0] }
 0x4b6   :  { %3529 = vmatpush.bf16.msra.mxu0 %v8209_v54  ;;  %v8193_v54 = vor.u32 %v9964_v13, %v8190_v11  ;;  %v8243_v20 = vor.u32 %v9976_v2, %v8240_v50  ;;  %v8238_v6 = vld [vmem:[#allocation2 + $0x520] sm:$0xf]  ;;  %v9977_v9 = vld [vmem:[#allocation2 + $0x524] sm:$0xf0]  ;;  %v9984_v32 = vld [vmem:[#allocation2 + $0x564] sm:$0xf]  ;;  %v8273_v23 = vor.u32 %v9985_v46, %v8272_v37 }
 0x4b7   :  { %3436 = vmatpush.bf16.msrb.mxu1 %v8163_v22  ;;  %v8274_v30 = vld [vmem:[#allocation2 + $0x568] sm:$0xf0]  ;;  %v9974_v47 = vld [vmem:[#allocation2 + $0x514] sm:$0xf]  ;;  %v8232_v22 = vld [vmem:[#allocation2 + $0x518] sm:$0xf0] }
 0x4b8   :  { %3449 = vmatpush.bf16.msrb.mxu2 %v8167_v55  ;;  %v3386_v55 = vrot.slane %v12730_v36, 2  ;;  %v3467_v45 = vrot.slane %v12730_v36, 3  ;;  %v9983_v25 = vld [vmem:[#allocation2 + $0x554] sm:$0xf0]  ;;  %v8235_v13 = vor.u32 %v9974_v47, %v8232_v22  ;;  %v8230_v11 = vld [vmem:[#allocation2 + $0x510] sm:$0xf] }
 0x4b9   :  { %3517 = vmatpush.bf16.msra.mxu3 %v8197_v14  ;;  %v8285_v14 = vor.u32 %v9986_v16, %v8282_v17  ;;  %v8277_v17 = vor.u32 %v9984_v32, %v8274_v30  ;;  %v9972_v35 = vld [vmem:[#allocation2 + $0x504] sm:$0xf]  ;;  %v8224_v36 = vld [vmem:[#allocation2 + $0x508] sm:$0xf0]  ;;  %v9994_v58 = vld [vmem:[#allocation2 + $0x5b4] sm:$0xf] }
 0x4ba   :  { %3530 = vmatpush.bf16.msra.mxu0 %v8201_v0  ;;  %v8239_v0 = vor.u32 %v9977_v9, %v8238_v6  ;;  %v8316_v16 = vld [vmem:[#allocation2 + $0x5b8] sm:$0xf0]  ;;  %v9973_v46 = vld [vmem:[#allocation2 + $0x504] sm:$0xf0]  ;;  %v8348_v9 = vld [vmem:[#allocation2 + $0x5f0] sm:$0xf] }
 0x4bb   :  { %3437 = vmatpush.bf16.msrb.mxu1 %v8155_v51  ;;  %v8256_v51 = vld [vmem:[#allocation2 + $0x540] sm:$0xf]  ;;  %v8319_v6 = vor.u32 %v9994_v58, %v8316_v16  ;;  %v10003_v32 = vld [vmem:[#allocation2 + $0x5f4] sm:$0xf0]  ;;  %v8314_v30 = vld [vmem:[#allocation2 + $0x5b0] sm:$0xf] }
 0x4bc   :  { %3450 = vmatpush.bf16.msrb.mxu2 %v8159_v60  ;;  %v8264_v60 = vld [vmem:[#allocation2 + $0x550] sm:$0xf]  ;;  %v9995_v47 = vld [vmem:[#allocation2 + $0x5b4] sm:$0xf0]  ;;  %v10002_v22 = vld [vmem:[#allocation2 + $0x5f4] sm:$0xf] }
 0x4bd   :  { %3518 = vmatpush.bf16.msra.mxu3 %v8189_v1  ;;  %v9975_v1 = vld [vmem:[#allocation2 + $0x514] sm:$0xf0]  ;;  %v8265_v2 = vor.u32 %v9983_v25, %v8264_v60  ;;  %v9992_v60 = vld [vmem:[#allocation2 + $0x5a4] sm:$0xf]  ;;  %v8308_v25 = vld [vmem:[#allocation2 + $0x5a8] sm:$0xf0] }
 0x4be   :  { %3531 = vmatpush.bf16.msra.mxu0 %v8193_v54  ;;  %8184 = vmatmul.msk.bf16.vlgmr.msrb.gmra.mxu1 %vm2068_vm5, %v3386_v55  ;;  %v8231_v50 = vor.u32 %v9975_v1, %v8230_v11  ;;  %v9981_v54 = vld [vmem:[#allocation2 + $0x544] sm:$0xf0]  ;;  %v8315_v11 = vor.u32 %v9995_v47, %v8314_v30  ;;  %v8306_v58 = vld [vmem:[#allocation2 + $0x5a0] sm:$0xf]  ;;  %v8334_v30 = vld [vmem:[#allocation2 + $0x5d8] sm:$0xf0] }
 0x4bf   :  { %3596 = vmatpush.bf16.msra.mxu1 %v8247_v52  ;;  %8185 = vmatmul.msk.bf16.vlgmr.msrb.gmra.mxu2 %vm2068_vm5, %v3386_v55  ;;  %v8222_v52 = vld [vmem:[#allocation2 + $0x500] sm:$0xf]  ;;  %v8227_v55 = vor.u32 %v9972_v35, %v8224_v36  ;;  %v12748_v35 = vpack.c.bf16 %v1929_v7, %v1929_v7  ;;  %v8311_v36 = vor.u32 %v9992_v60, %v8308_v25  ;;  %v9993_v16 = vld [vmem:[#allocation2 + $0x5a4] sm:$0xf0]  ;;  %v9988_v47 = vld [vmem:[#allocation2 + $0x584] sm:$0xf] }
 0x4c0   :  { %3609 = vmatpush.bf16.msra.mxu2 %v8251_v15  ;;  %v9982_v15 = vld [vmem:[#allocation2 + $0x554] sm:$0xf]  ;;  %8218 = vmatmul.msk.bf16.vlgmr.msra.gmra.mxu3 %vm2068_vm5, %v3467_v45  ;;  %v8307_v7 = vor.u32 %v9993_v16, %v8306_v58  ;;  %v8384_v60 = vld [vmem:[#allocation2 + $0x638] sm:$0xf0]  ;;  %v8416_v25 = vld [vmem:[#allocation2 + $0x670] sm:$0xf] }
 0x4c1   :  { %3678 = vmatpush.bf16.msrb.mxu3 %v8281_v34  ;;  %v8266_v34 = vld [vmem:[#allocation2 + $0x558] sm:$0xf0]  ;;  %8219 = vmatmul.msk.bf16.vlgmr.msra.gmra.mxu0 %vm2068_vm5, %v3467_v45  ;;  %v3630_v33 = vrot.slane %v12748_v35, 1  ;;  %v8326_v16 = vld [vmem:[#allocation2 + $0x5c8] sm:$0xf0] }
 0x4c2   :  { %3691 = vmatpush.bf16.msrb.mxu0 %v8285_v14  ;;  %v8269_v37 = vor.u32 %v9982_v15, %v8266_v34  ;;  %v9980_v14 = vld [vmem:[#allocation2 + $0x544] sm:$0xf]  ;;  %v8350_v45 = vld [vmem:[#allocation2 + $0x5f8] sm:$0xf0]  ;;  %v8340_v15 = vld [vmem:[#allocation2 + $0x5e0] sm:$0xf] }
 0x4c3   :  { %3597 = vmatpush.bf16.msra.mxu1 %v8239_v0  ;;  %v8223_v0 = vor.u32 %v9973_v46, %v8222_v52  ;;  %v8353_v1 = vor.u32 %v10002_v22, %v8350_v45  ;;  %v10001_v34 = vld [vmem:[#allocation2 + $0x5e4] sm:$0xf0]  ;;  %v8300_v52 = vld [vmem:[#allocation2 + $0x598] sm:$0xf0]  ;;  %v8292_v22 = vld [vmem:[#allocation2 + $0x588] sm:$0xf0] }
 0x4c4   :  { %3610 = vmatpush.bf16.msra.mxu2 %v8243_v20  ;;  %v8258_v20 = vld [vmem:[#allocation2 + $0x548] sm:$0xf0]  ;;  %v8324_v45 = vld [vmem:[#allocation2 + $0x5c0] sm:$0xf]  ;;  %v10020_v29 = vld [vmem:[#allocation2 + $0x684] sm:$0xf] }
 0x4c5   :  { %3679 = vmatpush.bf16.msrb.mxu3 %v8273_v23  ;;  %v8257_v23 = vor.u32 %v9981_v54, %v8256_v51  ;;  %v8342_v51 = vld [vmem:[#allocation2 + $0x5e8] sm:$0xf0]  ;;  %v9990_v54 = vld [vmem:[#allocation2 + $0x594] sm:$0xf] }
 0x4c6   :  { %3692 = vmatpush.bf16.msrb.mxu0 %v8277_v17  ;;  %v8261_v17 = vor.u32 %v9980_v14, %v8258_v20  ;;  %v8298_v14 = vld [vmem:[#allocation2 + $0x590] sm:$0xf]  ;;  %v9991_v20 = vld [vmem:[#allocation2 + $0x594] sm:$0xf0] }
 0x4c7   :  { %3598 = vmatpush.bf16.msra.mxu1 %v8231_v50  ;;  %v10000_v50 = vld [vmem:[#allocation2 + $0x5e4] sm:$0xf] }
 0x4c8   :  { %3611 = vmatpush.bf16.msra.mxu2 %v8235_v13  ;;  %v8349_v13 = vor.u32 %v10003_v32, %v8348_v9  ;;  %v8345_v46 = vor.u32 %v10000_v50, %v8342_v51  ;;  %v8303_v9 = vor.u32 %v9990_v54, %v8300_v52  ;;  %v10011_v50 = vld [vmem:[#allocation2 + $0x634] sm:$0xf0]  ;;  %v10018_v52 = vld [vmem:[#allocation2 + $0x674] sm:$0xf] }
 0x4c9   :  { %3680 = vmatpush.bf16.msrb.mxu3 %v8265_v2  ;;  %v8341_v2 = vor.u32 %v10001_v34, %v8340_v15  ;;  %v9989_v15 = vld [vmem:[#allocation2 + $0x584] sm:$0xf0]  ;;  %v9996_v34 = vld [vmem:[#allocation2 + $0x5c4] sm:$0xf] }
 0x4ca   :  { %3693 = vmatpush.bf16.msrb.mxu0 %v8269_v37  ;;  %v8332_v37 = vld [vmem:[#allocation2 + $0x5d0] sm:$0xf] }
 0x4cb   :  { %3599 = vmatpush.bf16.msra.mxu1 %v8223_v0  ;;  %v10010_v0 = vld [vmem:[#allocation2 + $0x634] sm:$0xf] }
 0x4cc   :  { %3612 = vmatpush.bf16.msra.mxu2 %v8227_v55  ;;  %v9999_v55 = vld [vmem:[#allocation2 + $0x5d4] sm:$0xf0]  ;;  %v8387_v51 = vor.u32 %v10010_v0, %v8384_v60  ;;  %v3711_v0 = vrot.slane %v12748_v35, 2  ;;  %v10006_v60 = vld [vmem:[#allocation2 + $0x614] sm:$0xf] }
 0x4cd   :  { %3681 = vmatpush.bf16.msrb.mxu3 %v8257_v23  ;;  %v8333_v32 = vor.u32 %v9999_v55, %v8332_v37  ;;  %v9997_v23 = vld [vmem:[#allocation2 + $0x5c4] sm:$0xf0]  ;;  %v8418_v37 = vld [vmem:[#allocation2 + $0x678] sm:$0xf0]  ;;  %v10008_v55 = vld [vmem:[#allocation2 + $0x624] sm:$0xf] }
 0x4ce   :  { %3694 = vmatpush.bf16.msrb.mxu0 %v8261_v17  ;;  %8252 = vmatmul.msk.bf16.vlgmr.msra.gmra.mxu1 %vm2068_vm5, %v12748_v35  ;;  %v10019_v17 = vld [vmem:[#allocation2 + $0x674] sm:$0xf0]  ;;  %v8325_v58 = vor.u32 %v9997_v23, %v8324_v45  ;;  %v10016_v45 = vld [vmem:[#allocation2 + $0x664] sm:$0xf]  ;;  %v8410_v23 = vld [vmem:[#allocation2 + $0x668] sm:$0xf0] }
 0x4cf   :  { %3759 = vmatpush.bf16.msrb.mxu1 %v8315_v11  ;;  %8253 = vmatmul.msk.bf16.vlgmr.msra.gmra.mxu2 %vm2068_vm5, %v12748_v35  ;;  %v8417_v54 = vor.u32 %v10019_v17, %v8416_v25  ;;  %v8368_v25 = vld [vmem:[#allocation2 + $0x618] sm:$0xf0] }
 0x4d0   :  { %3772 = vmatpush.bf16.msrb.mxu2 %v8319_v6  ;;  %v9998_v6 = vld [vmem:[#allocation2 + $0x5d4] sm:$0xf]  ;;  %8286 = vmatmul.msk.bf16.vlgmr.msrb.gmra.mxu3 %vm2068_vm5, %v3630_v33 }
 0x4d1   :  { %3840 = vmatpush.bf16.msra.mxu3 %v8349_v13  ;;  %8287 = vmatmul.msk.bf16.vlgmr.msrb.gmra.mxu0 %vm2068_vm5, %v3630_v33  ;;  %v8299_v13 = vor.u32 %v9991_v20, %v8298_v14  ;;  %v8337_v11 = vor.u32 %v9998_v6, %v8334_v30  ;;  %v8376_v33 = vld [vmem:[#allocation2 + $0x628] sm:$0xf0]  ;;  %v8329_v20 = vor.u32 %v9996_v34, %v8326_v16  ;;  %v10007_v34 = vld [vmem:[#allocation2 + $0x614] sm:$0xf0]  ;;  %v3792_v16 = vrot.slane %v12748_v35, 3 }
 0x4d2   :  { %3853 = vmatpush.bf16.msra.mxu0 %v8353_v1  ;;  %v8290_v1 = vld [vmem:[#allocation2 + $0x580] sm:$0xf]  ;;  %v8379_v30 = vor.u32 %v10008_v55, %v8376_v33  ;;  %v8452_v35 = vld [vmem:[#allocation2 + $0x6b8] sm:$0xf0] }
 0x4d3   :  { %3760 = vmatpush.bf16.msrb.mxu1 %v8307_v7  ;;  %v8408_v7 = vld [vmem:[#allocation2 + $0x660] sm:$0xf]  ;;  %v8291_v14 = vor.u32 %v9989_v15, %v8290_v1  ;;  %v10015_v1 = vld [vmem:[#allocation2 + $0x654] sm:$0xf0]  ;;  %v8366_v15 = vld [vmem:[#allocation2 + $0x610] sm:$0xf] }
 0x4d4   :  { %3773 = vmatpush.bf16.msrb.mxu2 %v8311_v36  ;;  %v8295_v36 = vor.u32 %v9988_v47, %v8292_v22  ;;  %v10009_v22 = vld [vmem:[#allocation2 + $0x624] sm:$0xf0]  ;;  %v8367_v55 = vor.u32 %v10007_v34, %v8366_v15 }
 0x4d5   :  { %3841 = vmatpush.bf16.msra.mxu3 %v8341_v2  ;;  %v8382_v2 = vld [vmem:[#allocation2 + $0x630] sm:$0xf] }
 0x4d6   :  { %3854 = vmatpush.bf16.msra.mxu0 %v8345_v46  ;;  %v10017_v46 = vld [vmem:[#allocation2 + $0x664] sm:$0xf0]  ;;  %v8383_v6 = vor.u32 %v10011_v50, %v8382_v2  ;;  %v10004_v2 = vld [vmem:[#allocation2 + $0x604] sm:$0xf]  ;;  %v8371_v50 = vor.u32 %v10006_v60, %v8368_v25  ;;  %v8486_v60 = vld [vmem:[#allocation2 + $0x6f8] sm:$0xf0] }
 0x4d7   :  { %3761 = vmatpush.bf16.msrb.mxu1 %v8299_v13  ;;  %v8409_v47 = vor.u32 %v10017_v46, %v8408_v7  ;;  %v8413_v13 = vor.u32 %v10016_v45, %v8410_v23  ;;  %v8358_v7 = vld [vmem:[#allocation2 + $0x600] sm:$0xf]  ;;  %v10005_v46 = vld [vmem:[#allocation2 + $0x604] sm:$0xf0]  ;;  %v10027_v45 = vld [vmem:[#allocation2 + $0x6b4] sm:$0xf0] }
 0x4d8   :  { %3774 = vmatpush.bf16.msrb.mxu2 %v8303_v9  ;;  %v8421_v9 = vor.u32 %v10018_v52, %v8418_v37  ;;  %v8392_v52 = vld [vmem:[#allocation2 + $0x640] sm:$0xf]  ;;  %v10013_v37 = vld [vmem:[#allocation2 + $0x644] sm:$0xf0]  ;;  %v10034_v23 = vld [vmem:[#allocation2 + $0x6f4] sm:$0xf] }
 0x4d9   :  { %3842 = vmatpush.bf16.msra.mxu3 %v8333_v32  ;;  %v8374_v32 = vld [vmem:[#allocation2 + $0x620] sm:$0xf]  ;;  %v8489_v34 = vor.u32 %v10034_v23, %v8486_v60  ;;  %v10029_v23 = vld [vmem:[#allocation2 + $0x6c4] sm:$0xf0] }
 0x4da   :  { %3855 = vmatpush.bf16.msra.mxu0 %v8337_v11  ;;  %v8375_v17 = vor.u32 %v10009_v22, %v8374_v32  ;;  %v8400_v11 = vld [vmem:[#allocation2 + $0x650] sm:$0xf]  ;;  %v10035_v32 = vld [vmem:[#allocation2 + $0x6f4] sm:$0xf0]  ;;  %v8393_v22 = vor.u32 %v10013_v37, %v8392_v52  ;;  %v12766_v37 = vpack.c.bf16 %v1930_v24, %v1930_v24 }
 0x4db   :  { %3762 = vmatpush.bf16.msrb.mxu1 %v8291_v14  ;;  %v10012_v14 = vld [vmem:[#allocation2 + $0x644] sm:$0xf] }
 0x4dc   :  { %3775 = vmatpush.bf16.msrb.mxu2 %v8295_v36  ;;  %v10014_v36 = vld [vmem:[#allocation2 + $0x654] sm:$0xf] }
 0x4dd   :  { %3843 = vmatpush.bf16.msra.mxu3 %v8325_v58  ;;  %v8402_v58 = vld [vmem:[#allocation2 + $0x658] sm:$0xf0] }
 0x4de   :  { %3856 = vmatpush.bf16.msra.mxu0 %v8329_v20  ;;  %v8405_v33 = vor.u32 %v10014_v36, %v8402_v58  ;;  %8320 = vmatmul.msk.bf16.vlgmr.msrb.gmra.mxu1 %vm2068_vm5, %v3711_v0  ;;  %v8394_v20 = vld [vmem:[#allocation2 + $0x648] sm:$0xf0]  ;;  %v8476_v36 = vld [vmem:[#allocation2 + $0x6e0] sm:$0xf]  ;;  %v10033_v58 = vld [vmem:[#allocation2 + $0x6e4] sm:$0xf0] }
 0x4df   :  { %3921 = vmatpush.bf16.msra.mxu1 %v8383_v6  ;;  %8321 = vmatmul.msk.bf16.vlgmr.msrb.gmra.mxu2 %vm2068_vm5, %v3711_v0  ;;  %v10026_v6 = vld [vmem:[#allocation2 + $0x6b4] sm:$0xf]  ;;  %v8359_v0 = vor.u32 %v10005_v46, %v8358_v7  ;;  %v8397_v25 = vor.u32 %v10012_v14, %v8394_v20  ;;  %v8477_v52 = vor.u32 %v10033_v58, %v8476_v36  ;;  %v8436_v46 = vld [vmem:[#allocation2 + $0x698] sm:$0xf0]  ;;  %v8468_v14 = vld [vmem:[#allocation2 + $0x6d0] sm:$0xf] }
 0x4e0   :  { %3934 = vmatpush.bf16.msra.mxu2 %v8387_v51  ;;  %v8401_v51 = vor.u32 %v10015_v1, %v8400_v11  ;;  %8354 = vmatmul.msk.bf16.vlgmr.msra.gmra.mxu3 %vm2068_vm5, %v3792_v16  ;;  %v10024_v11 = vld [vmem:[#allocation2 + $0x6a4] sm:$0xf]  ;;  %v8444_v1 = vld [vmem:[#allocation2 + $0x6a8] sm:$0xf0]  ;;  %v10022_v7 = vld [vmem:[#allocation2 + $0x694] sm:$0xf] }
 0x4e1   :  { %4003 = vmatpush.bf16.msrb.mxu3 %v8417_v54  ;;  %v8360_v54 = vld [vmem:[#allocation2 + $0x608] sm:$0xf0]  ;;  %8355 = vmatmul.msk.bf16.vlgmr.msra.gmra.mxu0 %vm2068_vm5, %v3792_v16  ;;  %v8442_v16 = vld [vmem:[#allocation2 + $0x6a0] sm:$0xf]  ;;  %v10031_v20 = vld [vmem:[#allocation2 + $0x6d4] sm:$0xf0]  ;;  %v8439_v24 = vor.u32 %v10022_v7, %v8436_v46 }
 0x4e2   :  { %4016 = vmatpush.bf16.msrb.mxu0 %v8421_v9  ;;  %v8484_v9 = vld [vmem:[#allocation2 + $0x6f0] sm:$0xf]  ;;  %v10051_v36 = vld [vmem:[#allocation2 + $0x774] sm:$0xf0]  ;;  %v10040_v46 = vld [vmem:[#allocation2 + $0x724] sm:$0xf] }
 0x4e3   :  { %3922 = vmatpush.bf16.msra.mxu1 %v8375_v17  ;;  %v8455_v17 = vor.u32 %v10026_v6, %v8452_v35  ;;  %v8434_v6 = vld [vmem:[#allocation2 + $0x690] sm:$0xf]  ;;  %v10023_v35 = vld [vmem:[#allocation2 + $0x694] sm:$0xf0] }
 0x4e4   :  { %3935 = vmatpush.bf16.msra.mxu2 %v8379_v30  ;;  %v8450_v30 = vld [vmem:[#allocation2 + $0x6b0] sm:$0xf]  ;;  %v8435_v60 = vor.u32 %v10023_v35, %v8434_v6  ;;  %v8544_v35 = vld [vmem:[#allocation2 + $0x760] sm:$0xf] }
 0x4e5   :  { %4004 = vmatpush.bf16.msrb.mxu3 %v8409_v47  ;;  %v8363_v47 = vor.u32 %v10004_v2, %v8360_v54  ;;  %v8451_v15 = vor.u32 %v10027_v45, %v8450_v30  ;;  %v10025_v2 = vld [vmem:[#allocation2 + $0x6a4] sm:$0xf0]  ;;  %v8447_v54 = vor.u32 %v10024_v11, %v8444_v1  ;;  %v3955_v30 = vrot.slane %v12766_v37, 1  ;;  %v8460_v45 = vld [vmem:[#allocation2 + $0x6c0] sm:$0xf] }
 0x4e6   :  { %4017 = vmatpush.bf16.msrb.mxu0 %v8413_v13  ;;  %v8485_v13 = vor.u32 %v10035_v32, %v8484_v9  ;;  %v10030_v9 = vld [vmem:[#allocation2 + $0x6d4] sm:$0xf]  ;;  %v8470_v32 = vld [vmem:[#allocation2 + $0x6d8] sm:$0xf0]  ;;  %v8462_v11 = vld [vmem:[#allocation2 + $0x6c8] sm:$0xf0] }
 0x4e7   :  { %3923 = vmatpush.bf16.msra.mxu1 %v8367_v55  ;;  %v8443_v55 = vor.u32 %v10025_v2, %v8442_v16  ;;  %v10042_v1 = vld [vmem:[#allocation2 + $0x734] sm:$0xf]  ;;  %v8518_v58 = vld [vmem:[#allocation2 + $0x730] sm:$0xf]  ;;  %v8461_v2 = vor.u32 %v10029_v23, %v8460_v45 }
 0x4e8   :  { %3936 = vmatpush.bf16.msra.mxu2 %v8371_v50  ;;  %v10032_v50 = vld [vmem:[#allocation2 + $0x6e4] sm:$0xf] }
 0x4e9   :  { %4005 = vmatpush.bf16.msrb.mxu3 %v8401_v51  ;;  %v8478_v51 = vld [vmem:[#allocation2 + $0x6e8] sm:$0xf0] }
 0x4ea   :  { %4018 = vmatpush.bf16.msrb.mxu0 %v8405_v33  ;;  %v8481_v33 = vor.u32 %v10032_v50, %v8478_v51  ;;  %v10043_v50 = vld [vmem:[#allocation2 + $0x734] sm:$0xf0]  ;;  %v10050_v51 = vld [vmem:[#allocation2 + $0x774] sm:$0xf] }
 0x4eb   :  { %3924 = vmatpush.bf16.msra.mxu1 %v8359_v0  ;;  %v8473_v0 = vor.u32 %v10030_v9, %v8470_v32  ;;  %v10049_v9 = vld [vmem:[#allocation2 + $0x764] sm:$0xf0]  ;;  %v8510_v32 = vld [vmem:[#allocation2 + $0x720] sm:$0xf] }
 0x4ec   :  { %3937 = vmatpush.bf16.msra.mxu2 %v8363_v47  ;;  %v8469_v47 = vor.u32 %v10031_v20, %v8468_v14  ;;  %v8512_v14 = vld [vmem:[#allocation2 + $0x728] sm:$0xf0]  ;;  %v8519_v20 = vor.u32 %v10043_v50, %v8518_v58  ;;  %v10036_v58 = vld [vmem:[#allocation2 + $0x704] sm:$0xf] }
 0x4ed   :  { %4006 = vmatpush.bf16.msrb.mxu3 %v8393_v22  ;;  %v8428_v22 = vld [vmem:[#allocation2 + $0x688] sm:$0xf0] }
 0x4ee   :  { %4019 = vmatpush.bf16.msrb.mxu0 %v8397_v25  ;;  %v8426_v25 = vld [vmem:[#allocation2 + $0x680] sm:$0xf]  ;;  %8388 = vmatmul.msk.bf16.vlgmr.msra.gmra.mxu1 %vm2068_vm5, %v12766_v37  ;;  %v8431_v16 = vor.u32 %v10020_v29, %v8428_v22  ;;  %v10048_v29 = vld [vmem:[#allocation2 + $0x764] sm:$0xf]  ;;  %v8545_v22 = vor.u32 %v10049_v9, %v8544_v35  ;;  %v8496_v50 = vld [vmem:[#allocation2 + $0x708] sm:$0xf0] }
 0x4ef   :  { %4084 = vmatpush.bf16.msrb.mxu1 %v8451_v15  ;;  %8389 = vmatmul.msk.bf16.vlgmr.msra.gmra.mxu2 %vm2068_vm5, %v12766_v37  ;;  %v8520_v15 = vld [vmem:[#allocation2 + $0x738] sm:$0xf0]  ;;  %v10067_v35 = vld [vmem:[#allocation2 + $0x7f4] sm:$0xf0]  ;;  %v8586_v9 = vld [vmem:[#allocation2 + $0x7b0] sm:$0xf] }
 0x4f0   :  { %4097 = vmatpush.bf16.msrb.mxu2 %v8455_v17  ;;  %v10021_v17 = vld [vmem:[#allocation2 + $0x684] sm:$0xf0]  ;;  %8422 = vmatmul.msk.bf16.vlgmr.msrb.gmra.mxu3 %vm2068_vm5, %v3955_v30 }
 0x4f1   :  { %4165 = vmatpush.bf16.msra.mxu3 %v8485_v13  ;;  %v10028_v13 = vld [vmem:[#allocation2 + $0x6c4] sm:$0xf]  ;;  %8423 = vmatmul.msk.bf16.vlgmr.msrb.gmra.mxu0 %vm2068_vm5, %v3955_v30  ;;  %v10041_v30 = vld [vmem:[#allocation2 + $0x724] sm:$0xf0] }
 0x4f2   :  { %4178 = vmatpush.bf16.msra.mxu0 %v8489_v34  ;;  %v8552_v34 = vld [vmem:[#allocation2 + $0x770] sm:$0xf]  ;;  %v8511_v45 = vor.u32 %v10041_v30, %v8510_v32  ;;  %v8499_v32 = vor.u32 %v10036_v58, %v8496_v50  ;;  %v8614_v58 = vld [vmem:[#allocation2 + $0x7e8] sm:$0xf0]  ;;  %v4189_v50 = vpack.c.bf16 %v1931_v59, %v1931_v59  ;;  %v10052_v59 = vld [vmem:[#allocation2 + $0x784] sm:$0xf] }
 0x4f3   :  { %4085 = vmatpush.bf16.msrb.mxu1 %v8443_v55  ;;  %v8465_v55 = vor.u32 %v10028_v13, %v8462_v11  ;;  %v8553_v7 = vor.u32 %v10051_v36, %v8552_v34  ;;  %v10047_v13 = vld [vmem:[#allocation2 + $0x754] sm:$0xf0]  ;;  %v8502_v11 = vld [vmem:[#allocation2 + $0x710] sm:$0xf]  ;;  %v8538_v34 = vld [vmem:[#allocation2 + $0x758] sm:$0xf0] }
 0x4f4   :  { %4098 = vmatpush.bf16.msrb.mxu2 %v8447_v54  ;;  %v8554_v54 = vld [vmem:[#allocation2 + $0x778] sm:$0xf0]  ;;  %v4117_v36 = vrot.slane %v12766_v37, 3 }
 0x4f5   :  { %4166 = vmatpush.bf16.msra.mxu3 %v8477_v52  ;;  %v8427_v52 = vor.u32 %v10021_v17, %v8426_v25  ;;  %v8557_v6 = vor.u32 %v10050_v51, %v8554_v54  ;;  %v8504_v25 = vld [vmem:[#allocation2 + $0x718] sm:$0xf0]  ;;  %v8536_v17 = vld [vmem:[#allocation2 + $0x750] sm:$0xf]  ;;  %v8528_v51 = vld [vmem:[#allocation2 + $0x740] sm:$0xf] }
 0x4f6   :  { %4179 = vmatpush.bf16.msra.mxu0 %v8481_v33  ;;  %v8523_v33 = vor.u32 %v10042_v1, %v8520_v15  ;;  %v10039_v1 = vld [vmem:[#allocation2 + $0x714] sm:$0xf0]  ;;  %v10046_v15 = vld [vmem:[#allocation2 + $0x754] sm:$0xf]  ;;  %v10045_v54 = vld [vmem:[#allocation2 + $0x744] sm:$0xf0] }
 0x4f7   :  { %4086 = vmatpush.bf16.msrb.mxu1 %v8435_v60  ;;  %v4036_v60 = vrot.slane %v12766_v37, 2  ;;  %v8588_v37 = vld [vmem:[#allocation2 + $0x7b8] sm:$0xf0]  ;;  %v8529_v30 = vor.u32 %v10045_v54, %v8528_v51 }
 0x4f8   :  { %4099 = vmatpush.bf16.msrb.mxu2 %v8439_v24  ;;  %v8546_v24 = vld [vmem:[#allocation2 + $0x768] sm:$0xf0] }
 0x4f9   :  { %4167 = vmatpush.bf16.msra.mxu3 %v8469_v47  ;;  %v8515_v47 = vor.u32 %v10040_v46, %v8512_v14  ;;  %v8549_v23 = vor.u32 %v10048_v29, %v8546_v24  ;;  %v10044_v46 = vld [vmem:[#allocation2 + $0x744] sm:$0xf]  ;;  %v8530_v14 = vld [vmem:[#allocation2 + $0x748] sm:$0xf0]  ;;  %v10059_v29 = vld [vmem:[#allocation2 + $0x7b4] sm:$0xf0] }
 0x4fa   :  { %4180 = vmatpush.bf16.msra.mxu0 %v8473_v0  ;;  %v10038_v0 = vld [vmem:[#allocation2 + $0x714] sm:$0xf] }
 0x4fb   :  { %4087 = vmatpush.bf16.msrb.mxu1 %v8427_v52  ;;  %v8503_v52 = vor.u32 %v10039_v1, %v8502_v11  ;;  %v10066_v24 = vld [vmem:[#allocation2 + $0x7f4] sm:$0xf]  ;;  %v8612_v11 = vld [vmem:[#allocation2 + $0x7e0] sm:$0xf]  ;;  %v10065_v1 = vld [vmem:[#allocation2 + $0x7e4] sm:$0xf0] }
 0x4fc   :  { %4100 = vmatpush.bf16.msrb.mxu2 %v8431_v16  ;;  %v8507_v16 = vor.u32 %v10038_v0, %v8504_v25  ;;  %v10056_v0 = vld [vmem:[#allocation2 + $0x7a4] sm:$0xf]  ;;  %v8580_v25 = vld [vmem:[#allocation2 + $0x7a8] sm:$0xf0] }
 0x4fd   :  { %4168 = vmatpush.bf16.msra.mxu3 %v8461_v2  ;;  %v8537_v2 = vor.u32 %v10047_v13, %v8536_v17  ;;  %v8587_v17 = vor.u32 %v10059_v29, %v8586_v9  ;;  %v8564_v9 = vld [vmem:[#allocation2 + $0x788] sm:$0xf0]  ;;  %v8596_v29 = vld [vmem:[#allocation2 + $0x7c0] sm:$0xf] }
 0x4fe   :  { %4181 = vmatpush.bf16.msra.mxu0 %v8465_v55  ;;  %v8541_v55 = vor.u32 %v10046_v15, %v8538_v34  ;;  %8456 = vmatmul.msk.bf16.vlgmr.msrb.gmra.mxu1 %vm2068_vm5, %v4036_v60  ;;  %v8578_v15 = vld [vmem:[#allocation2 + $0x7a0] sm:$0xf]  ;;  %v10057_v34 = vld [vmem:[#allocation2 + $0x7a4] sm:$0xf0] }
 0x4ff   :  { %4246 = vmatpush.bf16.msra.mxu1 %v8519_v20  ;;  %8457 = vmatmul.msk.bf16.vlgmr.msrb.gmra.mxu2 %vm2068_vm5, %v4036_v60  ;;  %v10058_v20 = vld [vmem:[#allocation2 + $0x7b4] sm:$0xf]  ;;  %v8579_v51 = vor.u32 %v10057_v34, %v8578_v15 }
 0x500   :  { %4259 = vmatpush.bf16.msra.mxu2 %v8523_v33  ;;  %v8494_v33 = vld [vmem:[#allocation2 + $0x700] sm:$0xf]  ;;  %8490 = vmatmul.msk.bf16.vlgmr.msra.gmra.mxu3 %vm2068_vm5, %v4117_v36 }
 0x501   :  { %4328 = vmatpush.bf16.msrb.mxu3 %v8553_v7  ;;  %v10037_v7 = vld [vmem:[#allocation2 + $0x704] sm:$0xf0]  ;;  %8491 = vmatmul.msk.bf16.vlgmr.msra.gmra.mxu0 %vm2068_vm5, %v4117_v36  ;;  %v10064_v36 = vld [vmem:[#allocation2 + $0x7e4] sm:$0xf] }
 0x502   :  { %4341 = vmatpush.bf16.msrb.mxu0 %v8557_v6  ;;  %v8620_v6 = vld [vmem:[#allocation2 + $0x7f0] sm:$0xf]  ;;  %v8617_v54 = vor.u32 %v10064_v36, %v8614_v58 }
 0x503   :  { %4247 = vmatpush.bf16.msra.mxu1 %v8511_v45  ;;  %v8533_v45 = vor.u32 %v10044_v46, %v8530_v14  ;;  %v8621_v60 = vor.u32 %v10067_v35, %v8620_v6  ;;  %v8570_v46 = vld [vmem:[#allocation2 + $0x790] sm:$0xf]  ;;  %v10055_v14 = vld [vmem:[#allocation2 + $0x794] sm:$0xf0]  ;;  %v4280_v6 = vrot.slane %v4189_v50, 1 }
 0x504   :  { %4260 = vmatpush.bf16.msra.mxu2 %v8515_v47  ;;  %v8622_v47 = vld [vmem:[#allocation2 + $0x7f8] sm:$0xf0] }
 0x505   :  { %4329 = vmatpush.bf16.msrb.mxu3 %v8545_v22  ;;  %v8495_v22 = vor.u32 %v10037_v7, %v8494_v33  ;;  %v8625_v13 = vor.u32 %v10066_v24, %v8622_v47  ;;  %v8604_v33 = vld [vmem:[#allocation2 + $0x7d0] sm:$0xf]  ;;  %v10063_v7 = vld [vmem:[#allocation2 + $0x7d4] sm:$0xf0]  ;;  %v10061_v24 = vld [vmem:[#allocation2 + $0x7c4] sm:$0xf0] }
 0x506   :  { %4342 = vmatpush.bf16.msrb.mxu0 %v8549_v23  ;;  %v8591_v23 = vor.u32 %v10058_v20, %v8588_v37  ;;  %v10062_v20 = vld [vmem:[#allocation2 + $0x7d4] sm:$0xf]  ;;  %v8606_v37 = vld [vmem:[#allocation2 + $0x7d8] sm:$0xf0]  ;;  %v8605_v35 = vor.u32 %v10063_v7, %v8604_v33  ;;  %v8562_v47 = vld [vmem:[#allocation2 + $0x780] sm:$0xf] }
 0x507   :  { %4248 = vmatpush.bf16.msra.mxu1 %v8503_v52  ;;  %v10054_v52 = vld [vmem:[#allocation2 + $0x794] sm:$0xf] }
 0x508   :  { %4261 = vmatpush.bf16.msra.mxu2 %v8507_v16  ;;  %v8583_v16 = vor.u32 %v10056_v0, %v8580_v25  ;;  %v8597_v0 = vor.u32 %v10061_v24, %v8596_v29 }
 0x509   :  { %4330 = vmatpush.bf16.msrb.mxu3 %v8537_v2  ;;  %v8613_v2 = vor.u32 %v10065_v1, %v8612_v11  ;;  %v4442_v11 = vrot.slane %v4189_v50, 3 }
 0x50a   :  { %4343 = vmatpush.bf16.msrb.mxu0 %v8541_v55  ;;  %v8572_v55 = vld [vmem:[#allocation2 + $0x798] sm:$0xf0] }
 0x50b   :  { %4249 = vmatpush.bf16.msra.mxu1 %v8495_v22  ;;  %v8575_v8 = vor.u32 %v10054_v52, %v8572_v55  ;;  %v10053_v22 = vld [vmem:[#allocation2 + $0x784] sm:$0xf0] }
 0x50c   :  { %4262 = vmatpush.bf16.msra.mxu2 %v8499_v32  ;;  %v8571_v32 = vor.u32 %v10055_v14, %v8570_v46  ;;  %v8563_v25 = vor.u32 %v10053_v22, %v8562_v47 }
 0x50d   :  { %4331 = vmatpush.bf16.msrb.mxu3 %v8529_v30  ;;  %v8609_v30 = vor.u32 %v10062_v20, %v8606_v37 }
 0x50e   :  { %4344 = vmatpush.bf16.msrb.mxu0 %v8533_v45  ;;  %8524 = vmatmul.msk.bf16.vlgmr.msra.gmra.mxu1 %vm2068_vm5, %v4189_v50  ;;  %v10060_v45 = vld [vmem:[#allocation2 + $0x7c4] sm:$0xf] }
 0x50f   :  { %4409 = vmatpush.bf16.msrb.mxu1 %v8587_v17  ;;  %8525 = vmatmul.msk.bf16.vlgmr.msra.gmra.mxu2 %vm2068_vm5, %v4189_v50 }
 0x510   :  { %4422 = vmatpush.bf16.msrb.mxu2 %v8591_v23  ;;  %v8598_v23 = vld [vmem:[#allocation2 + $0x7c8] sm:$0xf0]  ;;  %8558 = vmatmul.msk.bf16.vlgmr.msrb.gmra.mxu3 %vm2068_vm5, %v4280_v6 }
 0x511   :  { %4490 = vmatpush.bf16.msra.mxu3 %v8621_v60  ;;  %8559 = vmatmul.msk.bf16.vlgmr.msrb.gmra.mxu0 %vm2068_vm5, %v4280_v6  ;;  %v8567_v60 = vor.u32 %v10052_v59, %v8564_v9  ;;  %v8601_v17 = vor.u32 %v10060_v45, %v8598_v23 }
 0x512   :  { %4503 = vmatpush.bf16.msra.mxu0 %v8625_v13  ;;  %v4361_v13 = vrot.slane %v4189_v50, 2 }
 0x513   :  { %4410 = vmatpush.bf16.msrb.mxu1 %v8579_v51 }
 0x514   :  { %4423 = vmatpush.bf16.msrb.mxu2 %v8583_v16 }
 0x515   :  { %4491 = vmatpush.bf16.msra.mxu3 %v8613_v2 }
 0x516   :  { %4504 = vmatpush.bf16.msra.mxu0 %v8617_v54 }
 0x517   :  { %4411 = vmatpush.bf16.msrb.mxu1 %v8571_v32 }
 0x518   :  { %4424 = vmatpush.bf16.msrb.mxu2 %v8575_v8 }
 0x519   :  { %4492 = vmatpush.bf16.msra.mxu3 %v8605_v35 }
 0x51a   :  { %4505 = vmatpush.bf16.msra.mxu0 %v8609_v30 }
 0x51b   :  { %4412 = vmatpush.bf16.msrb.mxu1 %v8563_v25 }
 0x51c   :  { %4425 = vmatpush.bf16.msrb.mxu2 %v8567_v60 }
 0x51d   :  { %4493 = vmatpush.bf16.msra.mxu3 %v8597_v0 }
 0x51e   :  { %4506 = vmatpush.bf16.msra.mxu0 %v8601_v17  ;;  %8592 = vmatmul.msk.bf16.vlgmr.msrb.gmra.mxu1 %vm2068_vm5, %v4361_v13 }
 0x51f   :  { %8593 = vmatmul.msk.bf16.vlgmr.msrb.gmra.mxu2 %vm2068_vm5, %v4361_v13 }
 0x520   :  { %8626 = vmatmul.msk.bf16.vlgmr.msra.gmra.mxu3 %vm2068_vm5, %v4442_v11 }
 0x521   :  { %8627 = vmatmul.msk.bf16.vlgmr.msra.gmra.mxu0 %vm2068_vm5, %v4442_v11 }
 0x52b   :  { %v3276_v1 = vpop.f32.mrf.mxu1 }
 0x52c   :  { %v3293_v60 = vadd.f32 %v3276_v1, %v12685_v40 }
 0x52e   :  { %v3371_v15 = vpop.f32.mrf.mxu0 }
 0x52f   :  { %v3376_v25 = vadd.f32 %v3371_v15, %v12694_v42 }
 0x532   :  { %v3289_v34 = vpop.f32.mrf.mxu2 }
 0x533   :  { %v3358_v36 = vpop.f32.mrf.mxu3  ;;  %v3278_v58 = vpop.f32.mrf.mxu1 }
 0x536   :  { %v3373_v16 = vpop.f32.mrf.mxu0 }
 0x537   :  { %v3294_v16 = vadd.f32 %v3289_v34, %v12677_v27 }
 0x53a   :  { %v3291_v2 = vpop.f32.mrf.mxu2 }
 0x53b   :  { %v3360_v51 = vpop.f32.mrf.mxu3  ;;  %v3439_v54 = vpop.f32.mrf.mxu1  ;;  %v3375_v2 = vadd.f32 %v3358_v36, %v12698_v57 }
 0x53c   :  { %v3456_v42 = vadd.f32 %v3439_v54, %v12705_v21 }
 0x53e   :  { %v3533_v52 = vpop.f32.mrf.mxu0 }
 0x542   :  { %v3452_v55 = vpop.f32.mrf.mxu2 }
 0x543   :  { %v3520_v50 = vpop.f32.mrf.mxu3  ;;  %v3441_v33 = vpop.f32.mrf.mxu1  ;;  %v3457_v57 = vadd.f32 %v3452_v55, %v12703_v10 }
 0x544   :  { %v3537_v36 = vadd.f32 %v3520_v50, %v12709_v3 }
 0x546   :  { %v3535_v7 = vpop.f32.mrf.mxu0 }
 0x54a   :  { %v3454_v46 = vpop.f32.mrf.mxu2 }
 0x54b   :  { %v3522_v14 = vpop.f32.mrf.mxu3  ;;  %v3601_v20 = vpop.f32.mrf.mxu1 }
 0x54e   :  { %v3696_v37 = vpop.f32.mrf.mxu0 }
 0x552   :  { %v3614_v6 = vpop.f32.mrf.mxu2 }
 0x553   :  { %v3683_v8 = vpop.f32.mrf.mxu3  ;;  %v3603_v35 = vpop.f32.mrf.mxu1  ;;  %v3619_v3 = vadd.f32 %v3614_v6, %v12711_v43 }
 0x554   :  { %v3538_v35 = vadd.f32 %v3533_v52, %v12707_v62  ;;  %v3618_v62 = vadd.f32 %v3601_v20, %v12713_v38  ;;  %v3700_v50 = vadd.f32 %v3683_v8, %v12717_v49 }
 0x556   :  { %v3698_v59 = vpop.f32.mrf.mxu0 }
 0x55a   :  { %v3616_v9 = vpop.f32.mrf.mxu2 }
 0x55b   :  { %v3685_v32 = vpop.f32.mrf.mxu3  ;;  %v3764_v30 = vpop.f32.mrf.mxu1 }
 0x55e   :  { %v3858_v29 = vpop.f32.mrf.mxu0 }
 0x562   :  { %v3777_v24 = vpop.f32.mrf.mxu2 }
 0x563   :  { %v3845_v47 = vpop.f32.mrf.mxu3  ;;  %v3766_v22 = vpop.f32.mrf.mxu1  ;;  %v3782_v49 = vadd.f32 %v3777_v24, %v12719_v5 }
 0x564   :  { %v3862_v8 = vadd.f32 %v3845_v47, %v12725_v53 }
 0x566   :  { %v3860_v45 = vpop.f32.mrf.mxu0 }
 0x56a   :  { %v3779_v23 = vpop.f32.mrf.mxu2 }
 0x56b   :  { %v3847_v0 = vpop.f32.mrf.mxu3  ;;  %v3926_v17 = vpop.f32.mrf.mxu1 }
 0x56c   :  { %v12794_v13 = vadd.f32 %v3926_v17, %v3293_v60  ;;  %v3701_v0 = vadd.f32 %v3696_v37, %v12715_v44  ;;  %v3781_v44 = vadd.f32 %v3764_v30, %v12721_v28 }
 0x56e   :  { %v4021_v11 = vpop.f32.mrf.mxu0 }
 0x56f   :  { %v12796_v58 = vadd.f32 %v4021_v11, %v3376_v25 }
 0x572   :  { %v3939_v51 = vpop.f32.mrf.mxu2 }
 0x573   :  { %v12800_v33 = vadd.f32 %v3939_v51, %v3294_v16  ;;  %v4008_v7 = vpop.f32.mrf.mxu3  ;;  %v3928_v40 = vpop.f32.mrf.mxu1 }
 0x574   :  { %v12802_v46 = vadd.f32 %v4008_v7, %v3375_v2  ;;  %v3863_v40 = vadd.f32 %v3858_v29, %v12723_v18 }
 0x576   :  { %v4023_v1 = vpop.f32.mrf.mxu0 }
 0x57a   :  { %v3941_v14 = vpop.f32.mrf.mxu2 }
 0x57b   :  { %v4010_v15 = vpop.f32.mrf.mxu3  ;;  %v4089_v59 = vpop.f32.mrf.mxu1 }
 0x57c   :  { %v12806_v9 = vadd.f32 %v4089_v59, %v3456_v42 }
 0x57e   :  { %v4183_v27 = vpop.f32.mrf.mxu0 }
 0x57f   :  { %v12808_v34 = vadd.f32 %v4183_v27, %v3538_v35 }
 0x582   :  { %v4102_v32 = vpop.f32.mrf.mxu2 }
 0x583   :  { %v12812_v22 = vadd.f32 %v4102_v32, %v3457_v57  ;;  %v4170_v45 = vpop.f32.mrf.mxu3  ;;  %v4091_v21 = vpop.f32.mrf.mxu1 }
 0x584   :  { %v12814_v23 = vadd.f32 %v4170_v45, %v3537_v36 }
 0x586   :  { %v4185_v54 = vpop.f32.mrf.mxu0 }
 0x58a   :  { %v4104_v60 = vpop.f32.mrf.mxu2 }
 0x58b   :  { %v4172_v52 = vpop.f32.mrf.mxu3  ;;  %v4251_v25 = vpop.f32.mrf.mxu1 }
 0x58c   :  { %v12818_v17 = vadd.f32 %v4251_v25, %v3618_v62 }
 0x58e   :  { %v4346_v10 = vpop.f32.mrf.mxu0 }
 0x58f   :  { %v12820_v55 = vadd.f32 %v4346_v10, %v3701_v0 }
 0x592   :  { %v4264_v11 = vpop.f32.mrf.mxu2 }
 0x593   :  { %v12824_v16 = vadd.f32 %v4264_v11, %v3619_v3  ;;  %v4333_v2 = vpop.f32.mrf.mxu3  ;;  %v4253_v38 = vpop.f32.mrf.mxu1 }
 0x594   :  { %v12826_v51 = vadd.f32 %v4333_v2, %v3700_v50 }
 0x596   :  { %v4348_v20 = vpop.f32.mrf.mxu0 }
 0x59a   :  { %v4266_v7 = vpop.f32.mrf.mxu2 }
 0x59b   :  { %v4335_v37 = vpop.f32.mrf.mxu3  ;;  %v4414_v1 = vpop.f32.mrf.mxu1 }
 0x59c   :  { %v12830_v14 = vadd.f32 %v4414_v1, %v3781_v44 }
 0x59e   :  { %v4508_v43 = vpop.f32.mrf.mxu0 }
 0x59f   :  { %v12832_v6 = vadd.f32 %v4508_v43, %v3863_v40 }
 0x5a2   :  { %v4427_v42 = vpop.f32.mrf.mxu2 }
 0x5a3   :  { %v12836_v15 = vadd.f32 %v4427_v42, %v3782_v49  ;;  %v4495_v35 = vpop.f32.mrf.mxu3  ;;  %v4416_v28 = vpop.f32.mrf.mxu1 }
 0x5a4   :  { %v12838_v59 = vadd.f32 %v4495_v35, %v3862_v8 }
 0x5a6   :  { %v4510_v30 = vpop.f32.mrf.mxu0 }
 0x5aa   :  { %v4429_v27 = vpop.f32.mrf.mxu2 }
 0x5ab   :  { %v4497_v18 = vpop.f32.mrf.mxu3 }
 0x5ac   :  { %10970 = dma.done.wait [#allocation3 + $0x2], 16384 }
 0x5ad   :  { %10971 = vsyncadd [#allocation3 + $0x2], 4294950912  ;;  %v8654_v29 = vld [vmem:[#allocation2 + $0x830] sm:$0xf]  ;;  %v10075_v57 = vld [vmem:[#allocation2 + $0x834] sm:$0xf0] }
 0x5ae   :  { %v10074_v36 = vld [vmem:[#allocation2 + $0x834] sm:$0xf]  ;;  %v8655_v32 = vor.u32 %v10075_v57, %v8654_v29  ;;  %v8656_v45 = vld [vmem:[#allocation2 + $0x838] sm:$0xf0]  ;;  %v8688_v5 = vld [vmem:[#allocation2 + $0x870] sm:$0xf] }
 0x5af   :  { %v10083_v24 = vld [vmem:[#allocation2 + $0x874] sm:$0xf0]  ;;  %v8659_v53 = vor.u32 %v10074_v36, %v8656_v45  ;;  %v10082_v21 = vld [vmem:[#allocation2 + $0x874] sm:$0xf]  ;;  %v8690_v54 = vld [vmem:[#allocation2 + $0x878] sm:$0xf0] }
 0x5b0   :  { %v8689_v47 = vor.u32 %v10083_v24, %v8688_v5  ;;  %v8646_v60 = vld [vmem:[#allocation2 + $0x820] sm:$0xf]  ;;  %4572 = vmatpush.bf16.msra.mxu1 %v8655_v32  ;;  %v8693_v62 = vor.u32 %v10082_v21, %v8690_v54  ;;  %v10073_v52 = vld [vmem:[#allocation2 + $0x824] sm:$0xf0]  ;;  %v10072_v0 = vld [vmem:[#allocation2 + $0x824] sm:$0xf]  ;;  %v12843_v21 = vpack.c.bf16 %v1932_v61, %v1932_v61 }
 0x5b1   :  { %v8648_v25 = vld [vmem:[#allocation2 + $0x828] sm:$0xf0]  ;;  %4585 = vmatpush.bf16.msra.mxu2 %v8659_v53  ;;  %v8647_v10 = vor.u32 %v10073_v52, %v8646_v60  ;;  %v8680_v50 = vld [vmem:[#allocation2 + $0x860] sm:$0xf]  ;;  %v10081_v11 = vld [vmem:[#allocation2 + $0x864] sm:$0xf0] }
 0x5b2   :  { %4654 = vmatpush.bf16.msrb.mxu3 %v8689_v47  ;;  %v8651_v3 = vor.u32 %v10072_v0, %v8648_v25  ;;  %v10080_v2 = vld [vmem:[#allocation2 + $0x864] sm:$0xf]  ;;  %4667 = vmatpush.bf16.msrb.mxu0 %v8693_v62  ;;  %v8681_v38 = vor.u32 %v10081_v11, %v8680_v50  ;;  %v8682_v20 = vld [vmem:[#allocation2 + $0x868] sm:$0xf0]  ;;  %v8638_v7 = vld [vmem:[#allocation2 + $0x810] sm:$0xf] }
 0x5b3   :  { %v10071_v44 = vld [vmem:[#allocation2 + $0x814] sm:$0xf0]  ;;  %v8685_v37 = vor.u32 %v10080_v2, %v8682_v20  ;;  %v10070_v40 = vld [vmem:[#allocation2 + $0x814] sm:$0xf]  ;;  %v8640_v1 = vld [vmem:[#allocation2 + $0x818] sm:$0xf0] }
 0x5b4   :  { %v8672_v43 = vld [vmem:[#allocation2 + $0x850] sm:$0xf]  ;;  %4573 = vmatpush.bf16.msra.mxu1 %v8647_v10  ;;  %v8639_v49 = vor.u32 %v10071_v44, %v8638_v7  ;;  %v10079_v8 = vld [vmem:[#allocation2 + $0x854] sm:$0xf0]  ;;  %v10078_v42 = vld [vmem:[#allocation2 + $0x854] sm:$0xf]  ;;  %v8643_v28 = vor.u32 %v10070_v40, %v8640_v1 }
 0x5b5   :  { %v8674_v35 = vld [vmem:[#allocation2 + $0x858] sm:$0xf0]  ;;  %4586 = vmatpush.bf16.msra.mxu2 %v8651_v3  ;;  %v8673_v30 = vor.u32 %v10079_v8, %v8672_v43  ;;  %v8630_v27 = vld [vmem:[#allocation2 + $0x800] sm:$0xf]  ;;  %v10069_v18 = vld [vmem:[#allocation2 + $0x804] sm:$0xf0] }
 0x5b6   :  { %4655 = vmatpush.bf16.msrb.mxu3 %v8681_v38  ;;  %v10068_v29 = vld [vmem:[#allocation2 + $0x804] sm:$0xf]  ;;  %4668 = vmatpush.bf16.msrb.mxu0 %v8685_v37  ;;  %v8677_v57 = vor.u32 %v10078_v42, %v8674_v35  ;;  %v8632_v36 = vld [vmem:[#allocation2 + $0x808] sm:$0xf0]  ;;  %v8664_v32 = vld [vmem:[#allocation2 + $0x840] sm:$0xf]  ;;  %v8631_v47 = vor.u32 %v10069_v18, %v8630_v27 }
 0x5b7   :  { %v10077_v45 = vld [vmem:[#allocation2 + $0x844] sm:$0xf0]  ;;  %v10076_v5 = vld [vmem:[#allocation2 + $0x844] sm:$0xf]  ;;  %v8666_v24 = vld [vmem:[#allocation2 + $0x848] sm:$0xf0]  ;;  %v8635_v52 = vor.u32 %v10068_v29, %v8632_v36 }
 0x5b8   :  { %v10090_v53 = vld [vmem:[#allocation2 + $0x8b4] sm:$0xf]  ;;  %4574 = vmatpush.bf16.msra.mxu1 %v8639_v49  ;;  %v8724_v54 = vld [vmem:[#allocation2 + $0x8b8] sm:$0xf0]  ;;  %v8756_v60 = vld [vmem:[#allocation2 + $0x8f0] sm:$0xf]  ;;  %v8665_v0 = vor.u32 %v10077_v45, %v8664_v32  ;;  %v8669_v25 = vor.u32 %v10076_v5, %v8666_v24 }
 0x5b9   :  { %v10099_v62 = vld [vmem:[#allocation2 + $0x8f4] sm:$0xf0]  ;;  %4587 = vmatpush.bf16.msra.mxu2 %v8643_v28  ;;  %v8727_v10 = vor.u32 %v10090_v53, %v8724_v54  ;;  %v8722_v3 = vld [vmem:[#allocation2 + $0x8b0] sm:$0xf]  ;;  %v10098_v11 = vld [vmem:[#allocation2 + $0x8f4] sm:$0xf] }
 0x5ba   :  { %4656 = vmatpush.bf16.msrb.mxu3 %v8673_v30  ;;  %4669 = vmatpush.bf16.msrb.mxu0 %v8677_v57  ;;  %v10091_v50 = vld [vmem:[#allocation2 + $0x8b4] sm:$0xf0]  ;;  %v8757_v2 = vor.u32 %v10099_v62, %v8756_v60  ;;  %v8758_v38 = vld [vmem:[#allocation2 + $0x8f8] sm:$0xf0]  ;;  %v10088_v20 = vld [vmem:[#allocation2 + $0x8a4] sm:$0xf] }
 0x5bb   :  { %v8716_v19 = vld [vmem:[#allocation2 + $0x8a8] sm:$0xf0]  ;;  %v4606_v61 = vrot.slane %v12843_v21, 1  ;;  %v8748_v7 = vld [vmem:[#allocation2 + $0x8e0] sm:$0xf]  ;;  %v8723_v37 = vor.u32 %v10091_v50, %v8722_v3  ;;  %v8761_v40 = vor.u32 %v10098_v11, %v8758_v38 }
 0x5bc   :  { %4575 = vmatpush.bf16.msra.mxu1 %v8631_v47  ;;  %v10097_v44 = vld [vmem:[#allocation2 + $0x8e4] sm:$0xf0]  ;;  %v8719_v1 = vor.u32 %v10088_v20, %v8716_v19  ;;  %v8714_v43 = vld [vmem:[#allocation2 + $0x8a0] sm:$0xf]  ;;  %v10096_v8 = vld [vmem:[#allocation2 + $0x8e4] sm:$0xf] }
 0x5bd   :  { %4588 = vmatpush.bf16.msra.mxu2 %v8635_v52  ;;  %v10089_v49 = vld [vmem:[#allocation2 + $0x8a4] sm:$0xf0]  ;;  %v8749_v42 = vor.u32 %v10097_v44, %v8748_v7  ;;  %v8750_v35 = vld [vmem:[#allocation2 + $0x8e8] sm:$0xf0]  ;;  %v10086_v28 = vld [vmem:[#allocation2 + $0x894] sm:$0xf] }
 0x5be   :  { %4657 = vmatpush.bf16.msrb.mxu3 %v8665_v0  ;;  %4670 = vmatpush.bf16.msrb.mxu0 %v8669_v25  ;;  %v8708_v30 = vld [vmem:[#allocation2 + $0x898] sm:$0xf0]  ;;  %v8740_v27 = vld [vmem:[#allocation2 + $0x8d0] sm:$0xf]  ;;  %v10095_v18 = vld [vmem:[#allocation2 + $0x8d4] sm:$0xf0]  ;;  %v8715_v29 = vor.u32 %v10089_v49, %v8714_v43  ;;  %v8753_v36 = vor.u32 %v10096_v8, %v8750_v35 }
 0x5bf   :  { %8660 = vmatmul.msk.bf16.vlgmr.msra.gmra.mxu1 %vm2068_vm5, %v12843_v21  ;;  %v8706_v57 = vld [vmem:[#allocation2 + $0x890] sm:$0xf]  ;;  %v8711_v32 = vor.u32 %v10086_v28, %v8708_v30  ;;  %v10087_v45 = vld [vmem:[#allocation2 + $0x894] sm:$0xf0]  ;;  %v10094_v5 = vld [vmem:[#allocation2 + $0x8d4] sm:$0xf]  ;;  %v8741_v53 = vor.u32 %v10095_v18, %v8740_v27 }
 0x5c0   :  { %8661 = vmatmul.msk.bf16.vlgmr.msra.gmra.mxu2 %vm2068_vm5, %v12843_v21  ;;  %4735 = vmatpush.bf16.msrb.mxu1 %v8723_v37  ;;  %v8742_v24 = vld [vmem:[#allocation2 + $0x8d8] sm:$0xf0]  ;;  %v10084_v47 = vld [vmem:[#allocation2 + $0x884] sm:$0xf]  ;;  %v8700_v54 = vld [vmem:[#allocation2 + $0x888] sm:$0xf0]  ;;  %v8707_v25 = vor.u32 %v10087_v45, %v8706_v57 }
 0x5c1   :  { %4748 = vmatpush.bf16.msrb.mxu2 %v8727_v10  ;;  %8694 = vmatmul.msk.bf16.vlgmr.msrb.gmra.mxu3 %vm2068_vm5, %v4606_v61  ;;  %v8732_v60 = vld [vmem:[#allocation2 + $0x8c0] sm:$0xf]  ;;  %v10093_v62 = vld [vmem:[#allocation2 + $0x8c4] sm:$0xf0]  ;;  %v10106_v52 = vld [vmem:[#allocation2 + $0x934] sm:$0xf]  ;;  %v8745_v11 = vor.u32 %v10094_v5, %v8742_v24 }
 0x5c2   :  { %4816 = vmatpush.bf16.msra.mxu3 %v8757_v2  ;;  %8695 = vmatmul.msk.bf16.vlgmr.msrb.gmra.mxu0 %vm2068_vm5, %v4606_v61  ;;  %v8792_v0 = vld [vmem:[#allocation2 + $0x938] sm:$0xf0]  ;;  %v8698_v10 = vld [vmem:[#allocation2 + $0x880] sm:$0xf]  ;;  %v8824_v3 = vld [vmem:[#allocation2 + $0x970] sm:$0xf]  ;;  %v8703_v2 = vor.u32 %v10084_v47, %v8700_v54  ;;  %v8733_v61 = vor.u32 %v10093_v62, %v8732_v60 }
 0x5c3   :  { %4829 = vmatpush.bf16.msra.mxu0 %v8761_v40  ;;  %v10115_v50 = vld [vmem:[#allocation2 + $0x974] sm:$0xf0]  ;;  %v10085_v38 = vld [vmem:[#allocation2 + $0x884] sm:$0xf0]  ;;  %v10092_v20 = vld [vmem:[#allocation2 + $0x8c4] sm:$0xf]  ;;  %v8795_v7 = vor.u32 %v10106_v52, %v8792_v0 }
 0x5c4   :  { %4736 = vmatpush.bf16.msrb.mxu1 %v8715_v29  ;;  %v8734_v19 = vld [vmem:[#allocation2 + $0x8c8] sm:$0xf0]  ;;  %v8790_v44 = vld [vmem:[#allocation2 + $0x930] sm:$0xf]  ;;  %v10107_v37 = vld [vmem:[#allocation2 + $0x934] sm:$0xf0] }
 0x5c5   :  { %4749 = vmatpush.bf16.msrb.mxu2 %v8719_v1  ;;  %v10114_v40 = vld [vmem:[#allocation2 + $0x974] sm:$0xf]  ;;  %v8825_v1 = vor.u32 %v10115_v50, %v8824_v3  ;;  %v8826_v43 = vld [vmem:[#allocation2 + $0x978] sm:$0xf0]  ;;  %v10104_v49 = vld [vmem:[#allocation2 + $0x924] sm:$0xf]  ;;  %v8737_v35 = vor.u32 %v10092_v20, %v8734_v19  ;;  %v8791_v30 = vor.u32 %v10107_v37, %v8790_v44 }
 0x5c6   :  { %4817 = vmatpush.bf16.msra.mxu3 %v8749_v42  ;;  %v8784_v8 = vld [vmem:[#allocation2 + $0x928] sm:$0xf0]  ;;  %v8699_v42 = vor.u32 %v10085_v38, %v8698_v10  ;;  %v4687_v28 = vrot.slane %v12843_v21, 2  ;;  %v8816_v27 = vld [vmem:[#allocation2 + $0x960] sm:$0xf]  ;;  %v8829_v29 = vor.u32 %v10114_v40, %v8826_v43  ;;  %v4768_v47 = vrot.slane %v12843_v21, 3 }
 0x5c7   :  { %4830 = vmatpush.bf16.msra.mxu0 %v8753_v36  ;;  %v10113_v18 = vld [vmem:[#allocation2 + $0x964] sm:$0xf0]  ;;  %v8787_v57 = vor.u32 %v10104_v49, %v8784_v8  ;;  %v8782_v36 = vld [vmem:[#allocation2 + $0x920] sm:$0xf]  ;;  %v10112_v45 = vld [vmem:[#allocation2 + $0x964] sm:$0xf] }
 0x5c8   :  { %4737 = vmatpush.bf16.msrb.mxu1 %v8707_v25  ;;  %v8818_v5 = vld [vmem:[#allocation2 + $0x968] sm:$0xf0]  ;;  %v10102_v24 = vld [vmem:[#allocation2 + $0x914] sm:$0xf]  ;;  %v8817_v54 = vor.u32 %v10113_v18, %v8816_v27  ;;  %v8808_v62 = vld [vmem:[#allocation2 + $0x950] sm:$0xf] }
 0x5c9   :  { %4750 = vmatpush.bf16.msrb.mxu2 %v8711_v32  ;;  %v10105_v32 = vld [vmem:[#allocation2 + $0x924] sm:$0xf0]  ;;  %v10111_v52 = vld [vmem:[#allocation2 + $0x954] sm:$0xf0]  ;;  %v8821_v0 = vor.u32 %v10112_v45, %v8818_v5  ;;  %v8774_v10 = vld [vmem:[#allocation2 + $0x910] sm:$0xf] }
 0x5ca   :  { %4818 = vmatpush.bf16.msra.mxu3 %v8741_v53  ;;  %v8776_v53 = vld [vmem:[#allocation2 + $0x918] sm:$0xf0]  ;;  %v8783_v60 = vor.u32 %v10105_v32, %v8782_v36  ;;  %v10103_v3 = vld [vmem:[#allocation2 + $0x914] sm:$0xf0]  ;;  %v10110_v50 = vld [vmem:[#allocation2 + $0x954] sm:$0xf]  ;;  %v8809_v19 = vor.u32 %v10111_v52, %v8808_v62  ;;  %v12861_v62 = vpack.c.bf16 %v1933_v63, %v1933_v63 }
 0x5cb   :  { %4831 = vmatpush.bf16.msra.mxu0 %v8745_v11  ;;  %v8779_v25 = vor.u32 %v10102_v24, %v8776_v53  ;;  %v8810_v11 = vld [vmem:[#allocation2 + $0x958] sm:$0xf0]  ;;  %v8768_v21 = vld [vmem:[#allocation2 + $0x908] sm:$0xf0]  ;;  %v10122_v38 = vld [vmem:[#allocation2 + $0x9b4] sm:$0xf] }
 0x5cc   :  { %4738 = vmatpush.bf16.msrb.mxu1 %v8699_v42  ;;  %v8860_v20 = vld [vmem:[#allocation2 + $0x9b8] sm:$0xf0]  ;;  %v10109_v44 = vld [vmem:[#allocation2 + $0x944] sm:$0xf0]  ;;  %v8766_v37 = vld [vmem:[#allocation2 + $0x900] sm:$0xf]  ;;  %v8813_v40 = vor.u32 %v10110_v50, %v8810_v11 }
 0x5cd   :  { %4751 = vmatpush.bf16.msrb.mxu2 %v8703_v2  ;;  %v10100_v2 = vld [vmem:[#allocation2 + $0x904] sm:$0xf]  ;;  %v10101_v43 = vld [vmem:[#allocation2 + $0x904] sm:$0xf0]  ;;  %v8802_v8 = vld [vmem:[#allocation2 + $0x948] sm:$0xf0]  ;;  %v8863_v42 = vor.u32 %v10122_v38, %v8860_v20 }
 0x5ce   :  { %4819 = vmatpush.bf16.msra.mxu3 %v8733_v61  ;;  %v8775_v61 = vor.u32 %v10103_v3, %v8774_v10  ;;  %v10108_v49 = vld [vmem:[#allocation2 + $0x944] sm:$0xf]  ;;  %v10123_v27 = vld [vmem:[#allocation2 + $0x9b4] sm:$0xf0]  ;;  %v10130_v18 = vld [vmem:[#allocation2 + $0x9f4] sm:$0xf]  ;;  %v8767_v36 = vor.u32 %v10101_v43, %v8766_v37 }
 0x5cf   :  { %4832 = vmatpush.bf16.msra.mxu0 %v8737_v35  ;;  %8728 = vmatmul.msk.bf16.vlgmr.msrb.gmra.mxu1 %vm2068_vm5, %v4687_v28  ;;  %v8892_v35 = vld [vmem:[#allocation2 + $0x9f0] sm:$0xf]  ;;  %v10120_v32 = vld [vmem:[#allocation2 + $0x9a4] sm:$0xf]  ;;  %v8852_v45 = vld [vmem:[#allocation2 + $0x9a8] sm:$0xf0]  ;;  %v8805_v5 = vor.u32 %v10108_v49, %v8802_v8 }
 0x5d0   :  { %4897 = vmatpush.bf16.msra.mxu1 %v8791_v30  ;;  %8729 = vmatmul.msk.bf16.vlgmr.msrb.gmra.mxu2 %vm2068_vm5, %v4687_v28  ;;  %v10131_v28 = vld [vmem:[#allocation2 + $0x9f4] sm:$0xf0]  ;;  %v8858_v30 = vld [vmem:[#allocation2 + $0x9b0] sm:$0xf]  ;;  %v8855_v52 = vor.u32 %v10120_v32, %v8852_v45  ;;  %v10128_v3 = vld [vmem:[#allocation2 + $0x9e4] sm:$0xf] }
 0x5d1   :  { %4910 = vmatpush.bf16.msra.mxu2 %v8795_v7  ;;  %8762 = vmatmul.msk.bf16.vlgmr.msra.gmra.mxu3 %vm2068_vm5, %v4768_v47  ;;  %v8800_v7 = vld [vmem:[#allocation2 + $0x940] sm:$0xf]  ;;  %v8893_v24 = vor.u32 %v10131_v28, %v8892_v35  ;;  %v8859_v53 = vor.u32 %v10123_v27, %v8858_v30  ;;  %v8886_v50 = vld [vmem:[#allocation2 + $0x9e8] sm:$0xf0]  ;;  %v10118_v11 = vld [vmem:[#allocation2 + $0x994] sm:$0xf] }
 0x5d2   :  { %4979 = vmatpush.bf16.msrb.mxu3 %v8825_v1  ;;  %8763 = vmatmul.msk.bf16.vlgmr.msra.gmra.mxu0 %vm2068_vm5, %v4768_v47  ;;  %v8771_v1 = vor.u32 %v10100_v2, %v8768_v21  ;;  %v8844_v2 = vld [vmem:[#allocation2 + $0x998] sm:$0xf0]  ;;  %v8876_v21 = vld [vmem:[#allocation2 + $0x9d0] sm:$0xf]  ;;  %v10127_v38 = vld [vmem:[#allocation2 + $0x9d4] sm:$0xf0]  ;;  %v8889_v20 = vor.u32 %v10128_v3, %v8886_v50 }
 0x5d3   :  { %4992 = vmatpush.bf16.msrb.mxu0 %v8829_v29  ;;  %v8894_v29 = vld [vmem:[#allocation2 + $0x9f8] sm:$0xf0]  ;;  %v4931_v56 = vrot.slane %v12861_v62, 1  ;;  %v8877_v37 = vor.u32 %v10127_v38, %v8876_v21  ;;  %v8836_v43 = vld [vmem:[#allocation2 + $0x988] sm:$0xf0] }
 0x5d4   :  { %4898 = vmatpush.bf16.msra.mxu1 %v8783_v60  ;;  %v8897_v47 = vor.u32 %v10130_v18, %v8894_v29  ;;  %v10129_v60 = vld [vmem:[#allocation2 + $0x9e4] sm:$0xf0]  ;;  %v8868_v49 = vld [vmem:[#allocation2 + $0x9c0] sm:$0xf]  ;;  %v8928_v35 = vld [vmem:[#allocation2 + $0xa38] sm:$0xf0] }
 0x5d5   :  { %4911 = vmatpush.bf16.msra.mxu2 %v8787_v57  ;;  %v8801_v57 = vor.u32 %v10109_v44, %v8800_v7  ;;  %v10126_v7 = vld [vmem:[#allocation2 + $0x9d4] sm:$0xf]  ;;  %v8847_v44 = vor.u32 %v10118_v11, %v8844_v2  ;;  %v10125_v8 = vld [vmem:[#allocation2 + $0x9c4] sm:$0xf0]  ;;  %v8960_v28 = vld [vmem:[#allocation2 + $0xa70] sm:$0xf] }
 0x5d6   :  { %4980 = vmatpush.bf16.msrb.mxu3 %v8817_v54  ;;  %v8884_v54 = vld [vmem:[#allocation2 + $0x9e0] sm:$0xf]  ;;  %v10147_v30 = vld [vmem:[#allocation2 + $0xa74] sm:$0xf0]  ;;  %v8869_v45 = vor.u32 %v10125_v8, %v8868_v49  ;;  %v10145_v3 = vld [vmem:[#allocation2 + $0xa64] sm:$0xf0] }
 0x5d7   :  { %4993 = vmatpush.bf16.msrb.mxu0 %v8821_v0  ;;  %v8850_v0 = vld [vmem:[#allocation2 + $0x9a0] sm:$0xf]  ;;  %v8885_v10 = vor.u32 %v10129_v60, %v8884_v54  ;;  %v8961_v54 = vor.u32 %v10147_v30, %v8960_v28  ;;  %v10146_v60 = vld [vmem:[#allocation2 + $0xa74] sm:$0xf]  ;;  %v10143_v49 = vld [vmem:[#allocation2 + $0xa54] sm:$0xf0] }
 0x5d8   :  { %4899 = vmatpush.bf16.msra.mxu1 %v8775_v61  ;;  %v10119_v61 = vld [vmem:[#allocation2 + $0x994] sm:$0xf0]  ;;  %v8834_v29 = vld [vmem:[#allocation2 + $0x980] sm:$0xf]  ;;  %v8910_v8 = vld [vmem:[#allocation2 + $0xa10] sm:$0xf] }
 0x5d9   :  { %4912 = vmatpush.bf16.msra.mxu2 %v8779_v25  ;;  %v10121_v25 = vld [vmem:[#allocation2 + $0x9a4] sm:$0xf0]  ;;  %v8918_v38 = vld [vmem:[#allocation2 + $0xa20] sm:$0xf]  ;;  %v8946_v28 = vld [vmem:[#allocation2 + $0xa58] sm:$0xf0] }
 0x5da   :  { %4981 = vmatpush.bf16.msrb.mxu3 %v8809_v19  ;;  %v8851_v63 = vor.u32 %v10121_v25, %v8850_v0  ;;  %v8842_v19 = vld [vmem:[#allocation2 + $0x990] sm:$0xf]  ;;  %v10136_v0 = vld [vmem:[#allocation2 + $0xa24] sm:$0xf]  ;;  %v8920_v25 = vld [vmem:[#allocation2 + $0xa28] sm:$0xf0] }
 0x5db   :  { %4994 = vmatpush.bf16.msrb.mxu0 %v8813_v40  ;;  %v8878_v40 = vld [vmem:[#allocation2 + $0x9d8] sm:$0xf0]  ;;  %v8843_v27 = vor.u32 %v10119_v61, %v8842_v19  ;;  %v10144_v19 = vld [vmem:[#allocation2 + $0xa64] sm:$0xf]  ;;  %v8954_v61 = vld [vmem:[#allocation2 + $0xa68] sm:$0xf0] }
 0x5dc   :  { %4900 = vmatpush.bf16.msra.mxu1 %v8767_v36  ;;  %v8881_v18 = vor.u32 %v10126_v7, %v8878_v40  ;;  %v10124_v36 = vld [vmem:[#allocation2 + $0x9c4] sm:$0xf]  ;;  %v5012_v7 = vrot.slane %v12861_v62, 2  ;;  %v5093_v30 = vrot.slane %v12861_v62, 3 }
 0x5dd   :  { %4913 = vmatpush.bf16.msra.mxu2 %v8771_v1  ;;  %v10116_v1 = vld [vmem:[#allocation2 + $0x984] sm:$0xf] }
 0x5de   :  { %4982 = vmatpush.bf16.msrb.mxu3 %v8801_v57  ;;  %v10117_v57 = vld [vmem:[#allocation2 + $0x984] sm:$0xf0]  ;;  %v8839_v32 = vor.u32 %v10116_v1, %v8836_v43  ;;  %v8957_v1 = vor.u32 %v10144_v19, %v8954_v61  ;;  %v8944_v43 = vld [vmem:[#allocation2 + $0xa50] sm:$0xf]  ;;  %v8988_v19 = vld [vmem:[#allocation2 + $0xaa8] sm:$0xf0] }
 0x5df   :  { %4995 = vmatpush.bf16.msrb.mxu0 %v8805_v5  ;;  %8796 = vmatmul.msk.bf16.vlgmr.msra.gmra.mxu1 %vm2068_vm5, %v12861_v62  ;;  %v8870_v5 = vld [vmem:[#allocation2 + $0x9c8] sm:$0xf0]  ;;  %v8835_v50 = vor.u32 %v10117_v57, %v8834_v29  ;;  %v8945_v29 = vor.u32 %v10143_v49, %v8944_v43  ;;  %v10160_v43 = vld [vmem:[#allocation2 + $0xae4] sm:$0xf] }
 0x5e0   :  { %5060 = vmatpush.bf16.msrb.mxu1 %v8859_v53  ;;  %8797 = vmatmul.msk.bf16.vlgmr.msra.gmra.mxu2 %vm2068_vm5, %v12861_v62  ;;  %v10139_v53 = vld [vmem:[#allocation2 + $0xa34] sm:$0xf0]  ;;  %v8873_v11 = vor.u32 %v10124_v36, %v8870_v5  ;;  %v8904_v57 = vld [vmem:[#allocation2 + $0xa08] sm:$0xf0]  ;;  %v8936_v36 = vld [vmem:[#allocation2 + $0xa40] sm:$0xf] }
 0x5e1   :  { %5073 = vmatpush.bf16.msrb.mxu2 %v8863_v42  ;;  %v10138_v42 = vld [vmem:[#allocation2 + $0xa34] sm:$0xf]  ;;  %8830 = vmatmul.msk.bf16.vlgmr.msrb.gmra.mxu3 %vm2068_vm5, %v4931_v56  ;;  %v8996_v62 = vld [vmem:[#allocation2 + $0xab8] sm:$0xf0]  ;;  %v9022_v49 = vld [vmem:[#allocation2 + $0xae8] sm:$0xf0] }
 0x5e2   :  { %5141 = vmatpush.bf16.msra.mxu3 %v8893_v24  ;;  %8831 = vmatmul.msk.bf16.vlgmr.msrb.gmra.mxu0 %vm2068_vm5, %v4931_v56  ;;  %v8926_v24 = vld [vmem:[#allocation2 + $0xa30] sm:$0xf]  ;;  %v8923_v56 = vor.u32 %v10136_v0, %v8920_v25  ;;  %v10163_v0 = vld [vmem:[#allocation2 + $0xaf4] sm:$0xf0]  ;;  %v10148_v48 = vld [vmem:[#allocation2 + $0xa84] sm:$0xf] }
 0x5e3   :  { %5154 = vmatpush.bf16.msra.mxu0 %v8897_v47  ;;  %v8931_v47 = vor.u32 %v10138_v42, %v8928_v35  ;;  %v8927_v2 = vor.u32 %v10139_v53, %v8926_v24  ;;  %v10135_v42 = vld [vmem:[#allocation2 + $0xa14] sm:$0xf0]  ;;  %v10142_v35 = vld [vmem:[#allocation2 + $0xa54] sm:$0xf]  ;;  %v8902_v24 = vld [vmem:[#allocation2 + $0xa00] sm:$0xf] }
 0x5e4   :  { %5061 = vmatpush.bf16.msrb.mxu1 %v8851_v63  ;;  %v8949_v5 = vor.u32 %v10142_v35, %v8946_v28  ;;  %v10133_v53 = vld [vmem:[#allocation2 + $0xa04] sm:$0xf0]  ;;  %v8994_v25 = vld [vmem:[#allocation2 + $0xab0] sm:$0xf]  ;;  %v12879_v35 = vpack.c.bf16 %v1934_v31, %v1934_v31 }
 0x5e5   :  { %5074 = vmatpush.bf16.msrb.mxu2 %v8855_v52  ;;  %v8962_v52 = vld [vmem:[#allocation2 + $0xa78] sm:$0xf0] }
 0x5e6   :  { %5142 = vmatpush.bf16.msra.mxu3 %v8885_v10  ;;  %v8952_v10 = vld [vmem:[#allocation2 + $0xa60] sm:$0xf]  ;;  %v8965_v21 = vor.u32 %v10146_v60, %v8962_v52  ;;  %v10154_v60 = vld [vmem:[#allocation2 + $0xab4] sm:$0xf]  ;;  %v9028_v52 = vld [vmem:[#allocation2 + $0xaf0] sm:$0xf] }
 0x5e7   :  { %5155 = vmatpush.bf16.msra.mxu0 %v8889_v20  ;;  %v8953_v63 = vor.u32 %v10145_v3, %v8952_v10  ;;  %v10137_v20 = vld [vmem:[#allocation2 + $0xa24] sm:$0xf0] }
 0x5e8   :  { %5062 = vmatpush.bf16.msrb.mxu1 %v8843_v27  ;;  %v8919_v40 = vor.u32 %v10137_v20, %v8918_v38  ;;  %v10132_v27 = vld [vmem:[#allocation2 + $0xa04] sm:$0xf] }
 0x5e9   :  { %5075 = vmatpush.bf16.msrb.mxu2 %v8847_v44  ;;  %v10134_v44 = vld [vmem:[#allocation2 + $0xa14] sm:$0xf]  ;;  %v8907_v10 = vor.u32 %v10132_v27, %v8904_v57  ;;  %v10152_v20 = vld [vmem:[#allocation2 + $0xaa4] sm:$0xf]  ;;  %v10159_v57 = vld [vmem:[#allocation2 + $0xad4] sm:$0xf0] }
 0x5ea   :  { %5143 = vmatpush.bf16.msra.mxu3 %v8877_v37  ;;  %v8912_v37 = vld [vmem:[#allocation2 + $0xa18] sm:$0xf0]  ;;  %v10150_v27 = vld [vmem:[#allocation2 + $0xa94] sm:$0xf] }
 0x5eb   :  { %5156 = vmatpush.bf16.msra.mxu0 %v8881_v18  ;;  %v8915_v18 = vor.u32 %v10134_v44, %v8912_v37  ;;  %v9020_v44 = vld [vmem:[#allocation2 + $0xae0] sm:$0xf]  ;;  %v10161_v37 = vld [vmem:[#allocation2 + $0xae4] sm:$0xf0] }
 0x5ec   :  { %5063 = vmatpush.bf16.msrb.mxu1 %v8835_v50  ;;  %v10155_v50 = vld [vmem:[#allocation2 + $0xab4] sm:$0xf0] }
 0x5ed   :  { %5076 = vmatpush.bf16.msrb.mxu2 %v8839_v32  ;;  %v10141_v32 = vld [vmem:[#allocation2 + $0xa44] sm:$0xf0]  ;;  %v8995_v61 = vor.u32 %v10155_v50, %v8994_v25  ;;  %v10170_v50 = vld [vmem:[#allocation2 + $0xb34] sm:$0xf] }
 0x5ee   :  { %5144 = vmatpush.bf16.msra.mxu3 %v8869_v45  ;;  %v8911_v45 = vor.u32 %v10135_v42, %v8910_v8  ;;  %v8937_v3 = vor.u32 %v10141_v32, %v8936_v36  ;;  %v8991_v8 = vor.u32 %v10152_v20, %v8988_v19  ;;  %v9021_v42 = vor.u32 %v10161_v37, %v9020_v44  ;;  %v8978_v36 = vld [vmem:[#allocation2 + $0xa90] sm:$0xf]  ;;  %v10151_v32 = vld [vmem:[#allocation2 + $0xa94] sm:$0xf0]  ;;  %v10149_v25 = vld [vmem:[#allocation2 + $0xa84] sm:$0xf0] }
 0x5ef   :  { %5157 = vmatpush.bf16.msra.mxu0 %v8873_v11  ;;  %8864 = vmatmul.msk.bf16.vlgmr.msrb.gmra.mxu1 %vm2068_vm5, %v5012_v7  ;;  %v10162_v11 = vld [vmem:[#allocation2 + $0xaf4] sm:$0xf]  ;;  %v10171_v20 = vld [vmem:[#allocation2 + $0xb34] sm:$0xf0] }
 0x5f0   :  { %5222 = vmatpush.bf16.msra.mxu1 %v8927_v2  ;;  %8865 = vmatmul.msk.bf16.vlgmr.msrb.gmra.mxu2 %vm2068_vm5, %v5012_v7  ;;  %v9030_v2 = vld [vmem:[#allocation2 + $0xaf8] sm:$0xf0]  ;;  %v10178_v19 = vld [vmem:[#allocation2 + $0xb74] sm:$0xf] }
 0x5f1   :  { %5235 = vmatpush.bf16.msra.mxu2 %v8931_v47  ;;  %v10140_v47 = vld [vmem:[#allocation2 + $0xa44] sm:$0xf]  ;;  %8898 = vmatmul.msk.bf16.vlgmr.msra.gmra.mxu3 %vm2068_vm5, %v5093_v30  ;;  %v9033_v7 = vor.u32 %v10162_v11, %v9030_v2  ;;  %v9064_v11 = vld [vmem:[#allocation2 + $0xb38] sm:$0xf0]  ;;  %v9096_v2 = vld [vmem:[#allocation2 + $0xb70] sm:$0xf] }
 0x5f2   :  { %5304 = vmatpush.bf16.msrb.mxu3 %v8961_v54  ;;  %v8938_v54 = vld [vmem:[#allocation2 + $0xa48] sm:$0xf0]  ;;  %8899 = vmatmul.msk.bf16.vlgmr.msra.gmra.mxu0 %vm2068_vm5, %v5093_v30  ;;  %v9025_v30 = vor.u32 %v10160_v43, %v9022_v49  ;;  %v9067_v37 = vor.u32 %v10170_v50, %v9064_v11  ;;  %v9072_v50 = vld [vmem:[#allocation2 + $0xb40] sm:$0xf]  ;;  %v10173_v11 = vld [vmem:[#allocation2 + $0xb44] sm:$0xf0] }
 0x5f3   :  { %5317 = vmatpush.bf16.msrb.mxu0 %v8965_v21  ;;  %v8903_v21 = vor.u32 %v10133_v53, %v8902_v24  ;;  %v8941_v38 = vor.u32 %v10140_v47, %v8938_v54  ;;  %v5256_v24 = vrot.slane %v12879_v35, 1  ;;  %v8972_v47 = vld [vmem:[#allocation2 + $0xa88] sm:$0xf0]  ;;  %v9004_v54 = vld [vmem:[#allocation2 + $0xac0] sm:$0xf] }
 0x5f4   :  { %5223 = vmatpush.bf16.msra.mxu1 %v8919_v40  ;;  %v8986_v40 = vld [vmem:[#allocation2 + $0xaa0] sm:$0xf]  ;;  %v9056_v43 = vld [vmem:[#allocation2 + $0xb28] sm:$0xf0] }
 0x5f5   :  { %5236 = vmatpush.bf16.msra.mxu2 %v8923_v56  ;;  %v8999_v56 = vor.u32 %v10154_v60, %v8996_v62  ;;  %v10157_v60 = vld [vmem:[#allocation2 + $0xac4] sm:$0xf0]  ;;  %v8979_v62 = vor.u32 %v10151_v32, %v8978_v36 }
 0x5f6   :  { %5305 = vmatpush.bf16.msrb.mxu3 %v8953_v63  ;;  %v9029_v63 = vor.u32 %v10163_v0, %v9028_v52  ;;  %v8970_v0 = vld [vmem:[#allocation2 + $0xa80] sm:$0xf] }
 0x5f7   :  { %5318 = vmatpush.bf16.msrb.mxu0 %v8957_v1  ;;  %v10153_v1 = vld [vmem:[#allocation2 + $0xaa4] sm:$0xf0] }
 0x5f8   :  { %5224 = vmatpush.bf16.msra.mxu1 %v8911_v45  ;;  %v8987_v28 = vor.u32 %v10153_v1, %v8986_v40  ;;  %v10158_v45 = vld [vmem:[#allocation2 + $0xad4] sm:$0xf]  ;;  %v10168_v1 = vld [vmem:[#allocation2 + $0xb24] sm:$0xf] }
 0x5f9   :  { %5237 = vmatpush.bf16.msra.mxu2 %v8915_v18  ;;  %v8980_v18 = vld [vmem:[#allocation2 + $0xa98] sm:$0xf0] }
 0x5fa   :  { %5306 = vmatpush.bf16.msrb.mxu3 %v8945_v29  ;;  %v9012_v29 = vld [vmem:[#allocation2 + $0xad0] sm:$0xf]  ;;  %v8983_v31 = vor.u32 %v10150_v27, %v8980_v18  ;;  %v10169_v27 = vld [vmem:[#allocation2 + $0xb24] sm:$0xf0]  ;;  %v10176_v18 = vld [vmem:[#allocation2 + $0xb64] sm:$0xf] }
 0x5fb   :  { %5319 = vmatpush.bf16.msrb.mxu0 %v8949_v5  ;;  %v9014_v5 = vld [vmem:[#allocation2 + $0xad8] sm:$0xf0]  ;;  %v9013_v53 = vor.u32 %v10159_v57, %v9012_v29  ;;  %v9090_v29 = vld [vmem:[#allocation2 + $0xb68] sm:$0xf0]  ;;  %v9059_v57 = vor.u32 %v10168_v1, %v9056_v43  ;;  %v10187_v1 = vld [vmem:[#allocation2 + $0xbb4] sm:$0xf0] }
 0x5fc   :  { %5225 = vmatpush.bf16.msra.mxu1 %v8903_v21  ;;  %v9017_v52 = vor.u32 %v10158_v45, %v9014_v5  ;;  %v10179_v21 = vld [vmem:[#allocation2 + $0xb74] sm:$0xf0]  ;;  %v9093_v45 = vor.u32 %v10176_v18, %v9090_v29  ;;  %v5337_v5 = vrot.slane %v12879_v35, 2  ;;  %v10194_v43 = vld [vmem:[#allocation2 + $0xbf4] sm:$0xf] }
 0x5fd   :  { %5238 = vmatpush.bf16.msra.mxu2 %v8907_v10  ;;  %v10156_v10 = vld [vmem:[#allocation2 + $0xac4] sm:$0xf]  ;;  %v9097_v40 = vor.u32 %v10179_v21, %v9096_v2  ;;  %v9124_v18 = vld [vmem:[#allocation2 + $0xba8] sm:$0xf0] }
 0x5fe   :  { %5307 = vmatpush.bf16.msrb.mxu3 %v8937_v3  ;;  %v9006_v3 = vld [vmem:[#allocation2 + $0xac8] sm:$0xf0] }
 0x5ff   :  { %5320 = vmatpush.bf16.msrb.mxu0 %v8941_v38  ;;  %8932 = vmatmul.msk.bf16.vlgmr.msra.gmra.mxu1 %vm2068_vm5, %v12879_v35  ;;  %v9062_v38 = vld [vmem:[#allocation2 + $0xb30] sm:$0xf]  ;;  %v9009_v44 = vor.u32 %v10156_v10, %v9006_v3  ;;  %v9040_v3 = vld [vmem:[#allocation2 + $0xb08] sm:$0xf0] }
 0x600   :  { %5385 = vmatpush.bf16.msrb.mxu1 %v8995_v61  ;;  %8933 = vmatmul.msk.bf16.vlgmr.msra.gmra.mxu2 %vm2068_vm5, %v12879_v35  ;;  %v9098_v61 = vld [vmem:[#allocation2 + $0xb78] sm:$0xf0]  ;;  %v9063_v49 = vor.u32 %v10171_v20, %v9062_v38  ;;  %v9038_v38 = vld [vmem:[#allocation2 + $0xb00] sm:$0xf]  ;;  %v9074_v20 = vld [vmem:[#allocation2 + $0xb48] sm:$0xf0] }
 0x601   :  { %5398 = vmatpush.bf16.msrb.mxu2 %v8999_v56  ;;  %8966 = vmatmul.msk.bf16.vlgmr.msrb.gmra.mxu3 %vm2068_vm5, %v5256_v24  ;;  %v8975_v56 = vor.u32 %v10148_v48, %v8972_v47  ;;  %v9048_v48 = vld [vmem:[#allocation2 + $0xb18] sm:$0xf0]  ;;  %v9046_v47 = vld [vmem:[#allocation2 + $0xb10] sm:$0xf] }
 0x602   :  { %5466 = vmatpush.bf16.msra.mxu3 %v9029_v63  ;;  %8967 = vmatmul.msk.bf16.vlgmr.msrb.gmra.mxu0 %vm2068_vm5, %v5256_v24  ;;  %v9005_v63 = vor.u32 %v10157_v60, %v9004_v54  ;;  %v10166_v24 = vld [vmem:[#allocation2 + $0xb14] sm:$0xf]  ;;  %v10167_v54 = vld [vmem:[#allocation2 + $0xb14] sm:$0xf0] }
 0x603   :  { %5479 = vmatpush.bf16.msra.mxu0 %v9033_v7  ;;  %v8971_v7 = vor.u32 %v10149_v25, %v8970_v0  ;;  %v10174_v60 = vld [vmem:[#allocation2 + $0xb54] sm:$0xf]  ;;  %v10164_v0 = vld [vmem:[#allocation2 + $0xb04] sm:$0xf]  ;;  %v9051_v25 = vor.u32 %v10166_v24, %v9048_v48  ;;  %v9047_v2 = vor.u32 %v10167_v54, %v9046_v47  ;;  %v9158_v48 = vld [vmem:[#allocation2 + $0xbe8] sm:$0xf0] }
 0x604   :  { %5386 = vmatpush.bf16.msrb.mxu1 %v8987_v28  ;;  %v10177_v28 = vld [vmem:[#allocation2 + $0xb64] sm:$0xf0]  ;;  %v10192_v24 = vld [vmem:[#allocation2 + $0xbe4] sm:$0xf]  ;;  %v13493_v47 = vmax.f32 %v12588_v39, 0.0 }
 0x605   :  { %5399 = vmatpush.bf16.msrb.mxu2 %v8991_v8  ;;  %v9101_v8 = vor.u32 %v10178_v19, %v9098_v61  ;;  %v10186_v19 = vld [vmem:[#allocation2 + $0xbb4] sm:$0xf]  ;;  %v9164_v61 = vld [vmem:[#allocation2 + $0xbf0] sm:$0xf] }
 0x606   :  { %5467 = vmatpush.bf16.msra.mxu3 %v9021_v42  ;;  %v9088_v42 = vld [vmem:[#allocation2 + $0xb60] sm:$0xf]  ;;  %v5490_v54 = vpack.c.bf16 %v13493_v47, %v13493_v47 }
 0x607   :  { %5480 = vmatpush.bf16.msra.mxu0 %v9025_v30  ;;  %v9054_v30 = vld [vmem:[#allocation2 + $0xb20] sm:$0xf]  ;;  %v9089_v36 = vor.u32 %v10177_v28, %v9088_v42 }
 0x608   :  { %5387 = vmatpush.bf16.msrb.mxu1 %v8979_v62  ;;  %v9055_v32 = vor.u32 %v10169_v27, %v9054_v30  ;;  %v9082_v62 = vld [vmem:[#allocation2 + $0xb58] sm:$0xf0]  ;;  %v10184_v27 = vld [vmem:[#allocation2 + $0xba4] sm:$0xf] }
 0x609   :  { %5400 = vmatpush.bf16.msrb.mxu2 %v8983_v31  ;;  %v9080_v31 = vld [vmem:[#allocation2 + $0xb50] sm:$0xf]  ;;  %v9085_v21 = vor.u32 %v10174_v60, %v9082_v62  ;;  %v9161_v62 = vor.u32 %v10192_v24, %v9158_v48 }
 0x60a   :  { %5468 = vmatpush.bf16.msra.mxu3 %v9013_v53  ;;  %v10175_v53 = vld [vmem:[#allocation2 + $0xb54] sm:$0xf0] }
 0x60b   :  { %5481 = vmatpush.bf16.msra.mxu0 %v9017_v52  ;;  %v5418_v52 = vrot.slane %v12879_v35, 3  ;;  %v9081_v10 = vor.u32 %v10175_v53, %v9080_v31  ;;  %v9132_v35 = vld [vmem:[#allocation2 + $0xbb8] sm:$0xf0]  ;;  %v9127_v31 = vor.u32 %v10184_v27, %v9124_v18 }
 0x60c   :  { %5388 = vmatpush.bf16.msrb.mxu1 %v8971_v7  ;;  %v10195_v7 = vld [vmem:[#allocation2 + $0xbf4] sm:$0xf0]  ;;  %v9135_v28 = vor.u32 %v10186_v19, %v9132_v35  ;;  %v9140_v35 = vld [vmem:[#allocation2 + $0xbc0] sm:$0xf] }
 0x60d   :  { %5401 = vmatpush.bf16.msrb.mxu2 %v8975_v56  ;;  %v10165_v56 = vld [vmem:[#allocation2 + $0xb04] sm:$0xf0]  ;;  %v9165_v30 = vor.u32 %v10195_v7, %v9164_v61  ;;  %v9106_v7 = vld [vmem:[#allocation2 + $0xb80] sm:$0xf] }
 0x60e   :  { %5469 = vmatpush.bf16.msra.mxu3 %v9005_v63  ;;  %v10172_v63 = vld [vmem:[#allocation2 + $0xb44] sm:$0xf]  ;;  %v10189_v61 = vld [vmem:[#allocation2 + $0xbc4] sm:$0xf0] }
 0x60f   :  { %5482 = vmatpush.bf16.msra.mxu0 %v9009_v44  ;;  %9000 = vmatmul.msk.bf16.vlgmr.msrb.gmra.mxu1 %vm2068_vm5, %v5337_v5  ;;  %v9130_v44 = vld [vmem:[#allocation2 + $0xbb0] sm:$0xf]  ;;  %v9077_v42 = vor.u32 %v10172_v63, %v9074_v20  ;;  %v9108_v63 = vld [vmem:[#allocation2 + $0xb88] sm:$0xf0] }
 0x610   :  { %5547 = vmatpush.bf16.msra.mxu1 %v9063_v49  ;;  %9001 = vmatmul.msk.bf16.vlgmr.msrb.gmra.mxu2 %vm2068_vm5, %v5337_v5  ;;  %v9166_v49 = vld [vmem:[#allocation2 + $0xbf8] sm:$0xf0]  ;;  %v9131_v29 = vor.u32 %v10187_v1, %v9130_v44  ;;  %v10185_v5 = vld [vmem:[#allocation2 + $0xba4] sm:$0xf0] }
 0x611   :  { %5560 = vmatpush.bf16.msra.mxu2 %v9067_v37  ;;  %9034 = vmatmul.msk.bf16.vlgmr.msra.gmra.mxu3 %vm2068_vm5, %v5418_v52  ;;  %v9043_v37 = vor.u32 %v10164_v0, %v9040_v3  ;;  %v9116_v0 = vld [vmem:[#allocation2 + $0xb98] sm:$0xf0]  ;;  %v9114_v3 = vld [vmem:[#allocation2 + $0xb90] sm:$0xf]  ;;  %v10181_v44 = vld [vmem:[#allocation2 + $0xb84] sm:$0xf0] }
 0x612   :  { %5629 = vmatpush.bf16.msrb.mxu3 %v9097_v40  ;;  %9035 = vmatmul.msk.bf16.vlgmr.msra.gmra.mxu0 %vm2068_vm5, %v5418_v52  ;;  %v9073_v40 = vor.u32 %v10173_v11, %v9072_v50  ;;  %v10182_v52 = vld [vmem:[#allocation2 + $0xb94] sm:$0xf]  ;;  %v10183_v50 = vld [vmem:[#allocation2 + $0xb94] sm:$0xf0] }
 0x613   :  { %5642 = vmatpush.bf16.msrb.mxu0 %v9101_v8  ;;  %v9039_v8 = vor.u32 %v10165_v56, %v9038_v38  ;;  %v10190_v11 = vld [vmem:[#allocation2 + $0xbd4] sm:$0xf]  ;;  %v9119_v39 = vor.u32 %v10182_v52, %v9116_v0  ;;  %v10180_v56 = vld [vmem:[#allocation2 + $0xb84] sm:$0xf]  ;;  %v9115_v20 = vor.u32 %v10183_v50, %v9114_v3 }
 0x614   :  { %5548 = vmatpush.bf16.msra.mxu1 %v9055_v32  ;;  %v10193_v32 = vld [vmem:[#allocation2 + $0xbe4] sm:$0xf0]  ;;  %v9111_v1 = vor.u32 %v10180_v56, %v9108_v63 }
 0x615   :  { %5561 = vmatpush.bf16.msra.mxu2 %v9059_v57  ;;  %v9169_v57 = vor.u32 %v10194_v43, %v9166_v49  ;;  %v9141_v43 = vor.u32 %v10189_v61, %v9140_v35  ;;  %v9107_v49 = vor.u32 %v10181_v44, %v9106_v7 }
 0x616   :  { %5630 = vmatpush.bf16.msrb.mxu3 %v9089_v36  ;;  %v9156_v36 = vld [vmem:[#allocation2 + $0xbe0] sm:$0xf] }
 0x617   :  { %5643 = vmatpush.bf16.msrb.mxu0 %v9093_v45  ;;  %v9122_v45 = vld [vmem:[#allocation2 + $0xba0] sm:$0xf]  ;;  %v9157_v53 = vor.u32 %v10193_v32, %v9156_v36 }
 0x618   :  { %5549 = vmatpush.bf16.msra.mxu1 %v9047_v2  ;;  %v9123_v60 = vor.u32 %v10185_v5, %v9122_v45  ;;  %v9150_v2 = vld [vmem:[#allocation2 + $0xbd8] sm:$0xf0] }
 0x619   :  { %5562 = vmatpush.bf16.msra.mxu2 %v9051_v25  ;;  %v9148_v25 = vld [vmem:[#allocation2 + $0xbd0] sm:$0xf]  ;;  %v9153_v19 = vor.u32 %v10190_v11, %v9150_v2 }
 0x61a   :  { %5631 = vmatpush.bf16.msrb.mxu3 %v9081_v10  ;;  %v10191_v10 = vld [vmem:[#allocation2 + $0xbd4] sm:$0xf0] }
 0x61b   :  { %5644 = vmatpush.bf16.msrb.mxu0 %v9085_v21  ;;  %v5581_v21 = vrot.slane %v5490_v54, 1  ;;  %v9149_v38 = vor.u32 %v10191_v10, %v9148_v25 }
 0x61c   :  { %5550 = vmatpush.bf16.msra.mxu1 %v9039_v8 }
 0x61d   :  { %5563 = vmatpush.bf16.msra.mxu2 %v9043_v37  ;;  %v10188_v37 = vld [vmem:[#allocation2 + $0xbc4] sm:$0xf] }
 0x61e   :  { %5632 = vmatpush.bf16.msrb.mxu3 %v9073_v40  ;;  %v9142_v40 = vld [vmem:[#allocation2 + $0xbc8] sm:$0xf0] }
 0x61f   :  { %5645 = vmatpush.bf16.msrb.mxu0 %v9077_v42  ;;  %9068 = vmatmul.msk.bf16.vlgmr.msra.gmra.mxu1 %vm2068_vm5, %v5490_v54  ;;  %v9145_v8 = vor.u32 %v10188_v37, %v9142_v40  ;;  %v5662_v42 = vrot.slane %v5490_v54, 2 }
 0x620   :  { %5710 = vmatpush.bf16.msrb.mxu1 %v9131_v29  ;;  %9069 = vmatmul.msk.bf16.vlgmr.msra.gmra.mxu2 %vm2068_vm5, %v5490_v54 }
 0x621   :  { %5723 = vmatpush.bf16.msrb.mxu2 %v9135_v28  ;;  %9102 = vmatmul.msk.bf16.vlgmr.msrb.gmra.mxu3 %vm2068_vm5, %v5581_v21  ;;  %v5743_v28 = vrot.slane %v5490_v54, 3 }
 0x622   :  { %5791 = vmatpush.bf16.msra.mxu3 %v9165_v30  ;;  %9103 = vmatmul.msk.bf16.vlgmr.msrb.gmra.mxu0 %vm2068_vm5, %v5581_v21 }
 0x623   :  { %5804 = vmatpush.bf16.msra.mxu0 %v9169_v57 }
 0x624   :  { %5711 = vmatpush.bf16.msrb.mxu1 %v9123_v60 }
 0x625   :  { %5724 = vmatpush.bf16.msrb.mxu2 %v9127_v31 }
 0x626   :  { %5792 = vmatpush.bf16.msra.mxu3 %v9157_v53 }
 0x627   :  { %5805 = vmatpush.bf16.msra.mxu0 %v9161_v62 }
 0x628   :  { %5712 = vmatpush.bf16.msrb.mxu1 %v9115_v20 }
 0x629   :  { %5725 = vmatpush.bf16.msrb.mxu2 %v9119_v39 }
 0x62a   :  { %5793 = vmatpush.bf16.msra.mxu3 %v9149_v38 }
 0x62b   :  { %5806 = vmatpush.bf16.msra.mxu0 %v9153_v19 }
 0x62c   :  { %5713 = vmatpush.bf16.msrb.mxu1 %v9107_v49 }
 0x62d   :  { %5726 = vmatpush.bf16.msrb.mxu2 %v9111_v1 }
 0x62e   :  { %5794 = vmatpush.bf16.msra.mxu3 %v9141_v43 }
 0x62f   :  { %5807 = vmatpush.bf16.msra.mxu0 %v9145_v8  ;;  %9136 = vmatmul.msk.bf16.vlgmr.msrb.gmra.mxu1 %vm2068_vm5, %v5662_v42 }
 0x630   :  { %9137 = vmatmul.msk.bf16.vlgmr.msrb.gmra.mxu2 %vm2068_vm5, %v5662_v42 }
 0x631   :  { %9170 = vmatmul.msk.bf16.vlgmr.msra.gmra.mxu3 %vm2068_vm5, %v5743_v28 }
 0x632   :  { %9171 = vmatmul.msk.bf16.vlgmr.msra.gmra.mxu0 %vm2068_vm5, %v5743_v28 }
 0x63c   :  { %v4577_v30 = vpop.f32.mrf.mxu1 }
 0x63d   :  { %v4594_v19 = vadd.f32 %v4577_v30, %v12794_v13 }
 0x63f   :  { %v4672_v27 = vpop.f32.mrf.mxu0 }
 0x640   :  { %v4677_v61 = vadd.f32 %v4672_v27, %v12796_v58 }
 0x643   :  { %v4590_v18 = vpop.f32.mrf.mxu2 }
 0x644   :  { %v4659_v29 = vpop.f32.mrf.mxu3  ;;  %v4579_v57 = vpop.f32.mrf.mxu1  ;;  %v4595_v1 = vadd.f32 %v4590_v18, %v12800_v33 }
 0x645   :  { %v4676_v43 = vadd.f32 %v4659_v29, %v12802_v46 }
 0x647   :  { %v4674_v36 = vpop.f32.mrf.mxu0 }
 0x64b   :  { %v4592_v32 = vpop.f32.mrf.mxu2 }
 0x64c   :  { %v4661_v45 = vpop.f32.mrf.mxu3  ;;  %v4740_v5 = vpop.f32.mrf.mxu1 }
 0x64d   :  { %v4757_v58 = vadd.f32 %v4740_v5, %v12806_v9 }
 0x64f   :  { %v4834_v24 = vpop.f32.mrf.mxu0 }
 0x650   :  { %v4839_v36 = vadd.f32 %v4834_v24, %v12808_v34 }
 0x653   :  { %v4753_v48 = vpop.f32.mrf.mxu2 }
 0x654   :  { %v4821_v31 = vpop.f32.mrf.mxu3  ;;  %v4742_v53 = vpop.f32.mrf.mxu1  ;;  %v4758_v46 = vadd.f32 %v4753_v48, %v12812_v22 }
 0x655   :  { %v4838_v29 = vadd.f32 %v4821_v31, %v12814_v23 }
 0x657   :  { %v4836_v47 = vpop.f32.mrf.mxu0 }
 0x65b   :  { %v4755_v54 = vpop.f32.mrf.mxu2 }
 0x65c   :  { %v4823_v60 = vpop.f32.mrf.mxu3  ;;  %v4902_v62 = vpop.f32.mrf.mxu1 }
 0x65d   :  { %v4919_v34 = vadd.f32 %v4902_v62, %v12818_v17 }
 0x65f   :  { %v4997_v52 = vpop.f32.mrf.mxu0 }
 0x663   :  { %v4915_v0 = vpop.f32.mrf.mxu2 }
 0x664   :  { %v4984_v25 = vpop.f32.mrf.mxu3  ;;  %v4904_v10 = vpop.f32.mrf.mxu1  ;;  %v4920_v23 = vadd.f32 %v4915_v0, %v12824_v16 }
 0x665   :  { %v5001_v31 = vadd.f32 %v4984_v25, %v12826_v51 }
 0x667   :  { %v4999_v3 = vpop.f32.mrf.mxu0 }
 0x668   :  { %v5002_v3 = vadd.f32 %v4997_v52, %v12820_v55 }
 0x66b   :  { %v4917_v50 = vpop.f32.mrf.mxu2 }
 0x66c   :  { %v4986_v11 = vpop.f32.mrf.mxu3  ;;  %v5065_v2 = vpop.f32.mrf.mxu1 }
 0x66d   :  { %v5082_v55 = vadd.f32 %v5065_v2, %v12830_v14 }
 0x66f   :  { %v5159_v21 = vpop.f32.mrf.mxu0 }
 0x673   :  { %v5078_v39 = vpop.f32.mrf.mxu2 }
 0x674   :  { %v5146_v38 = vpop.f32.mrf.mxu3  ;;  %v5067_v56 = vpop.f32.mrf.mxu1  ;;  %v5083_v51 = vadd.f32 %v5078_v39, %v12836_v15 }
 0x675   :  { %v5163_v25 = vadd.f32 %v5146_v38, %v12838_v59 }
 0x677   :  { %v5161_v63 = vpop.f32.mrf.mxu0 }
 0x67b   :  { %v5080_v20 = vpop.f32.mrf.mxu2 }
 0x67c   :  { %v5148_v35 = vpop.f32.mrf.mxu3  ;;  %v5227_v7 = vpop.f32.mrf.mxu1 }
 0x67d   :  { %v12907_v44 = vadd.f32 %v5227_v7, %v4594_v19 }
 0x67f   :  { %v5322_v37 = vpop.f32.mrf.mxu0 }
 0x680   :  { %v12909_v40 = vadd.f32 %v5322_v37, %v4677_v61  ;;  %v5164_v61 = vadd.f32 %v5159_v21, %v12832_v6 }
 0x683   :  { %v5240_v49 = vpop.f32.mrf.mxu2 }
 0x684   :  { %v12913_v8 = vadd.f32 %v5240_v49, %v4595_v1  ;;  %v5309_v42 = vpop.f32.mrf.mxu3  ;;  %v5229_v13 = vpop.f32.mrf.mxu1 }
 0x685   :  { %v12915_v28 = vadd.f32 %v5309_v42, %v4676_v43 }
 0x687   :  { %v5324_v30 = vpop.f32.mrf.mxu0 }
 0x68b   :  { %v5242_v57 = vpop.f32.mrf.mxu2 }
 0x68c   :  { %v5311_v27 = vpop.f32.mrf.mxu3  ;;  %v5390_v32 = vpop.f32.mrf.mxu1 }
 0x68d   :  { %v12919_v45 = vadd.f32 %v5390_v32, %v4757_v58 }
 0x68f   :  { %v5484_v33 = vpop.f32.mrf.mxu0 }
 0x690   :  { %v12921_v18 = vadd.f32 %v5484_v33, %v4839_v36 }
 0x693   :  { %v5403_v53 = vpop.f32.mrf.mxu2 }
 0x694   :  { %v12925_v47 = vadd.f32 %v5403_v53, %v4758_v46  ;;  %v5471_v54 = vpop.f32.mrf.mxu3  ;;  %v5392_v9 = vpop.f32.mrf.mxu1 }
 0x695   :  { %v12927_v60 = vadd.f32 %v5471_v54, %v4838_v29 }
 0x697   :  { %v5486_v5 = vpop.f32.mrf.mxu0 }
 0x69b   :  { %v5405_v10 = vpop.f32.mrf.mxu2 }
 0x69c   :  { %v5473_v24 = vpop.f32.mrf.mxu3  ;;  %v5552_v50 = vpop.f32.mrf.mxu1 }
 0x69d   :  { %v12931_v11 = vadd.f32 %v5552_v50, %v4919_v34 }
 0x69f   :  { %v5647_v22 = vpop.f32.mrf.mxu0 }
 0x6a0   :  { %v12933_v48 = vadd.f32 %v5647_v22, %v5002_v3 }
 0x6a3   :  { %v5565_v56 = vpop.f32.mrf.mxu2 }
 0x6a4   :  { %v12937_v63 = vadd.f32 %v5565_v56, %v4920_v23  ;;  %v5634_v20 = vpop.f32.mrf.mxu3  ;;  %v5554_v17 = vpop.f32.mrf.mxu1 }
 0x6a5   :  { %v12939_v19 = vadd.f32 %v5634_v20, %v5001_v31 }
 0x6a7   :  { %v5649_v62 = vpop.f32.mrf.mxu0 }
 0x6ab   :  { %v5567_v35 = vpop.f32.mrf.mxu2 }
 0x6ac   :  { %v5636_v52 = vpop.f32.mrf.mxu3  ;;  %v5715_v7 = vpop.f32.mrf.mxu1 }
 0x6ad   :  { %v12943_v37 = vadd.f32 %v5715_v7, %v5082_v55 }
 0x6af   :  { %v5809_v16 = vpop.f32.mrf.mxu0 }
 0x6b0   :  { %v12945_v0 = vadd.f32 %v5809_v16, %v5164_v61 }
 0x6b3   :  { %v5728_v1 = vpop.f32.mrf.mxu2 }
 0x6b4   :  { %v12949_v43 = vadd.f32 %v5728_v1, %v5083_v51  ;;  %v5796_v49 = vpop.f32.mrf.mxu3  ;;  %v5717_v14 = vpop.f32.mrf.mxu1 }
 0x6b5   :  { %v12951_v42 = vadd.f32 %v5796_v49, %v5163_v25 }
 0x6b7   :  { %v5811_v2 = vpop.f32.mrf.mxu0 }
 0x6bb   :  { %v5730_v13 = vpop.f32.mrf.mxu2 }
 0x6bc   :  { %v5798_v6 = vpop.f32.mrf.mxu3 }
 0x6bd   :  { %10972 = dma.done.wait [#allocation3 + $0x3], 16384 }
 0x6be   :  { %10973 = vsyncadd [#allocation3 + $0x3], 4294950912  ;;  %v9198_v21 = vld [vmem:[#allocation2 + $0xc30] sm:$0xf]  ;;  %v10203_v30 = vld [vmem:[#allocation2 + $0xc34] sm:$0xf0] }
 0x6bf   :  { %v10202_v57 = vld [vmem:[#allocation2 + $0xc34] sm:$0xf]  ;;  %v9199_v58 = vor.u32 %v10203_v30, %v9198_v21  ;;  %v9200_v27 = vld [vmem:[#allocation2 + $0xc38] sm:$0xf0]  ;;  %v9232_v15 = vld [vmem:[#allocation2 + $0xc70] sm:$0xf] }
 0x6c0   :  { %v10211_v39 = vld [vmem:[#allocation2 + $0xc74] sm:$0xf0]  ;;  %v9203_v59 = vor.u32 %v10202_v57, %v9200_v27  ;;  %v10210_v36 = vld [vmem:[#allocation2 + $0xc74] sm:$0xf]  ;;  %v9234_v32 = vld [vmem:[#allocation2 + $0xc78] sm:$0xf0] }
 0x6c1   :  { %v9233_v38 = vor.u32 %v10211_v39, %v9232_v15  ;;  %v9190_v33 = vld [vmem:[#allocation2 + $0xc20] sm:$0xf]  ;;  %5873 = vmatpush.bf16.msra.mxu1 %v9199_v58  ;;  %v9237_v46 = vor.u32 %v10210_v36, %v9234_v32  ;;  %v10201_v29 = vld [vmem:[#allocation2 + $0xc24] sm:$0xf0]  ;;  %v10200_v53 = vld [vmem:[#allocation2 + $0xc24] sm:$0xf] }
 0x6c2   :  { %v9192_v54 = vld [vmem:[#allocation2 + $0xc28] sm:$0xf0]  ;;  %5886 = vmatpush.bf16.msra.mxu2 %v9203_v59  ;;  %v9191_v9 = vor.u32 %v10201_v29, %v9190_v33  ;;  %v9224_v10 = vld [vmem:[#allocation2 + $0xc60] sm:$0xf]  ;;  %v10209_v34 = vld [vmem:[#allocation2 + $0xc64] sm:$0xf0] }
 0x6c3   :  { %5955 = vmatpush.bf16.msrb.mxu3 %v9233_v38  ;;  %v9195_v5 = vor.u32 %v10200_v53, %v9192_v54  ;;  %v10208_v24 = vld [vmem:[#allocation2 + $0xc64] sm:$0xf]  ;;  %5968 = vmatpush.bf16.msrb.mxu0 %v9237_v46  ;;  %v9225_v3 = vor.u32 %v10209_v34, %v9224_v10  ;;  %v9226_v50 = vld [vmem:[#allocation2 + $0xc68] sm:$0xf0]  ;;  %v9182_v22 = vld [vmem:[#allocation2 + $0xc10] sm:$0xf] }
 0x6c4   :  { %v10199_v23 = vld [vmem:[#allocation2 + $0xc14] sm:$0xf0]  ;;  %v9229_v31 = vor.u32 %v10208_v24, %v9226_v50  ;;  %v10198_v56 = vld [vmem:[#allocation2 + $0xc14] sm:$0xf]  ;;  %v9184_v20 = vld [vmem:[#allocation2 + $0xc18] sm:$0xf0] }
 0x6c5   :  { %v9216_v17 = vld [vmem:[#allocation2 + $0xc50] sm:$0xf]  ;;  %5874 = vmatpush.bf16.msra.mxu1 %v9191_v9  ;;  %v9183_v62 = vor.u32 %v10199_v23, %v9182_v22  ;;  %v10207_v35 = vld [vmem:[#allocation2 + $0xc54] sm:$0xf0]  ;;  %v10206_v55 = vld [vmem:[#allocation2 + $0xc54] sm:$0xf]  ;;  %v9187_v61 = vor.u32 %v10198_v56, %v9184_v20 }
 0x6c6   :  { %v9218_v52 = vld [vmem:[#allocation2 + $0xc58] sm:$0xf0]  ;;  %5887 = vmatpush.bf16.msra.mxu2 %v9195_v5  ;;  %v9217_v7 = vor.u32 %v10207_v35, %v9216_v17  ;;  %v9174_v16 = vld [vmem:[#allocation2 + $0xc00] sm:$0xf]  ;;  %v10197_v51 = vld [vmem:[#allocation2 + $0xc04] sm:$0xf0] }
 0x6c7   :  { %5956 = vmatpush.bf16.msrb.mxu3 %v9225_v3  ;;  %v10196_v25 = vld [vmem:[#allocation2 + $0xc04] sm:$0xf]  ;;  %5969 = vmatpush.bf16.msrb.mxu0 %v9229_v31  ;;  %v9221_v1 = vor.u32 %v10206_v55, %v9218_v52  ;;  %v9176_v49 = vld [vmem:[#allocation2 + $0xc08] sm:$0xf0]  ;;  %v9208_v14 = vld [vmem:[#allocation2 + $0xc40] sm:$0xf]  ;;  %v9175_v30 = vor.u32 %v10197_v51, %v9174_v16 }
 0x6c8   :  { %v10205_v2 = vld [vmem:[#allocation2 + $0xc44] sm:$0xf0]  ;;  %v10204_v13 = vld [vmem:[#allocation2 + $0xc44] sm:$0xf]  ;;  %v9210_v6 = vld [vmem:[#allocation2 + $0xc48] sm:$0xf0]  ;;  %v9179_v15 = vor.u32 %v10196_v25, %v9176_v49 }
 0x6c9   :  { %v10218_v21 = vld [vmem:[#allocation2 + $0xcb4] sm:$0xf]  ;;  %5875 = vmatpush.bf16.msra.mxu1 %v9183_v62  ;;  %v13494_v57 = vmax.f32 %v12595_v12, 0.0  ;;  %v9268_v27 = vld [vmem:[#allocation2 + $0xcb8] sm:$0xf0]  ;;  %v9209_v39 = vor.u32 %v10205_v2, %v9208_v14  ;;  %v9213_v36 = vor.u32 %v10204_v13, %v9210_v6  ;;  %s10989_s6 = smov [#allocation16]  }
 0x6ca   :  { %5888 = vmatpush.bf16.msra.mxu2 %v9187_v61  ;;  %v9300_v59 = vld [vmem:[#allocation2 + $0xcf0] sm:$0xf]  ;;  %v10227_v38 = vld [vmem:[#allocation2 + $0xcf4] sm:$0xf0]  ;;  %v9271_v32 = vor.u32 %v10218_v21, %v9268_v27  ;;  %v10226_v29 = vld [vmem:[#allocation2 + $0xcf4] sm:$0xf] }
 0x6cb   :  { %v12956_v58 = vpack.c.bf16 %v13494_v57, %v13494_v57  ;;  %5957 = vmatpush.bf16.msrb.mxu3 %v9217_v7  ;;  %5970 = vmatpush.bf16.msrb.mxu0 %v9221_v1  ;;  %v9266_v33 = vld [vmem:[#allocation2 + $0xcb0] sm:$0xf]  ;;  %v10219_v46 = vld [vmem:[#allocation2 + $0xcb4] sm:$0xf0]  ;;  %v9301_v53 = vor.u32 %v10227_v38, %v9300_v59  ;;  %v9302_v54 = vld [vmem:[#allocation2 + $0xcf8] sm:$0xf0] }
 0x6cc   :  { %v10216_v9 = vld [vmem:[#allocation2 + $0xca4] sm:$0xf]  ;;  %v9260_v12 = vld [vmem:[#allocation2 + $0xca8] sm:$0xf0]  ;;  %v9292_v10 = vld [vmem:[#allocation2 + $0xce0] sm:$0xf]  ;;  %v9267_v24 = vor.u32 %v10219_v46, %v9266_v33  ;;  %v9305_v3 = vor.u32 %v10226_v29, %v9302_v54 }
 0x6cd   :  { %5876 = vmatpush.bf16.msra.mxu1 %v9175_v30  ;;  %v5907_v5 = vrot.slane %v12956_v58, 1  ;;  %v10225_v34 = vld [vmem:[#allocation2 + $0xce4] sm:$0xf0]  ;;  %v9263_v50 = vor.u32 %v10216_v9, %v9260_v12  ;;  %v9258_v22 = vld [vmem:[#allocation2 + $0xca0] sm:$0xf]  ;;  %s7306_s8 = sshll.u32 %s10989_s6, 4  ;;  %s7307_s8 = int_to_ptr.vmem [resolvable:$true] %s7306_s8 }
 0x6ce   :  { %5889 = vmatpush.bf16.msra.mxu2 %v9179_v15  ;;  %v10217_v23 = vld [vmem:[#allocation2 + $0xca4] sm:$0xf0]  ;;  %v10224_v31 = vld [vmem:[#allocation2 + $0xce4] sm:$0xf]  ;;  %v9293_v56 = vor.u32 %v10225_v34, %v9292_v10  ;;  %v9294_v20 = vld [vmem:[#allocation2 + $0xce8] sm:$0xf0] }
 0x6cf   :  { %5958 = vmatpush.bf16.msrb.mxu3 %v9209_v39  ;;  %5971 = vmatpush.bf16.msrb.mxu0 %v9213_v36  ;;  %v10214_v17 = vld [vmem:[#allocation2 + $0xc94] sm:$0xf]  ;;  %v9252_v62 = vld [vmem:[#allocation2 + $0xc98] sm:$0xf0]  ;;  %v9284_v35 = vld [vmem:[#allocation2 + $0xcd0] sm:$0xf]  ;;  %v9259_v52 = vor.u32 %v10217_v23, %v9258_v22  ;;  %v9297_v7 = vor.u32 %v10224_v31, %v9294_v20 }
 0x6d0   :  { %9204 = vmatmul.msk.bf16.vlgmr.msra.gmra.mxu1 %vm2068_vm5, %v12956_v58  ;;  %v10223_v55 = vld [vmem:[#allocation2 + $0xcd4] sm:$0xf0]  ;;  %v9250_v61 = vld [vmem:[#allocation2 + $0xc90] sm:$0xf]  ;;  %v9255_v16 = vor.u32 %v10214_v17, %v9252_v62  ;;  %v10222_v25 = vld [vmem:[#allocation2 + $0xcd4] sm:$0xf] }
 0x6d1   :  { %9205 = vmatmul.msk.bf16.vlgmr.msra.gmra.mxu2 %vm2068_vm5, %v12956_v58  ;;  %6036 = vmatpush.bf16.msrb.mxu1 %v9267_v24  ;;  %v10215_v51 = vld [vmem:[#allocation2 + $0xc94] sm:$0xf0]  ;;  %v9286_v1 = vld [vmem:[#allocation2 + $0xcd8] sm:$0xf0]  ;;  %v9285_v49 = vor.u32 %v10223_v55, %v9284_v35  ;;  %v10212_v14 = vld [vmem:[#allocation2 + $0xc84] sm:$0xf] }
 0x6d2   :  { %6049 = vmatpush.bf16.msrb.mxu2 %v9271_v32  ;;  %9238 = vmatmul.msk.bf16.vlgmr.msrb.gmra.mxu3 %vm2068_vm5, %v5907_v5  ;;  %v9244_v2 = vld [vmem:[#allocation2 + $0xc88] sm:$0xf0]  ;;  %v9276_v13 = vld [vmem:[#allocation2 + $0xcc0] sm:$0xf]  ;;  %v10221_v6 = vld [vmem:[#allocation2 + $0xcc4] sm:$0xf0]  ;;  %v9251_v57 = vor.u32 %v10215_v51, %v9250_v61  ;;  %v9289_v59 = vor.u32 %v10222_v25, %v9286_v1 }
 0x6d3   :  { %6117 = vmatpush.bf16.msra.mxu3 %v9301_v53  ;;  %9239 = vmatmul.msk.bf16.vlgmr.msrb.gmra.mxu0 %vm2068_vm5, %v5907_v5  ;;  %v10234_v21 = vld [vmem:[#allocation2 + $0xd34] sm:$0xf]  ;;  %v9336_v30 = vld [vmem:[#allocation2 + $0xd38] sm:$0xf0]  ;;  %v9242_v27 = vld [vmem:[#allocation2 + $0xc80] sm:$0xf]  ;;  %v9247_v38 = vor.u32 %v10212_v14, %v9244_v2  ;;  %v9277_v46 = vor.u32 %v10221_v6, %v9276_v13 }
 0x6d4   :  { %6130 = vmatpush.bf16.msra.mxu0 %v9305_v3  ;;  %v9368_v15 = vld [vmem:[#allocation2 + $0xd70] sm:$0xf]  ;;  %v10243_v39 = vld [vmem:[#allocation2 + $0xd74] sm:$0xf0]  ;;  %v10213_v36 = vld [vmem:[#allocation2 + $0xc84] sm:$0xf0]  ;;  %v9339_v29 = vor.u32 %v10234_v21, %v9336_v30 }
 0x6d5   :  { %6037 = vmatpush.bf16.msrb.mxu1 %v9259_v52  ;;  %v10220_v32 = vld [vmem:[#allocation2 + $0xcc4] sm:$0xf]  ;;  %v9278_v33 = vld [vmem:[#allocation2 + $0xcc8] sm:$0xf0]  ;;  %v9334_v53 = vld [vmem:[#allocation2 + $0xd30] sm:$0xf]  ;;  %v9369_v12 = vor.u32 %v10243_v39, %v9368_v15  ;;  %v9243_v24 = vor.u32 %v10213_v36, %v9242_v27 }
 0x6d6   :  { %6050 = vmatpush.bf16.msrb.mxu2 %v9263_v50  ;;  %v10235_v54 = vld [vmem:[#allocation2 + $0xd34] sm:$0xf0]  ;;  %v10242_v9 = vld [vmem:[#allocation2 + $0xd74] sm:$0xf]  ;;  %v9370_v5 = vld [vmem:[#allocation2 + $0xd78] sm:$0xf0]  ;;  %v9281_v3 = vor.u32 %v10220_v32, %v9278_v33 }
 0x6d7   :  { %6118 = vmatpush.bf16.msra.mxu3 %v9293_v56  ;;  %v10232_v10 = vld [vmem:[#allocation2 + $0xd24] sm:$0xf]  ;;  %v9328_v34 = vld [vmem:[#allocation2 + $0xd28] sm:$0xf0]  ;;  %v5988_v50 = vrot.slane %v12956_v58, 2  ;;  %v9335_v22 = vor.u32 %v10235_v54, %v9334_v53  ;;  %v9373_v56 = vor.u32 %v10242_v9, %v9370_v5  ;;  %s7308_s18 = sshll.u32 %s13074_s10, 4  ;;  %s7309_s18 = int_to_ptr.hbm [resolvable:$true] %s7308_s18 }
 0x6d8   :  { %6131 = vmatpush.bf16.msra.mxu0 %v9297_v7  ;;  %v9326_v23 = vld [vmem:[#allocation2 + $0xd20] sm:$0xf]  ;;  %v10233_v31 = vld [vmem:[#allocation2 + $0xd24] sm:$0xf0]  ;;  %v9331_v20 = vor.u32 %v10232_v10, %v9328_v34  ;;  %v10240_v35 = vld [vmem:[#allocation2 + $0xd64] sm:$0xf] }
 0x6d9   :  { %6038 = vmatpush.bf16.msrb.mxu1 %v9251_v57  ;;  %v9360_v17 = vld [vmem:[#allocation2 + $0xd60] sm:$0xf]  ;;  %v10241_v62 = vld [vmem:[#allocation2 + $0xd64] sm:$0xf0]  ;;  %v9362_v55 = vld [vmem:[#allocation2 + $0xd68] sm:$0xf0] }
 0x6da   :  { %6051 = vmatpush.bf16.msrb.mxu2 %v9255_v16  ;;  %v10230_v52 = vld [vmem:[#allocation2 + $0xd14] sm:$0xf]  ;;  %v9320_v61 = vld [vmem:[#allocation2 + $0xd18] sm:$0xf0]  ;;  %v6069_v7 = vrot.slane %v12956_v58, 3  ;;  %v9327_v16 = vor.u32 %v10233_v31, %v9326_v23  ;;  %v9361_v51 = vor.u32 %v10241_v62, %v9360_v17 }
 0x6db   :  { %6119 = vmatpush.bf16.msra.mxu3 %v9285_v49  ;;  %v9318_v25 = vld [vmem:[#allocation2 + $0xd10] sm:$0xf]  ;;  %v10231_v1 = vld [vmem:[#allocation2 + $0xd14] sm:$0xf0]  ;;  %v9365_v49 = vor.u32 %v10240_v35, %v9362_v55  ;;  %v9323_v14 = vor.u32 %v10230_v52, %v9320_v61  ;;  %v10238_v6 = vld [vmem:[#allocation2 + $0xd54] sm:$0xf] }
 0x6dc   :  { %6132 = vmatpush.bf16.msra.mxu0 %v9289_v59  ;;  %v9352_v2 = vld [vmem:[#allocation2 + $0xd50] sm:$0xf]  ;;  %v10239_v13 = vld [vmem:[#allocation2 + $0xd54] sm:$0xf0]  ;;  %v9354_v21 = vld [vmem:[#allocation2 + $0xd58] sm:$0xf0]  ;;  %v9319_v15 = vor.u32 %v10231_v1, %v9318_v25 }
 0x6dd   :  { %6039 = vmatpush.bf16.msrb.mxu1 %v9243_v24  ;;  %v10228_v30 = vld [vmem:[#allocation2 + $0xd04] sm:$0xf]  ;;  %v9312_v58 = vld [vmem:[#allocation2 + $0xd08] sm:$0xf0]  ;;  %v10250_v57 = vld [vmem:[#allocation2 + $0xdb4] sm:$0xf]  ;;  %v9353_v39 = vor.u32 %v10239_v13, %v9352_v2  ;;  %v9357_v32 = vor.u32 %v10238_v6, %v9354_v21 }
 0x6de   :  { %6052 = vmatpush.bf16.msrb.mxu2 %v9247_v38  ;;  %v9404_v27 = vld [vmem:[#allocation2 + $0xdb8] sm:$0xf0]  ;;  %v9310_v59 = vld [vmem:[#allocation2 + $0xd00] sm:$0xf]  ;;  %v10229_v38 = vld [vmem:[#allocation2 + $0xd04] sm:$0xf0]  ;;  %v9315_v33 = vor.u32 %v10228_v30, %v9312_v58 }
 0x6df   :  { %6120 = vmatpush.bf16.msra.mxu3 %v9277_v46  ;;  %v9344_v36 = vld [vmem:[#allocation2 + $0xd40] sm:$0xf]  ;;  %v10237_v46 = vld [vmem:[#allocation2 + $0xd44] sm:$0xf0]  ;;  %v9346_v53 = vld [vmem:[#allocation2 + $0xd48] sm:$0xf0]  ;;  %v9407_v54 = vor.u32 %v10250_v57, %v9404_v27 }
 0x6e0   :  { %6133 = vmatpush.bf16.msra.mxu0 %v9281_v3  ;;  %9272 = vmatmul.msk.bf16.vlgmr.msrb.gmra.mxu1 %vm2068_vm5, %v5988_v50  ;;  %v9402_v9 = vld [vmem:[#allocation2 + $0xdb0] sm:$0xf]  ;;  %v10259_v10 = vld [vmem:[#allocation2 + $0xdf4] sm:$0xf0]  ;;  %v10258_v34 = vld [vmem:[#allocation2 + $0xdf4] sm:$0xf]  ;;  %v9311_v3 = vor.u32 %v10229_v38, %v9310_v59 }
 0x6e1   :  { %6198 = vmatpush.bf16.msra.mxu1 %v9335_v22  ;;  %9273 = vmatmul.msk.bf16.vlgmr.msrb.gmra.mxu2 %vm2068_vm5, %v5988_v50  ;;  %v9436_v5 = vld [vmem:[#allocation2 + $0xdf0] sm:$0xf]  ;;  %v9438_v24 = vld [vmem:[#allocation2 + $0xdf8] sm:$0xf0]  ;;  %v9345_v50 = vor.u32 %v10237_v46, %v9344_v36  ;;  %v10248_v22 = vld [vmem:[#allocation2 + $0xda4] sm:$0xf] }
 0x6e2   :  { %6211 = vmatpush.bf16.msra.mxu2 %v9339_v29  ;;  %9306 = vmatmul.msk.bf16.vlgmr.msra.gmra.mxu3 %vm2068_vm5, %v6069_v7  ;;  %v10236_v29 = vld [vmem:[#allocation2 + $0xd44] sm:$0xf]  ;;  %v9396_v23 = vld [vmem:[#allocation2 + $0xda8] sm:$0xf0]  ;;  %v9441_v17 = vor.u32 %v10258_v34, %v9438_v24  ;;  %v9394_v62 = vld [vmem:[#allocation2 + $0xda0] sm:$0xf] }
 0x6e3   :  { %6280 = vmatpush.bf16.msrb.mxu3 %v9369_v12  ;;  %9307 = vmatmul.msk.bf16.vlgmr.msra.gmra.mxu0 %vm2068_vm5, %v6069_v7  ;;  %v10251_v12 = vld [vmem:[#allocation2 + $0xdb4] sm:$0xf0]  ;;  %v9349_v31 = vor.u32 %v10236_v29, %v9346_v53  ;;  %v10249_v35 = vld [vmem:[#allocation2 + $0xda4] sm:$0xf0]  ;;  %v13495_v55 = vmax.f32 %v12602_v41, 0.0  ;;  %v9399_v61 = vor.u32 %v10248_v22, %v9396_v23 }
 0x6e4   :  { %6293 = vmatpush.bf16.msrb.mxu0 %v9373_v56  ;;  %v9403_v56 = vor.u32 %v10251_v12, %v9402_v9  ;;  %v9428_v7 = vld [vmem:[#allocation2 + $0xde0] sm:$0xf]  ;;  %v10256_v25 = vld [vmem:[#allocation2 + $0xde4] sm:$0xf]  ;;  %v9430_v1 = vld [vmem:[#allocation2 + $0xde8] sm:$0xf0] }
 0x6e5   :  { %6199 = vmatpush.bf16.msra.mxu1 %v9327_v16  ;;  %v12974_v52 = vpack.c.bf16 %v13495_v55, %v13495_v55  ;;  %v10257_v16 = vld [vmem:[#allocation2 + $0xde4] sm:$0xf0]  ;;  %v9386_v2 = vld [vmem:[#allocation2 + $0xd90] sm:$0xf]  ;;  %v10247_v13 = vld [vmem:[#allocation2 + $0xd94] sm:$0xf0]  ;;  %v9433_v21 = vor.u32 %v10256_v25, %v9430_v1 }
 0x6e6   :  { %6212 = vmatpush.bf16.msra.mxu2 %v9331_v20  ;;  %v9437_v20 = vor.u32 %v10259_v10, %v9436_v5  ;;  %v9429_v6 = vor.u32 %v10257_v16, %v9428_v7  ;;  %v9420_v30 = vld [vmem:[#allocation2 + $0xdd0] sm:$0xf]  ;;  %v10255_v58 = vld [vmem:[#allocation2 + $0xdd4] sm:$0xf0]  ;;  %v10254_v57 = vld [vmem:[#allocation2 + $0xdd4] sm:$0xf] }
 0x6e7   :  { %6281 = vmatpush.bf16.msrb.mxu3 %v9361_v51  ;;  %v9395_v51 = vor.u32 %v10249_v35, %v9394_v62  ;;  %v6232_v41 = vrot.slane %v12974_v52, 1  ;;  %v10244_v59 = vld [vmem:[#allocation2 + $0xd84] sm:$0xf]  ;;  %v9380_v38 = vld [vmem:[#allocation2 + $0xd88] sm:$0xf0] }
 0x6e8   :  { %6294 = vmatpush.bf16.msrb.mxu0 %v9365_v49  ;;  %v10246_v49 = vld [vmem:[#allocation2 + $0xd94] sm:$0xf]  ;;  %v9378_v36 = vld [vmem:[#allocation2 + $0xd80] sm:$0xf]  ;;  %v9472_v46 = vld [vmem:[#allocation2 + $0xe38] sm:$0xf0]  ;;  %v9383_v34 = vor.u32 %v10244_v59, %v9380_v38 }
 0x6e9   :  { %6200 = vmatpush.bf16.msra.mxu1 %v9319_v15  ;;  %v9387_v15 = vor.u32 %v10247_v13, %v9386_v2  ;;  %v9470_v29 = vld [vmem:[#allocation2 + $0xe30] sm:$0xf]  ;;  %v10267_v53 = vld [vmem:[#allocation2 + $0xe34] sm:$0xf0]  ;;  %v9412_v12 = vld [vmem:[#allocation2 + $0xdc0] sm:$0xf] }
 0x6ea   :  { %6213 = vmatpush.bf16.msra.mxu2 %v9323_v14  ;;  %v9388_v14 = vld [vmem:[#allocation2 + $0xd98] sm:$0xf0]  ;;  %v10253_v5 = vld [vmem:[#allocation2 + $0xdc4] sm:$0xf0]  ;;  %v10252_v10 = vld [vmem:[#allocation2 + $0xdc4] sm:$0xf] }
 0x6eb   :  { %6282 = vmatpush.bf16.msrb.mxu3 %v9353_v39  ;;  %v9391_v27 = vor.u32 %v10246_v49, %v9388_v14  ;;  %v9422_v39 = vld [vmem:[#allocation2 + $0xdd8] sm:$0xf0]  ;;  %v10275_v22 = vld [vmem:[#allocation2 + $0xe74] sm:$0xf0]  ;;  %v9464_v62 = vld [vmem:[#allocation2 + $0xe28] sm:$0xf0] }
 0x6ec   :  { %6295 = vmatpush.bf16.msrb.mxu0 %v9357_v32  ;;  %v10245_v32 = vld [vmem:[#allocation2 + $0xd84] sm:$0xf0]  ;;  %v9425_v9 = vor.u32 %v10254_v57, %v9422_v39  ;;  %v9462_v35 = vld [vmem:[#allocation2 + $0xe20] sm:$0xf]  ;;  %v10272_v2 = vld [vmem:[#allocation2 + $0xe64] sm:$0xf] }
 0x6ed   :  { %6201 = vmatpush.bf16.msra.mxu1 %v9311_v3  ;;  %v9379_v24 = vor.u32 %v10245_v32, %v9378_v36  ;;  %v9414_v3 = vld [vmem:[#allocation2 + $0xdc8] sm:$0xf0]  ;;  %v10265_v55 = vld [vmem:[#allocation2 + $0xe24] sm:$0xf0]  ;;  %v9496_v25 = vld [vmem:[#allocation2 + $0xe60] sm:$0xf] }
 0x6ee   :  { %6214 = vmatpush.bf16.msra.mxu2 %v9315_v33  ;;  %v10266_v33 = vld [vmem:[#allocation2 + $0xe34] sm:$0xf]  ;;  %v9417_v7 = vor.u32 %v10252_v10, %v9414_v3  ;;  %v9463_v49 = vor.u32 %v10265_v55, %v9462_v35  ;;  %v10273_v14 = vld [vmem:[#allocation2 + $0xe64] sm:$0xf0]  ;;  %v9498_v13 = vld [vmem:[#allocation2 + $0xe68] sm:$0xf0] }
 0x6ef   :  { %6283 = vmatpush.bf16.msrb.mxu3 %v9345_v50  ;;  %v9504_v50 = vld [vmem:[#allocation2 + $0xe70] sm:$0xf]  ;;  %v9475_v23 = vor.u32 %v10266_v33, %v9472_v46  ;;  %v10271_v39 = vld [vmem:[#allocation2 + $0xe54] sm:$0xf0]  ;;  %v10270_v59 = vld [vmem:[#allocation2 + $0xe54] sm:$0xf] }
 0x6f0   :  { %6296 = vmatpush.bf16.msrb.mxu0 %v9349_v31  ;;  %9340 = vmatmul.msk.bf16.vlgmr.msra.gmra.mxu1 %vm2068_vm5, %v12974_v52  ;;  %v9471_v31 = vor.u32 %v10267_v53, %v9470_v29  ;;  %v9505_v16 = vor.u32 %v10275_v22, %v9504_v50  ;;  %v9454_v57 = vld [vmem:[#allocation2 + $0xe10] sm:$0xf]  ;;  %v9490_v38 = vld [vmem:[#allocation2 + $0xe58] sm:$0xf0]  ;;  %v6394_v36 = vrot.slane %v12974_v52, 3 }
 0x6f1   :  { %6361 = vmatpush.bf16.msrb.mxu1 %v9403_v56  ;;  %9341 = vmatmul.msk.bf16.vlgmr.msra.gmra.mxu2 %vm2068_vm5, %v12974_v52  ;;  %v10274_v56 = vld [vmem:[#allocation2 + $0xe74] sm:$0xf]  ;;  %v10260_v32 = vld [vmem:[#allocation2 + $0xe04] sm:$0xf]  ;;  %v9448_v33 = vld [vmem:[#allocation2 + $0xe08] sm:$0xf0] }
 0x6f2   :  { %6374 = vmatpush.bf16.msrb.mxu2 %v9407_v54  ;;  %9374 = vmatmul.msk.bf16.vlgmr.msrb.gmra.mxu3 %vm2068_vm5, %v6232_v41  ;;  %v9421_v54 = vor.u32 %v10255_v58, %v9420_v30  ;;  %v9497_v30 = vor.u32 %v10273_v14, %v9496_v25  ;;  %v9501_v58 = vor.u32 %v10272_v2, %v9498_v13  ;;  %v9446_v53 = vld [vmem:[#allocation2 + $0xe00] sm:$0xf]  ;;  %v10269_v10 = vld [vmem:[#allocation2 + $0xe44] sm:$0xf0]  ;;  %v10282_v3 = vld [vmem:[#allocation2 + $0xeb4] sm:$0xf] }
 0x6f3   :  { %6442 = vmatpush.bf16.msra.mxu3 %v9437_v20  ;;  %9375 = vmatmul.msk.bf16.vlgmr.msrb.gmra.mxu0 %vm2068_vm5, %v6232_v41  ;;  %v9506_v20 = vld [vmem:[#allocation2 + $0xe78] sm:$0xf0]  ;;  %v6313_v41 = vrot.slane %v12974_v52, 2  ;;  %v9538_v50 = vld [vmem:[#allocation2 + $0xeb0] sm:$0xf] }
 0x6f4   :  { %6455 = vmatpush.bf16.msra.mxu0 %v9441_v17  ;;  %v10264_v17 = vld [vmem:[#allocation2 + $0xe24] sm:$0xf]  ;;  %v9540_v52 = vld [vmem:[#allocation2 + $0xeb8] sm:$0xf0]  ;;  %v10283_v22 = vld [vmem:[#allocation2 + $0xeb4] sm:$0xf0] }
 0x6f5   :  { %6362 = vmatpush.bf16.msrb.mxu1 %v9395_v51  ;;  %v9509_v51 = vor.u32 %v10274_v56, %v9506_v20  ;;  %v9467_v1 = vor.u32 %v10264_v17, %v9464_v62  ;;  %v10291_v20 = vld [vmem:[#allocation2 + $0xef4] sm:$0xf0]  ;;  %v10290_v17 = vld [vmem:[#allocation2 + $0xef4] sm:$0xf]  ;;  %v9574_v62 = vld [vmem:[#allocation2 + $0xef8] sm:$0xf0] }
 0x6f6   :  { %6375 = vmatpush.bf16.msrb.mxu2 %v9399_v61  ;;  %v9413_v61 = vor.u32 %v10253_v5, %v9412_v12  ;;  %v9493_v12 = vor.u32 %v10270_v59, %v9490_v38  ;;  %v9480_v5 = vld [vmem:[#allocation2 + $0xe40] sm:$0xf]  ;;  %v10281_v14 = vld [vmem:[#allocation2 + $0xea4] sm:$0xf0]  ;;  %v9524_v59 = vld [vmem:[#allocation2 + $0xe98] sm:$0xf0] }
 0x6f7   :  { %6443 = vmatpush.bf16.msra.mxu3 %v9429_v6  ;;  %v10262_v6 = vld [vmem:[#allocation2 + $0xe14] sm:$0xf]  ;;  %v9481_v35 = vor.u32 %v10269_v10, %v9480_v5  ;;  %v9564_v2 = vld [vmem:[#allocation2 + $0xee0] sm:$0xf]  ;;  %v10289_v13 = vld [vmem:[#allocation2 + $0xee4] sm:$0xf0] }
 0x6f8   :  { %6456 = vmatpush.bf16.msra.mxu0 %v9433_v21  ;;  %v9456_v21 = vld [vmem:[#allocation2 + $0xe18] sm:$0xf0]  ;;  %v9522_v38 = vld [vmem:[#allocation2 + $0xe90] sm:$0xf]  ;;  %v9514_v5 = vld [vmem:[#allocation2 + $0xe80] sm:$0xf] }
 0x6f9   :  { %6363 = vmatpush.bf16.msrb.mxu1 %v9387_v15  ;;  %v9488_v15 = vld [vmem:[#allocation2 + $0xe50] sm:$0xf]  ;;  %v9459_v46 = vor.u32 %v10262_v6, %v9456_v21  ;;  %v9566_v6 = vld [vmem:[#allocation2 + $0xee8] sm:$0xf0]  ;;  %v10277_v10 = vld [vmem:[#allocation2 + $0xe84] sm:$0xf0] }
 0x6fa   :  { %6376 = vmatpush.bf16.msrb.mxu2 %v9391_v27  ;;  %v10263_v27 = vld [vmem:[#allocation2 + $0xe14] sm:$0xf0] }
 0x6fb   :  { %6444 = vmatpush.bf16.msra.mxu3 %v9421_v54  ;;  %v9455_v29 = vor.u32 %v10263_v27, %v9454_v57  ;;  %v10261_v54 = vld [vmem:[#allocation2 + $0xe04] sm:$0xf0]  ;;  %v9565_v27 = vor.u32 %v10289_v13, %v9564_v2 }
 0x6fc   :  { %6457 = vmatpush.bf16.msra.mxu0 %v9425_v9  ;;  %v9489_v9 = vor.u32 %v10271_v39, %v9488_v15  ;;  %v9447_v56 = vor.u32 %v10261_v54, %v9446_v53  ;;  %v10278_v39 = vld [vmem:[#allocation2 + $0xe94] sm:$0xf] }
 0x6fd   :  { %6364 = vmatpush.bf16.msrb.mxu1 %v9379_v24  ;;  %v9482_v24 = vld [vmem:[#allocation2 + $0xe48] sm:$0xf0]  ;;  %v9527_v54 = vor.u32 %v10278_v39, %v9524_v59 }
 0x6fe   :  { %6377 = vmatpush.bf16.msrb.mxu2 %v9383_v34  ;;  %v10268_v34 = vld [vmem:[#allocation2 + $0xe44] sm:$0xf] }
 0x6ff   :  { %6445 = vmatpush.bf16.msra.mxu3 %v9413_v61  ;;  %v9485_v55 = vor.u32 %v10268_v34, %v9482_v24  ;;  %v9543_v61 = vor.u32 %v10282_v3, %v9540_v52  ;;  %v9548_v3 = vld [vmem:[#allocation2 + $0xec0] sm:$0xf]  ;;  %v10285_v52 = vld [vmem:[#allocation2 + $0xec4] sm:$0xf0] }
 0x700   :  { %6458 = vmatpush.bf16.msra.mxu0 %v9417_v7  ;;  %9408 = vmatmul.msk.bf16.vlgmr.msrb.gmra.mxu1 %vm2068_vm5, %v6313_v41  ;;  %v9539_v7 = vor.u32 %v10283_v22, %v9538_v50  ;;  %v10284_v50 = vld [vmem:[#allocation2 + $0xec4] sm:$0xf]  ;;  %v9550_v22 = vld [vmem:[#allocation2 + $0xec8] sm:$0xf0] }
 0x701   :  { %6523 = vmatpush.bf16.msra.mxu1 %v9471_v31  ;;  %9409 = vmatmul.msk.bf16.vlgmr.msrb.gmra.mxu2 %vm2068_vm5, %v6313_v41  ;;  %v9451_v31 = vor.u32 %v10260_v32, %v9448_v33  ;;  %v10288_v41 = vld [vmem:[#allocation2 + $0xee4] sm:$0xf]  ;;  %v9556_v32 = vld [vmem:[#allocation2 + $0xed0] sm:$0xf]  ;;  %v10287_v33 = vld [vmem:[#allocation2 + $0xed4] sm:$0xf0] }
 0x702   :  { %6536 = vmatpush.bf16.msra.mxu2 %v9475_v23  ;;  %9442 = vmatmul.msk.bf16.vlgmr.msra.gmra.mxu3 %vm2068_vm5, %v6394_v36  ;;  %v9572_v23 = vld [vmem:[#allocation2 + $0xef0] sm:$0xf]  ;;  %v9569_v15 = vor.u32 %v10288_v41, %v9566_v6  ;;  %v9557_v34 = vor.u32 %v10287_v33, %v9556_v32  ;;  %v9598_v41 = vld [vmem:[#allocation2 + $0xf20] sm:$0xf]  ;;  %v10297_v6 = vld [vmem:[#allocation2 + $0xf24] sm:$0xf0] }
 0x703   :  { %6605 = vmatpush.bf16.msrb.mxu3 %v9505_v16  ;;  %9443 = vmatmul.msk.bf16.vlgmr.msra.gmra.mxu0 %vm2068_vm5, %v6394_v36  ;;  %v10280_v16 = vld [vmem:[#allocation2 + $0xea4] sm:$0xf]  ;;  %v9573_v25 = vor.u32 %v10291_v20, %v9572_v23  ;;  %v10279_v36 = vld [vmem:[#allocation2 + $0xe94] sm:$0xf0]  ;;  %v10298_v23 = vld [vmem:[#allocation2 + $0xf34] sm:$0xf]  ;;  %v9599_v39 = vor.u32 %v10297_v6, %v9598_v41 }
 0x704   :  { %6618 = vmatpush.bf16.msrb.mxu0 %v9509_v51  ;;  %v9532_v51 = vld [vmem:[#allocation2 + $0xea8] sm:$0xf0]  ;;  %v10299_v20 = vld [vmem:[#allocation2 + $0xf34] sm:$0xf0]  ;;  %v10294_v32 = vld [vmem:[#allocation2 + $0xf14] sm:$0xf] }
 0x705   :  { %6524 = vmatpush.bf16.msra.mxu1 %v9463_v49  ;;  %v9530_v49 = vld [vmem:[#allocation2 + $0xea0] sm:$0xf]  ;;  %v9535_v21 = vor.u32 %v10280_v16, %v9532_v51  ;;  %v9549_v16 = vor.u32 %v10285_v52, %v9548_v3  ;;  %v9553_v51 = vor.u32 %v10284_v50, %v9550_v22  ;;  %v9592_v33 = vld [vmem:[#allocation2 + $0xf18] sm:$0xf0]  ;;  %v10293_v52 = vld [vmem:[#allocation2 + $0xf04] sm:$0xf0] }
 0x706   :  { %6537 = vmatpush.bf16.msra.mxu2 %v9467_v1  ;;  %v9577_v1 = vor.u32 %v10290_v17, %v9574_v62  ;;  %v9640_v17 = vld [vmem:[#allocation2 + $0xf70] sm:$0xf]  ;;  %v9582_v3 = vld [vmem:[#allocation2 + $0xf00] sm:$0xf]  ;;  %v9668_v41 = vld [vmem:[#allocation2 + $0xfa8] sm:$0xf0] }
 0x707   :  { %6606 = vmatpush.bf16.msrb.mxu3 %v9497_v30  ;;  %v9531_v30 = vor.u32 %v10281_v14, %v9530_v49  ;;  %v10296_v49 = vld [vmem:[#allocation2 + $0xf24] sm:$0xf]  ;;  %v9600_v14 = vld [vmem:[#allocation2 + $0xf28] sm:$0xf0] }
 0x708   :  { %6619 = vmatpush.bf16.msrb.mxu0 %v9501_v58  ;;  %v13496_v58 = vmax.f32 %v12609_v4, 0.0  ;;  %v10276_v4 = vld [vmem:[#allocation2 + $0xe84] sm:$0xf] }
 0x709   :  { %6525 = vmatpush.bf16.msra.mxu1 %v9455_v29  ;;  %v9558_v29 = vld [vmem:[#allocation2 + $0xed8] sm:$0xf0] }
 0x70a   :  { %6538 = vmatpush.bf16.msra.mxu2 %v9459_v46  ;;  %v12992_v57 = vpack.c.bf16 %v13496_v58, %v13496_v58  ;;  %v10286_v46 = vld [vmem:[#allocation2 + $0xed4] sm:$0xf]  ;;  %v10304_v58 = vld [vmem:[#allocation2 + $0xf64] sm:$0xf] }
 0x70b   :  { %6607 = vmatpush.bf16.msrb.mxu3 %v9489_v9  ;;  %v9523_v9 = vor.u32 %v10279_v36, %v9522_v38  ;;  %v9561_v24 = vor.u32 %v10286_v46, %v9558_v29  ;;  %v9590_v46 = vld [vmem:[#allocation2 + $0xf10] sm:$0xf]  ;;  %v10295_v29 = vld [vmem:[#allocation2 + $0xf14] sm:$0xf0] }
 0x70c   :  { %6620 = vmatpush.bf16.msrb.mxu0 %v9493_v12  ;;  %v6557_v53 = vrot.slane %v12992_v57, 1  ;;  %v9516_v12 = vld [vmem:[#allocation2 + $0xe88] sm:$0xf0]  ;;  %v6638_v36 = vrot.slane %v12992_v57, 2 }
 0x70d   :  { %6526 = vmatpush.bf16.msra.mxu1 %v9447_v56  ;;  %v9606_v56 = vld [vmem:[#allocation2 + $0xf30] sm:$0xf]  ;;  %v9519_v62 = vor.u32 %v10276_v4, %v9516_v12  ;;  %v10303_v4 = vld [vmem:[#allocation2 + $0xf54] sm:$0xf0]  ;;  %v6719_v12 = vrot.slane %v12992_v57, 3 }
 0x70e   :  { %6539 = vmatpush.bf16.msra.mxu2 %v9451_v31  ;;  %v9608_v31 = vld [vmem:[#allocation2 + $0xf38] sm:$0xf0] }
 0x70f   :  { %6608 = vmatpush.bf16.msrb.mxu3 %v9481_v35  ;;  %v9515_v35 = vor.u32 %v10277_v10, %v9514_v5  ;;  %v10292_v5 = vld [vmem:[#allocation2 + $0xf04] sm:$0xf]  ;;  %v9595_v10 = vor.u32 %v10294_v32, %v9592_v33  ;;  %v13497_v32 = vmax.f32 %v12614_v26, 0.0 }
 0x710   :  { %6621 = vmatpush.bf16.msrb.mxu0 %v9485_v55  ;;  %9476 = vmatmul.msk.bf16.vlgmr.msra.gmra.mxu1 %vm2068_vm5, %v12992_v57  ;;  %v10307_v55 = vld [vmem:[#allocation2 + $0xf74] sm:$0xf0] }
 0x711   :  { %6686 = vmatpush.bf16.msrb.mxu1 %v9539_v7  ;;  %9477 = vmatmul.msk.bf16.vlgmr.msra.gmra.mxu2 %vm2068_vm5, %v12992_v57  ;;  %v9642_v7 = vld [vmem:[#allocation2 + $0xf78] sm:$0xf0]  ;;  %v9641_v2 = vor.u32 %v10307_v55, %v9640_v17  ;;  %v10314_v17 = vld [vmem:[#allocation2 + $0xfb4] sm:$0xf]  ;;  %v9708_v55 = vld [vmem:[#allocation2 + $0xff0] sm:$0xf]  ;;  %v6791_v33 = vpack.c.bf16 %v13497_v32, %v13497_v32 }
 0x712   :  { %6699 = vmatpush.bf16.msrb.mxu2 %v9543_v61  ;;  %9510 = vmatmul.msk.bf16.vlgmr.msrb.gmra.mxu3 %vm2068_vm5, %v6557_v53  ;;  %v10306_v61 = vld [vmem:[#allocation2 + $0xf74] sm:$0xf]  ;;  %v9676_v57 = vld [vmem:[#allocation2 + $0xfb8] sm:$0xf0] }
 0x713   :  { %6767 = vmatpush.bf16.msra.mxu3 %v9573_v25  ;;  %9511 = vmatmul.msk.bf16.vlgmr.msrb.gmra.mxu0 %vm2068_vm5, %v6557_v53  ;;  %v9611_v25 = vor.u32 %v10298_v23, %v9608_v31  ;;  %v9645_v13 = vor.u32 %v10306_v61, %v9642_v7  ;;  %v9624_v53 = vld [vmem:[#allocation2 + $0xf50] sm:$0xf]  ;;  %v9616_v23 = vld [vmem:[#allocation2 + $0xf40] sm:$0xf]  ;;  %v10301_v31 = vld [vmem:[#allocation2 + $0xf44] sm:$0xf0]  ;;  %v9583_v7 = vor.u32 %v10293_v52, %v9582_v3 }
 0x714   :  { %6780 = vmatpush.bf16.msra.mxu0 %v9577_v1  ;;  %v9607_v1 = vor.u32 %v10299_v20, %v9606_v56  ;;  %v9625_v50 = vor.u32 %v10303_v4, %v9624_v53  ;;  %v10300_v56 = vld [vmem:[#allocation2 + $0xf44] sm:$0xf]  ;;  %v9618_v20 = vld [vmem:[#allocation2 + $0xf48] sm:$0xf0]  ;;  %v10310_v53 = vld [vmem:[#allocation2 + $0xf94] sm:$0xf] }
 0x715   :  { %6687 = vmatpush.bf16.msrb.mxu1 %v9531_v30  ;;  %v10305_v30 = vld [vmem:[#allocation2 + $0xf64] sm:$0xf0]  ;;  %v9660_v4 = vld [vmem:[#allocation2 + $0xf98] sm:$0xf0]  ;;  %v10308_v52 = vld [vmem:[#allocation2 + $0xf84] sm:$0xf] }
 0x716   :  { %6700 = vmatpush.bf16.msrb.mxu2 %v9535_v21  ;;  %v9632_v21 = vld [vmem:[#allocation2 + $0xf60] sm:$0xf]  ;;  %v9663_v26 = vor.u32 %v10310_v53, %v9660_v4 }
 0x717   :  { %6768 = vmatpush.bf16.msra.mxu3 %v9565_v27  ;;  %v9634_v27 = vld [vmem:[#allocation2 + $0xf68] sm:$0xf0]  ;;  %v9633_v59 = vor.u32 %v10305_v30, %v9632_v21  ;;  %v9666_v30 = vld [vmem:[#allocation2 + $0xfa0] sm:$0xf] }
 0x718   :  { %6781 = vmatpush.bf16.msra.mxu0 %v9569_v15  ;;  %v9603_v15 = vor.u32 %v10296_v49, %v9600_v14  ;;  %v9637_v38 = vor.u32 %v10304_v58, %v9634_v27  ;;  %v9621_v49 = vor.u32 %v10300_v56, %v9618_v20  ;;  %v9679_v14 = vor.u32 %v10314_v17, %v9676_v57  ;;  %v10313_v58 = vld [vmem:[#allocation2 + $0xfa4] sm:$0xf0]  ;;  %v9700_v27 = vld [vmem:[#allocation2 + $0xfe0] sm:$0xf]  ;;  %v10316_v57 = vld [vmem:[#allocation2 + $0xfc4] sm:$0xf] }
 0x719   :  { %6688 = vmatpush.bf16.msrb.mxu1 %v9523_v9  ;;  %v9626_v9 = vld [vmem:[#allocation2 + $0xf58] sm:$0xf0]  ;;  %v10309_v56 = vld [vmem:[#allocation2 + $0xf84] sm:$0xf0]  ;;  %v9684_v20 = vld [vmem:[#allocation2 + $0xfc0] sm:$0xf] }
 0x71a   :  { %6701 = vmatpush.bf16.msrb.mxu2 %v9527_v54  ;;  %v10302_v54 = vld [vmem:[#allocation2 + $0xf54] sm:$0xf]  ;;  %v10317_v17 = vld [vmem:[#allocation2 + $0xfc4] sm:$0xf0] }
 0x71b   :  { %6769 = vmatpush.bf16.msra.mxu3 %v9557_v34  ;;  %v9591_v34 = vor.u32 %v10295_v29, %v9590_v46  ;;  %v9629_v22 = vor.u32 %v10302_v54, %v9626_v9  ;;  %v9658_v54 = vld [vmem:[#allocation2 + $0xf90] sm:$0xf]  ;;  %v10311_v9 = vld [vmem:[#allocation2 + $0xf94] sm:$0xf0] }
 0x71c   :  { %6782 = vmatpush.bf16.msra.mxu0 %v9561_v24  ;;  %v9584_v24 = vld [vmem:[#allocation2 + $0xf08] sm:$0xf0]  ;;  %v9659_v3 = vor.u32 %v10311_v9, %v9658_v54 }
 0x71d   :  { %6689 = vmatpush.bf16.msrb.mxu1 %v9515_v35  ;;  %v10315_v35 = vld [vmem:[#allocation2 + $0xfb4] sm:$0xf0]  ;;  %v9587_v61 = vor.u32 %v10292_v5, %v9584_v24  ;;  %v6882_v24 = vrot.slane %v6791_v33, 1 }
 0x71e   :  { %6702 = vmatpush.bf16.msrb.mxu2 %v9519_v62  ;;  %v9674_v62 = vld [vmem:[#allocation2 + $0xfb0] sm:$0xf]  ;;  %v10319_v5 = vld [vmem:[#allocation2 + $0xfd4] sm:$0xf0] }
 0x71f   :  { %6770 = vmatpush.bf16.msra.mxu3 %v9549_v16  ;;  %v10323_v16 = vld [vmem:[#allocation2 + $0xff4] sm:$0xf0] }
 0x720   :  { %6783 = vmatpush.bf16.msra.mxu0 %v9553_v51  ;;  %9544 = vmatmul.msk.bf16.vlgmr.msrb.gmra.mxu1 %vm2068_vm5, %v6638_v36  ;;  %v10322_v51 = vld [vmem:[#allocation2 + $0xff4] sm:$0xf]  ;;  %v9709_v6 = vor.u32 %v10323_v16, %v9708_v55  ;;  %v6963_v16 = vrot.slane %v6791_v33, 2 }
 0x721   :  { %6848 = vmatpush.bf16.msra.mxu1 %v9607_v1  ;;  %9545 = vmatmul.msk.bf16.vlgmr.msrb.gmra.mxu2 %vm2068_vm5, %v6638_v36  ;;  %v9617_v1 = vor.u32 %v10301_v31, %v9616_v23  ;;  %v9667_v36 = vor.u32 %v10313_v58, %v9666_v30  ;;  %v9650_v31 = vld [vmem:[#allocation2 + $0xf80] sm:$0xf] }
 0x722   :  { %6861 = vmatpush.bf16.msra.mxu2 %v9611_v25  ;;  %9578 = vmatmul.msk.bf16.vlgmr.msra.gmra.mxu3 %vm2068_vm5, %v6719_v12  ;;  %v9710_v25 = vld [vmem:[#allocation2 + $0xff8] sm:$0xf0]  ;;  %v9651_v55 = vor.u32 %v10309_v56, %v9650_v31  ;;  %v10331_v31 = vld [vmem:[#allocation13 + $0x38] sm:$0xff] }
 0x723   :  { %6930 = vmatpush.bf16.msrb.mxu3 %v9641_v2  ;;  %9579 = vmatmul.msk.bf16.vlgmr.msra.gmra.mxu0 %vm2068_vm5, %v6719_v12  ;;  %v9675_v2 = vor.u32 %v10315_v35, %v9674_v62  ;;  %v9713_v21 = vor.u32 %v10322_v51, %v9710_v25  ;;  %v9692_v12 = vld [vmem:[#allocation2 + $0xfd0] sm:$0xf]  ;;  %v9686_v62 = vld [vmem:[#allocation2 + $0xfc8] sm:$0xf0]  ;;  %v7044_v51 = vrot.slane %v6791_v33, 3 }
 0x724   :  { %6943 = vmatpush.bf16.msrb.mxu0 %v9645_v13  ;;  %v10312_v13 = vld [vmem:[#allocation2 + $0xfa4] sm:$0xf]  ;;  %v10339_v56 = vld [vmem:[#allocation13 + $0x78] sm:$0xff] }
 0x725   :  { %6849 = vmatpush.bf16.msra.mxu1 %v9599_v39  ;;  %v10320_v39 = vld [vmem:[#allocation2 + $0xfe4] sm:$0xf] }
 0x726   :  { %6862 = vmatpush.bf16.msra.mxu2 %v9603_v15  ;;  %v10321_v15 = vld [vmem:[#allocation2 + $0xfe4] sm:$0xf0] }
 0x727   :  { %6931 = vmatpush.bf16.msrb.mxu3 %v9633_v59  ;;  %v9702_v59 = vld [vmem:[#allocation2 + $0xfe8] sm:$0xf0]  ;;  %v9701_v46 = vor.u32 %v10321_v15, %v9700_v27 }
 0x728   :  { %6944 = vmatpush.bf16.msrb.mxu0 %v9637_v38  ;;  %v9671_v38 = vor.u32 %v10312_v13, %v9668_v41  ;;  %v9705_v29 = vor.u32 %v10320_v39, %v9702_v59 }
 0x729   :  { %6850 = vmatpush.bf16.msra.mxu1 %v9591_v34  ;;  %v9694_v34 = vld [vmem:[#allocation2 + $0xfd8] sm:$0xf0] }
 0x72a   :  { %6863 = vmatpush.bf16.msra.mxu2 %v9595_v10  ;;  %v10318_v10 = vld [vmem:[#allocation2 + $0xfd4] sm:$0xf] }
 0x72b   :  { %6932 = vmatpush.bf16.msrb.mxu3 %v9625_v50  ;;  %v9652_v50 = vld [vmem:[#allocation2 + $0xf88] sm:$0xf0]  ;;  %v9697_v23 = vor.u32 %v10318_v10, %v9694_v34 }
 0x72c   :  { %6945 = vmatpush.bf16.msrb.mxu0 %v9629_v22  ;;  %v9693_v22 = vor.u32 %v10319_v5, %v9692_v12  ;;  %v9655_v35 = vor.u32 %v10308_v52, %v9652_v50 }
 0x72d   :  { %6851 = vmatpush.bf16.msra.mxu1 %v9583_v7  ;;  %v9689_v7 = vor.u32 %v10316_v57, %v9686_v62 }
 0x72e   :  { %6864 = vmatpush.bf16.msra.mxu2 %v9587_v61  ;;  %v9685_v61 = vor.u32 %v10317_v17, %v9684_v20 }
 0x72f   :  { %6933 = vmatpush.bf16.msrb.mxu3 %v9617_v1 }
 0x730   :  { %6946 = vmatpush.bf16.msrb.mxu0 %v9621_v49  ;;  %9612 = vmatmul.msk.bf16.vlgmr.msra.gmra.mxu1 %vm2068_vm5, %v6791_v33 }
 0x731   :  { %7011 = vmatpush.bf16.msrb.mxu1 %v9675_v2  ;;  %9613 = vmatmul.msk.bf16.vlgmr.msra.gmra.mxu2 %vm2068_vm5, %v6791_v33 }
 0x732   :  { %7024 = vmatpush.bf16.msrb.mxu2 %v9679_v14  ;;  %9646 = vmatmul.msk.bf16.vlgmr.msrb.gmra.mxu3 %vm2068_vm5, %v6882_v24 }
 0x733   :  { %7092 = vmatpush.bf16.msra.mxu3 %v9709_v6  ;;  %9647 = vmatmul.msk.bf16.vlgmr.msrb.gmra.mxu0 %vm2068_vm5, %v6882_v24 }
 0x734   :  { %7105 = vmatpush.bf16.msra.mxu0 %v9713_v21 }
 0x735   :  { %7012 = vmatpush.bf16.msrb.mxu1 %v9667_v36 }
 0x736   :  { %7025 = vmatpush.bf16.msrb.mxu2 %v9671_v38 }
 0x737   :  { %7093 = vmatpush.bf16.msra.mxu3 %v9701_v46 }
 0x738   :  { %7106 = vmatpush.bf16.msra.mxu0 %v9705_v29 }
 0x739   :  { %7013 = vmatpush.bf16.msrb.mxu1 %v9659_v3 }
 0x73a   :  { %7026 = vmatpush.bf16.msrb.mxu2 %v9663_v26 }
 0x73b   :  { %7094 = vmatpush.bf16.msra.mxu3 %v9693_v22 }
 0x73c   :  { %7107 = vmatpush.bf16.msra.mxu0 %v9697_v23 }
 0x73d   :  { %7014 = vmatpush.bf16.msrb.mxu1 %v9651_v55 }
 0x73e   :  { %7027 = vmatpush.bf16.msrb.mxu2 %v9655_v35 }
 0x73f   :  { %7095 = vmatpush.bf16.msra.mxu3 %v9685_v61 }
 0x740   :  { %7108 = vmatpush.bf16.msra.mxu0 %v9689_v7  ;;  %9680 = vmatmul.msk.bf16.vlgmr.msrb.gmra.mxu1 %vm2068_vm5, %v6963_v16 }
 0x741   :  { %9681 = vmatmul.msk.bf16.vlgmr.msrb.gmra.mxu2 %vm2068_vm5, %v6963_v16  ;;  %7274 = vmatpush.bf16.msra.mxu1 %v10331_v31  ;;  %v10324_v31 = vld [vmem:[#allocation13] sm:$0xff] }
 0x742   :  { %9714 = vmatmul.msk.bf16.vlgmr.msra.gmra.mxu3 %vm2068_vm5, %v7044_v51  ;;  %7287 = vmatpush.bf16.msra.mxu2 %v10339_v56  ;;  %v10332_v56 = vld [vmem:[#allocation13 + $0x40] sm:$0xff] }
 0x743   :  { %9715 = vmatmul.msk.bf16.vlgmr.msra.gmra.mxu0 %vm2068_vm5, %v7044_v51 }
 0x74d   :  { %v5878_v25 = vpop.f32.mrf.mxu1 }
 0x74e   :  { %v5895_v20 = vadd.f32 %v5878_v25, %v12907_v44  ;;  %v10337_v44 = vld [vmem:[#allocation13 + $0x68] sm:$0xff] }
 0x750   :  { %v5973_v1 = vpop.f32.mrf.mxu0 }
 0x751   :  { %v5978_v22 = vadd.f32 %v5973_v1, %v12909_v40  ;;  %v10330_v40 = vld [vmem:[#allocation13 + $0x30] sm:$0xff] }
 0x752   :  { %v10338_v1 = vld [vmem:[#allocation13 + $0x70] sm:$0xff]  ;;  %7275 = vmatpush.bf16.msra.mxu1 %v10330_v40 }
 0x753   :  { %7288 = vmatpush.bf16.msra.mxu2 %v10338_v1 }
 0x754   :  { %v5891_v49 = vpop.f32.mrf.mxu2 }
 0x755   :  { %v5960_v14 = vpop.f32.mrf.mxu3  ;;  %v5880_v2 = vpop.f32.mrf.mxu1  ;;  %v5896_v23 = vadd.f32 %v5891_v49, %v12913_v8  ;;  %v10329_v49 = vld [vmem:[#allocation13 + $0x28] sm:$0xff] }
 0x756   :  { %v5977_v17 = vadd.f32 %v5960_v14, %v12915_v28  ;;  %7276 = vmatpush.bf16.msra.mxu1 %v10329_v49 }
 0x757   :  { %7289 = vmatpush.bf16.msra.mxu2 %v10337_v44 }
 0x758   :  { %v5975_v13 = vpop.f32.mrf.mxu0 }
 0x75c   :  { %v5893_v41 = vpop.f32.mrf.mxu2 }
 0x75d   :  { %v5962_v6 = vpop.f32.mrf.mxu3  ;;  %v13018_v21 = vpop.f32.mrf.mxu1  ;;  %v10328_v41 = vld [vmem:[#allocation13 + $0x20] sm:$0xff] }
 0x75e   :  { %v10336_v6 = vld [vmem:[#allocation13 + $0x60] sm:$0xff]  ;;  %7277 = vmatpush.bf16.msra.mxu1 %v10328_v41 }
 0x75f   :  { %7290 = vmatpush.bf16.msra.mxu2 %v10336_v6 }
 0x760   :  { %v6135_v30 = vpop.f32.mrf.mxu0 }
 0x764   :  { %v6054_v58 = vpop.f32.mrf.mxu2 }
 0x765   :  { %v6122_v27 = vpop.f32.mrf.mxu3  ;;  %v6043_v15 = vpop.f32.mrf.mxu1 }
 0x766   :  { %v6140_v15 = vadd.f32 %v6135_v30, %v12921_v18  ;;  %v10326_v30 = vld [vmem:[#allocation13 + $0x10] sm:$0xff] }
 0x768   :  { %v6137_v39 = vpop.f32.mrf.mxu0 }
 0x769   :  { %v6059_v39 = vadd.f32 %v6054_v58, %v12925_v47  ;;  %v10334_v47 = vld [vmem:[#allocation13 + $0x50] sm:$0xff] }
 0x76c   :  { %v6056_v59 = vpop.f32.mrf.mxu2 }
 0x76d   :  { %v6124_v38 = vpop.f32.mrf.mxu3  ;;  %v13020_v36 = vpop.f32.mrf.mxu1  ;;  %v10327_v59 = vld [vmem:[#allocation13 + $0x18] sm:$0xff] }
 0x76e   :  { %v10335_v38 = vld [vmem:[#allocation13 + $0x58] sm:$0xff]  ;;  %7278 = vmatpush.bf16.msra.mxu1 %v10327_v59 }
 0x76f   :  { %7291 = vmatpush.bf16.msra.mxu2 %v10335_v38 }
 0x770   :  { %v13022_v32 = vpop.f32.mrf.mxu0 }
 0x772   :  { %7279 = vmatpush.bf16.msra.mxu1 %v10326_v30 }
 0x773   :  { %7292 = vmatpush.bf16.msra.mxu2 %v10334_v47 }
 0x774   :  { %v13024_v33 = vpop.f32.mrf.mxu2 }
 0x775   :  { %v13026_v46 = vpop.f32.mrf.mxu3  ;;  %v6205_v29 = vpop.f32.mrf.mxu1 }
 0x776   :  { %v6058_v29 = vadd.f32 %v13018_v21, %v12919_v45  ;;  %v10325_v21 = vld [vmem:[#allocation13 + $0x8] sm:$0xff] }
 0x777   :  { %7280 = vmatpush.bf16.msra.mxu1 %v10325_v21 }
 0x778   :  { %v6300_v53 = vpop.f32.mrf.mxu0 }
 0x779   :  { %v6139_v53 = vadd.f32 %v6122_v27, %v12927_v60  ;;  %v10333_v60 = vld [vmem:[#allocation13 + $0x48] sm:$0xff] }
 0x77a   :  { %7293 = vmatpush.bf16.msra.mxu2 %v10333_v60 }
 0x77b   :  { %7281 = vmatpush.bf16.msra.mxu1 %v10324_v31 }
 0x77c   :  { %v6218_v4 = vpop.f32.mrf.mxu2 }
 0x77d   :  { %v6287_v54 = vpop.f32.mrf.mxu3  ;;  %v13028_v9 = vpop.f32.mrf.mxu1 }
 0x77e   :  { %7294 = vmatpush.bf16.msra.mxu2 %v10332_v56 }
 0x780   :  { %v13030_v12 = vpop.f32.mrf.mxu0 }
 0x784   :  { %v13032_v5 = vpop.f32.mrf.mxu2 }
 0x785   :  { %v13034_v10 = vpop.f32.mrf.mxu3  ;;  %v6368_v34 = vpop.f32.mrf.mxu1 }
 0x788   :  { %v6462_v24 = vpop.f32.mrf.mxu0 }
 0x78c   :  { %v6381_v26 = vpop.f32.mrf.mxu2 }
 0x78d   :  { %v6449_v3 = vpop.f32.mrf.mxu3  ;;  %v6528_v52 = vpop.f32.mrf.mxu1 }
 0x78e   :  { %v6545_v61 = vadd.f32 %v6528_v52, %v5895_v20 }
 0x790   :  { %v6623_v50 = vpop.f32.mrf.mxu0 }
 0x791   :  { %v6628_v62 = vadd.f32 %v6623_v50, %v5978_v22 }
 0x794   :  { %v6541_v57 = vpop.f32.mrf.mxu2 }
 0x795   :  { %v6546_v35 = vadd.f32 %v6541_v57, %v5896_v23  ;;  %v6610_v55 = vpop.f32.mrf.mxu3  ;;  %v6530_v16 = vpop.f32.mrf.mxu1  ;;  %v6303_v57 = vadd.f32 %v13022_v32, %v12933_v48 }
 0x796   :  { %v6627_v7 = vadd.f32 %v6610_v55, %v5977_v17  ;;  %v6302_v55 = vadd.f32 %v13026_v46, %v12939_v19  ;;  %v6384_v19 = vadd.f32 %v13032_v5, %v12949_v43 }
 0x797   :  { %v7117_v51 = vadd.f32 %v6628_v62, %v6546_v35  ;;  %v6221_v62 = vadd.f32 %v13024_v33, %v12937_v63  ;;  %v6220_v35 = vadd.f32 %v13020_v36, %v12931_v11  ;;  %v6465_v11 = vadd.f32 %v13030_v12, %v12945_v0 }
 0x798   :  { %v6625_v2 = vpop.f32.mrf.mxu0  ;;  %v7116_v8 = vadd.f32 %v6627_v7, %v6545_v61  ;;  %v6383_v36 = vadd.f32 %v13028_v9, %v12943_v37  ;;  %v6464_v33 = vadd.f32 %v13034_v10, %v12951_v42 }
 0x79c   :  { %v6543_v25 = vpop.f32.mrf.mxu2 }
 0x79d   :  { %v6612_v28 = vpop.f32.mrf.mxu3  ;;  %v6691_v14 = vpop.f32.mrf.mxu1 }
 0x79e   :  { %v6708_v26 = vadd.f32 %v6691_v14, %v6058_v29 }
 0x7a0   :  { %v6785_v13 = vpop.f32.mrf.mxu0 }
 0x7a1   :  { %v6790_v54 = vadd.f32 %v6785_v13, %v6140_v15 }
 0x7a4   :  { %v6704_v4 = vpop.f32.mrf.mxu2 }
 0x7a5   :  { %v6709_v34 = vadd.f32 %v6704_v4, %v6059_v39  ;;  %v6772_v24 = vpop.f32.mrf.mxu3  ;;  %v6693_v52 = vpop.f32.mrf.mxu1  ;;  %v7130_v39 = vld [vmem:[#allocation12] sm:$0x3] }
 0x7a6   :  { %v6789_v3 = vadd.f32 %v6772_v24, %v6139_v53  ;;  %v7133_v29 = vperm.slane %v7130_v39, 1  ;;  %v7132_v5 = vperm.slane %v7130_v39, 0 }
 0x7a7   :  { %v7119_v50 = vadd.f32 %v6790_v54, %v6709_v34 }
 0x7a8   :  { %v6787_v18 = vpop.f32.mrf.mxu0  ;;  %v7118_v58 = vadd.f32 %v6789_v3, %v6708_v26  ;;  %v10669_v3 = vld [vmem:[#allocation15] ss:$0 sm:$0xff] }
 0x7a9   :  { %v7125_v22 = vadd.f32 %v7119_v50, %v7117_v51 }
 0x7aa   :  { %v7124_v45 = vadd.f32 %v7118_v58, %v7116_v8 }
 0x7ac   :  { %v6706_v27 = vpop.f32.mrf.mxu2 }
 0x7ad   :  { %v6774_v23 = vpop.f32.mrf.mxu3  ;;  %v6853_v20 = vpop.f32.mrf.mxu1 }
 0x7ae   :  { %v6870_v2 = vadd.f32 %v6853_v20, %v6220_v35 }
 0x7b0   :  { %v6948_v17 = vpop.f32.mrf.mxu0 }
 0x7b1   :  { %v6953_v7 = vadd.f32 %v6948_v17, %v6303_v57 }
 0x7b4   :  { %v6866_v61 = vpop.f32.mrf.mxu2 }
 0x7b5   :  { %v6871_v16 = vadd.f32 %v6866_v61, %v6221_v62  ;;  %v6935_v51 = vpop.f32.mrf.mxu3  ;;  %v6855_v1 = vpop.f32.mrf.mxu1 }
 0x7b6   :  { %v6952_v40 = vadd.f32 %v6935_v51, %v6302_v55 }
 0x7b7   :  { %v7121_v8 = vadd.f32 %v6953_v7, %v6871_v16 }
 0x7b8   :  { %v6950_v49 = vpop.f32.mrf.mxu0  ;;  %v7120_v44 = vadd.f32 %v6952_v40, %v6870_v2 }
 0x7bc   :  { %v6868_v48 = vpop.f32.mrf.mxu2 }
 0x7bd   :  { %v6937_v32 = vpop.f32.mrf.mxu3  ;;  %v7016_v25 = vpop.f32.mrf.mxu1 }
 0x7be   :  { %v7033_v41 = vadd.f32 %v7016_v25, %v6383_v36 }
 0x7c0   :  { %v7110_v63 = vpop.f32.mrf.mxu0 }
 0x7c1   :  { %v7115_v28 = vadd.f32 %v7110_v63, %v6465_v11 }
 0x7c4   :  { %v7029_v46 = vpop.f32.mrf.mxu2 }
 0x7c5   :  { %v7034_v14 = vadd.f32 %v7029_v46, %v6384_v19  ;;  %v7097_v13 = vpop.f32.mrf.mxu3  ;;  %v7018_v15 = vpop.f32.mrf.mxu1 }
 0x7c6   :  { %v7114_v6 = vadd.f32 %v7097_v13, %v6464_v33 }
 0x7c7   :  { %v7123_v59 = vadd.f32 %v7115_v28, %v7034_v14 }
 0x7c8   :  { %v7112_v38 = vpop.f32.mrf.mxu0  ;;  %v7122_v0 = vadd.f32 %v7114_v6, %v7033_v41 }
 0x7c9   :  { %v7127_v12 = vadd.f32 %v7123_v59, %v7121_v8 }
 0x7ca   :  { %v7126_v43 = vadd.f32 %v7122_v0, %v7120_v44 }
 0x7cb   :  { %v7129_v53 = vadd.f32 %v7127_v12, %v7125_v22 }
 0x7cc   :  { %v7128_v37 = vadd.f32 %v7126_v43, %v7124_v45  ;;  %v7031_v9 = vpop.f32.mrf.mxu2 }
 0x7cd   :  { %v7099_v4 = vpop.f32.mrf.mxu3  ;;  %v7137_v42 = vadd.f32 %v7133_v29, %v7129_v53 }
 0x7ce   :  { %v7136_v10 = vadd.f32 %v7132_v5, %v7128_v37 }
 0x7cf   :  { %v7139_v54 = vmax.f32 %v7137_v42, 0.0 }
 0x7d0   :  { %v7138_v34 = vmax.f32 %v7136_v10, 0.0 }
 0x7d1   :  { %v7141_v24 = vpack.c.bf16 %v7139_v54, %v7139_v54 }
 0x7d2   :  { %v7140_v26 = vpack.c.bf16 %v7138_v34, %v7138_v34 }
 0x7d3   :  { %7295 = vmatmul.bf16.vlgmr.msra.gmra.mxu2 %v7141_v24 }
 0x7d4   :  { %7282 = vmatmul.bf16.vlgmr.msra.gmra.mxu1 %v7140_v26 }
 0x851   :  { %v7283_v52 = vpop.f32.mrf.mxu1 }
 0x852   :  { %v7284_v50 = vadd.f32 %v10669_v3, %v7283_v52 }
 0x856   :  { %v7296_v18 = vpop.f32.mrf.mxu2 }
 0x857   :  { %v7297_v30 = vadd.f32 %v7296_v18, %v7284_v50 }
 0x859   :  { %7300 = vst [vmem:[#allocation16] sm:$0x3] %v7297_v30  ;;  %v7285_v47 = vpop.f32.mrf.mxu1 }
 0x85a   :  { %7311 = dma.vmem_to_hbm [thread:$0]  %s7307_s8, 32, %s7309_s18, [#allocation6]  }
 0x85e   :  { %v7298_v58 = vpop.f32.mrf.mxu2 }
 0x85f   :  { %10974 = dma.done.wait [#allocation6], 32  }
 0x860   :  { %10975 = vsyncadd [#allocation6], 4294967264 }
 0x861   :  { %7316 = vsyncpa [#allocation5], 1 }
 0x862   :  { %7317 = vsyncpa [#allocation8], 1 }
 0x863   :  { %7318 = vsyncpa [#allocation11], 1 }
 0x864   :  { %7319 = vsyncpa [#allocation14], 1 }
 0x865   :  { %7320 = vsyncpa [#allocation6], 1 }
 0x866   :  { %7321 = vsyncmov [#allocation3] }
 0x869   :  { %s7322_s19 = vpop.sfrf %7321 }
 0x86a   :  { %p9780_p0 = scmp.ne.s32.totalorder %s7322_s19, 0 }
 0x86c   :  { %7326 = shalt.err (%p9780_p0)  }
 0x86d   :  { %7328 = vsyncmov [#allocation3 + $0x1] }
 0x870   :  { %s7329_s10 = vpop.sfrf %7328 }
 0x871   :  { %p9781_p1 = scmp.ne.s32.totalorder %s7329_s10, 0 }
 0x873   :  { %7333 = shalt.err (%p9781_p1)  }
 0x874   :  { %7335 = vsyncmov [#allocation3 + $0x2] }
 0x877   :  { %s7336_s1 = vpop.sfrf %7335 }
 0x878   :  { %p9782_p2 = scmp.ne.s32.totalorder %s7336_s1, 0 }
 0x87a   :  { %7340 = shalt.err (%p9782_p2)  }
 0x87b   :  { %7342 = vsyncmov [#allocation3 + $0x3] }
 0x87e   :  { %s7343_s0 = vpop.sfrf %7342 }
 0x87f   :  { %p9783_p3 = scmp.ne.s32.totalorder %s7343_s0, 0 }
 0x881   :  { %7347 = shalt.err (%p9783_p3)  }

</bundles_post_ra>
